<compile_context>
chip_gen: v7x
topology: tpu7x:2x2x1
jax: 0.10.0
libtpu: 0.0.40
codegen_flags: <defaults>
</compile_context>

<pallas_src>
import jax
import jax.numpy as jnp
from jax.experimental import pallas as pl
from jax.experimental.pallas import tpu as pltpu


# ----------------------------------------------------------------------------
# In-kernel helpers
# ----------------------------------------------------------------------------
def _conv3x3_s1_acc(src_ref, w_ref, ho, wo, cin, cout, has_batch_dim):
    """3x3 stride-1 conv from a zero-padded VMEM ref -> (ho*wo, cout) f32 accumulator.

    In-kernel im2col: each of the 9 taps is a shifted unit-stride slice of the padded
    activation; channel mixing is a bf16 MXU matmul with f32 accumulation (or a VPU
    broadcast-multiply when cin == 1, avoiding a degenerate K=1 matmul).
    """
    acc = jnp.zeros((ho * wo, cout), jnp.float32)
    for ih in range(3):
        for iw in range(3):
            if has_batch_dim:
                tap = src_ref[0, ih:ih + ho, iw:iw + wo, :]
            else:
                tap = src_ref[ih:ih + ho, iw:iw + wo, :]
            tap2d = tap.reshape(ho * wo, cin)
            wt = w_ref[ih, iw, :, :]
            if cin == 1:
                acc = acc + tap2d.astype(jnp.float32) * wt.astype(jnp.float32)
            else:
                acc = acc + jnp.dot(tap2d, wt, preferred_element_type=jnp.float32)
    return acc


# ----------------------------------------------------------------------------
# Fused residual-block kernels (one pallas_call per block)
# ----------------------------------------------------------------------------
def _identity_block_c1_kernel(xpad_ref, w1_ref, b1_ref, w2_ref, b2_ref, o_ref, hpad_ref):
    """ResidualIdentity with Cin=Cout=1: pure VPU stencil, weights read as SMEM scalars."""
    _, hp, wp = xpad_ref.shape
    h, w = hp - 2, wp - 2
    # conv1 + bias + ReLU (9 shifted multiply-adds on (h, w) slabs)
    acc1 = jnp.zeros((h, w), jnp.float32)
    for ih in range(3):
        for iw in range(3):
            acc1 = acc1 + (xpad_ref[0, ih:ih + h, iw:iw + w].astype(jnp.float32)
                           * w1_ref[ih * 3 + iw])
    hid = jnp.maximum(acc1 + b1_ref[0], 0.0)
    # zero-pad the intermediate into VMEM scratch (it never leaves VMEM)
    hpad_ref[...] = jnp.zeros_like(hpad_ref)
    hpad_ref[1:1 + h, 1:1 + w] = hid
    # conv2 + bias + residual + ReLU
    acc2 = jnp.zeros((h, w), jnp.float32)
    for ih in range(3):
        for iw in range(3):
            acc2 = acc2 + hpad_ref[ih:ih + h, iw:iw + w] * w2_ref[ih * 3 + iw]
    resid = xpad_ref[0, 1:1 + h, 1:1 + w].astype(jnp.float32)
    out = jnp.maximum(acc2 + b2_ref[0] + resid, 0.0)
    o_ref[...] = out.reshape(1, h, w).astype(o_ref.dtype)


def _identity_block_kernel(xpad_ref, w1_ref, b1_ref, w2_ref, b2_ref, o_ref, hpad_ref):
    """ResidualIdentity, general channel count (MXU matmuls, f32 accumulation)."""
    _, hp, wp, c = xpad_ref.shape
    h, w = hp - 2, wp - 2
    # conv1 + bias + ReLU
    acc1 = _conv3x3_s1_acc(xpad_ref, w1_ref, h, w, c, c, has_batch_dim=True)
    hid = jnp.maximum(acc1 + b1_ref[...], 0.0)                     # (h*w, c) f32
    # intermediate stays in VMEM scratch (bf16, feeds the second matmul)
    hpad_ref[...] = jnp.zeros_like(hpad_ref)
    hpad_ref[1:1 + h, 1:1 + w, :] = hid.reshape(h, w, c).astype(hpad_ref.dtype)
    # conv2 + bias + residual + ReLU
    acc2 = _conv3x3_s1_acc(hpad_ref, w2_ref, h, w, c, c, has_batch_dim=False)
    resid = xpad_ref[0, 1:1 + h, 1:1 + w, :].reshape(h * w, c).astype(jnp.float32)
    out = jnp.maximum(acc2 + b2_ref[...] + resid, 0.0)
    o_ref[...] = out.reshape(1, h * w, c).astype(o_ref.dtype)


def _down_block_kernel(pee_ref, peo_ref, poe_ref, poo_ref,
                       w1_ref, b1_ref, w2_ref, b2_ref, ws_ref, bs_ref,
                       o_ref, hpad_ref):
    """ResidualDownSample: 1x1/s2 skip + 3x3/s2 conv1 + ReLU + 3x3/s1 conv2 + add + ReLU."""
    _, hp2, wp2, cin = pee_ref.shape
    ho, wo = hp2 - 1, wp2 - 1
    cout = o_ref.shape[-1]
    phases = ((pee_ref, peo_ref), (poe_ref, poo_ref))   # [row parity][col parity] of xpad

    # conv1: 3x3 / stride 2 on the (padded) block input.  The wrapper's 2x2 polyphase
    # split turns tap (dh, dw) into a unit-stride slice of phase (dh%2, dw%2):
    #   xpad[2ho+dh, 2wo+dw] == phase[dh%2][dw%2][ho + dh//2, wo + dw//2]
    acc1 = jnp.zeros((ho * wo, cout), jnp.float32)
    for dh in range(3):
        for dw in range(3):
            pref = phases[dh % 2][dw % 2]
            tap = pref[0, dh // 2:dh // 2 + ho, dw // 2:dw // 2 + wo, :]
            tap2d = tap.reshape(ho * wo, cin)
            wt = w1_ref[dh, dw, :, :]
            if cin == 1:
                acc1 = acc1 + tap2d.astype(jnp.float32) * wt.astype(jnp.float32)
            else:
                acc1 = acc1 + jnp.dot(tap2d, wt, preferred_element_type=jnp.float32)
    hid = jnp.maximum(acc1 + b1_ref[...], 0.0)                     # (ho*wo, cout) f32

    # skip: 1x1 / stride 2 reads x at even positions == odd-odd phase of xpad (no ReLU)
    s2d = poo_ref[0, 0:ho, 0:wo, :].reshape(ho * wo, cin)
    ws = ws_ref[0, 0, :, :]
    if cin == 1:
        skip = s2d.astype(jnp.float32) * ws.astype(jnp.float32)
    else:
        skip = jnp.dot(s2d, ws, preferred_element_type=jnp.float32)
    skip = skip + bs_ref[...]

    # conv2: 3x3 / stride 1 on the intermediate, kept in VMEM scratch
    hpad_ref[...] = jnp.zeros_like(hpad_ref)
    hpad_ref[1:1 + ho, 1:1 + wo, :] = hid.reshape(ho, wo, cout).astype(hpad_ref.dtype)
    acc2 = _conv3x3_s1_acc(hpad_ref, w2_ref, ho, wo, cout, cout, has_batch_dim=False)

    out = jnp.maximum(acc2 + b2_ref[...] + skip, 0.0)
    o_ref[...] = out.reshape(1, ho * wo, cout).astype(o_ref.dtype)


# ----------------------------------------------------------------------------
# Block wrappers (one pallas_call each; wrapper ops are layout plumbing only)
# ----------------------------------------------------------------------------
_SMEM_SPEC = pl.BlockSpec(memory_space=pltpu.MemorySpace.SMEM)


def _full_spec(shape):
    return pl.BlockSpec(shape, lambda i: (0,) * len(shape))


def _identity_block_c1(x, p):
    n, h, w, _ = x.shape
    hp, wp = h + 2, w + 2
    xpad = jnp.pad(x[..., 0], ((0, 0), (1, 1), (1, 1)))
    w1 = p["c1"]["w"].reshape(9).astype(jnp.float32)
    b1 = p["c1"]["b"].reshape(1).astype(jnp.float32)
    w2 = p["c2"]["w"].reshape(9).astype(jnp.float32)
    b2 = p["c2"]["b"].reshape(1).astype(jnp.float32)
    out = pl.pallas_call(
        _identity_block_c1_kernel,
        out_shape=jax.ShapeDtypeStruct((n, h, w), x.dtype),
        grid=(n,),
        in_specs=[pl.BlockSpec((1, hp, wp), lambda i: (i, 0, 0)),
                  _SMEM_SPEC, _SMEM_SPEC, _SMEM_SPEC, _SMEM_SPEC],
        out_specs=pl.BlockSpec((1, h, w), lambda i: (i, 0, 0)),
        scratch_shapes=[pltpu.VMEM((hp, wp), jnp.float32)],
        compiler_params=pltpu.CompilerParams(dimension_semantics=("parallel",)),
    )(xpad, w1, b1, w2, b2)
    return out[..., None]          # back to NHWC with C=1


def _identity_block(x, p):
    n, h, w, c = x.shape
    hp, wp = h + 2, w + 2
    xpad = jnp.pad(x, ((0, 0), (1, 1), (1, 1), (0, 0)))
    w1 = p["c1"]["w"].astype(jnp.bfloat16)
    b1 = p["c1"]["b"].reshape(1, c).astype(jnp.float32)
    w2 = p["c2"]["w"].astype(jnp.bfloat16)
    b2 = p["c2"]["b"].reshape(1, c).astype(jnp.float32)
    out = pl.pallas_call(
        _identity_block_kernel,
        out_shape=jax.ShapeDtypeStruct((n, h * w, c), x.dtype),
        grid=(n,),
        in_specs=[pl.BlockSpec((1, hp, wp, c), lambda i: (i, 0, 0, 0)),
                  _full_spec((3, 3, c, c)), _full_spec((1, c)),
                  _full_spec((3, 3, c, c)), _full_spec((1, c))],
        out_specs=pl.BlockSpec((1, h * w, c), lambda i: (i, 0, 0)),
        scratch_shapes=[pltpu.VMEM((hp, wp, c), jnp.bfloat16)],
        compiler_params=pltpu.CompilerParams(dimension_semantics=("parallel",)),
    )(xpad, w1, b1, w2, b2)
    return out.reshape(n, h, w, c)


def _down_block(x, p):
    n, h, w, cin = x.shape
    assert h % 2 == 0 and w % 2 == 0
    ho, wo = h // 2, w // 2
    cout = p["c1"]["w"].shape[-1]
    xpad = jnp.pad(x, ((0, 0), (1, 1), (1, 1), (0, 0)))
    # 2x2 polyphase split of the padded input (total bytes == xpad bytes): makes every
    # stride-2 tap a unit-stride slice inside the kernel (no 9x im2col blow-up in HBM).
    phases = [xpad[:, a::2, b::2, :] for a in range(2) for b in range(2)]   # ee, eo, oe, oo
    w1 = p["c1"]["w"].astype(jnp.bfloat16)
    b1 = p["c1"]["b"].reshape(1, cout).astype(jnp.float32)
    w2 = p["c2"]["w"].astype(jnp.bfloat16)
    b2 = p["c2"]["b"].reshape(1, cout).astype(jnp.float32)
    ws = p["skip"]["w"].astype(jnp.bfloat16)
    bs = p["skip"]["b"].reshape(1, cout).astype(jnp.float32)
    hp2, wp2 = ho + 1, wo + 1
    phase_spec = pl.BlockSpec((1, hp2, wp2, cin), lambda i: (i, 0, 0, 0))
    out = pl.pallas_call(
        _down_block_kernel,
        out_shape=jax.ShapeDtypeStruct((n, ho * wo, cout), x.dtype),
        grid=(n,),
        in_specs=[phase_spec] * 4 + [
            _full_spec((3, 3, cin, cout)), _full_spec((1, cout)),
            _full_spec((3, 3, cout, cout)), _full_spec((1, cout)),
            _full_spec((1, 1, cin, cout)), _full_spec((1, cout))],
        out_specs=pl.BlockSpec((1, ho * wo, cout), lambda i: (i, 0, 0)),
        scratch_shapes=[pltpu.VMEM((ho + 2, wo + 2, cout), jnp.bfloat16)],
        compiler_params=pltpu.CompilerParams(dimension_semantics=("parallel",)),
    )(*phases, w1, b1, w2, b2, ws, bs)
    return out.reshape(n, ho, wo, cout)


# ----------------------------------------------------------------------------
# Parameter init (deterministic) + forward pass
# ----------------------------------------------------------------------------
def _conv_params(key, kh, kw, cin, cout):
    k1, k2 = jax.random.split(key)
    scale = (2.0 / (kh * kw * cin)) ** 0.5
    w = jax.random.normal(k1, (kh, kw, cin, cout), jnp.float32) * scale
    b = jax.random.normal(k2, (cout,), jnp.float32) * 0.01
    return {"w": w, "b": b}


def init_resnet_encoder(key, num_layers, num_inner_layers, use_3d):
    if use_3d:
        # TODO(synk): Conv3d path (ResidualIdentity/DownSample with use_3d=True) not implemented.
        raise NotImplementedError("use_3d=True (Conv3d) path is not implemented")
    start, end = 1, 32
    layers = []
    for _ in range(num_layers):
        for _ in range(num_inner_layers - 1):
            key, k1, k2 = jax.random.split(key, 3)
            layers.append(("identity", {
                "c1": _conv_params(k1, 3, 3, start, start),
                "c2": _conv_params(k2, 3, 3, start, start),
            }))
        key, k1, k2, k3 = jax.random.split(key, 4)
        layers.append(("down", {
            "c1": _conv_params(k1, 3, 3, start, end),    # 3x3 stride 2
            "c2": _conv_params(k2, 3, 3, end, end),      # 3x3 stride 1
            "skip": _conv_params(k3, 1, 1, start, end),  # 1x1 stride 2
        }))
        start, end = end, end * 2
    return layers


def resnet_encoder_forward(x_nchw, layer_params):
    x = jnp.transpose(x_nchw, (0, 2, 3, 1)).astype(jnp.bfloat16)  # NCHW -> NHWC, bf16 activations
    for kind, p in layer_params:
        if kind == "identity":
            if p["c1"]["w"].shape[2] == 1:
                x = _identity_block_c1(x, p)    # VPU stencil special case (start == 1)
            else:
                x = _identity_block(x, p)
        else:
            x = _down_block(x, p)
    return jnp.transpose(x, (0, 3, 1, 2)).astype(jnp.float32)      # NHWC -> NCHW


# ----------------------------------------------------------------------------
# Pure-XLA f32 reference (for a numerical sanity check of the fused kernels)
# ----------------------------------------------------------------------------
def _ref_conv(x, w, b, stride):
    pad = (w.shape[0] - 1) // 2
    out = jax.lax.conv_general_dilated(
        x, w, window_strides=(stride, stride),
        padding=((pad, pad), (pad, pad)),
        dimension_numbers=("NHWC", "HWIO", "NHWC"))
    return out + b.reshape(1, 1, 1, -1)


def resnet_encoder_reference(x_nchw, layer_params):
    x = jnp.transpose(x_nchw, (0, 2, 3, 1)).astype(jnp.float32)
    for kind, p in layer_params:
        if kind == "identity":
            h = jnp.maximum(_ref_conv(x, p["c1"]["w"], p["c1"]["b"], 1), 0.0)
            x = jnp.maximum(_ref_conv(h, p["c2"]["w"], p["c2"]["b"], 1) + x, 0.0)
        else:
            skip = _ref_conv(x, p["skip"]["w"], p["skip"]["b"], 2)
            h = jnp.maximum(_ref_conv(x, p["c1"]["w"], p["c1"]["b"], 2), 0.0)
            x = jnp.maximum(_ref_conv(h, p["c2"]["w"], p["c2"]["b"], 1) + skip, 0.0)
    return jnp.transpose(x, (0, 3, 1, 2))


# ----------------------------------------------------------------------------
if __name__ == "__main__":
    num_layers, num_inner_layers, use_3d = 2, 2, False

    key = jax.random.PRNGKey(0)
    key, pkey, xkey = jax.random.split(key, 3)
    params = init_resnet_encoder(pkey, num_layers, num_inner_layers, use_3d)

    # ResNetEncoder starts at 1 input channel (start=1): NCHW input (2, 1, 16, 16).
    x = jax.random.normal(xkey, (2, 1, 16, 16), jnp.float32)

    fwd = jax.jit(lambda inp: resnet_encoder_forward(inp, params))
    out = jax.block_until_ready(fwd(x))

    expected = (2, 32 * (2 ** (num_layers - 1)),
                16 // (2 ** num_layers), 16 // (2 ** num_layers))
    assert out.shape == expected, (out.shape, expected)
    assert bool(jnp.all(jnp.isfinite(out)))

    # Numerical check vs the pure-XLA f32 reference (kernel path uses bf16 activations/weights,
    # so allow a small, scale-aware tolerance).
    ref = resnet_encoder_reference(x, params)
    max_err = float(jnp.max(jnp.abs(out - ref)))
    tol = 0.05 * float(jnp.max(jnp.abs(ref))) + 0.05
    assert max_err <= tol, (max_err, tol)

    print("KERNEL_OK")
</pallas_src>

<mosaic_0001>
module attributes {stable_mosaic.version = 11 : i64} {
  func.func @_identity_block_c1_kernel(%arg0: i32, %arg1: memref<1x18x18xbf16, #tpu.memory_space<vmem>>, %arg2: memref<9xf32, #tpu.memory_space<smem>>, %arg3: memref<1xf32, #tpu.memory_space<smem>>, %arg4: memref<9xf32, #tpu.memory_space<smem>>, %arg5: memref<1xf32, #tpu.memory_space<smem>>, %arg6: memref<1x16x16xbf16, #tpu.memory_space<vmem>>, %arg7: memref<18x18xf32, #tpu.memory_space<vmem>>) attributes {dimension_semantics = [#tpu.dimension_semantics<parallel>], iteration_bounds = array<i64: 2>, scalar_prefetch = 0 : i64, scratch_operands = 1 : i64, tpu.core_type = #tpu.core_type<tc>, window_params = [{transform_indices = @transform_0, window_bounds = array<i64: 1, 18, 18>}, {transform_indices = @transform_1, window_bounds = array<i64: 9>}, {transform_indices = @transform_2, window_bounds = array<i64: 1>}, {transform_indices = @transform_3, window_bounds = array<i64: 9>}, {transform_indices = @transform_4, window_bounds = array<i64: 1>}, {transform_indices = @transform_5, window_bounds = array<i64: 1, 16, 16>}]} {
    %cst = arith.constant 0.000000e+00 : f32
    %0 = vector.broadcast %cst : f32 to vector<16x16xf32>
    %c0 = arith.constant 0 : index
    %c0_0 = arith.constant 0 : index
    %c0_1 = arith.constant 0 : index
    %1 = vector.load %arg1[%c0, %c0_0, %c0_1] : memref<1x18x18xbf16, #tpu.memory_space<vmem>>, vector<1x16x16xbf16>
    %2 = vector.shape_cast %1 : vector<1x16x16xbf16> to vector<16x16xbf16>
    %3 = arith.extf %2 : vector<16x16xbf16> to vector<16x16xf32>
    %c0_2 = arith.constant 0 : index
    %4 = memref.load %arg2[%c0_2] : memref<9xf32, #tpu.memory_space<smem>>
    %5 = vector.broadcast %4 : f32 to vector<16x16xf32>
    %6 = arith.mulf %3, %5 : vector<16x16xf32>
    %7 = arith.addf %0, %6 : vector<16x16xf32>
    %c0_3 = arith.constant 0 : index
    %c0_4 = arith.constant 0 : index
    %c1 = arith.constant 1 : index
    %8 = vector.load %arg1[%c0_3, %c0_4, %c1] : memref<1x18x18xbf16, #tpu.memory_space<vmem>>, vector<1x16x16xbf16>
    %9 = vector.shape_cast %8 : vector<1x16x16xbf16> to vector<16x16xbf16>
    %10 = arith.extf %9 : vector<16x16xbf16> to vector<16x16xf32>
    %c1_5 = arith.constant 1 : index
    %11 = memref.load %arg2[%c1_5] : memref<9xf32, #tpu.memory_space<smem>>
    %12 = vector.broadcast %11 : f32 to vector<16x16xf32>
    %13 = arith.mulf %10, %12 : vector<16x16xf32>
    %14 = arith.addf %7, %13 : vector<16x16xf32>
    %c0_6 = arith.constant 0 : index
    %c0_7 = arith.constant 0 : index
    %c2 = arith.constant 2 : index
    %15 = vector.load %arg1[%c0_6, %c0_7, %c2] : memref<1x18x18xbf16, #tpu.memory_space<vmem>>, vector<1x16x16xbf16>
    %16 = vector.shape_cast %15 : vector<1x16x16xbf16> to vector<16x16xbf16>
    %17 = arith.extf %16 : vector<16x16xbf16> to vector<16x16xf32>
    %c2_8 = arith.constant 2 : index
    %18 = memref.load %arg2[%c2_8] : memref<9xf32, #tpu.memory_space<smem>>
    %19 = vector.broadcast %18 : f32 to vector<16x16xf32>
    %20 = arith.mulf %17, %19 : vector<16x16xf32>
    %21 = arith.addf %14, %20 : vector<16x16xf32>
    %c0_9 = arith.constant 0 : index
    %c1_10 = arith.constant 1 : index
    %c0_11 = arith.constant 0 : index
    %22 = vector.load %arg1[%c0_9, %c1_10, %c0_11] : memref<1x18x18xbf16, #tpu.memory_space<vmem>>, vector<1x16x16xbf16>
    %23 = vector.shape_cast %22 : vector<1x16x16xbf16> to vector<16x16xbf16>
    %24 = arith.extf %23 : vector<16x16xbf16> to vector<16x16xf32>
    %c3 = arith.constant 3 : index
    %25 = memref.load %arg2[%c3] : memref<9xf32, #tpu.memory_space<smem>>
    %26 = vector.broadcast %25 : f32 to vector<16x16xf32>
    %27 = arith.mulf %24, %26 : vector<16x16xf32>
    %28 = arith.addf %21, %27 : vector<16x16xf32>
    %c0_12 = arith.constant 0 : index
    %c1_13 = arith.constant 1 : index
    %c1_14 = arith.constant 1 : index
    %29 = vector.load %arg1[%c0_12, %c1_13, %c1_14] : memref<1x18x18xbf16, #tpu.memory_space<vmem>>, vector<1x16x16xbf16>
    %30 = vector.shape_cast %29 : vector<1x16x16xbf16> to vector<16x16xbf16>
    %31 = arith.extf %30 : vector<16x16xbf16> to vector<16x16xf32>
    %c4 = arith.constant 4 : index
    %32 = memref.load %arg2[%c4] : memref<9xf32, #tpu.memory_space<smem>>
    %33 = vector.broadcast %32 : f32 to vector<16x16xf32>
    %34 = arith.mulf %31, %33 : vector<16x16xf32>
    %35 = arith.addf %28, %34 : vector<16x16xf32>
    %c0_15 = arith.constant 0 : index
    %c1_16 = arith.constant 1 : index
    %c2_17 = arith.constant 2 : index
    %36 = vector.load %arg1[%c0_15, %c1_16, %c2_17] : memref<1x18x18xbf16, #tpu.memory_space<vmem>>, vector<1x16x16xbf16>
    %37 = vector.shape_cast %36 : vector<1x16x16xbf16> to vector<16x16xbf16>
    %38 = arith.extf %37 : vector<16x16xbf16> to vector<16x16xf32>
    %c5 = arith.constant 5 : index
    %39 = memref.load %arg2[%c5] : memref<9xf32, #tpu.memory_space<smem>>
    %40 = vector.broadcast %39 : f32 to vector<16x16xf32>
    %41 = arith.mulf %38, %40 : vector<16x16xf32>
    %42 = arith.addf %35, %41 : vector<16x16xf32>
    %c0_18 = arith.constant 0 : index
    %c2_19 = arith.constant 2 : index
    %c0_20 = arith.constant 0 : index
    %43 = vector.load %arg1[%c0_18, %c2_19, %c0_20] : memref<1x18x18xbf16, #tpu.memory_space<vmem>>, vector<1x16x16xbf16>
    %44 = vector.shape_cast %43 : vector<1x16x16xbf16> to vector<16x16xbf16>
    %45 = arith.extf %44 : vector<16x16xbf16> to vector<16x16xf32>
    %c6 = arith.constant 6 : index
    %46 = memref.load %arg2[%c6] : memref<9xf32, #tpu.memory_space<smem>>
    %47 = vector.broadcast %46 : f32 to vector<16x16xf32>
    %48 = arith.mulf %45, %47 : vector<16x16xf32>
    %49 = arith.addf %42, %48 : vector<16x16xf32>
    %c0_21 = arith.constant 0 : index
    %c2_22 = arith.constant 2 : index
    %c1_23 = arith.constant 1 : index
    %50 = vector.load %arg1[%c0_21, %c2_22, %c1_23] : memref<1x18x18xbf16, #tpu.memory_space<vmem>>, vector<1x16x16xbf16>
    %51 = vector.shape_cast %50 : vector<1x16x16xbf16> to vector<16x16xbf16>
    %52 = arith.extf %51 : vector<16x16xbf16> to vector<16x16xf32>
    %c7 = arith.constant 7 : index
    %53 = memref.load %arg2[%c7] : memref<9xf32, #tpu.memory_space<smem>>
    %54 = vector.broadcast %53 : f32 to vector<16x16xf32>
    %55 = arith.mulf %52, %54 : vector<16x16xf32>
    %56 = arith.addf %49, %55 : vector<16x16xf32>
    %c0_24 = arith.constant 0 : index
    %c2_25 = arith.constant 2 : index
    %c2_26 = arith.constant 2 : index
    %57 = vector.load %arg1[%c0_24, %c2_25, %c2_26] : memref<1x18x18xbf16, #tpu.memory_space<vmem>>, vector<1x16x16xbf16>
    %58 = vector.shape_cast %57 : vector<1x16x16xbf16> to vector<16x16xbf16>
    %59 = arith.extf %58 : vector<16x16xbf16> to vector<16x16xf32>
    %c8 = arith.constant 8 : index
    %60 = memref.load %arg2[%c8] : memref<9xf32, #tpu.memory_space<smem>>
    %61 = vector.broadcast %60 : f32 to vector<16x16xf32>
    %62 = arith.mulf %59, %61 : vector<16x16xf32>
    %63 = arith.addf %56, %62 : vector<16x16xf32>
    %c0_27 = arith.constant 0 : index
    %64 = memref.load %arg3[%c0_27] : memref<1xf32, #tpu.memory_space<smem>>
    %65 = vector.broadcast %64 : f32 to vector<16x16xf32>
    %66 = arith.addf %63, %65 : vector<16x16xf32>
    %cst_28 = arith.constant 0.000000e+00 : f32
    %67 = vector.broadcast %cst_28 : f32 to vector<16x16xf32>
    %68 = arith.maximumf %66, %67 : vector<16x16xf32>
    %cst_29 = arith.constant 0.000000e+00 : f32
    %69 = vector.broadcast %cst_29 : f32 to vector<18x18xf32>
    %c0_30 = arith.constant 0 : index
    %c0_31 = arith.constant 0 : index
    %70 = vector.load %arg7[%c0_30, %c0_31] : memref<18x18xf32, #tpu.memory_space<vmem>>, vector<18x18xf32>
    tpu.vector_store %arg7[%c0_30, %c0_31], %69 {strides = array<i32>} : memref<18x18xf32, #tpu.memory_space<vmem>>, vector<18x18xf32>,
    %c1_32 = arith.constant 1 : index
    %c1_33 = arith.constant 1 : index
    %71 = vector.load %arg7[%c1_32, %c1_33] : memref<18x18xf32, #tpu.memory_space<vmem>>, vector<16x16xf32>
    tpu.vector_store %arg7[%c1_32, %c1_33], %68 {strides = array<i32>} : memref<18x18xf32, #tpu.memory_space<vmem>>, vector<16x16xf32>,
    %cst_34 = arith.constant 0.000000e+00 : f32
    %72 = vector.broadcast %cst_34 : f32 to vector<16x16xf32>
    %c0_35 = arith.constant 0 : index
    %c0_36 = arith.constant 0 : index
    %73 = vector.load %arg7[%c0_35, %c0_36] : memref<18x18xf32, #tpu.memory_space<vmem>>, vector<16x16xf32>
    %c0_37 = arith.constant 0 : index
    %74 = memref.load %arg4[%c0_37] : memref<9xf32, #tpu.memory_space<smem>>
    %75 = vector.broadcast %74 : f32 to vector<16x16xf32>
    %76 = arith.mulf %73, %75 : vector<16x16xf32>
    %77 = arith.addf %72, %76 : vector<16x16xf32>
    %c0_38 = arith.constant 0 : index
    %c1_39 = arith.constant 1 : index
    %78 = vector.load %arg7[%c0_38, %c1_39] : memref<18x18xf32, #tpu.memory_space<vmem>>, vector<16x16xf32>
    %c1_40 = arith.constant 1 : index
    %79 = memref.load %arg4[%c1_40] : memref<9xf32, #tpu.memory_space<smem>>
    %80 = vector.broadcast %79 : f32 to vector<16x16xf32>
    %81 = arith.mulf %78, %80 : vector<16x16xf32>
    %82 = arith.addf %77, %81 : vector<16x16xf32>
    %c0_41 = arith.constant 0 : index
    %c2_42 = arith.constant 2 : index
    %83 = vector.load %arg7[%c0_41, %c2_42] : memref<18x18xf32, #tpu.memory_space<vmem>>, vector<16x16xf32>
    %c2_43 = arith.constant 2 : index
    %84 = memref.load %arg4[%c2_43] : memref<9xf32, #tpu.memory_space<smem>>
    %85 = vector.broadcast %84 : f32 to vector<16x16xf32>
    %86 = arith.mulf %83, %85 : vector<16x16xf32>
    %87 = arith.addf %82, %86 : vector<16x16xf32>
    %c1_44 = arith.constant 1 : index
    %c0_45 = arith.constant 0 : index
    %88 = vector.load %arg7[%c1_44, %c0_45] : memref<18x18xf32, #tpu.memory_space<vmem>>, vector<16x16xf32>
    %c3_46 = arith.constant 3 : index
    %89 = memref.load %arg4[%c3_46] : memref<9xf32, #tpu.memory_space<smem>>
    %90 = vector.broadcast %89 : f32 to vector<16x16xf32>
    %91 = arith.mulf %88, %90 : vector<16x16xf32>
    %92 = arith.addf %87, %91 : vector<16x16xf32>
    %c1_47 = arith.constant 1 : index
    %c1_48 = arith.constant 1 : index
    %93 = vector.load %arg7[%c1_47, %c1_48] : memref<18x18xf32, #tpu.memory_space<vmem>>, vector<16x16xf32>
    %c4_49 = arith.constant 4 : index
    %94 = memref.load %arg4[%c4_49] : memref<9xf32, #tpu.memory_space<smem>>
    %95 = vector.broadcast %94 : f32 to vector<16x16xf32>
    %96 = arith.mulf %93, %95 : vector<16x16xf32>
    %97 = arith.addf %92, %96 : vector<16x16xf32>
    %c1_50 = arith.constant 1 : index
    %c2_51 = arith.constant 2 : index
    %98 = vector.load %arg7[%c1_50, %c2_51] : memref<18x18xf32, #tpu.memory_space<vmem>>, vector<16x16xf32>
    %c5_52 = arith.constant 5 : index
    %99 = memref.load %arg4[%c5_52] : memref<9xf32, #tpu.memory_space<smem>>
    %100 = vector.broadcast %99 : f32 to vector<16x16xf32>
    %101 = arith.mulf %98, %100 : vector<16x16xf32>
    %102 = arith.addf %97, %101 : vector<16x16xf32>
    %c2_53 = arith.constant 2 : index
    %c0_54 = arith.constant 0 : index
    %103 = vector.load %arg7[%c2_53, %c0_54] : memref<18x18xf32, #tpu.memory_space<vmem>>, vector<16x16xf32>
    %c6_55 = arith.constant 6 : index
    %104 = memref.load %arg4[%c6_55] : memref<9xf32, #tpu.memory_space<smem>>
    %105 = vector.broadcast %104 : f32 to vector<16x16xf32>
    %106 = arith.mulf %103, %105 : vector<16x16xf32>
    %107 = arith.addf %102, %106 : vector<16x16xf32>
    %c2_56 = arith.constant 2 : index
    %c1_57 = arith.constant 1 : index
    %108 = vector.load %arg7[%c2_56, %c1_57] : memref<18x18xf32, #tpu.memory_space<vmem>>, vector<16x16xf32>
    %c7_58 = arith.constant 7 : index
    %109 = memref.load %arg4[%c7_58] : memref<9xf32, #tpu.memory_space<smem>>
    %110 = vector.broadcast %109 : f32 to vector<16x16xf32>
    %111 = arith.mulf %108, %110 : vector<16x16xf32>
    %112 = arith.addf %107, %111 : vector<16x16xf32>
    %c2_59 = arith.constant 2 : index
    %c2_60 = arith.constant 2 : index
    %113 = vector.load %arg7[%c2_59, %c2_60] : memref<18x18xf32, #tpu.memory_space<vmem>>, vector<16x16xf32>
    %c8_61 = arith.constant 8 : index
    %114 = memref.load %arg4[%c8_61] : memref<9xf32, #tpu.memory_space<smem>>
    %115 = vector.broadcast %114 : f32 to vector<16x16xf32>
    %116 = arith.mulf %113, %115 : vector<16x16xf32>
    %117 = arith.addf %112, %116 : vector<16x16xf32>
    %c0_62 = arith.constant 0 : index
    %c1_63 = arith.constant 1 : index
    %c1_64 = arith.constant 1 : index
    %118 = vector.load %arg1[%c0_62, %c1_63, %c1_64] : memref<1x18x18xbf16, #tpu.memory_space<vmem>>, vector<1x16x16xbf16>
    %119 = vector.shape_cast %118 : vector<1x16x16xbf16> to vector<16x16xbf16>
    %120 = arith.extf %119 : vector<16x16xbf16> to vector<16x16xf32>
    %c0_65 = arith.constant 0 : index
    %121 = memref.load %arg5[%c0_65] : memref<1xf32, #tpu.memory_space<smem>>
    %122 = vector.broadcast %121 : f32 to vector<16x16xf32>
    %123 = arith.addf %117, %122 : vector<16x16xf32>
    %124 = arith.addf %123, %120 : vector<16x16xf32>
    %cst_66 = arith.constant 0.000000e+00 : f32
    %125 = vector.broadcast %cst_66 : f32 to vector<16x16xf32>
    %126 = arith.maximumf %124, %125 : vector<16x16xf32>
    %127 = vector.shape_cast %126 : vector<16x16xf32> to vector<1x16x16xf32>
    %128 = arith.truncf %127 : vector<1x16x16xf32> to vector<1x16x16xbf16>
    %c0_67 = arith.constant 0 : index
    %c0_68 = arith.constant 0 : index
    %c0_69 = arith.constant 0 : index
    %129 = vector.load %arg6[%c0_67, %c0_68, %c0_69] : memref<1x16x16xbf16, #tpu.memory_space<vmem>>, vector<1x16x16xbf16>
    tpu.vector_store %arg6[%c0_67, %c0_68, %c0_69], %128 {strides = array<i32>} : memref<1x16x16xbf16, #tpu.memory_space<vmem>>, vector<1x16x16xbf16>,
    return
  }
  func.func @transform_0(%arg0: i32) -> (i32, i32, i32) {
    %c0_i32 = arith.constant 0 : i32
    %c0_i32_0 = arith.constant 0 : i32
    %c0_i32_1 = arith.constant 0 : i32
    return %arg0, %c0_i32, %c0_i32_0 : i32, i32, i32
  }
  func.func @transform_1(%arg0: i32) -> i32 {
    %c0_i32 = arith.constant 0 : i32
    %c0_i32_0 = arith.constant 0 : i32
    return %c0_i32 : i32
  }
  func.func @transform_2(%arg0: i32) -> i32 {
    %c0_i32 = arith.constant 0 : i32
    %c0_i32_0 = arith.constant 0 : i32
    return %c0_i32 : i32
  }
  func.func @transform_3(%arg0: i32) -> i32 {
    %c0_i32 = arith.constant 0 : i32
    %c0_i32_0 = arith.constant 0 : i32
    return %c0_i32 : i32
  }
  func.func @transform_4(%arg0: i32) -> i32 {
    %c0_i32 = arith.constant 0 : i32
    %c0_i32_0 = arith.constant 0 : i32
    return %c0_i32 : i32
  }
  func.func @transform_5(%arg0: i32) -> (i32, i32, i32) {
    %c0_i32 = arith.constant 0 : i32
    %c0_i32_0 = arith.constant 0 : i32
    %c0_i32_1 = arith.constant 0 : i32
    return %arg0, %c0_i32, %c0_i32_0 : i32, i32, i32
  }
}

module attributes {stable_mosaic.version = 11 : i64} {
  func.func @_down_block_kernel(%arg0: i32, %arg1: memref<1x9x9x1xbf16, #tpu.memory_space<vmem>>, %arg2: memref<1x9x9x1xbf16, #tpu.memory_space<vmem>>, %arg3: memref<1x9x9x1xbf16, #tpu.memory_space<vmem>>, %arg4: memref<1x9x9x1xbf16, #tpu.memory_space<vmem>>, %arg5: memref<3x3x1x32xbf16, #tpu.memory_space<vmem>>, %arg6: memref<1x32xf32, #tpu.memory_space<vmem>>, %arg7: memref<3x3x32x32xbf16, #tpu.memory_space<vmem>>, %arg8: memref<1x32xf32, #tpu.memory_space<vmem>>, %arg9: memref<1x1x1x32xbf16, #tpu.memory_space<vmem>>, %arg10: memref<1x32xf32, #tpu.memory_space<vmem>>, %arg11: memref<1x64x32xbf16, #tpu.memory_space<vmem>>, %arg12: memref<10x10x32xbf16, #tpu.memory_space<vmem>>) attributes {dimension_semantics = [#tpu.dimension_semantics<parallel>], iteration_bounds = array<i64: 2>, scalar_prefetch = 0 : i64, scratch_operands = 1 : i64, tpu.core_type = #tpu.core_type<tc>, window_params = [{transform_indices = @transform_0, window_bounds = array<i64: 1, 9, 9, 1>}, {transform_indices = @transform_1, window_bounds = array<i64: 1, 9, 9, 1>}, {transform_indices = @transform_2, window_bounds = array<i64: 1, 9, 9, 1>}, {transform_indices = @transform_3, window_bounds = array<i64: 1, 9, 9, 1>}, {pipeline_mode = #tpu.pipeline_mode<synchronous>, transform_indices = @transform_4, window_bounds = array<i64: 3, 3, 1, 32>}, {pipeline_mode = #tpu.pipeline_mode<synchronous>, transform_indices = @transform_5, window_bounds = array<i64: 1, 32>}, {pipeline_mode = #tpu.pipeline_mode<synchronous>, transform_indices = @transform_6, window_bounds = array<i64: 3, 3, 32, 32>}, {pipeline_mode = #tpu.pipeline_mode<synchronous>, transform_indices = @transform_7, window_bounds = array<i64: 1, 32>}, {pipeline_mode = #tpu.pipeline_mode<synchronous>, transform_indices = @transform_8, window_bounds = array<i64: 1, 1, 1, 32>}, {pipeline_mode = #tpu.pipeline_mode<synchronous>, transform_indices = @transform_9, window_bounds = array<i64: 1, 32>}, {transform_indices = @transform_10, window_bounds = array<i64: 1, 64, 32>}]} {
    %cst = arith.constant 0.000000e+00 : f32
    %0 = vector.broadcast %cst : f32 to vector<64x32xf32>
    %c0 = arith.constant 0 : index
    %c0_0 = arith.constant 0 : index
    %c0_1 = arith.constant 0 : index
    %c0_2 = arith.constant 0 : index
    %1 = vector.load %arg1[%c0, %c0_0, %c0_1, %c0_2] : memref<1x9x9x1xbf16, #tpu.memory_space<vmem>>, vector<1x8x8x1xbf16>
    %2 = vector.shape_cast %1 : vector<1x8x8x1xbf16> to vector<8x8x1xbf16>
    %3 = vector.shape_cast %2 : vector<8x8x1xbf16> to vector<64x1xbf16>
    %c0_3 = arith.constant 0 : index
    %c0_4 = arith.constant 0 : index
    %c0_5 = arith.constant 0 : index
    %c0_6 = arith.constant 0 : index
    %4 = vector.load %arg5[%c0_3, %c0_4, %c0_5, %c0_6] : memref<3x3x1x32xbf16, #tpu.memory_space<vmem>>, vector<1x1x1x32xbf16>
    %5 = vector.shape_cast %4 : vector<1x1x1x32xbf16> to vector<1x32xbf16>
    %6 = arith.extf %3 : vector<64x1xbf16> to vector<64x1xf32>
    %7 = arith.extf %5 : vector<1x32xbf16> to vector<1x32xf32>
    %8 = vector.broadcast %6 : vector<64x1xf32> to vector<64x32xf32>
    %9 = vector.broadcast %7 : vector<1x32xf32> to vector<64x32xf32>
    %10 = arith.mulf %8, %9 : vector<64x32xf32>
    %11 = arith.addf %0, %10 : vector<64x32xf32>
    %c0_7 = arith.constant 0 : index
    %c0_8 = arith.constant 0 : index
    %c0_9 = arith.constant 0 : index
    %c0_10 = arith.constant 0 : index
    %12 = vector.load %arg2[%c0_7, %c0_8, %c0_9, %c0_10] : memref<1x9x9x1xbf16, #tpu.memory_space<vmem>>, vector<1x8x8x1xbf16>
    %13 = vector.shape_cast %12 : vector<1x8x8x1xbf16> to vector<8x8x1xbf16>
    %14 = vector.shape_cast %13 : vector<8x8x1xbf16> to vector<64x1xbf16>
    %c0_11 = arith.constant 0 : index
    %c1 = arith.constant 1 : index
    %c0_12 = arith.constant 0 : index
    %c0_13 = arith.constant 0 : index
    %15 = vector.load %arg5[%c0_11, %c1, %c0_12, %c0_13] : memref<3x3x1x32xbf16, #tpu.memory_space<vmem>>, vector<1x1x1x32xbf16>
    %16 = vector.shape_cast %15 : vector<1x1x1x32xbf16> to vector<1x32xbf16>
    %17 = arith.extf %14 : vector<64x1xbf16> to vector<64x1xf32>
    %18 = arith.extf %16 : vector<1x32xbf16> to vector<1x32xf32>
    %19 = vector.broadcast %17 : vector<64x1xf32> to vector<64x32xf32>
    %20 = vector.broadcast %18 : vector<1x32xf32> to vector<64x32xf32>
    %21 = arith.mulf %19, %20 : vector<64x32xf32>
    %22 = arith.addf %11, %21 : vector<64x32xf32>
    %c0_14 = arith.constant 0 : index
    %c0_15 = arith.constant 0 : index
    %c1_16 = arith.constant 1 : index
    %c0_17 = arith.constant 0 : index
    %23 = vector.load %arg1[%c0_14, %c0_15, %c1_16, %c0_17] : memref<1x9x9x1xbf16, #tpu.memory_space<vmem>>, vector<1x8x8x1xbf16>
    %24 = vector.shape_cast %23 : vector<1x8x8x1xbf16> to vector<8x8x1xbf16>
    %25 = vector.shape_cast %24 : vector<8x8x1xbf16> to vector<64x1xbf16>
    %c0_18 = arith.constant 0 : index
    %c2 = arith.constant 2 : index
    %c0_19 = arith.constant 0 : index
    %c0_20 = arith.constant 0 : index
    %26 = vector.load %arg5[%c0_18, %c2, %c0_19, %c0_20] : memref<3x3x1x32xbf16, #tpu.memory_space<vmem>>, vector<1x1x1x32xbf16>
    %27 = vector.shape_cast %26 : vector<1x1x1x32xbf16> to vector<1x32xbf16>
    %28 = arith.extf %25 : vector<64x1xbf16> to vector<64x1xf32>
    %29 = arith.extf %27 : vector<1x32xbf16> to vector<1x32xf32>
    %30 = vector.broadcast %28 : vector<64x1xf32> to vector<64x32xf32>
    %31 = vector.broadcast %29 : vector<1x32xf32> to vector<64x32xf32>
    %32 = arith.mulf %30, %31 : vector<64x32xf32>
    %33 = arith.addf %22, %32 : vector<64x32xf32>
    %c0_21 = arith.constant 0 : index
    %c0_22 = arith.constant 0 : index
    %c0_23 = arith.constant 0 : index
    %c0_24 = arith.constant 0 : index
    %34 = vector.load %arg3[%c0_21, %c0_22, %c0_23, %c0_24] : memref<1x9x9x1xbf16, #tpu.memory_space<vmem>>, vector<1x8x8x1xbf16>
    %35 = vector.shape_cast %34 : vector<1x8x8x1xbf16> to vector<8x8x1xbf16>
    %36 = vector.shape_cast %35 : vector<8x8x1xbf16> to vector<64x1xbf16>
    %c1_25 = arith.constant 1 : index
    %c0_26 = arith.constant 0 : index
    %c0_27 = arith.constant 0 : index
    %c0_28 = arith.constant 0 : index
    %37 = vector.load %arg5[%c1_25, %c0_26, %c0_27, %c0_28] : memref<3x3x1x32xbf16, #tpu.memory_space<vmem>>, vector<1x1x1x32xbf16>
    %38 = vector.shape_cast %37 : vector<1x1x1x32xbf16> to vector<1x32xbf16>
    %39 = arith.extf %36 : vector<64x1xbf16> to vector<64x1xf32>
    %40 = arith.extf %38 : vector<1x32xbf16> to vector<1x32xf32>
    %41 = vector.broadcast %39 : vector<64x1xf32> to vector<64x32xf32>
    %42 = vector.broadcast %40 : vector<1x32xf32> to vector<64x32xf32>
    %43 = arith.mulf %41, %42 : vector<64x32xf32>
    %44 = arith.addf %33, %43 : vector<64x32xf32>
    %c0_29 = arith.constant 0 : index
    %c0_30 = arith.constant 0 : index
    %c0_31 = arith.constant 0 : index
    %c0_32 = arith.constant 0 : index
    %45 = vector.load %arg4[%c0_29, %c0_30, %c0_31, %c0_32] : memref<1x9x9x1xbf16, #tpu.memory_space<vmem>>, vector<1x8x8x1xbf16>
    %46 = vector.shape_cast %45 : vector<1x8x8x1xbf16> to vector<8x8x1xbf16>
    %47 = vector.shape_cast %46 : vector<8x8x1xbf16> to vector<64x1xbf16>
    %c1_33 = arith.constant 1 : index
    %c1_34 = arith.constant 1 : index
    %c0_35 = arith.constant 0 : index
    %c0_36 = arith.constant 0 : index
    %48 = vector.load %arg5[%c1_33, %c1_34, %c0_35, %c0_36] : memref<3x3x1x32xbf16, #tpu.memory_space<vmem>>, vector<1x1x1x32xbf16>
    %49 = vector.shape_cast %48 : vector<1x1x1x32xbf16> to vector<1x32xbf16>
    %50 = arith.extf %47 : vector<64x1xbf16> to vector<64x1xf32>
    %51 = arith.extf %49 : vector<1x32xbf16> to vector<1x32xf32>
    %52 = vector.broadcast %50 : vector<64x1xf32> to vector<64x32xf32>
    %53 = vector.broadcast %51 : vector<1x32xf32> to vector<64x32xf32>
    %54 = arith.mulf %52, %53 : vector<64x32xf32>
    %55 = arith.addf %44, %54 : vector<64x32xf32>
    %c0_37 = arith.constant 0 : index
    %c0_38 = arith.constant 0 : index
    %c1_39 = arith.constant 1 : index
    %c0_40 = arith.constant 0 : index
    %56 = vector.load %arg3[%c0_37, %c0_38, %c1_39, %c0_40] : memref<1x9x9x1xbf16, #tpu.memory_space<vmem>>, vector<1x8x8x1xbf16>
    %57 = vector.shape_cast %56 : vector<1x8x8x1xbf16> to vector<8x8x1xbf16>
    %58 = vector.shape_cast %57 : vector<8x8x1xbf16> to vector<64x1xbf16>
    %c1_41 = arith.constant 1 : index
    %c2_42 = arith.constant 2 : index
    %c0_43 = arith.constant 0 : index
    %c0_44 = arith.constant 0 : index
    %59 = vector.load %arg5[%c1_41, %c2_42, %c0_43, %c0_44] : memref<3x3x1x32xbf16, #tpu.memory_space<vmem>>, vector<1x1x1x32xbf16>
    %60 = vector.shape_cast %59 : vector<1x1x1x32xbf16> to vector<1x32xbf16>
    %61 = arith.extf %58 : vector<64x1xbf16> to vector<64x1xf32>
    %62 = arith.extf %60 : vector<1x32xbf16> to vector<1x32xf32>
    %63 = vector.broadcast %61 : vector<64x1xf32> to vector<64x32xf32>
    %64 = vector.broadcast %62 : vector<1x32xf32> to vector<64x32xf32>
    %65 = arith.mulf %63, %64 : vector<64x32xf32>
    %66 = arith.addf %55, %65 : vector<64x32xf32>
    %c0_45 = arith.constant 0 : index
    %c1_46 = arith.constant 1 : index
    %c0_47 = arith.constant 0 : index
    %c0_48 = arith.constant 0 : index
    %67 = vector.load %arg1[%c0_45, %c1_46, %c0_47, %c0_48] : memref<1x9x9x1xbf16, #tpu.memory_space<vmem>>, vector<1x8x8x1xbf16>
    %68 = vector.shape_cast %67 : vector<1x8x8x1xbf16> to vector<8x8x1xbf16>
    %69 = vector.shape_cast %68 : vector<8x8x1xbf16> to vector<64x1xbf16>
    %c2_49 = arith.constant 2 : index
    %c0_50 = arith.constant 0 : index
    %c0_51 = arith.constant 0 : index
    %c0_52 = arith.constant 0 : index
    %70 = vector.load %arg5[%c2_49, %c0_50, %c0_51, %c0_52] : memref<3x3x1x32xbf16, #tpu.memory_space<vmem>>, vector<1x1x1x32xbf16>
    %71 = vector.shape_cast %70 : vector<1x1x1x32xbf16> to vector<1x32xbf16>
    %72 = arith.extf %69 : vector<64x1xbf16> to vector<64x1xf32>
    %73 = arith.extf %71 : vector<1x32xbf16> to vector<1x32xf32>
    %74 = vector.broadcast %72 : vector<64x1xf32> to vector<64x32xf32>
    %75 = vector.broadcast %73 : vector<1x32xf32> to vector<64x32xf32>
    %76 = arith.mulf %74, %75 : vector<64x32xf32>
    %77 = arith.addf %66, %76 : vector<64x32xf32>
    %c0_53 = arith.constant 0 : index
    %c1_54 = arith.constant 1 : index
    %c0_55 = arith.constant 0 : index
    %c0_56 = arith.constant 0 : index
    %78 = vector.load %arg2[%c0_53, %c1_54, %c0_55, %c0_56] : memref<1x9x9x1xbf16, #tpu.memory_space<vmem>>, vector<1x8x8x1xbf16>
    %79 = vector.shape_cast %78 : vector<1x8x8x1xbf16> to vector<8x8x1xbf16>
    %80 = vector.shape_cast %79 : vector<8x8x1xbf16> to vector<64x1xbf16>
    %c2_57 = arith.constant 2 : index
    %c1_58 = arith.constant 1 : index
    %c0_59 = arith.constant 0 : index
    %c0_60 = arith.constant 0 : index
    %81 = vector.load %arg5[%c2_57, %c1_58, %c0_59, %c0_60] : memref<3x3x1x32xbf16, #tpu.memory_space<vmem>>, vector<1x1x1x32xbf16>
    %82 = vector.shape_cast %81 : vector<1x1x1x32xbf16> to vector<1x32xbf16>
    %83 = arith.extf %80 : vector<64x1xbf16> to vector<64x1xf32>
    %84 = arith.extf %82 : vector<1x32xbf16> to vector<1x32xf32>
    %85 = vector.broadcast %83 : vector<64x1xf32> to vector<64x32xf32>
    %86 = vector.broadcast %84 : vector<1x32xf32> to vector<64x32xf32>
    %87 = arith.mulf %85, %86 : vector<64x32xf32>
    %88 = arith.addf %77, %87 : vector<64x32xf32>
    %c0_61 = arith.constant 0 : index
    %c1_62 = arith.constant 1 : index
    %c1_63 = arith.constant 1 : index
    %c0_64 = arith.constant 0 : index
    %89 = vector.load %arg1[%c0_61, %c1_62, %c1_63, %c0_64] : memref<1x9x9x1xbf16, #tpu.memory_space<vmem>>, vector<1x8x8x1xbf16>
    %90 = vector.shape_cast %89 : vector<1x8x8x1xbf16> to vector<8x8x1xbf16>
    %91 = vector.shape_cast %90 : vector<8x8x1xbf16> to vector<64x1xbf16>
    %c2_65 = arith.constant 2 : index
    %c2_66 = arith.constant 2 : index
    %c0_67 = arith.constant 0 : index
    %c0_68 = arith.constant 0 : index
    %92 = vector.load %arg5[%c2_65, %c2_66, %c0_67, %c0_68] : memref<3x3x1x32xbf16, #tpu.memory_space<vmem>>, vector<1x1x1x32xbf16>
    %93 = vector.shape_cast %92 : vector<1x1x1x32xbf16> to vector<1x32xbf16>
    %94 = arith.extf %91 : vector<64x1xbf16> to vector<64x1xf32>
    %95 = arith.extf %93 : vector<1x32xbf16> to vector<1x32xf32>
    %96 = vector.broadcast %94 : vector<64x1xf32> to vector<64x32xf32>
    %97 = vector.broadcast %95 : vector<1x32xf32> to vector<64x32xf32>
    %98 = arith.mulf %96, %97 : vector<64x32xf32>
    %99 = arith.addf %88, %98 : vector<64x32xf32>
    %c0_69 = arith.constant 0 : index
    %c0_70 = arith.constant 0 : index
    %100 = vector.load %arg6[%c0_69, %c0_70] : memref<1x32xf32, #tpu.memory_space<vmem>>, vector<1x32xf32>
    %101 = vector.broadcast %100 : vector<1x32xf32> to vector<64x32xf32>
    %102 = arith.addf %99, %101 : vector<64x32xf32>
    %cst_71 = arith.constant 0.000000e+00 : f32
    %103 = vector.broadcast %cst_71 : f32 to vector<64x32xf32>
    %104 = arith.maximumf %102, %103 : vector<64x32xf32>
    %c0_72 = arith.constant 0 : index
    %c0_73 = arith.constant 0 : index
    %c0_74 = arith.constant 0 : index
    %c0_75 = arith.constant 0 : index
    %105 = vector.load %arg4[%c0_72, %c0_73, %c0_74, %c0_75] : memref<1x9x9x1xbf16, #tpu.memory_space<vmem>>, vector<1x8x8x1xbf16>
    %106 = vector.shape_cast %105 : vector<1x8x8x1xbf16> to vector<8x8x1xbf16>
    %107 = vector.shape_cast %106 : vector<8x8x1xbf16> to vector<64x1xbf16>
    %c0_76 = arith.constant 0 : index
    %c0_77 = arith.constant 0 : index
    %c0_78 = arith.constant 0 : index
    %c0_79 = arith.constant 0 : index
    %108 = vector.load %arg9[%c0_76, %c0_77, %c0_78, %c0_79] : memref<1x1x1x32xbf16, #tpu.memory_space<vmem>>, vector<1x1x1x32xbf16>
    %109 = vector.shape_cast %108 : vector<1x1x1x32xbf16> to vector<1x32xbf16>
    %110 = arith.extf %107 : vector<64x1xbf16> to vector<64x1xf32>
    %111 = arith.extf %109 : vector<1x32xbf16> to vector<1x32xf32>
    %112 = vector.broadcast %110 : vector<64x1xf32> to vector<64x32xf32>
    %113 = vector.broadcast %111 : vector<1x32xf32> to vector<64x32xf32>
    %114 = arith.mulf %112, %113 : vector<64x32xf32>
    %c0_80 = arith.constant 0 : index
    %c0_81 = arith.constant 0 : index
    %115 = vector.load %arg10[%c0_80, %c0_81] : memref<1x32xf32, #tpu.memory_space<vmem>>, vector<1x32xf32>
    %116 = vector.broadcast %115 : vector<1x32xf32> to vector<64x32xf32>
    %117 = arith.addf %114, %116 : vector<64x32xf32>
    %cst_82 = arith.constant 0.000000e+00 : bf16
    %118 = vector.broadcast %cst_82 : bf16 to vector<10x10x32xbf16>
    %c0_83 = arith.constant 0 : index
    %c0_84 = arith.constant 0 : index
    %c0_85 = arith.constant 0 : index
    %119 = vector.load %arg12[%c0_83, %c0_84, %c0_85] : memref<10x10x32xbf16, #tpu.memory_space<vmem>>, vector<10x10x32xbf16>
    tpu.vector_store %arg12[%c0_83, %c0_84, %c0_85], %118 {strides = array<i32>} : memref<10x10x32xbf16, #tpu.memory_space<vmem>>, vector<10x10x32xbf16>,
    %120 = vector.shape_cast %104 : vector<64x32xf32> to vector<8x8x32xf32>
    %121 = arith.truncf %120 : vector<8x8x32xf32> to vector<8x8x32xbf16>
    %c1_86 = arith.constant 1 : index
    %c1_87 = arith.constant 1 : index
    %c0_88 = arith.constant 0 : index
    %122 = vector.load %arg12[%c1_86, %c1_87, %c0_88] : memref<10x10x32xbf16, #tpu.memory_space<vmem>>, vector<8x8x32xbf16>
    tpu.vector_store %arg12[%c1_86, %c1_87, %c0_88], %121 {strides = array<i32>} : memref<10x10x32xbf16, #tpu.memory_space<vmem>>, vector<8x8x32xbf16>,
    %cst_89 = arith.constant 0.000000e+00 : f32
    %123 = vector.broadcast %cst_89 : f32 to vector<64x32xf32>
    %c0_90 = arith.constant 0 : index
    %c0_91 = arith.constant 0 : index
    %c0_92 = arith.constant 0 : index
    %124 = vector.load %arg12[%c0_90, %c0_91, %c0_92] : memref<10x10x32xbf16, #tpu.memory_space<vmem>>, vector<8x8x32xbf16>
    %125 = vector.shape_cast %124 : vector<8x8x32xbf16> to vector<64x32xbf16>
    %c0_93 = arith.constant 0 : index
    %c0_94 = arith.constant 0 : index
    %c0_95 = arith.constant 0 : index
    %c0_96 = arith.constant 0 : index
    %126 = vector.load %arg7[%c0_93, %c0_94, %c0_95, %c0_96] : memref<3x3x32x32xbf16, #tpu.memory_space<vmem>>, vector<1x1x32x32xbf16>
    %127 = vector.shape_cast %126 : vector<1x1x32x32xbf16> to vector<32x32xbf16>
    %cst_97 = arith.constant dense<0.000000e+00> : vector<64x32xf32>
    %128 = tpu.matmul %125, %127, %cst_97 {dimension_numbers = #tpu.dot_dimension_numbers<[1], [0], [0], [1], [0, 0, 1, 1], [], []>} : vector<64x32xbf16>, vector<32x32xbf16>, vector<64x32xf32> -> vector<64x32xf32>
    %129 = arith.addf %123, %128 : vector<64x32xf32>
    %c0_98 = arith.constant 0 : index
    %c1_99 = arith.constant 1 : index
    %c0_100 = arith.constant 0 : index
    %130 = vector.load %arg12[%c0_98, %c1_99, %c0_100] : memref<10x10x32xbf16, #tpu.memory_space<vmem>>, vector<8x8x32xbf16>
    %131 = vector.shape_cast %130 : vector<8x8x32xbf16> to vector<64x32xbf16>
    %c0_101 = arith.constant 0 : index
    %c1_102 = arith.constant 1 : index
    %c0_103 = arith.constant 0 : index
    %c0_104 = arith.constant 0 : index
    %132 = vector.load %arg7[%c0_101, %c1_102, %c0_103, %c0_104] : memref<3x3x32x32xbf16, #tpu.memory_space<vmem>>, vector<1x1x32x32xbf16>
    %133 = vector.shape_cast %132 : vector<1x1x32x32xbf16> to vector<32x32xbf16>
    %cst_105 = arith.constant dense<0.000000e+00> : vector<64x32xf32>
    %134 = tpu.matmul %131, %133, %cst_105 {dimension_numbers = #tpu.dot_dimension_numbers<[1], [0], [0], [1], [0, 0, 1, 1], [], []>} : vector<64x32xbf16>, vector<32x32xbf16>, vector<64x32xf32> -> vector<64x32xf32>
    %135 = arith.addf %129, %134 : vector<64x32xf32>
    %c0_106 = arith.constant 0 : index
    %c2_107 = arith.constant 2 : index
    %c0_108 = arith.constant 0 : index
    %136 = vector.load %arg12[%c0_106, %c2_107, %c0_108] : memref<10x10x32xbf16, #tpu.memory_space<vmem>>, vector<8x8x32xbf16>
    %137 = vector.shape_cast %136 : vector<8x8x32xbf16> to vector<64x32xbf16>
    %c0_109 = arith.constant 0 : index
    %c2_110 = arith.constant 2 : index
    %c0_111 = arith.constant 0 : index
    %c0_112 = arith.constant 0 : index
    %138 = vector.load %arg7[%c0_109, %c2_110, %c0_111, %c0_112] : memref<3x3x32x32xbf16, #tpu.memory_space<vmem>>, vector<1x1x32x32xbf16>
    %139 = vector.shape_cast %138 : vector<1x1x32x32xbf16> to vector<32x32xbf16>
    %cst_113 = arith.constant dense<0.000000e+00> : vector<64x32xf32>
    %140 = tpu.matmul %137, %139, %cst_113 {dimension_numbers = #tpu.dot_dimension_numbers<[1], [0], [0], [1], [0, 0, 1, 1], [], []>} : vector<64x32xbf16>, vector<32x32xbf16>, vector<64x32xf32> -> vector<64x32xf32>
    %141 = arith.addf %135, %140 : vector<64x32xf32>
    %c1_114 = arith.constant 1 : index
    %c0_115 = arith.constant 0 : index
    %c0_116 = arith.constant 0 : index
    %142 = vector.load %arg12[%c1_114, %c0_115, %c0_116] : memref<10x10x32xbf16, #tpu.memory_space<vmem>>, vector<8x8x32xbf16>
    %143 = vector.shape_cast %142 : vector<8x8x32xbf16> to vector<64x32xbf16>
    %c1_117 = arith.constant 1 : index
    %c0_118 = arith.constant 0 : index
    %c0_119 = arith.constant 0 : index
    %c0_120 = arith.constant 0 : index
    %144 = vector.load %arg7[%c1_117, %c0_118, %c0_119, %c0_120] : memref<3x3x32x32xbf16, #tpu.memory_space<vmem>>, vector<1x1x32x32xbf16>
    %145 = vector.shape_cast %144 : vector<1x1x32x32xbf16> to vector<32x32xbf16>
    %cst_121 = arith.constant dense<0.000000e+00> : vector<64x32xf32>
    %146 = tpu.matmul %143, %145, %cst_121 {dimension_numbers = #tpu.dot_dimension_numbers<[1], [0], [0], [1], [0, 0, 1, 1], [], []>} : vector<64x32xbf16>, vector<32x32xbf16>, vector<64x32xf32> -> vector<64x32xf32>
    %147 = arith.addf %141, %146 : vector<64x32xf32>
    %c1_122 = arith.constant 1 : index
    %c1_123 = arith.constant 1 : index
    %c0_124 = arith.constant 0 : index
    %148 = vector.load %arg12[%c1_122, %c1_123, %c0_124] : memref<10x10x32xbf16, #tpu.memory_space<vmem>>, vector<8x8x32xbf16>
    %149 = vector.shape_cast %148 : vector<8x8x32xbf16> to vector<64x32xbf16>
    %c1_125 = arith.constant 1 : index
    %c1_126 = arith.constant 1 : index
    %c0_127 = arith.constant 0 : index
    %c0_128 = arith.constant 0 : index
    %150 = vector.load %arg7[%c1_125, %c1_126, %c0_127, %c0_128] : memref<3x3x32x32xbf16, #tpu.memory_space<vmem>>, vector<1x1x32x32xbf16>
    %151 = vector.shape_cast %150 : vector<1x1x32x32xbf16> to vector<32x32xbf16>
    %cst_129 = arith.constant dense<0.000000e+00> : vector<64x32xf32>
    %152 = tpu.matmul %149, %151, %cst_129 {dimension_numbers = #tpu.dot_dimension_numbers<[1], [0], [0], [1], [0, 0, 1, 1], [], []>} : vector<64x32xbf16>, vector<32x32xbf16>, vector<64x32xf32> -> vector<64x32xf32>
    %153 = arith.addf %147, %152 : vector<64x32xf32>
    %c1_130 = arith.constant 1 : index
    %c2_131 = arith.constant 2 : index
    %c0_132 = arith.constant 0 : index
    %154 = vector.load %arg12[%c1_130, %c2_131, %c0_132] : memref<10x10x32xbf16, #tpu.memory_space<vmem>>, vector<8x8x32xbf16>
    %155 = vector.shape_cast %154 : vector<8x8x32xbf16> to vector<64x32xbf16>
    %c1_133 = arith.constant 1 : index
    %c2_134 = arith.constant 2 : index
    %c0_135 = arith.constant 0 : index
    %c0_136 = arith.constant 0 : index
    %156 = vector.load %arg7[%c1_133, %c2_134, %c0_135, %c0_136] : memref<3x3x32x32xbf16, #tpu.memory_space<vmem>>, vector<1x1x32x32xbf16>
    %157 = vector.shape_cast %156 : vector<1x1x32x32xbf16> to vector<32x32xbf16>
    %cst_137 = arith.constant dense<0.000000e+00> : vector<64x32xf32>
    %158 = tpu.matmul %155, %157, %cst_137 {dimension_numbers = #tpu.dot_dimension_numbers<[1], [0], [0], [1], [0, 0, 1, 1], [], []>} : vector<64x32xbf16>, vector<32x32xbf16>, vector<64x32xf32> -> vector<64x32xf32>
    %159 = arith.addf %153, %158 : vector<64x32xf32>
    %c2_138 = arith.constant 2 : index
    %c0_139 = arith.constant 0 : index
    %c0_140 = arith.constant 0 : index
    %160 = vector.load %arg12[%c2_138, %c0_139, %c0_140] : memref<10x10x32xbf16, #tpu.memory_space<vmem>>, vector<8x8x32xbf16>
    %161 = vector.shape_cast %160 : vector<8x8x32xbf16> to vector<64x32xbf16>
    %c2_141 = arith.constant 2 : index
    %c0_142 = arith.constant 0 : index
    %c0_143 = arith.constant 0 : index
    %c0_144 = arith.constant 0 : index
    %162 = vector.load %arg7[%c2_141, %c0_142, %c0_143, %c0_144] : memref<3x3x32x32xbf16, #tpu.memory_space<vmem>>, vector<1x1x32x32xbf16>
    %163 = vector.shape_cast %162 : vector<1x1x32x32xbf16> to vector<32x32xbf16>
    %cst_145 = arith.constant dense<0.000000e+00> : vector<64x32xf32>
    %164 = tpu.matmul %161, %163, %cst_145 {dimension_numbers = #tpu.dot_dimension_numbers<[1], [0], [0], [1], [0, 0, 1, 1], [], []>} : vector<64x32xbf16>, vector<32x32xbf16>, vector<64x32xf32> -> vector<64x32xf32>
    %165 = arith.addf %159, %164 : vector<64x32xf32>
    %c2_146 = arith.constant 2 : index
    %c1_147 = arith.constant 1 : index
    %c0_148 = arith.constant 0 : index
    %166 = vector.load %arg12[%c2_146, %c1_147, %c0_148] : memref<10x10x32xbf16, #tpu.memory_space<vmem>>, vector<8x8x32xbf16>
    %167 = vector.shape_cast %166 : vector<8x8x32xbf16> to vector<64x32xbf16>
    %c2_149 = arith.constant 2 : index
    %c1_150 = arith.constant 1 : index
    %c0_151 = arith.constant 0 : index
    %c0_152 = arith.constant 0 : index
    %168 = vector.load %arg7[%c2_149, %c1_150, %c0_151, %c0_152] : memref<3x3x32x32xbf16, #tpu.memory_space<vmem>>, vector<1x1x32x32xbf16>
    %169 = vector.shape_cast %168 : vector<1x1x32x32xbf16> to vector<32x32xbf16>
    %cst_153 = arith.constant dense<0.000000e+00> : vector<64x32xf32>
    %170 = tpu.matmul %167, %169, %cst_153 {dimension_numbers = #tpu.dot_dimension_numbers<[1], [0], [0], [1], [0, 0, 1, 1], [], []>} : vector<64x32xbf16>, vector<32x32xbf16>, vector<64x32xf32> -> vector<64x32xf32>
    %171 = arith.addf %165, %170 : vector<64x32xf32>
    %c2_154 = arith.constant 2 : index
    %c2_155 = arith.constant 2 : index
    %c0_156 = arith.constant 0 : index
    %172 = vector.load %arg12[%c2_154, %c2_155, %c0_156] : memref<10x10x32xbf16, #tpu.memory_space<vmem>>, vector<8x8x32xbf16>
    %173 = vector.shape_cast %172 : vector<8x8x32xbf16> to vector<64x32xbf16>
    %c2_157 = arith.constant 2 : index
    %c2_158 = arith.constant 2 : index
    %c0_159 = arith.constant 0 : index
    %c0_160 = arith.constant 0 : index
    %174 = vector.load %arg7[%c2_157, %c2_158, %c0_159, %c0_160] : memref<3x3x32x32xbf16, #tpu.memory_space<vmem>>, vector<1x1x32x32xbf16>
    %175 = vector.shape_cast %174 : vector<1x1x32x32xbf16> to vector<32x32xbf16>
    %cst_161 = arith.constant dense<0.000000e+00> : vector<64x32xf32>
    %176 = tpu.matmul %173, %175, %cst_161 {dimension_numbers = #tpu.dot_dimension_numbers<[1], [0], [0], [1], [0, 0, 1, 1], [], []>} : vector<64x32xbf16>, vector<32x32xbf16>, vector<64x32xf32> -> vector<64x32xf32>
    %177 = arith.addf %171, %176 : vector<64x32xf32>
    %c0_162 = arith.constant 0 : index
    %c0_163 = arith.constant 0 : index
    %178 = vector.load %arg8[%c0_162, %c0_163] : memref<1x32xf32, #tpu.memory_space<vmem>>, vector<1x32xf32>
    %179 = vector.broadcast %178 : vector<1x32xf32> to vector<64x32xf32>
    %180 = arith.addf %177, %179 : vector<64x32xf32>
    %181 = arith.addf %180, %117 : vector<64x32xf32>
    %cst_164 = arith.constant 0.000000e+00 : f32
    %182 = vector.broadcast %cst_164 : f32 to vector<64x32xf32>
    %183 = arith.maximumf %181, %182 : vector<64x32xf32>
    %184 = vector.shape_cast %183 : vector<64x32xf32> to vector<1x64x32xf32>
    %185 = arith.truncf %184 : vector<1x64x32xf32> to vector<1x64x32xbf16>
    %c0_165 = arith.constant 0 : index
    %c0_166 = arith.constant 0 : index
    %c0_167 = arith.constant 0 : index
    %186 = vector.load %arg11[%c0_165, %c0_166, %c0_167] : memref<1x64x32xbf16, #tpu.memory_space<vmem>>, vector<1x64x32xbf16>
    tpu.vector_store %arg11[%c0_165, %c0_166, %c0_167], %185 {strides = array<i32>} : memref<1x64x32xbf16, #tpu.memory_space<vmem>>, vector<1x64x32xbf16>,
    return
  }
  func.func @transform_0(%arg0: i32) -> (i32, i32, i32, i32) {
    %c0_i32 = arith.constant 0 : i32
    %c0_i32_0 = arith.constant 0 : i32
    %c0_i32_1 = arith.constant 0 : i32
    %c0_i32_2 = arith.constant 0 : i32
    return %arg0, %c0_i32, %c0_i32_0, %c0_i32_1 : i32, i32, i32, i32
  }
  func.func @transform_1(%arg0: i32) -> (i32, i32, i32, i32) {
    %c0_i32 = arith.constant 0 : i32
    %c0_i32_0 = arith.constant 0 : i32
    %c0_i32_1 = arith.constant 0 : i32
    %c0_i32_2 = arith.constant 0 : i32
    return %arg0, %c0_i32, %c0_i32_0, %c0_i32_1 : i32, i32, i32, i32
  }
  func.func @transform_2(%arg0: i32) -> (i32, i32, i32, i32) {
    %c0_i32 = arith.constant 0 : i32
    %c0_i32_0 = arith.constant 0 : i32
    %c0_i32_1 = arith.constant 0 : i32
    %c0_i32_2 = arith.constant 0 : i32
    return %arg0, %c0_i32, %c0_i32_0, %c0_i32_1 : i32, i32, i32, i32
  }
  func.func @transform_3(%arg0: i32) -> (i32, i32, i32, i32) {
    %c0_i32 = arith.constant 0 : i32
    %c0_i32_0 = arith.constant 0 : i32
    %c0_i32_1 = arith.constant 0 : i32
    %c0_i32_2 = arith.constant 0 : i32
    return %arg0, %c0_i32, %c0_i32_0, %c0_i32_1 : i32, i32, i32, i32
  }
  func.func @transform_4(%arg0: i32) -> (i32, i32, i32, i32) {
    %c0_i32 = arith.constant 0 : i32
    %c0_i32_0 = arith.constant 0 : i32
    %c0_i32_1 = arith.constant 0 : i32
    %c0_i32_2 = arith.constant 0 : i32
    %c0_i32_3 = arith.constant 0 : i32
    return %c0_i32, %c0_i32_0, %c0_i32_1, %c0_i32_2 : i32, i32, i32, i32
  }
  func.func @transform_5(%arg0: i32) -> (i32, i32) {
    %c0_i32 = arith.constant 0 : i32
    %c0_i32_0 = arith.constant 0 : i32
    %c0_i32_1 = arith.constant 0 : i32
    return %c0_i32, %c0_i32_0 : i32, i32
  }
  func.func @transform_6(%arg0: i32) -> (i32, i32, i32, i32) {
    %c0_i32 = arith.constant 0 : i32
    %c0_i32_0 = arith.constant 0 : i32
    %c0_i32_1 = arith.constant 0 : i32
    %c0_i32_2 = arith.constant 0 : i32
    %c0_i32_3 = arith.constant 0 : i32
    return %c0_i32, %c0_i32_0, %c0_i32_1, %c0_i32_2 : i32, i32, i32, i32
  }
  func.func @transform_7(%arg0: i32) -> (i32, i32) {
    %c0_i32 = arith.constant 0 : i32
    %c0_i32_0 = arith.constant 0 : i32
    %c0_i32_1 = arith.constant 0 : i32
    return %c0_i32, %c0_i32_0 : i32, i32
  }
  func.func @transform_8(%arg0: i32) -> (i32, i32, i32, i32) {
    %c0_i32 = arith.constant 0 : i32
    %c0_i32_0 = arith.constant 0 : i32
    %c0_i32_1 = arith.constant 0 : i32
    %c0_i32_2 = arith.constant 0 : i32
    %c0_i32_3 = arith.constant 0 : i32
    return %c0_i32, %c0_i32_0, %c0_i32_1, %c0_i32_2 : i32, i32, i32, i32
  }
  func.func @transform_9(%arg0: i32) -> (i32, i32) {
    %c0_i32 = arith.constant 0 : i32
    %c0_i32_0 = arith.constant 0 : i32
    %c0_i32_1 = arith.constant 0 : i32
    return %c0_i32, %c0_i32_0 : i32, i32
  }
  func.func @transform_10(%arg0: i32) -> (i32, i32, i32) {
    %c0_i32 = arith.constant 0 : i32
    %c0_i32_0 = arith.constant 0 : i32
    %c0_i32_1 = arith.constant 0 : i32
    return %arg0, %c0_i32, %c0_i32_0 : i32, i32, i32
  }
}

module attributes {stable_mosaic.version = 11 : i64} {
  func.func @_identity_block_kernel(%arg0: i32, %arg1: memref<1x10x10x32xbf16, #tpu.memory_space<vmem>>, %arg2: memref<3x3x32x32xbf16, #tpu.memory_space<vmem>>, %arg3: memref<1x32xf32, #tpu.memory_space<vmem>>, %arg4: memref<3x3x32x32xbf16, #tpu.memory_space<vmem>>, %arg5: memref<1x32xf32, #tpu.memory_space<vmem>>, %arg6: memref<1x64x32xbf16, #tpu.memory_space<vmem>>, %arg7: memref<10x10x32xbf16, #tpu.memory_space<vmem>>) attributes {dimension_semantics = [#tpu.dimension_semantics<parallel>], iteration_bounds = array<i64: 2>, scalar_prefetch = 0 : i64, scratch_operands = 1 : i64, tpu.core_type = #tpu.core_type<tc>, window_params = [{transform_indices = @transform_0, window_bounds = array<i64: 1, 10, 10, 32>}, {pipeline_mode = #tpu.pipeline_mode<synchronous>, transform_indices = @transform_1, window_bounds = array<i64: 3, 3, 32, 32>}, {pipeline_mode = #tpu.pipeline_mode<synchronous>, transform_indices = @transform_2, window_bounds = array<i64: 1, 32>}, {pipeline_mode = #tpu.pipeline_mode<synchronous>, transform_indices = @transform_3, window_bounds = array<i64: 3, 3, 32, 32>}, {pipeline_mode = #tpu.pipeline_mode<synchronous>, transform_indices = @transform_4, window_bounds = array<i64: 1, 32>}, {transform_indices = @transform_5, window_bounds = array<i64: 1, 64, 32>}]} {
    %cst = arith.constant 0.000000e+00 : f32
    %0 = vector.broadcast %cst : f32 to vector<64x32xf32>
    %c0 = arith.constant 0 : index
    %c0_0 = arith.constant 0 : index
    %c0_1 = arith.constant 0 : index
    %c0_2 = arith.constant 0 : index
    %1 = vector.load %arg1[%c0, %c0_0, %c0_1, %c0_2] : memref<1x10x10x32xbf16, #tpu.memory_space<vmem>>, vector<1x8x8x32xbf16>
    %2 = vector.shape_cast %1 : vector<1x8x8x32xbf16> to vector<8x8x32xbf16>
    %3 = vector.shape_cast %2 : vector<8x8x32xbf16> to vector<64x32xbf16>
    %c0_3 = arith.constant 0 : index
    %c0_4 = arith.constant 0 : index
    %c0_5 = arith.constant 0 : index
    %c0_6 = arith.constant 0 : index
    %4 = vector.load %arg2[%c0_3, %c0_4, %c0_5, %c0_6] : memref<3x3x32x32xbf16, #tpu.memory_space<vmem>>, vector<1x1x32x32xbf16>
    %5 = vector.shape_cast %4 : vector<1x1x32x32xbf16> to vector<32x32xbf16>
    %cst_7 = arith.constant dense<0.000000e+00> : vector<64x32xf32>
    %6 = tpu.matmul %3, %5, %cst_7 {dimension_numbers = #tpu.dot_dimension_numbers<[1], [0], [0], [1], [0, 0, 1, 1], [], []>} : vector<64x32xbf16>, vector<32x32xbf16>, vector<64x32xf32> -> vector<64x32xf32>
    %7 = arith.addf %0, %6 : vector<64x32xf32>
    %c0_8 = arith.constant 0 : index
    %c0_9 = arith.constant 0 : index
    %c1 = arith.constant 1 : index
    %c0_10 = arith.constant 0 : index
    %8 = vector.load %arg1[%c0_8, %c0_9, %c1, %c0_10] : memref<1x10x10x32xbf16, #tpu.memory_space<vmem>>, vector<1x8x8x32xbf16>
    %9 = vector.shape_cast %8 : vector<1x8x8x32xbf16> to vector<8x8x32xbf16>
    %10 = vector.shape_cast %9 : vector<8x8x32xbf16> to vector<64x32xbf16>
    %c0_11 = arith.constant 0 : index
    %c1_12 = arith.constant 1 : index
    %c0_13 = arith.constant 0 : index
    %c0_14 = arith.constant 0 : index
    %11 = vector.load %arg2[%c0_11, %c1_12, %c0_13, %c0_14] : memref<3x3x32x32xbf16, #tpu.memory_space<vmem>>, vector<1x1x32x32xbf16>
    %12 = vector.shape_cast %11 : vector<1x1x32x32xbf16> to vector<32x32xbf16>
    %cst_15 = arith.constant dense<0.000000e+00> : vector<64x32xf32>
    %13 = tpu.matmul %10, %12, %cst_15 {dimension_numbers = #tpu.dot_dimension_numbers<[1], [0], [0], [1], [0, 0, 1, 1], [], []>} : vector<64x32xbf16>, vector<32x32xbf16>, vector<64x32xf32> -> vector<64x32xf32>
    %14 = arith.addf %7, %13 : vector<64x32xf32>
    %c0_16 = arith.constant 0 : index
    %c0_17 = arith.constant 0 : index
    %c2 = arith.constant 2 : index
    %c0_18 = arith.constant 0 : index
    %15 = vector.load %arg1[%c0_16, %c0_17, %c2, %c0_18] : memref<1x10x10x32xbf16, #tpu.memory_space<vmem>>, vector<1x8x8x32xbf16>
    %16 = vector.shape_cast %15 : vector<1x8x8x32xbf16> to vector<8x8x32xbf16>
    %17 = vector.shape_cast %16 : vector<8x8x32xbf16> to vector<64x32xbf16>
    %c0_19 = arith.constant 0 : index
    %c2_20 = arith.constant 2 : index
    %c0_21 = arith.constant 0 : index
    %c0_22 = arith.constant 0 : index
    %18 = vector.load %arg2[%c0_19, %c2_20, %c0_21, %c0_22] : memref<3x3x32x32xbf16, #tpu.memory_space<vmem>>, vector<1x1x32x32xbf16>
    %19 = vector.shape_cast %18 : vector<1x1x32x32xbf16> to vector<32x32xbf16>
    %cst_23 = arith.constant dense<0.000000e+00> : vector<64x32xf32>
    %20 = tpu.matmul %17, %19, %cst_23 {dimension_numbers = #tpu.dot_dimension_numbers<[1], [0], [0], [1], [0, 0, 1, 1], [], []>} : vector<64x32xbf16>, vector<32x32xbf16>, vector<64x32xf32> -> vector<64x32xf32>
    %21 = arith.addf %14, %20 : vector<64x32xf32>
    %c0_24 = arith.constant 0 : index
    %c1_25 = arith.constant 1 : index
    %c0_26 = arith.constant 0 : index
    %c0_27 = arith.constant 0 : index
    %22 = vector.load %arg1[%c0_24, %c1_25, %c0_26, %c0_27] : memref<1x10x10x32xbf16, #tpu.memory_space<vmem>>, vector<1x8x8x32xbf16>
    %23 = vector.shape_cast %22 : vector<1x8x8x32xbf16> to vector<8x8x32xbf16>
    %24 = vector.shape_cast %23 : vector<8x8x32xbf16> to vector<64x32xbf16>
    %c1_28 = arith.constant 1 : index
    %c0_29 = arith.constant 0 : index
    %c0_30 = arith.constant 0 : index
    %c0_31 = arith.constant 0 : index
    %25 = vector.load %arg2[%c1_28, %c0_29, %c0_30, %c0_31] : memref<3x3x32x32xbf16, #tpu.memory_space<vmem>>, vector<1x1x32x32xbf16>
    %26 = vector.shape_cast %25 : vector<1x1x32x32xbf16> to vector<32x32xbf16>
    %cst_32 = arith.constant dense<0.000000e+00> : vector<64x32xf32>
    %27 = tpu.matmul %24, %26, %cst_32 {dimension_numbers = #tpu.dot_dimension_numbers<[1], [0], [0], [1], [0, 0, 1, 1], [], []>} : vector<64x32xbf16>, vector<32x32xbf16>, vector<64x32xf32> -> vector<64x32xf32>
    %28 = arith.addf %21, %27 : vector<64x32xf32>
    %c0_33 = arith.constant 0 : index
    %c1_34 = arith.constant 1 : index
    %c1_35 = arith.constant 1 : index
    %c0_36 = arith.constant 0 : index
    %29 = vector.load %arg1[%c0_33, %c1_34, %c1_35, %c0_36] : memref<1x10x10x32xbf16, #tpu.memory_space<vmem>>, vector<1x8x8x32xbf16>
    %30 = vector.shape_cast %29 : vector<1x8x8x32xbf16> to vector<8x8x32xbf16>
    %31 = vector.shape_cast %30 : vector<8x8x32xbf16> to vector<64x32xbf16>
    %c1_37 = arith.constant 1 : index
    %c1_38 = arith.constant 1 : index
    %c0_39 = arith.constant 0 : index
    %c0_40 = arith.constant 0 : index
    %32 = vector.load %arg2[%c1_37, %c1_38, %c0_39, %c0_40] : memref<3x3x32x32xbf16, #tpu.memory_space<vmem>>, vector<1x1x32x32xbf16>
    %33 = vector.shape_cast %32 : vector<1x1x32x32xbf16> to vector<32x32xbf16>
    %cst_41 = arith.constant dense<0.000000e+00> : vector<64x32xf32>
    %34 = tpu.matmul %31, %33, %cst_41 {dimension_numbers = #tpu.dot_dimension_numbers<[1], [0], [0], [1], [0, 0, 1, 1], [], []>} : vector<64x32xbf16>, vector<32x32xbf16>, vector<64x32xf32> -> vector<64x32xf32>
    %35 = arith.addf %28, %34 : vector<64x32xf32>
    %c0_42 = arith.constant 0 : index
    %c1_43 = arith.constant 1 : index
    %c2_44 = arith.constant 2 : index
    %c0_45 = arith.constant 0 : index
    %36 = vector.load %arg1[%c0_42, %c1_43, %c2_44, %c0_45] : memref<1x10x10x32xbf16, #tpu.memory_space<vmem>>, vector<1x8x8x32xbf16>
    %37 = vector.shape_cast %36 : vector<1x8x8x32xbf16> to vector<8x8x32xbf16>
    %38 = vector.shape_cast %37 : vector<8x8x32xbf16> to vector<64x32xbf16>
    %c1_46 = arith.constant 1 : index
    %c2_47 = arith.constant 2 : index
    %c0_48 = arith.constant 0 : index
    %c0_49 = arith.constant 0 : index
    %39 = vector.load %arg2[%c1_46, %c2_47, %c0_48, %c0_49] : memref<3x3x32x32xbf16, #tpu.memory_space<vmem>>, vector<1x1x32x32xbf16>
    %40 = vector.shape_cast %39 : vector<1x1x32x32xbf16> to vector<32x32xbf16>
    %cst_50 = arith.constant dense<0.000000e+00> : vector<64x32xf32>
    %41 = tpu.matmul %38, %40, %cst_50 {dimension_numbers = #tpu.dot_dimension_numbers<[1], [0], [0], [1], [0, 0, 1, 1], [], []>} : vector<64x32xbf16>, vector<32x32xbf16>, vector<64x32xf32> -> vector<64x32xf32>
    %42 = arith.addf %35, %41 : vector<64x32xf32>
    %c0_51 = arith.constant 0 : index
    %c2_52 = arith.constant 2 : index
    %c0_53 = arith.constant 0 : index
    %c0_54 = arith.constant 0 : index
    %43 = vector.load %arg1[%c0_51, %c2_52, %c0_53, %c0_54] : memref<1x10x10x32xbf16, #tpu.memory_space<vmem>>, vector<1x8x8x32xbf16>
    %44 = vector.shape_cast %43 : vector<1x8x8x32xbf16> to vector<8x8x32xbf16>
    %45 = vector.shape_cast %44 : vector<8x8x32xbf16> to vector<64x32xbf16>
    %c2_55 = arith.constant 2 : index
    %c0_56 = arith.constant 0 : index
    %c0_57 = arith.constant 0 : index
    %c0_58 = arith.constant 0 : index
    %46 = vector.load %arg2[%c2_55, %c0_56, %c0_57, %c0_58] : memref<3x3x32x32xbf16, #tpu.memory_space<vmem>>, vector<1x1x32x32xbf16>
    %47 = vector.shape_cast %46 : vector<1x1x32x32xbf16> to vector<32x32xbf16>
    %cst_59 = arith.constant dense<0.000000e+00> : vector<64x32xf32>
    %48 = tpu.matmul %45, %47, %cst_59 {dimension_numbers = #tpu.dot_dimension_numbers<[1], [0], [0], [1], [0, 0, 1, 1], [], []>} : vector<64x32xbf16>, vector<32x32xbf16>, vector<64x32xf32> -> vector<64x32xf32>
    %49 = arith.addf %42, %48 : vector<64x32xf32>
    %c0_60 = arith.constant 0 : index
    %c2_61 = arith.constant 2 : index
    %c1_62 = arith.constant 1 : index
    %c0_63 = arith.constant 0 : index
    %50 = vector.load %arg1[%c0_60, %c2_61, %c1_62, %c0_63] : memref<1x10x10x32xbf16, #tpu.memory_space<vmem>>, vector<1x8x8x32xbf16>
    %51 = vector.shape_cast %50 : vector<1x8x8x32xbf16> to vector<8x8x32xbf16>
    %52 = vector.shape_cast %51 : vector<8x8x32xbf16> to vector<64x32xbf16>
    %c2_64 = arith.constant 2 : index
    %c1_65 = arith.constant 1 : index
    %c0_66 = arith.constant 0 : index
    %c0_67 = arith.constant 0 : index
    %53 = vector.load %arg2[%c2_64, %c1_65, %c0_66, %c0_67] : memref<3x3x32x32xbf16, #tpu.memory_space<vmem>>, vector<1x1x32x32xbf16>
    %54 = vector.shape_cast %53 : vector<1x1x32x32xbf16> to vector<32x32xbf16>
    %cst_68 = arith.constant dense<0.000000e+00> : vector<64x32xf32>
    %55 = tpu.matmul %52, %54, %cst_68 {dimension_numbers = #tpu.dot_dimension_numbers<[1], [0], [0], [1], [0, 0, 1, 1], [], []>} : vector<64x32xbf16>, vector<32x32xbf16>, vector<64x32xf32> -> vector<64x32xf32>
    %56 = arith.addf %49, %55 : vector<64x32xf32>
    %c0_69 = arith.constant 0 : index
    %c2_70 = arith.constant 2 : index
    %c2_71 = arith.constant 2 : index
    %c0_72 = arith.constant 0 : index
    %57 = vector.load %arg1[%c0_69, %c2_70, %c2_71, %c0_72] : memref<1x10x10x32xbf16, #tpu.memory_space<vmem>>, vector<1x8x8x32xbf16>
    %58 = vector.shape_cast %57 : vector<1x8x8x32xbf16> to vector<8x8x32xbf16>
    %59 = vector.shape_cast %58 : vector<8x8x32xbf16> to vector<64x32xbf16>
    %c2_73 = arith.constant 2 : index
    %c2_74 = arith.constant 2 : index
    %c0_75 = arith.constant 0 : index
    %c0_76 = arith.constant 0 : index
    %60 = vector.load %arg2[%c2_73, %c2_74, %c0_75, %c0_76] : memref<3x3x32x32xbf16, #tpu.memory_space<vmem>>, vector<1x1x32x32xbf16>
    %61 = vector.shape_cast %60 : vector<1x1x32x32xbf16> to vector<32x32xbf16>
    %cst_77 = arith.constant dense<0.000000e+00> : vector<64x32xf32>
    %62 = tpu.matmul %59, %61, %cst_77 {dimension_numbers = #tpu.dot_dimension_numbers<[1], [0], [0], [1], [0, 0, 1, 1], [], []>} : vector<64x32xbf16>, vector<32x32xbf16>, vector<64x32xf32> -> vector<64x32xf32>
    %63 = arith.addf %56, %62 : vector<64x32xf32>
    %c0_78 = arith.constant 0 : index
    %c0_79 = arith.constant 0 : index
    %64 = vector.load %arg3[%c0_78, %c0_79] : memref<1x32xf32, #tpu.memory_space<vmem>>, vector<1x32xf32>
    %65 = vector.broadcast %64 : vector<1x32xf32> to vector<64x32xf32>
    %66 = arith.addf %63, %65 : vector<64x32xf32>
    %cst_80 = arith.constant 0.000000e+00 : f32
    %67 = vector.broadcast %cst_80 : f32 to vector<64x32xf32>
    %68 = arith.maximumf %66, %67 : vector<64x32xf32>
    %cst_81 = arith.constant 0.000000e+00 : bf16
    %69 = vector.broadcast %cst_81 : bf16 to vector<10x10x32xbf16>
    %c0_82 = arith.constant 0 : index
    %c0_83 = arith.constant 0 : index
    %c0_84 = arith.constant 0 : index
    %70 = vector.load %arg7[%c0_82, %c0_83, %c0_84] : memref<10x10x32xbf16, #tpu.memory_space<vmem>>, vector<10x10x32xbf16>
    tpu.vector_store %arg7[%c0_82, %c0_83, %c0_84], %69 {strides = array<i32>} : memref<10x10x32xbf16, #tpu.memory_space<vmem>>, vector<10x10x32xbf16>,
    %71 = vector.shape_cast %68 : vector<64x32xf32> to vector<8x8x32xf32>
    %72 = arith.truncf %71 : vector<8x8x32xf32> to vector<8x8x32xbf16>
    %c1_85 = arith.constant 1 : index
    %c1_86 = arith.constant 1 : index
    %c0_87 = arith.constant 0 : index
    %73 = vector.load %arg7[%c1_85, %c1_86, %c0_87] : memref<10x10x32xbf16, #tpu.memory_space<vmem>>, vector<8x8x32xbf16>
    tpu.vector_store %arg7[%c1_85, %c1_86, %c0_87], %72 {strides = array<i32>} : memref<10x10x32xbf16, #tpu.memory_space<vmem>>, vector<8x8x32xbf16>,
    %cst_88 = arith.constant 0.000000e+00 : f32
    %74 = vector.broadcast %cst_88 : f32 to vector<64x32xf32>
    %c0_89 = arith.constant 0 : index
    %c0_90 = arith.constant 0 : index
    %c0_91 = arith.constant 0 : index
    %75 = vector.load %arg7[%c0_89, %c0_90, %c0_91] : memref<10x10x32xbf16, #tpu.memory_space<vmem>>, vector<8x8x32xbf16>
    %76 = vector.shape_cast %75 : vector<8x8x32xbf16> to vector<64x32xbf16>
    %c0_92 = arith.constant 0 : index
    %c0_93 = arith.constant 0 : index
    %c0_94 = arith.constant 0 : index
    %c0_95 = arith.constant 0 : index
    %77 = vector.load %arg4[%c0_92, %c0_93, %c0_94, %c0_95] : memref<3x3x32x32xbf16, #tpu.memory_space<vmem>>, vector<1x1x32x32xbf16>
    %78 = vector.shape_cast %77 : vector<1x1x32x32xbf16> to vector<32x32xbf16>
    %cst_96 = arith.constant dense<0.000000e+00> : vector<64x32xf32>
    %79 = tpu.matmul %76, %78, %cst_96 {dimension_numbers = #tpu.dot_dimension_numbers<[1], [0], [0], [1], [0, 0, 1, 1], [], []>} : vector<64x32xbf16>, vector<32x32xbf16>, vector<64x32xf32> -> vector<64x32xf32>
    %80 = arith.addf %74, %79 : vector<64x32xf32>
    %c0_97 = arith.constant 0 : index
    %c1_98 = arith.constant 1 : index
    %c0_99 = arith.constant 0 : index
    %81 = vector.load %arg7[%c0_97, %c1_98, %c0_99] : memref<10x10x32xbf16, #tpu.memory_space<vmem>>, vector<8x8x32xbf16>
    %82 = vector.shape_cast %81 : vector<8x8x32xbf16> to vector<64x32xbf16>
    %c0_100 = arith.constant 0 : index
    %c1_101 = arith.constant 1 : index
    %c0_102 = arith.constant 0 : index
    %c0_103 = arith.constant 0 : index
    %83 = vector.load %arg4[%c0_100, %c1_101, %c0_102, %c0_103] : memref<3x3x32x32xbf16, #tpu.memory_space<vmem>>, vector<1x1x32x32xbf16>
    %84 = vector.shape_cast %83 : vector<1x1x32x32xbf16> to vector<32x32xbf16>
    %cst_104 = arith.constant dense<0.000000e+00> : vector<64x32xf32>
    %85 = tpu.matmul %82, %84, %cst_104 {dimension_numbers = #tpu.dot_dimension_numbers<[1], [0], [0], [1], [0, 0, 1, 1], [], []>} : vector<64x32xbf16>, vector<32x32xbf16>, vector<64x32xf32> -> vector<64x32xf32>
    %86 = arith.addf %80, %85 : vector<64x32xf32>
    %c0_105 = arith.constant 0 : index
    %c2_106 = arith.constant 2 : index
    %c0_107 = arith.constant 0 : index
    %87 = vector.load %arg7[%c0_105, %c2_106, %c0_107] : memref<10x10x32xbf16, #tpu.memory_space<vmem>>, vector<8x8x32xbf16>
    %88 = vector.shape_cast %87 : vector<8x8x32xbf16> to vector<64x32xbf16>
    %c0_108 = arith.constant 0 : index
    %c2_109 = arith.constant 2 : index
    %c0_110 = arith.constant 0 : index
    %c0_111 = arith.constant 0 : index
    %89 = vector.load %arg4[%c0_108, %c2_109, %c0_110, %c0_111] : memref<3x3x32x32xbf16, #tpu.memory_space<vmem>>, vector<1x1x32x32xbf16>
    %90 = vector.shape_cast %89 : vector<1x1x32x32xbf16> to vector<32x32xbf16>
    %cst_112 = arith.constant dense<0.000000e+00> : vector<64x32xf32>
    %91 = tpu.matmul %88, %90, %cst_112 {dimension_numbers = #tpu.dot_dimension_numbers<[1], [0], [0], [1], [0, 0, 1, 1], [], []>} : vector<64x32xbf16>, vector<32x32xbf16>, vector<64x32xf32> -> vector<64x32xf32>
    %92 = arith.addf %86, %91 : vector<64x32xf32>
    %c1_113 = arith.constant 1 : index
    %c0_114 = arith.constant 0 : index
    %c0_115 = arith.constant 0 : index
    %93 = vector.load %arg7[%c1_113, %c0_114, %c0_115] : memref<10x10x32xbf16, #tpu.memory_space<vmem>>, vector<8x8x32xbf16>
    %94 = vector.shape_cast %93 : vector<8x8x32xbf16> to vector<64x32xbf16>
    %c1_116 = arith.constant 1 : index
    %c0_117 = arith.constant 0 : index
    %c0_118 = arith.constant 0 : index
    %c0_119 = arith.constant 0 : index
    %95 = vector.load %arg4[%c1_116, %c0_117, %c0_118, %c0_119] : memref<3x3x32x32xbf16, #tpu.memory_space<vmem>>, vector<1x1x32x32xbf16>
    %96 = vector.shape_cast %95 : vector<1x1x32x32xbf16> to vector<32x32xbf16>
    %cst_120 = arith.constant dense<0.000000e+00> : vector<64x32xf32>
    %97 = tpu.matmul %94, %96, %cst_120 {dimension_numbers = #tpu.dot_dimension_numbers<[1], [0], [0], [1], [0, 0, 1, 1], [], []>} : vector<64x32xbf16>, vector<32x32xbf16>, vector<64x32xf32> -> vector<64x32xf32>
    %98 = arith.addf %92, %97 : vector<64x32xf32>
    %c1_121 = arith.constant 1 : index
    %c1_122 = arith.constant 1 : index
    %c0_123 = arith.constant 0 : index
    %99 = vector.load %arg7[%c1_121, %c1_122, %c0_123] : memref<10x10x32xbf16, #tpu.memory_space<vmem>>, vector<8x8x32xbf16>
    %100 = vector.shape_cast %99 : vector<8x8x32xbf16> to vector<64x32xbf16>
    %c1_124 = arith.constant 1 : index
    %c1_125 = arith.constant 1 : index
    %c0_126 = arith.constant 0 : index
    %c0_127 = arith.constant 0 : index
    %101 = vector.load %arg4[%c1_124, %c1_125, %c0_126, %c0_127] : memref<3x3x32x32xbf16, #tpu.memory_space<vmem>>, vector<1x1x32x32xbf16>
    %102 = vector.shape_cast %101 : vector<1x1x32x32xbf16> to vector<32x32xbf16>
    %cst_128 = arith.constant dense<0.000000e+00> : vector<64x32xf32>
    %103 = tpu.matmul %100, %102, %cst_128 {dimension_numbers = #tpu.dot_dimension_numbers<[1], [0], [0], [1], [0, 0, 1, 1], [], []>} : vector<64x32xbf16>, vector<32x32xbf16>, vector<64x32xf32> -> vector<64x32xf32>
    %104 = arith.addf %98, %103 : vector<64x32xf32>
    %c1_129 = arith.constant 1 : index
    %c2_130 = arith.constant 2 : index
    %c0_131 = arith.constant 0 : index
    %105 = vector.load %arg7[%c1_129, %c2_130, %c0_131] : memref<10x10x32xbf16, #tpu.memory_space<vmem>>, vector<8x8x32xbf16>
    %106 = vector.shape_cast %105 : vector<8x8x32xbf16> to vector<64x32xbf16>
    %c1_132 = arith.constant 1 : index
    %c2_133 = arith.constant 2 : index
    %c0_134 = arith.constant 0 : index
    %c0_135 = arith.constant 0 : index
    %107 = vector.load %arg4[%c1_132, %c2_133, %c0_134, %c0_135] : memref<3x3x32x32xbf16, #tpu.memory_space<vmem>>, vector<1x1x32x32xbf16>
    %108 = vector.shape_cast %107 : vector<1x1x32x32xbf16> to vector<32x32xbf16>
    %cst_136 = arith.constant dense<0.000000e+00> : vector<64x32xf32>
    %109 = tpu.matmul %106, %108, %cst_136 {dimension_numbers = #tpu.dot_dimension_numbers<[1], [0], [0], [1], [0, 0, 1, 1], [], []>} : vector<64x32xbf16>, vector<32x32xbf16>, vector<64x32xf32> -> vector<64x32xf32>
    %110 = arith.addf %104, %109 : vector<64x32xf32>
    %c2_137 = arith.constant 2 : index
    %c0_138 = arith.constant 0 : index
    %c0_139 = arith.constant 0 : index
    %111 = vector.load %arg7[%c2_137, %c0_138, %c0_139] : memref<10x10x32xbf16, #tpu.memory_space<vmem>>, vector<8x8x32xbf16>
    %112 = vector.shape_cast %111 : vector<8x8x32xbf16> to vector<64x32xbf16>
    %c2_140 = arith.constant 2 : index
    %c0_141 = arith.constant 0 : index
    %c0_142 = arith.constant 0 : index
    %c0_143 = arith.constant 0 : index
    %113 = vector.load %arg4[%c2_140, %c0_141, %c0_142, %c0_143] : memref<3x3x32x32xbf16, #tpu.memory_space<vmem>>, vector<1x1x32x32xbf16>
    %114 = vector.shape_cast %113 : vector<1x1x32x32xbf16> to vector<32x32xbf16>
    %cst_144 = arith.constant dense<0.000000e+00> : vector<64x32xf32>
    %115 = tpu.matmul %112, %114, %cst_144 {dimension_numbers = #tpu.dot_dimension_numbers<[1], [0], [0], [1], [0, 0, 1, 1], [], []>} : vector<64x32xbf16>, vector<32x32xbf16>, vector<64x32xf32> -> vector<64x32xf32>
    %116 = arith.addf %110, %115 : vector<64x32xf32>
    %c2_145 = arith.constant 2 : index
    %c1_146 = arith.constant 1 : index
    %c0_147 = arith.constant 0 : index
    %117 = vector.load %arg7[%c2_145, %c1_146, %c0_147] : memref<10x10x32xbf16, #tpu.memory_space<vmem>>, vector<8x8x32xbf16>
    %118 = vector.shape_cast %117 : vector<8x8x32xbf16> to vector<64x32xbf16>
    %c2_148 = arith.constant 2 : index
    %c1_149 = arith.constant 1 : index
    %c0_150 = arith.constant 0 : index
    %c0_151 = arith.constant 0 : index
    %119 = vector.load %arg4[%c2_148, %c1_149, %c0_150, %c0_151] : memref<3x3x32x32xbf16, #tpu.memory_space<vmem>>, vector<1x1x32x32xbf16>
    %120 = vector.shape_cast %119 : vector<1x1x32x32xbf16> to vector<32x32xbf16>
    %cst_152 = arith.constant dense<0.000000e+00> : vector<64x32xf32>
    %121 = tpu.matmul %118, %120, %cst_152 {dimension_numbers = #tpu.dot_dimension_numbers<[1], [0], [0], [1], [0, 0, 1, 1], [], []>} : vector<64x32xbf16>, vector<32x32xbf16>, vector<64x32xf32> -> vector<64x32xf32>
    %122 = arith.addf %116, %121 : vector<64x32xf32>
    %c2_153 = arith.constant 2 : index
    %c2_154 = arith.constant 2 : index
    %c0_155 = arith.constant 0 : index
    %123 = vector.load %arg7[%c2_153, %c2_154, %c0_155] : memref<10x10x32xbf16, #tpu.memory_space<vmem>>, vector<8x8x32xbf16>
    %124 = vector.shape_cast %123 : vector<8x8x32xbf16> to vector<64x32xbf16>
    %c2_156 = arith.constant 2 : index
    %c2_157 = arith.constant 2 : index
    %c0_158 = arith.constant 0 : index
    %c0_159 = arith.constant 0 : index
    %125 = vector.load %arg4[%c2_156, %c2_157, %c0_158, %c0_159] : memref<3x3x32x32xbf16, #tpu.memory_space<vmem>>, vector<1x1x32x32xbf16>
    %126 = vector.shape_cast %125 : vector<1x1x32x32xbf16> to vector<32x32xbf16>
    %cst_160 = arith.constant dense<0.000000e+00> : vector<64x32xf32>
    %127 = tpu.matmul %124, %126, %cst_160 {dimension_numbers = #tpu.dot_dimension_numbers<[1], [0], [0], [1], [0, 0, 1, 1], [], []>} : vector<64x32xbf16>, vector<32x32xbf16>, vector<64x32xf32> -> vector<64x32xf32>
    %128 = arith.addf %122, %127 : vector<64x32xf32>
    %c0_161 = arith.constant 0 : index
    %c1_162 = arith.constant 1 : index
    %c1_163 = arith.constant 1 : index
    %c0_164 = arith.constant 0 : index
    %129 = vector.load %arg1[%c0_161, %c1_162, %c1_163, %c0_164] : memref<1x10x10x32xbf16, #tpu.memory_space<vmem>>, vector<1x8x8x32xbf16>
    %130 = vector.shape_cast %129 : vector<1x8x8x32xbf16> to vector<8x8x32xbf16>
    %131 = vector.shape_cast %130 : vector<8x8x32xbf16> to vector<64x32xbf16>
    %132 = arith.extf %131 : vector<64x32xbf16> to vector<64x32xf32>
    %c0_165 = arith.constant 0 : index
    %c0_166 = arith.constant 0 : index
    %133 = vector.load %arg5[%c0_165, %c0_166] : memref<1x32xf32, #tpu.memory_space<vmem>>, vector<1x32xf32>
    %134 = vector.broadcast %133 : vector<1x32xf32> to vector<64x32xf32>
    %135 = arith.addf %128, %134 : vector<64x32xf32>
    %136 = arith.addf %135, %132 : vector<64x32xf32>
    %cst_167 = arith.constant 0.000000e+00 : f32
    %137 = vector.broadcast %cst_167 : f32 to vector<64x32xf32>
    %138 = arith.maximumf %136, %137 : vector<64x32xf32>
    %139 = vector.shape_cast %138 : vector<64x32xf32> to vector<1x64x32xf32>
    %140 = arith.truncf %139 : vector<1x64x32xf32> to vector<1x64x32xbf16>
    %c0_168 = arith.constant 0 : index
    %c0_169 = arith.constant 0 : index
    %c0_170 = arith.constant 0 : index
    %141 = vector.load %arg6[%c0_168, %c0_169, %c0_170] : memref<1x64x32xbf16, #tpu.memory_space<vmem>>, vector<1x64x32xbf16>
    tpu.vector_store %arg6[%c0_168, %c0_169, %c0_170], %140 {strides = array<i32>} : memref<1x64x32xbf16, #tpu.memory_space<vmem>>, vector<1x64x32xbf16>,
    return
  }
  func.func @transform_0(%arg0: i32) -> (i32, i32, i32, i32) {
    %c0_i32 = arith.constant 0 : i32
    %c0_i32_0 = arith.constant 0 : i32
    %c0_i32_1 = arith.constant 0 : i32
    %c0_i32_2 = arith.constant 0 : i32
    return %arg0, %c0_i32, %c0_i32_0, %c0_i32_1 : i32, i32, i32, i32
  }
  func.func @transform_1(%arg0: i32) -> (i32, i32, i32, i32) {
    %c0_i32 = arith.constant 0 : i32
    %c0_i32_0 = arith.constant 0 : i32
    %c0_i32_1 = arith.constant 0 : i32
    %c0_i32_2 = arith.constant 0 : i32
    %c0_i32_3 = arith.constant 0 : i32
    return %c0_i32, %c0_i32_0, %c0_i32_1, %c0_i32_2 : i32, i32, i32, i32
  }
  func.func @transform_2(%arg0: i32) -> (i32, i32) {
    %c0_i32 = arith.constant 0 : i32
    %c0_i32_0 = arith.constant 0 : i32
    %c0_i32_1 = arith.constant 0 : i32
    return %c0_i32, %c0_i32_0 : i32, i32
  }
  func.func @transform_3(%arg0: i32) -> (i32, i32, i32, i32) {
    %c0_i32 = arith.constant 0 : i32
    %c0_i32_0 = arith.constant 0 : i32
    %c0_i32_1 = arith.constant 0 : i32
    %c0_i32_2 = arith.constant 0 : i32
    %c0_i32_3 = arith.constant 0 : i32
    return %c0_i32, %c0_i32_0, %c0_i32_1, %c0_i32_2 : i32, i32, i32, i32
  }
  func.func @transform_4(%arg0: i32) -> (i32, i32) {
    %c0_i32 = arith.constant 0 : i32
    %c0_i32_0 = arith.constant 0 : i32
    %c0_i32_1 = arith.constant 0 : i32
    return %c0_i32, %c0_i32_0 : i32, i32
  }
  func.func @transform_5(%arg0: i32) -> (i32, i32, i32) {
    %c0_i32 = arith.constant 0 : i32
    %c0_i32_0 = arith.constant 0 : i32
    %c0_i32_1 = arith.constant 0 : i32
    return %arg0, %c0_i32, %c0_i32_0 : i32, i32, i32
  }
}

module attributes {stable_mosaic.version = 11 : i64} {
  func.func @_down_block_kernel(%arg0: i32, %arg1: memref<1x5x5x32xbf16, #tpu.memory_space<vmem>>, %arg2: memref<1x5x5x32xbf16, #tpu.memory_space<vmem>>, %arg3: memref<1x5x5x32xbf16, #tpu.memory_space<vmem>>, %arg4: memref<1x5x5x32xbf16, #tpu.memory_space<vmem>>, %arg5: memref<3x3x32x64xbf16, #tpu.memory_space<vmem>>, %arg6: memref<1x64xf32, #tpu.memory_space<vmem>>, %arg7: memref<3x3x64x64xbf16, #tpu.memory_space<vmem>>, %arg8: memref<1x64xf32, #tpu.memory_space<vmem>>, %arg9: memref<1x1x32x64xbf16, #tpu.memory_space<vmem>>, %arg10: memref<1x64xf32, #tpu.memory_space<vmem>>, %arg11: memref<1x16x64xbf16, #tpu.memory_space<vmem>>, %arg12: memref<6x6x64xbf16, #tpu.memory_space<vmem>>) attributes {dimension_semantics = [#tpu.dimension_semantics<parallel>], iteration_bounds = array<i64: 2>, scalar_prefetch = 0 : i64, scratch_operands = 1 : i64, tpu.core_type = #tpu.core_type<tc>, window_params = [{transform_indices = @transform_0, window_bounds = array<i64: 1, 5, 5, 32>}, {transform_indices = @transform_1, window_bounds = array<i64: 1, 5, 5, 32>}, {transform_indices = @transform_2, window_bounds = array<i64: 1, 5, 5, 32>}, {transform_indices = @transform_3, window_bounds = array<i64: 1, 5, 5, 32>}, {pipeline_mode = #tpu.pipeline_mode<synchronous>, transform_indices = @transform_4, window_bounds = array<i64: 3, 3, 32, 64>}, {pipeline_mode = #tpu.pipeline_mode<synchronous>, transform_indices = @transform_5, window_bounds = array<i64: 1, 64>}, {pipeline_mode = #tpu.pipeline_mode<synchronous>, transform_indices = @transform_6, window_bounds = array<i64: 3, 3, 64, 64>}, {pipeline_mode = #tpu.pipeline_mode<synchronous>, transform_indices = @transform_7, window_bounds = array<i64: 1, 64>}, {pipeline_mode = #tpu.pipeline_mode<synchronous>, transform_indices = @transform_8, window_bounds = array<i64: 1, 1, 32, 64>}, {pipeline_mode = #tpu.pipeline_mode<synchronous>, transform_indices = @transform_9, window_bounds = array<i64: 1, 64>}, {transform_indices = @transform_10, window_bounds = array<i64: 1, 16, 64>}]} {
    %cst = arith.constant 0.000000e+00 : f32
    %0 = vector.broadcast %cst : f32 to vector<16x64xf32>
    %c0 = arith.constant 0 : index
    %c0_0 = arith.constant 0 : index
    %c0_1 = arith.constant 0 : index
    %c0_2 = arith.constant 0 : index
    %1 = vector.load %arg1[%c0, %c0_0, %c0_1, %c0_2] : memref<1x5x5x32xbf16, #tpu.memory_space<vmem>>, vector<1x4x4x32xbf16>
    %2 = vector.shape_cast %1 : vector<1x4x4x32xbf16> to vector<4x4x32xbf16>
    %3 = vector.shape_cast %2 : vector<4x4x32xbf16> to vector<16x32xbf16>
    %c0_3 = arith.constant 0 : index
    %c0_4 = arith.constant 0 : index
    %c0_5 = arith.constant 0 : index
    %c0_6 = arith.constant 0 : index
    %4 = vector.load %arg5[%c0_3, %c0_4, %c0_5, %c0_6] : memref<3x3x32x64xbf16, #tpu.memory_space<vmem>>, vector<1x1x32x64xbf16>
    %5 = vector.shape_cast %4 : vector<1x1x32x64xbf16> to vector<32x64xbf16>
    %cst_7 = arith.constant dense<0.000000e+00> : vector<16x64xf32>
    %6 = tpu.matmul %3, %5, %cst_7 {dimension_numbers = #tpu.dot_dimension_numbers<[1], [0], [0], [1], [0, 0, 1, 1], [], []>} : vector<16x32xbf16>, vector<32x64xbf16>, vector<16x64xf32> -> vector<16x64xf32>
    %7 = arith.addf %0, %6 : vector<16x64xf32>
    %c0_8 = arith.constant 0 : index
    %c0_9 = arith.constant 0 : index
    %c0_10 = arith.constant 0 : index
    %c0_11 = arith.constant 0 : index
    %8 = vector.load %arg2[%c0_8, %c0_9, %c0_10, %c0_11] : memref<1x5x5x32xbf16, #tpu.memory_space<vmem>>, vector<1x4x4x32xbf16>
    %9 = vector.shape_cast %8 : vector<1x4x4x32xbf16> to vector<4x4x32xbf16>
    %10 = vector.shape_cast %9 : vector<4x4x32xbf16> to vector<16x32xbf16>
    %c0_12 = arith.constant 0 : index
    %c1 = arith.constant 1 : index
    %c0_13 = arith.constant 0 : index
    %c0_14 = arith.constant 0 : index
    %11 = vector.load %arg5[%c0_12, %c1, %c0_13, %c0_14] : memref<3x3x32x64xbf16, #tpu.memory_space<vmem>>, vector<1x1x32x64xbf16>
    %12 = vector.shape_cast %11 : vector<1x1x32x64xbf16> to vector<32x64xbf16>
    %cst_15 = arith.constant dense<0.000000e+00> : vector<16x64xf32>
    %13 = tpu.matmul %10, %12, %cst_15 {dimension_numbers = #tpu.dot_dimension_numbers<[1], [0], [0], [1], [0, 0, 1, 1], [], []>} : vector<16x32xbf16>, vector<32x64xbf16>, vector<16x64xf32> -> vector<16x64xf32>
    %14 = arith.addf %7, %13 : vector<16x64xf32>
    %c0_16 = arith.constant 0 : index
    %c0_17 = arith.constant 0 : index
    %c1_18 = arith.constant 1 : index
    %c0_19 = arith.constant 0 : index
    %15 = vector.load %arg1[%c0_16, %c0_17, %c1_18, %c0_19] : memref<1x5x5x32xbf16, #tpu.memory_space<vmem>>, vector<1x4x4x32xbf16>
    %16 = vector.shape_cast %15 : vector<1x4x4x32xbf16> to vector<4x4x32xbf16>
    %17 = vector.shape_cast %16 : vector<4x4x32xbf16> to vector<16x32xbf16>
    %c0_20 = arith.constant 0 : index
    %c2 = arith.constant 2 : index
    %c0_21 = arith.constant 0 : index
    %c0_22 = arith.constant 0 : index
    %18 = vector.load %arg5[%c0_20, %c2, %c0_21, %c0_22] : memref<3x3x32x64xbf16, #tpu.memory_space<vmem>>, vector<1x1x32x64xbf16>
    %19 = vector.shape_cast %18 : vector<1x1x32x64xbf16> to vector<32x64xbf16>
    %cst_23 = arith.constant dense<0.000000e+00> : vector<16x64xf32>
    %20 = tpu.matmul %17, %19, %cst_23 {dimension_numbers = #tpu.dot_dimension_numbers<[1], [0], [0], [1], [0, 0, 1, 1], [], []>} : vector<16x32xbf16>, vector<32x64xbf16>, vector<16x64xf32> -> vector<16x64xf32>
    %21 = arith.addf %14, %20 : vector<16x64xf32>
    %c0_24 = arith.constant 0 : index
    %c0_25 = arith.constant 0 : index
    %c0_26 = arith.constant 0 : index
    %c0_27 = arith.constant 0 : index
    %22 = vector.load %arg3[%c0_24, %c0_25, %c0_26, %c0_27] : memref<1x5x5x32xbf16, #tpu.memory_space<vmem>>, vector<1x4x4x32xbf16>
    %23 = vector.shape_cast %22 : vector<1x4x4x32xbf16> to vector<4x4x32xbf16>
    %24 = vector.shape_cast %23 : vector<4x4x32xbf16> to vector<16x32xbf16>
    %c1_28 = arith.constant 1 : index
    %c0_29 = arith.constant 0 : index
    %c0_30 = arith.constant 0 : index
    %c0_31 = arith.constant 0 : index
    %25 = vector.load %arg5[%c1_28, %c0_29, %c0_30, %c0_31] : memref<3x3x32x64xbf16, #tpu.memory_space<vmem>>, vector<1x1x32x64xbf16>
    %26 = vector.shape_cast %25 : vector<1x1x32x64xbf16> to vector<32x64xbf16>
    %cst_32 = arith.constant dense<0.000000e+00> : vector<16x64xf32>
    %27 = tpu.matmul %24, %26, %cst_32 {dimension_numbers = #tpu.dot_dimension_numbers<[1], [0], [0], [1], [0, 0, 1, 1], [], []>} : vector<16x32xbf16>, vector<32x64xbf16>, vector<16x64xf32> -> vector<16x64xf32>
    %28 = arith.addf %21, %27 : vector<16x64xf32>
    %c0_33 = arith.constant 0 : index
    %c0_34 = arith.constant 0 : index
    %c0_35 = arith.constant 0 : index
    %c0_36 = arith.constant 0 : index
    %29 = vector.load %arg4[%c0_33, %c0_34, %c0_35, %c0_36] : memref<1x5x5x32xbf16, #tpu.memory_space<vmem>>, vector<1x4x4x32xbf16>
    %30 = vector.shape_cast %29 : vector<1x4x4x32xbf16> to vector<4x4x32xbf16>
    %31 = vector.shape_cast %30 : vector<4x4x32xbf16> to vector<16x32xbf16>
    %c1_37 = arith.constant 1 : index
    %c1_38 = arith.constant 1 : index
    %c0_39 = arith.constant 0 : index
    %c0_40 = arith.constant 0 : index
    %32 = vector.load %arg5[%c1_37, %c1_38, %c0_39, %c0_40] : memref<3x3x32x64xbf16, #tpu.memory_space<vmem>>, vector<1x1x32x64xbf16>
    %33 = vector.shape_cast %32 : vector<1x1x32x64xbf16> to vector<32x64xbf16>
    %cst_41 = arith.constant dense<0.000000e+00> : vector<16x64xf32>
    %34 = tpu.matmul %31, %33, %cst_41 {dimension_numbers = #tpu.dot_dimension_numbers<[1], [0], [0], [1], [0, 0, 1, 1], [], []>} : vector<16x32xbf16>, vector<32x64xbf16>, vector<16x64xf32> -> vector<16x64xf32>
    %35 = arith.addf %28, %34 : vector<16x64xf32>
    %c0_42 = arith.constant 0 : index
    %c0_43 = arith.constant 0 : index
    %c1_44 = arith.constant 1 : index
    %c0_45 = arith.constant 0 : index
    %36 = vector.load %arg3[%c0_42, %c0_43, %c1_44, %c0_45] : memref<1x5x5x32xbf16, #tpu.memory_space<vmem>>, vector<1x4x4x32xbf16>
    %37 = vector.shape_cast %36 : vector<1x4x4x32xbf16> to vector<4x4x32xbf16>
    %38 = vector.shape_cast %37 : vector<4x4x32xbf16> to vector<16x32xbf16>
    %c1_46 = arith.constant 1 : index
    %c2_47 = arith.constant 2 : index
    %c0_48 = arith.constant 0 : index
    %c0_49 = arith.constant 0 : index
    %39 = vector.load %arg5[%c1_46, %c2_47, %c0_48, %c0_49] : memref<3x3x32x64xbf16, #tpu.memory_space<vmem>>, vector<1x1x32x64xbf16>
    %40 = vector.shape_cast %39 : vector<1x1x32x64xbf16> to vector<32x64xbf16>
    %cst_50 = arith.constant dense<0.000000e+00> : vector<16x64xf32>
    %41 = tpu.matmul %38, %40, %cst_50 {dimension_numbers = #tpu.dot_dimension_numbers<[1], [0], [0], [1], [0, 0, 1, 1], [], []>} : vector<16x32xbf16>, vector<32x64xbf16>, vector<16x64xf32> -> vector<16x64xf32>
    %42 = arith.addf %35, %41 : vector<16x64xf32>
    %c0_51 = arith.constant 0 : index
    %c1_52 = arith.constant 1 : index
    %c0_53 = arith.constant 0 : index
    %c0_54 = arith.constant 0 : index
    %43 = vector.load %arg1[%c0_51, %c1_52, %c0_53, %c0_54] : memref<1x5x5x32xbf16, #tpu.memory_space<vmem>>, vector<1x4x4x32xbf16>
    %44 = vector.shape_cast %43 : vector<1x4x4x32xbf16> to vector<4x4x32xbf16>
    %45 = vector.shape_cast %44 : vector<4x4x32xbf16> to vector<16x32xbf16>
    %c2_55 = arith.constant 2 : index
    %c0_56 = arith.constant 0 : index
    %c0_57 = arith.constant 0 : index
    %c0_58 = arith.constant 0 : index
    %46 = vector.load %arg5[%c2_55, %c0_56, %c0_57, %c0_58] : memref<3x3x32x64xbf16, #tpu.memory_space<vmem>>, vector<1x1x32x64xbf16>
    %47 = vector.shape_cast %46 : vector<1x1x32x64xbf16> to vector<32x64xbf16>
    %cst_59 = arith.constant dense<0.000000e+00> : vector<16x64xf32>
    %48 = tpu.matmul %45, %47, %cst_59 {dimension_numbers = #tpu.dot_dimension_numbers<[1], [0], [0], [1], [0, 0, 1, 1], [], []>} : vector<16x32xbf16>, vector<32x64xbf16>, vector<16x64xf32> -> vector<16x64xf32>
    %49 = arith.addf %42, %48 : vector<16x64xf32>
    %c0_60 = arith.constant 0 : index
    %c1_61 = arith.constant 1 : index
    %c0_62 = arith.constant 0 : index
    %c0_63 = arith.constant 0 : index
    %50 = vector.load %arg2[%c0_60, %c1_61, %c0_62, %c0_63] : memref<1x5x5x32xbf16, #tpu.memory_space<vmem>>, vector<1x4x4x32xbf16>
    %51 = vector.shape_cast %50 : vector<1x4x4x32xbf16> to vector<4x4x32xbf16>
    %52 = vector.shape_cast %51 : vector<4x4x32xbf16> to vector<16x32xbf16>
    %c2_64 = arith.constant 2 : index
    %c1_65 = arith.constant 1 : index
    %c0_66 = arith.constant 0 : index
    %c0_67 = arith.constant 0 : index
    %53 = vector.load %arg5[%c2_64, %c1_65, %c0_66, %c0_67] : memref<3x3x32x64xbf16, #tpu.memory_space<vmem>>, vector<1x1x32x64xbf16>
    %54 = vector.shape_cast %53 : vector<1x1x32x64xbf16> to vector<32x64xbf16>
    %cst_68 = arith.constant dense<0.000000e+00> : vector<16x64xf32>
    %55 = tpu.matmul %52, %54, %cst_68 {dimension_numbers = #tpu.dot_dimension_numbers<[1], [0], [0], [1], [0, 0, 1, 1], [], []>} : vector<16x32xbf16>, vector<32x64xbf16>, vector<16x64xf32> -> vector<16x64xf32>
    %56 = arith.addf %49, %55 : vector<16x64xf32>
    %c0_69 = arith.constant 0 : index
    %c1_70 = arith.constant 1 : index
    %c1_71 = arith.constant 1 : index
    %c0_72 = arith.constant 0 : index
    %57 = vector.load %arg1[%c0_69, %c1_70, %c1_71, %c0_72] : memref<1x5x5x32xbf16, #tpu.memory_space<vmem>>, vector<1x4x4x32xbf16>
    %58 = vector.shape_cast %57 : vector<1x4x4x32xbf16> to vector<4x4x32xbf16>
    %59 = vector.shape_cast %58 : vector<4x4x32xbf16> to vector<16x32xbf16>
    %c2_73 = arith.constant 2 : index
    %c2_74 = arith.constant 2 : index
    %c0_75 = arith.constant 0 : index
    %c0_76 = arith.constant 0 : index
    %60 = vector.load %arg5[%c2_73, %c2_74, %c0_75, %c0_76] : memref<3x3x32x64xbf16, #tpu.memory_space<vmem>>, vector<1x1x32x64xbf16>
    %61 = vector.shape_cast %60 : vector<1x1x32x64xbf16> to vector<32x64xbf16>
    %cst_77 = arith.constant dense<0.000000e+00> : vector<16x64xf32>
    %62 = tpu.matmul %59, %61, %cst_77 {dimension_numbers = #tpu.dot_dimension_numbers<[1], [0], [0], [1], [0, 0, 1, 1], [], []>} : vector<16x32xbf16>, vector<32x64xbf16>, vector<16x64xf32> -> vector<16x64xf32>
    %63 = arith.addf %56, %62 : vector<16x64xf32>
    %c0_78 = arith.constant 0 : index
    %c0_79 = arith.constant 0 : index
    %64 = vector.load %arg6[%c0_78, %c0_79] : memref<1x64xf32, #tpu.memory_space<vmem>>, vector<1x64xf32>
    %65 = vector.broadcast %64 : vector<1x64xf32> to vector<16x64xf32>
    %66 = arith.addf %63, %65 : vector<16x64xf32>
    %cst_80 = arith.constant 0.000000e+00 : f32
    %67 = vector.broadcast %cst_80 : f32 to vector<16x64xf32>
    %68 = arith.maximumf %66, %67 : vector<16x64xf32>
    %c0_81 = arith.constant 0 : index
    %c0_82 = arith.constant 0 : index
    %c0_83 = arith.constant 0 : index
    %c0_84 = arith.constant 0 : index
    %69 = vector.load %arg4[%c0_81, %c0_82, %c0_83, %c0_84] : memref<1x5x5x32xbf16, #tpu.memory_space<vmem>>, vector<1x4x4x32xbf16>
    %70 = vector.shape_cast %69 : vector<1x4x4x32xbf16> to vector<4x4x32xbf16>
    %71 = vector.shape_cast %70 : vector<4x4x32xbf16> to vector<16x32xbf16>
    %c0_85 = arith.constant 0 : index
    %c0_86 = arith.constant 0 : index
    %c0_87 = arith.constant 0 : index
    %c0_88 = arith.constant 0 : index
    %72 = vector.load %arg9[%c0_85, %c0_86, %c0_87, %c0_88] : memref<1x1x32x64xbf16, #tpu.memory_space<vmem>>, vector<1x1x32x64xbf16>
    %73 = vector.shape_cast %72 : vector<1x1x32x64xbf16> to vector<32x64xbf16>
    %cst_89 = arith.constant dense<0.000000e+00> : vector<16x64xf32>
    %74 = tpu.matmul %71, %73, %cst_89 {dimension_numbers = #tpu.dot_dimension_numbers<[1], [0], [0], [1], [0, 0, 1, 1], [], []>} : vector<16x32xbf16>, vector<32x64xbf16>, vector<16x64xf32> -> vector<16x64xf32>
    %c0_90 = arith.constant 0 : index
    %c0_91 = arith.constant 0 : index
    %75 = vector.load %arg10[%c0_90, %c0_91] : memref<1x64xf32, #tpu.memory_space<vmem>>, vector<1x64xf32>
    %76 = vector.broadcast %75 : vector<1x64xf32> to vector<16x64xf32>
    %77 = arith.addf %74, %76 : vector<16x64xf32>
    %cst_92 = arith.constant 0.000000e+00 : bf16
    %78 = vector.broadcast %cst_92 : bf16 to vector<6x6x64xbf16>
    %c0_93 = arith.constant 0 : index
    %c0_94 = arith.constant 0 : index
    %c0_95 = arith.constant 0 : index
    %79 = vector.load %arg12[%c0_93, %c0_94, %c0_95] : memref<6x6x64xbf16, #tpu.memory_space<vmem>>, vector<6x6x64xbf16>
    tpu.vector_store %arg12[%c0_93, %c0_94, %c0_95], %78 {strides = array<i32>} : memref<6x6x64xbf16, #tpu.memory_space<vmem>>, vector<6x6x64xbf16>,
    %80 = vector.shape_cast %68 : vector<16x64xf32> to vector<4x4x64xf32>
    %81 = arith.truncf %80 : vector<4x4x64xf32> to vector<4x4x64xbf16>
    %c1_96 = arith.constant 1 : index
    %c1_97 = arith.constant 1 : index
    %c0_98 = arith.constant 0 : index
    %82 = vector.load %arg12[%c1_96, %c1_97, %c0_98] : memref<6x6x64xbf16, #tpu.memory_space<vmem>>, vector<4x4x64xbf16>
    tpu.vector_store %arg12[%c1_96, %c1_97, %c0_98], %81 {strides = array<i32>} : memref<6x6x64xbf16, #tpu.memory_space<vmem>>, vector<4x4x64xbf16>,
    %cst_99 = arith.constant 0.000000e+00 : f32
    %83 = vector.broadcast %cst_99 : f32 to vector<16x64xf32>
    %c0_100 = arith.constant 0 : index
    %c0_101 = arith.constant 0 : index
    %c0_102 = arith.constant 0 : index
    %84 = vector.load %arg12[%c0_100, %c0_101, %c0_102] : memref<6x6x64xbf16, #tpu.memory_space<vmem>>, vector<4x4x64xbf16>
    %85 = vector.shape_cast %84 : vector<4x4x64xbf16> to vector<16x64xbf16>
    %c0_103 = arith.constant 0 : index
    %c0_104 = arith.constant 0 : index
    %c0_105 = arith.constant 0 : index
    %c0_106 = arith.constant 0 : index
    %86 = vector.load %arg7[%c0_103, %c0_104, %c0_105, %c0_106] : memref<3x3x64x64xbf16, #tpu.memory_space<vmem>>, vector<1x1x64x64xbf16>
    %87 = vector.shape_cast %86 : vector<1x1x64x64xbf16> to vector<64x64xbf16>
    %cst_107 = arith.constant dense<0.000000e+00> : vector<16x64xf32>
    %88 = tpu.matmul %85, %87, %cst_107 {dimension_numbers = #tpu.dot_dimension_numbers<[1], [0], [0], [1], [0, 0, 1, 1], [], []>} : vector<16x64xbf16>, vector<64x64xbf16>, vector<16x64xf32> -> vector<16x64xf32>
    %89 = arith.addf %83, %88 : vector<16x64xf32>
    %c0_108 = arith.constant 0 : index
    %c1_109 = arith.constant 1 : index
    %c0_110 = arith.constant 0 : index
    %90 = vector.load %arg12[%c0_108, %c1_109, %c0_110] : memref<6x6x64xbf16, #tpu.memory_space<vmem>>, vector<4x4x64xbf16>
    %91 = vector.shape_cast %90 : vector<4x4x64xbf16> to vector<16x64xbf16>
    %c0_111 = arith.constant 0 : index
    %c1_112 = arith.constant 1 : index
    %c0_113 = arith.constant 0 : index
    %c0_114 = arith.constant 0 : index
    %92 = vector.load %arg7[%c0_111, %c1_112, %c0_113, %c0_114] : memref<3x3x64x64xbf16, #tpu.memory_space<vmem>>, vector<1x1x64x64xbf16>
    %93 = vector.shape_cast %92 : vector<1x1x64x64xbf16> to vector<64x64xbf16>
    %cst_115 = arith.constant dense<0.000000e+00> : vector<16x64xf32>
    %94 = tpu.matmul %91, %93, %cst_115 {dimension_numbers = #tpu.dot_dimension_numbers<[1], [0], [0], [1], [0, 0, 1, 1], [], []>} : vector<16x64xbf16>, vector<64x64xbf16>, vector<16x64xf32> -> vector<16x64xf32>
    %95 = arith.addf %89, %94 : vector<16x64xf32>
    %c0_116 = arith.constant 0 : index
    %c2_117 = arith.constant 2 : index
    %c0_118 = arith.constant 0 : index
    %96 = vector.load %arg12[%c0_116, %c2_117, %c0_118] : memref<6x6x64xbf16, #tpu.memory_space<vmem>>, vector<4x4x64xbf16>
    %97 = vector.shape_cast %96 : vector<4x4x64xbf16> to vector<16x64xbf16>
    %c0_119 = arith.constant 0 : index
    %c2_120 = arith.constant 2 : index
    %c0_121 = arith.constant 0 : index
    %c0_122 = arith.constant 0 : index
    %98 = vector.load %arg7[%c0_119, %c2_120, %c0_121, %c0_122] : memref<3x3x64x64xbf16, #tpu.memory_space<vmem>>, vector<1x1x64x64xbf16>
    %99 = vector.shape_cast %98 : vector<1x1x64x64xbf16> to vector<64x64xbf16>
    %cst_123 = arith.constant dense<0.000000e+00> : vector<16x64xf32>
    %100 = tpu.matmul %97, %99, %cst_123 {dimension_numbers = #tpu.dot_dimension_numbers<[1], [0], [0], [1], [0, 0, 1, 1], [], []>} : vector<16x64xbf16>, vector<64x64xbf16>, vector<16x64xf32> -> vector<16x64xf32>
    %101 = arith.addf %95, %100 : vector<16x64xf32>
    %c1_124 = arith.constant 1 : index
    %c0_125 = arith.constant 0 : index
    %c0_126 = arith.constant 0 : index
    %102 = vector.load %arg12[%c1_124, %c0_125, %c0_126] : memref<6x6x64xbf16, #tpu.memory_space<vmem>>, vector<4x4x64xbf16>
    %103 = vector.shape_cast %102 : vector<4x4x64xbf16> to vector<16x64xbf16>
    %c1_127 = arith.constant 1 : index
    %c0_128 = arith.constant 0 : index
    %c0_129 = arith.constant 0 : index
    %c0_130 = arith.constant 0 : index
    %104 = vector.load %arg7[%c1_127, %c0_128, %c0_129, %c0_130] : memref<3x3x64x64xbf16, #tpu.memory_space<vmem>>, vector<1x1x64x64xbf16>
    %105 = vector.shape_cast %104 : vector<1x1x64x64xbf16> to vector<64x64xbf16>
    %cst_131 = arith.constant dense<0.000000e+00> : vector<16x64xf32>
    %106 = tpu.matmul %103, %105, %cst_131 {dimension_numbers = #tpu.dot_dimension_numbers<[1], [0], [0], [1], [0, 0, 1, 1], [], []>} : vector<16x64xbf16>, vector<64x64xbf16>, vector<16x64xf32> -> vector<16x64xf32>
    %107 = arith.addf %101, %106 : vector<16x64xf32>
    %c1_132 = arith.constant 1 : index
    %c1_133 = arith.constant 1 : index
    %c0_134 = arith.constant 0 : index
    %108 = vector.load %arg12[%c1_132, %c1_133, %c0_134] : memref<6x6x64xbf16, #tpu.memory_space<vmem>>, vector<4x4x64xbf16>
    %109 = vector.shape_cast %108 : vector<4x4x64xbf16> to vector<16x64xbf16>
    %c1_135 = arith.constant 1 : index
    %c1_136 = arith.constant 1 : index
    %c0_137 = arith.constant 0 : index
    %c0_138 = arith.constant 0 : index
    %110 = vector.load %arg7[%c1_135, %c1_136, %c0_137, %c0_138] : memref<3x3x64x64xbf16, #tpu.memory_space<vmem>>, vector<1x1x64x64xbf16>
    %111 = vector.shape_cast %110 : vector<1x1x64x64xbf16> to vector<64x64xbf16>
    %cst_139 = arith.constant dense<0.000000e+00> : vector<16x64xf32>
    %112 = tpu.matmul %109, %111, %cst_139 {dimension_numbers = #tpu.dot_dimension_numbers<[1], [0], [0], [1], [0, 0, 1, 1], [], []>} : vector<16x64xbf16>, vector<64x64xbf16>, vector<16x64xf32> -> vector<16x64xf32>
    %113 = arith.addf %107, %112 : vector<16x64xf32>
    %c1_140 = arith.constant 1 : index
    %c2_141 = arith.constant 2 : index
    %c0_142 = arith.constant 0 : index
    %114 = vector.load %arg12[%c1_140, %c2_141, %c0_142] : memref<6x6x64xbf16, #tpu.memory_space<vmem>>, vector<4x4x64xbf16>
    %115 = vector.shape_cast %114 : vector<4x4x64xbf16> to vector<16x64xbf16>
    %c1_143 = arith.constant 1 : index
    %c2_144 = arith.constant 2 : index
    %c0_145 = arith.constant 0 : index
    %c0_146 = arith.constant 0 : index
    %116 = vector.load %arg7[%c1_143, %c2_144, %c0_145, %c0_146] : memref<3x3x64x64xbf16, #tpu.memory_space<vmem>>, vector<1x1x64x64xbf16>
    %117 = vector.shape_cast %116 : vector<1x1x64x64xbf16> to vector<64x64xbf16>
    %cst_147 = arith.constant dense<0.000000e+00> : vector<16x64xf32>
    %118 = tpu.matmul %115, %117, %cst_147 {dimension_numbers = #tpu.dot_dimension_numbers<[1], [0], [0], [1], [0, 0, 1, 1], [], []>} : vector<16x64xbf16>, vector<64x64xbf16>, vector<16x64xf32> -> vector<16x64xf32>
    %119 = arith.addf %113, %118 : vector<16x64xf32>
    %c2_148 = arith.constant 2 : index
    %c0_149 = arith.constant 0 : index
    %c0_150 = arith.constant 0 : index
    %120 = vector.load %arg12[%c2_148, %c0_149, %c0_150] : memref<6x6x64xbf16, #tpu.memory_space<vmem>>, vector<4x4x64xbf16>
    %121 = vector.shape_cast %120 : vector<4x4x64xbf16> to vector<16x64xbf16>
    %c2_151 = arith.constant 2 : index
    %c0_152 = arith.constant 0 : index
    %c0_153 = arith.constant 0 : index
    %c0_154 = arith.constant 0 : index
    %122 = vector.load %arg7[%c2_151, %c0_152, %c0_153, %c0_154] : memref<3x3x64x64xbf16, #tpu.memory_space<vmem>>, vector<1x1x64x64xbf16>
    %123 = vector.shape_cast %122 : vector<1x1x64x64xbf16> to vector<64x64xbf16>
    %cst_155 = arith.constant dense<0.000000e+00> : vector<16x64xf32>
    %124 = tpu.matmul %121, %123, %cst_155 {dimension_numbers = #tpu.dot_dimension_numbers<[1], [0], [0], [1], [0, 0, 1, 1], [], []>} : vector<16x64xbf16>, vector<64x64xbf16>, vector<16x64xf32> -> vector<16x64xf32>
    %125 = arith.addf %119, %124 : vector<16x64xf32>
    %c2_156 = arith.constant 2 : index
    %c1_157 = arith.constant 1 : index
    %c0_158 = arith.constant 0 : index
    %126 = vector.load %arg12[%c2_156, %c1_157, %c0_158] : memref<6x6x64xbf16, #tpu.memory_space<vmem>>, vector<4x4x64xbf16>
    %127 = vector.shape_cast %126 : vector<4x4x64xbf16> to vector<16x64xbf16>
    %c2_159 = arith.constant 2 : index
    %c1_160 = arith.constant 1 : index
    %c0_161 = arith.constant 0 : index
    %c0_162 = arith.constant 0 : index
    %128 = vector.load %arg7[%c2_159, %c1_160, %c0_161, %c0_162] : memref<3x3x64x64xbf16, #tpu.memory_space<vmem>>, vector<1x1x64x64xbf16>
    %129 = vector.shape_cast %128 : vector<1x1x64x64xbf16> to vector<64x64xbf16>
    %cst_163 = arith.constant dense<0.000000e+00> : vector<16x64xf32>
    %130 = tpu.matmul %127, %129, %cst_163 {dimension_numbers = #tpu.dot_dimension_numbers<[1], [0], [0], [1], [0, 0, 1, 1], [], []>} : vector<16x64xbf16>, vector<64x64xbf16>, vector<16x64xf32> -> vector<16x64xf32>
    %131 = arith.addf %125, %130 : vector<16x64xf32>
    %c2_164 = arith.constant 2 : index
    %c2_165 = arith.constant 2 : index
    %c0_166 = arith.constant 0 : index
    %132 = vector.load %arg12[%c2_164, %c2_165, %c0_166] : memref<6x6x64xbf16, #tpu.memory_space<vmem>>, vector<4x4x64xbf16>
    %133 = vector.shape_cast %132 : vector<4x4x64xbf16> to vector<16x64xbf16>
    %c2_167 = arith.constant 2 : index
    %c2_168 = arith.constant 2 : index
    %c0_169 = arith.constant 0 : index
    %c0_170 = arith.constant 0 : index
    %134 = vector.load %arg7[%c2_167, %c2_168, %c0_169, %c0_170] : memref<3x3x64x64xbf16, #tpu.memory_space<vmem>>, vector<1x1x64x64xbf16>
    %135 = vector.shape_cast %134 : vector<1x1x64x64xbf16> to vector<64x64xbf16>
    %cst_171 = arith.constant dense<0.000000e+00> : vector<16x64xf32>
    %136 = tpu.matmul %133, %135, %cst_171 {dimension_numbers = #tpu.dot_dimension_numbers<[1], [0], [0], [1], [0, 0, 1, 1], [], []>} : vector<16x64xbf16>, vector<64x64xbf16>, vector<16x64xf32> -> vector<16x64xf32>
    %137 = arith.addf %131, %136 : vector<16x64xf32>
    %c0_172 = arith.constant 0 : index
    %c0_173 = arith.constant 0 : index
    %138 = vector.load %arg8[%c0_172, %c0_173] : memref<1x64xf32, #tpu.memory_space<vmem>>, vector<1x64xf32>
    %139 = vector.broadcast %138 : vector<1x64xf32> to vector<16x64xf32>
    %140 = arith.addf %137, %139 : vector<16x64xf32>
    %141 = arith.addf %140, %77 : vector<16x64xf32>
    %cst_174 = arith.constant 0.000000e+00 : f32
    %142 = vector.broadcast %cst_174 : f32 to vector<16x64xf32>
    %143 = arith.maximumf %141, %142 : vector<16x64xf32>
    %144 = vector.shape_cast %143 : vector<16x64xf32> to vector<1x16x64xf32>
    %145 = arith.truncf %144 : vector<1x16x64xf32> to vector<1x16x64xbf16>
    %c0_175 = arith.constant 0 : index
    %c0_176 = arith.constant 0 : index
    %c0_177 = arith.constant 0 : index
    %146 = vector.load %arg11[%c0_175, %c0_176, %c0_177] : memref<1x16x64xbf16, #tpu.memory_space<vmem>>, vector<1x16x64xbf16>
    tpu.vector_store %arg11[%c0_175, %c0_176, %c0_177], %145 {strides = array<i32>} : memref<1x16x64xbf16, #tpu.memory_space<vmem>>, vector<1x16x64xbf16>,
    return
  }
  func.func @transform_0(%arg0: i32) -> (i32, i32, i32, i32) {
    %c0_i32 = arith.constant 0 : i32
    %c0_i32_0 = arith.constant 0 : i32
    %c0_i32_1 = arith.constant 0 : i32
    %c0_i32_2 = arith.constant 0 : i32
    return %arg0, %c0_i32, %c0_i32_0, %c0_i32_1 : i32, i32, i32, i32
  }
  func.func @transform_1(%arg0: i32) -> (i32, i32, i32, i32) {
    %c0_i32 = arith.constant 0 : i32
    %c0_i32_0 = arith.constant 0 : i32
    %c0_i32_1 = arith.constant 0 : i32
    %c0_i32_2 = arith.constant 0 : i32
    return %arg0, %c0_i32, %c0_i32_0, %c0_i32_1 : i32, i32, i32, i32
  }
  func.func @transform_2(%arg0: i32) -> (i32, i32, i32, i32) {
    %c0_i32 = arith.constant 0 : i32
    %c0_i32_0 = arith.constant 0 : i32
    %c0_i32_1 = arith.constant 0 : i32
    %c0_i32_2 = arith.constant 0 : i32
    return %arg0, %c0_i32, %c0_i32_0, %c0_i32_1 : i32, i32, i32, i32
  }
  func.func @transform_3(%arg0: i32) -> (i32, i32, i32, i32) {
    %c0_i32 = arith.constant 0 : i32
    %c0_i32_0 = arith.constant 0 : i32
    %c0_i32_1 = arith.constant 0 : i32
    %c0_i32_2 = arith.constant 0 : i32
    return %arg0, %c0_i32, %c0_i32_0, %c0_i32_1 : i32, i32, i32, i32
  }
  func.func @transform_4(%arg0: i32) -> (i32, i32, i32, i32) {
    %c0_i32 = arith.constant 0 : i32
    %c0_i32_0 = arith.constant 0 : i32
    %c0_i32_1 = arith.constant 0 : i32
    %c0_i32_2 = arith.constant 0 : i32
    %c0_i32_3 = arith.constant 0 : i32
    return %c0_i32, %c0_i32_0, %c0_i32_1, %c0_i32_2 : i32, i32, i32, i32
  }
  func.func @transform_5(%arg0: i32) -> (i32, i32) {
    %c0_i32 = arith.constant 0 : i32
    %c0_i32_0 = arith.constant 0 : i32
    %c0_i32_1 = arith.constant 0 : i32
    return %c0_i32, %c0_i32_0 : i32, i32
  }
  func.func @transform_6(%arg0: i32) -> (i32, i32, i32, i32) {
    %c0_i32 = arith.constant 0 : i32
    %c0_i32_0 = arith.constant 0 : i32
    %c0_i32_1 = arith.constant 0 : i32
    %c0_i32_2 = arith.constant 0 : i32
    %c0_i32_3 = arith.constant 0 : i32
    return %c0_i32, %c0_i32_0, %c0_i32_1, %c0_i32_2 : i32, i32, i32, i32
  }
  func.func @transform_7(%arg0: i32) -> (i32, i32) {
    %c0_i32 = arith.constant 0 : i32
    %c0_i32_0 = arith.constant 0 : i32
    %c0_i32_1 = arith.constant 0 : i32
    return %c0_i32, %c0_i32_0 : i32, i32
  }
  func.func @transform_8(%arg0: i32) -> (i32, i32, i32, i32) {
    %c0_i32 = arith.constant 0 : i32
    %c0_i32_0 = arith.constant 0 : i32
    %c0_i32_1 = arith.constant 0 : i32
    %c0_i32_2 = arith.constant 0 : i32
    %c0_i32_3 = arith.constant 0 : i32
    return %c0_i32, %c0_i32_0, %c0_i32_1, %c0_i32_2 : i32, i32, i32, i32
  }
  func.func @transform_9(%arg0: i32) -> (i32, i32) {
    %c0_i32 = arith.constant 0 : i32
    %c0_i32_0 = arith.constant 0 : i32
    %c0_i32_1 = arith.constant 0 : i32
    return %c0_i32, %c0_i32_0 : i32, i32
  }
  func.func @transform_10(%arg0: i32) -> (i32, i32, i32) {
    %c0_i32 = arith.constant 0 : i32
    %c0_i32_0 = arith.constant 0 : i32
    %c0_i32_1 = arith.constant 0 : i32
    return %arg0, %c0_i32, %c0_i32_0 : i32, i32, i32
  }
}

</mosaic_0001>

<bundles_post_ra>
// kernel: _lambda_.4
= control target key start
LH: loop header
LB: loop body
LE: loop exit
PB: predicated region body
PF: predicated region fallthrough
CT: control target
= control target key end

     0   :  { %s979_s0 = inlined_call_operand.vmem [shape: bf16[2,18,18], index: 0, kind: input, shape index: {}]   ;;  %s980_s1 = inlined_call_operand.vmem [shape: f32[9], index: 1, kind: input, shape index: {}]   ;;  %s981_s2 = inlined_call_operand.<no memory space> [shape: f32[1], index: 2, kind: input, shape index: {}]   ;;  %s982_s3 = inlined_call_operand.vmem [shape: f32[9], index: 3, kind: input, shape index: {}]   ;;  %s983_s4 = inlined_call_operand.<no memory space> [shape: f32[1], index: 4, kind: input, shape index: {}]   ;;  %s984_s5 = inlined_call_operand.vmem [shape: bf16[2,16,16], index: 5, kind: output, shape index: {}]  }
   0x1   :  { %10 = sst [smem:[#allocation3]] %s981_s2 }
   0x2   :  { %11 = sst [smem:[#allocation4]] %s983_s4 }
   0x3   :  { %12 = vsyncpa [#allocation6], 0 }
   0x4   :  { %13 = vsyncpa [#allocation8], 0  ;;  %s842_s22 = smov 0  }
   0x5 LB: > { %s848_s23 = sadd.s32 4294967295, %s798_s22   ;;  %p668_p0 = scmp.ge.s32.totalorder %s798_s22, 1  ;;  %s798_s22 = sphi %s842_s22, %s19_s22  }
   0x6   : > { %p160_p1 = scmp.lt.s32.totalorder %s798_s22, 3  ;;  %s173_s24 = sshll.u32 %s980_s1, 4  ;;  %s174_s24 = int_to_ptr.vmem [resolvable:$true] %s173_s24 }
   0x7   : > { %p985_p3 = scmp.eq.s32.totalorder %s848_s23, 0  ;;  %s187_s28 = sshll.u32 %s982_s3, 4  ;;  %s188_s28 = int_to_ptr.vmem [resolvable:$true] %s187_s28 }
   0x8   : > { %p855_p2 = pnand %p668_p0, %p160_p1  ;;  %s754_s30 = scalar_lea.vmem %s174_s24, 16 }
   0x9   : > { %p755_p6 = scmp.ne.s32.totalorder %s174_s24, %s754_s30  ;;  %p762_p10 = scmp.lt.s32.totalorder %s174_s24, %s174_s24 }
   0xa   : > { %s987_s25 = scalar_select %p855_p2, 1, 0 }
   0xb   : > { %p722_p4 = pneg %p855_p2  ;;  %p763_p11 = scmp.lt.s32.totalorder %s754_s30, %s754_s30 }
   0xd   : > { %p867_p5 = pnand %p985_p3, %p722_p4  ;;  %p764_p12 = por %p763_p11, %p762_p10 }
   0xf   : > { %p756_p7 = pneg %p867_p5 }
  0x11   : > { %p757_p8 = pnand %p756_p7, %p755_p6 }
  0x13   : > { %p758_p9 = pneg %p757_p8 }
  0x15   : > { %p765_p13 = pnand %p764_p12, %p758_p9 }
  0x17   : > { %768 = shalt.err (!%p765_p13)
}
  0x18   : > { %s800_s6 = smov [#allocation5]   ;;  %s769_s7 = scalar_lea.vmem %s188_s28, 16 }
  0x19   : > { %725 = dma.vmem_to_smem (!%p867_p5), %s174_s24, 16, %s800_s6, [#allocation6]  }
  0x1a   : > { %p770_p0 = scmp.ne.s32.totalorder %s188_s28, %s769_s7  ;;  %p777_p3 = scmp.lt.s32.totalorder %s188_s28, %s188_s28 }
  0x1b   : > { %p778_p2 = scmp.lt.s32.totalorder %s769_s7, %s769_s7 }
  0x1c   : > { %p772_p1 = pnand %p770_p0, %p756_p7 }
  0x1d   : > { %p779_p6 = por %p778_p2, %p777_p3 }
  0x1e   : > { %p773_p4 = pneg %p772_p1 }
  0x20   : > { %p780_p8 = pnand %p779_p6, %p773_p4 }
  0x22   : > { %783 = shalt.err (!%p780_p8)
}
  0x23   : > { %s801_s8 = smov [#allocation7]   ;;  %p989_p9 = scmp.ne.s32.totalorder %s987_s25, 0 }
  0x24   : > { %728 = dma.vmem_to_smem (!%p867_p5), %s188_s28, 16, %s801_s8, [#allocation8]  }
  0x25   : > { %211 = sbr.rel (%p989_p9) target bundleno = 474 (0x1da), region = 40  ;;  %p990_p10 = scmp.eq.s32.totalorder (!%p989_p9), %s848_s23, 0 }
  0x2c   : > { %789 = dma.done.wait (%p990_p10), [#allocation6], 16   ;;  %p991_p11 = pmov %p990_p10 }
  0x2d   : > { %p992_p7 = pmov %p990_p10 }
  0x2e   : > { %791 = vsyncadd (%p991_p11), [#allocation6], 4294967280 }
  0x2f   : > { %793 = dma.done.wait (%p992_p7), [#allocation8], 16   ;;  %p993_p2 = pmov %p992_p7 }
  0x31   : > { %795 = vsyncadd (%p993_p2), [#allocation8], 4294967280 }
  0x32   : > { %221 = sfence }
  0x33   : > { %p244_p3 = scmp.lt.s32.totalorder %s848_s23, 1  ;;  %s679_s9 = sld [smem:[#allocation5 + $0x2]]  ;;  %vm306_vm0 = vcmask 1046528   ;;  %vm368_vm1 = vcmask 1045504   ;;  %vm426_vm2 = vcmask 146432   ;;  %v804_v56 = vmov 0.0  }
  0x34   : > { %s678_s10 = sld [smem:[#allocation5 + $0x1]]  ;;  %s681_s11 = sld [smem:[#allocation5 + $0x4]]  ;;  %428 = vst.msk [vmem:[#allocation2 + $0x8] sm:$0xff] %vm426_vm2, %v804_v56  ;;  %vm429_vm3 = vcmask 140288   ;;  %427 = vst.msk [vmem:[#allocation2] sm:$0xff] %vm426_vm2, %v804_v56  ;;  %vm439_vm4 = vcmask 138248  }
  0x35   : > { %s995_s23 = smov (!%p244_p3, %s848_s23), 1  ;;  %s682_s13 = sld [smem:[#allocation5 + $0x5]]  ;;  %430 = vst.msk [vmem:[#allocation2 + $0x10] sm:$0x3] %vm429_vm3, %v804_v56  ;;  %vm586_vm5 = vcmask 125952  }
  0x36   : > { %s713_s12 = smul.u32 12, %s995_s23  ;;  %s684_s14 = sld [smem:[#allocation5 + $0x7]] }
  0x37   : > { %s906_s18 = sld [smem:[#allocation5 + $0x8]]  ;;  %s683_s19 = sld [smem:[#allocation5 + $0x6]] }
  0x38   : > { %s895_s17 = scalar_lea.vmem %s979_s0, %s713_s12  ;;  %s802_s20 = smov 126  }
  0x39   : > { %v279_v0 = vstv %s679_s9  ;;  %v702_v1 = vld [vmem:[%s895_s17] sm:$0xff]   ;;  %v294_v3 = vld [vmem:[%s895_s17 + $0x8] sm:$0x1]  ;;  %s803_s21 = smov 127   ;;  %s258_s2 = sld [smem:[#allocation5]] }
  0x3a   : > { %v265_v2 = vstv %s678_s10  ;;  %v358_v4 = vld [vmem:[%s895_s17] sm:$0xe]  ;;  %v900_v5 = vunpack.c.l.bf16 %v702_v1  ;;  %v902_v6 = vunpack.c.h.bf16 %v702_v1  ;;  %v904_v7 = vunpack.c.l.bf16 %v294_v3  ;;  %s680_s4 = sld [smem:[#allocation5 + $0x3]]  ;;  %s420_s24 = sld [smem:[#allocation3]] }
  0x3b   : > { %v317_v8 = vstv %s681_s11  ;;  %v359_v12 = vunpack.c.l.bf16 %v358_v4  ;;  %v338_v16 = vstv %s682_s13  ;;  %s805_s25 = smov 1   ;;  %s686_s26 = sld [smem:[#allocation7 + $0x1]] }
  0x3c   : > { %v280_v9 = vmul.f32 %v900_v5, %v279_v0  ;;  %v281_v10 = vmul.f32 %v902_v6, %v279_v0  ;;  %v266_v11 = vmul.f32 %v900_v5, %v265_v2  ;;  %v319_v13 = vmul.f32 %v902_v6, %v317_v8  ;;  %s687_s27 = sld [smem:[#allocation7 + $0x2]]  ;;  %s689_s28 = sld [smem:[#allocation7 + $0x4]] }
  0x3d   : > { %v320_v14 = vmul.f32 %v317_v8, %v904_v7  ;;  %v318_v15 = vmul.f32 %v900_v5, %v317_v8  ;;  %v267_v17 = vmul.f32 %v902_v6, %v265_v2  ;;  %v340_v18 = vmul.f32 %v902_v6, %v338_v16  ;;  %s690_s29 = sld [smem:[#allocation7 + $0x5]]  ;;  %s692_s30 = sld [smem:[#allocation7 + $0x7]] }
  0x3e   : > { %284 = vrot.lane.b32.xlu1 %v280_v9, %s802_s20  ;;  %270 = vrot.lane.b32.xlu0 %v266_v11, %s803_s21  ;;  %v341_v19 = vmul.f32 %v338_v16, %v904_v7  ;;  %v379_v20 = vstv %s684_s14  ;;  %v325_v21 = vrot.slane %v319_v13, 1  ;;  %v339_v24 = vmul.f32 %v900_v5, %v338_v16  ;;  %s693_s6 = sld [smem:[#allocation7 + $0x8]]  ;;  %s688_s8 = sld [smem:[#allocation7 + $0x3]] }
  0x3f   : > { %v327_v22 = vrot.slane %v320_v14, 1  ;;  %v324_v23 = vrot.slane %v318_v15, 1  ;;  %v381_v25 = vmul.f32 %v902_v6, %v379_v20  ;;  %v382_v26 = vmul.f32 %v379_v20, %v904_v7  ;;  %s444_s7 = sld [smem:[#allocation7]]  ;;  %s691_s9 = sld [smem:[#allocation7 + $0x6]] }
  0x40   : > { %v380_v27 = vmul.f32 %v379_v20, %v359_v12  ;;  %v346_v28 = vrot.slane %v340_v18, 1  ;;  %v348_v29 = vrot.slane %v341_v19, 1  ;;  %v345_v32 = vrot.slane %v339_v24, 1  ;;  %s556_s10 = sld [smem:[#allocation4]]  ;;  %s698_s11 = sshll.u32 %s995_s23, 3 }
  0x41   : > { %v328_v30 = vsel %vm306_vm0, %v325_v21, %v327_v22  ;;  %v326_v31 = vsel %vm306_vm0, %v324_v23, %v325_v21  ;;  %v400_v33 = vstv %s906_s18  ;;  %v387_v34 = vrot.slane %v381_v25, 2  ;;  %s253_s14 = scalar_lea.vmem %s984_s5, %s698_s11 }
  0x42   : > { %286 = vrot.lane.b32.xlu1 %v281_v10, %s802_s20  ;;  %272 = vrot.lane.b32.xlu0 %v267_v17, %s803_s21  ;;  %v389_v35 = vrot.slane %v382_v26, 2  ;;  %v386_v36 = vrot.slane %v380_v27, 2  ;;  %v361_v37 = vstv %s683_s19  ;;  %v402_v38 = vmul.f32 %v902_v6, %v400_v33 }
  0x43   : > { %v349_v39 = vsel %vm306_vm0, %v346_v28, %v348_v29  ;;  %v347_v40 = vsel %vm306_vm0, %v345_v32, %v346_v28  ;;  %v403_v41 = vmul.f32 %v400_v33, %v904_v7  ;;  %v401_v42 = vmul.f32 %v400_v33, %v359_v12 }
  0x44   : > { %v363_v43 = vmul.f32 %v902_v6, %v361_v37  ;;  %v364_v44 = vmul.f32 %v361_v37, %v904_v7  ;;  %v362_v45 = vmul.f32 %v361_v37, %v359_v12  ;;  %v390_v46 = vsel %vm368_vm1, %v387_v34, %v389_v35 }
  0x45   : > { %v388_v47 = vsel %vm368_vm1, %v386_v36, %v387_v34  ;;  %v408_v48 = vrot.slane %v402_v38, 2  ;;  %v410_v52 = vrot.slane %v403_v41, 2  ;;  %v407_v53 = vrot.slane %v401_v42, 2 }
  0x46   : > { %331 = vrot.lane.b32.xlu1 %v328_v30, %s803_s21  ;;  %329 = vrot.lane.b32.xlu0 %v326_v31, %s803_s21  ;;  %v370_v49 = vrot.slane %v363_v43, 2  ;;  %v372_v50 = vrot.slane %v364_v44, 2  ;;  %v369_v51 = vrot.slane %v362_v45, 2  ;;  %v259_v59 = vstv %s258_s2 }
  0x47   : > { %v411_v57 = vsel %vm368_vm1, %v408_v48, %v410_v52  ;;  %v409_v58 = vsel %vm368_vm1, %v407_v53, %v408_v48  ;;  %v299_v60 = vstv %s680_s4  ;;  %v260_v61 = vmul.f32 %v900_v5, %v259_v59 }
  0x48   : > { %v373_v54 = vsel %vm368_vm1, %v370_v49, %v372_v50  ;;  %v371_v55 = vsel %vm368_vm1, %v369_v51, %v370_v49  ;;  %v301_v62 = vmul.f32 %v902_v6, %v299_v60  ;;  %v302_v63 = vmul.f32 %v299_v60, %v904_v7 }
  0x49   : > { %v300_v0 = vmul.f32 %v900_v5, %v299_v60  ;;  %v261_v4 = vmul.f32 %v902_v6, %v259_v59  ;;  %v421_v33 = vstv %s420_s24  ;;  %v451_v44 = vstv %s686_s26 }
  0x4a   : > { %352 = vrot.lane.b32.xlu1 %v349_v39, %s802_s20  ;;  %350 = vrot.lane.b32.xlu0 %v347_v40, %s802_s20  ;;  %v308_v8 = vrot.slane %v301_v62, 1  ;;  %v310_v9 = vrot.slane %v302_v63, 1  ;;  %v465_v49 = vstv %s687_s27  ;;  %v487_v53 = vstv %s689_s28 }
  0x4b   : > { %v307_v10 = vrot.slane %v300_v0, 1  ;;  %v523_v63 = vstv %s692_s30 }
  0x4c   : > { %v311_v15 = vsel %vm306_vm0, %v308_v8, %v310_v9  ;;  %v537_v9 = vstv %s693_s6 }
  0x4d   : > { %v309_v16 = vsel %vm306_vm0, %v307_v10, %v308_v8 }
  0x4e   : > { %393 = vrot.lane.b32.xlu1 %v390_v46, %s803_s21  ;;  %391 = vrot.lane.b32.xlu0 %v388_v47, %s803_s21 }
  0x52   : > { %414 = vrot.lane.b32.xlu1 %v411_v57, %s802_s20  ;;  %412 = vrot.lane.b32.xlu0 %v409_v58, %s802_s20  ;;  %v552_v57 = vld [vmem:[%s895_s17 + $0x8] sm:$0x1]  ;;  %v501_v58 = vstv %s690_s29 }
  0x53   : > { %v555_v59 = vunpack.c.l.bf16 %v552_v57 }
  0xb0   : > { %v285_v1 = vpop.permute.xlu1 %284  ;;  %v271_v2 = vpop.permute.xlu0 %270 }
  0xb1   : > { %v276_v3 = vadd.f32 %v271_v2, %v260_v61  ;;  %v564_v2 = vrot.slane %v902_v6, 1  ;;  %v445_v6 = vstv %s444_s7 }
  0xb3   : > { %v290_v13 = vadd.f32 %v285_v1, %v276_v3  ;;  %v563_v1 = vrot.slane %v900_v5, 1  ;;  %v566_v3 = vrot.slane %v555_v59, 1 }
  0xb4   : > { %v287_v11 = vpop.permute.xlu1 %286  ;;  %v273_v12 = vpop.permute.xlu0 %272 }
  0xb5   : > { %v277_v14 = vadd.f32 %v273_v12, %v261_v4  ;;  %v314_v20 = vadd.f32 %v309_v16, %v290_v13  ;;  %v565_v10 = vsel %vm306_vm0, %v563_v1, %v564_v2 }
  0xb7   : > { %v291_v17 = vadd.f32 %v287_v11, %v277_v14  ;;  %v567_v11 = vsel %vm306_vm0, %v564_v2, %v566_v3 }
  0xb8   : > { %v332_v7 = vpop.permute.xlu1 %331  ;;  %v330_v18 = vpop.permute.xlu0 %329  ;;  %v747_v5 = vpack.i.bf16 %v567_v11, %v565_v10 }
  0xb9   : > { %v315_v19 = vadd.f32 %v311_v15, %v291_v17  ;;  %v335_v22 = vadd.f32 %v330_v18, %v314_v20 }
  0xbb   : > { %v336_v21 = vadd.f32 %v332_v7, %v315_v19  ;;  %v481_v7 = vstv %s688_s8 }
  0xbc   : > { %v353_v23 = vpop.permute.xlu1 %352  ;;  %v351_v24 = vpop.permute.xlu0 %350 }
  0xbd   : > { %v357_v25 = vadd.f32 %v353_v23, %v336_v21  ;;  %v356_v26 = vadd.f32 %v351_v24, %v335_v22 }
  0xbf   : > { %v377_v27 = vadd.f32 %v373_v54, %v357_v25  ;;  %v376_v28 = vadd.f32 %v371_v55, %v356_v26 }
  0xc0   : > { %v394_v29 = vpop.permute.xlu1 %393  ;;  %v392_v30 = vpop.permute.xlu0 %391 }
  0xc1   : > { %v398_v31 = vadd.f32 %v394_v29, %v377_v27  ;;  %v397_v32 = vadd.f32 %v392_v30, %v376_v28  ;;  %v517_v30 = vstv %s691_s9 }
  0xc4   : > { %v415_v34 = vpop.permute.xlu1 %414  ;;  %v413_v35 = vpop.permute.xlu0 %412 }
  0xc5   : > { %v419_v36 = vadd.f32 %v415_v34, %v398_v31  ;;  %v418_v37 = vadd.f32 %v413_v35, %v397_v32 }
  0xc7   : > { %v423_v38 = vadd.f32 %v421_v33, %v419_v36  ;;  %v422_v39 = vadd.f32 %v421_v33, %v418_v37 }
  0xc9   : > { %v425_v40 = vmax.f32 %v423_v38, 0.0  ;;  %v424_v41 = vmax.f32 %v422_v39, 0.0 }
  0xcb   : > { %435 = vrot.lane.b32.xlu1 %v425_v40, %s805_s25  ;;  %433 = vrot.lane.b32.xlu0 %v424_v41, %s805_s25 }
 0x13d   : > { %v436_v42 = vpop.permute.xlu1 %435  ;;  %v434_v43 = vpop.permute.xlu0 %433 }
 0x13e   : > { %441 = vst.msk [vmem:[#allocation2 + $0x9] sm:$0xff] %vm439_vm4, %v436_v42  ;;  %440 = vst.msk [vmem:[#allocation2 + $0x1] sm:$0xff] %vm439_vm4, %v434_v43 }
 0x145   : > { %v443_v45 = vld [vmem:[#allocation2 + $0x8] sm:$0xff]  ;;  %v442_v46 = vld [vmem:[#allocation2] sm:$0xff] }
 0x146   : > { %v453_v47 = vmul.f32 %v451_v44, %v443_v45  ;;  %v452_v48 = vmul.f32 %v451_v44, %v442_v46  ;;  %v467_v50 = vmul.f32 %v465_v49, %v443_v45  ;;  %v466_v51 = vmul.f32 %v465_v49, %v442_v46  ;;  %v479_v52 = vld [vmem:[#allocation2 + $0x9] sm:$0xff]  ;;  %v478_v54 = vld [vmem:[#allocation2 + $0x1] sm:$0xff] }
 0x147   : > { %v489_v55 = vmul.f32 %v487_v53, %v479_v52  ;;  %v488_v56 = vmul.f32 %v487_v53, %v478_v54  ;;  %v503_v60 = vmul.f32 %v501_v58, %v479_v52  ;;  %v502_v61 = vmul.f32 %v501_v58, %v478_v54  ;;  %v515_v62 = vld [vmem:[#allocation2 + $0xa] sm:$0xff]  ;;  %v514_v0 = vld [vmem:[#allocation2 + $0x2] sm:$0xff] }
 0x148   : > { %458 = vrot.lane.b32.xlu1 %v453_v47, %s803_s21  ;;  %456 = vrot.lane.b32.xlu0 %v452_v48, %s803_s21  ;;  %v525_v4 = vmul.f32 %v523_v63, %v515_v62  ;;  %v524_v8 = vmul.f32 %v523_v63, %v514_v0  ;;  %v539_v12 = vmul.f32 %v537_v9, %v515_v62  ;;  %v557_v49 = vstv %s556_s10 }
 0x149   : > { %v538_v13 = vmul.f32 %v537_v9, %v514_v0  ;;  %v447_v16 = vmul.f32 %v445_v6, %v443_v45  ;;  %v446_v17 = vmul.f32 %v445_v6, %v442_v46  ;;  %v483_v24 = vmul.f32 %v481_v7, %v479_v52 }
 0x14a   : > { %v482_v25 = vmul.f32 %v481_v7, %v478_v54  ;;  %v519_v37 = vmul.f32 %v517_v30, %v515_v62  ;;  %v518_v38 = vmul.f32 %v517_v30, %v514_v0 }
 0x14c   : > { %472 = vrot.lane.b32.xlu1 %v467_v50, %s802_s20  ;;  %470 = vrot.lane.b32.xlu0 %v466_v51, %s802_s20 }
 0x150   : > { %494 = vrot.lane.b32.xlu1 %v489_v55, %s803_s21  ;;  %492 = vrot.lane.b32.xlu0 %v488_v56, %s803_s21 }
 0x154   : > { %508 = vrot.lane.b32.xlu1 %v503_v60, %s802_s20  ;;  %506 = vrot.lane.b32.xlu0 %v502_v61, %s802_s20 }
 0x158   : > { %530 = vrot.lane.b32.xlu1 %v525_v4, %s803_s21  ;;  %528 = vrot.lane.b32.xlu0 %v524_v8, %s803_s21 }
 0x15c   : > { %544 = vrot.lane.b32.xlu1 %v539_v12, %s802_s20  ;;  %542 = vrot.lane.b32.xlu0 %v538_v13, %s802_s20 }
 0x160   : > { %748 = vrot.lane.b32.xlu0 %v747_v5, %s803_s21 }
 0x1ba   : > { %v459_v14 = vpop.permute.xlu1 %458  ;;  %v457_v15 = vpop.permute.xlu0 %456 }
 0x1bb   : > { %v463_v18 = vadd.f32 %v459_v14, %v447_v16  ;;  %v462_v19 = vadd.f32 %v457_v15, %v446_v17 }
 0x1be   : > { %v473_v20 = vpop.permute.xlu1 %472  ;;  %v471_v21 = vpop.permute.xlu0 %470 }
 0x1bf   : > { %v477_v22 = vadd.f32 %v473_v20, %v463_v18  ;;  %v476_v23 = vadd.f32 %v471_v21, %v462_v19 }
 0x1c1   : > { %v485_v26 = vadd.f32 %v483_v24, %v477_v22  ;;  %v484_v27 = vadd.f32 %v482_v25, %v476_v23 }
 0x1c2   : > { %v495_v28 = vpop.permute.xlu1 %494  ;;  %v493_v29 = vpop.permute.xlu0 %492 }
 0x1c3   : > { %v499_v31 = vadd.f32 %v495_v28, %v485_v26  ;;  %v498_v32 = vadd.f32 %v493_v29, %v484_v27 }
 0x1c6   : > { %v509_v33 = vpop.permute.xlu1 %508  ;;  %v507_v34 = vpop.permute.xlu0 %506 }
 0x1c7   : > { %v513_v35 = vadd.f32 %v509_v33, %v499_v31  ;;  %v512_v36 = vadd.f32 %v507_v34, %v498_v32 }
 0x1c9   : > { %v521_v39 = vadd.f32 %v519_v37, %v513_v35  ;;  %v520_v40 = vadd.f32 %v518_v38, %v512_v36 }
 0x1ca   : > { %v531_v41 = vpop.permute.xlu1 %530  ;;  %v529_v42 = vpop.permute.xlu0 %528 }
 0x1cb   : > { %v535_v43 = vadd.f32 %v531_v41, %v521_v39  ;;  %v534_v44 = vadd.f32 %v529_v42, %v520_v40 }
 0x1ce   : > { %v545_v45 = vpop.permute.xlu1 %544  ;;  %v543_v46 = vpop.permute.xlu0 %542 }
 0x1cf   : > { %v549_v47 = vadd.f32 %v545_v45, %v535_v43  ;;  %v548_v48 = vadd.f32 %v543_v46, %v534_v44 }
 0x1d1   : > { %v559_v51 = vadd.f32 %v557_v49, %v549_v47  ;;  %v558_v52 = vadd.f32 %v557_v49, %v548_v48 }
 0x1d2   : > { %v749_v50 = vpop.permute.xlu0 %748 }
 0x1d3   : > { %v752_v53 = vadd.high.f32.bf16 %v559_v51, %v749_v50  ;;  %v753_v54 = vadd.low.f32.bf16 %v558_v52, %v749_v50 }
 0x1d5   : > { %v577_v55 = vmax.f32 %v752_v53, 0.0  ;;  %v576_v56 = vmax.f32 %v753_v54, 0.0 }
 0x1d7   : > { %v700_v57 = vpack.c.bf16 %v577_v55, %v577_v55  ;;  %v699_v58 = vpack.c.bf16 %v576_v56, %v576_v56 }
 0x1d9   : > { %588 = vst.msk [vmem:[%s253_s14 + $0x4] sm:$0xf] %vm586_vm5, %v700_v57  ;;  %587 = vst.msk [vmem:[%s253_s14] sm:$0xf] %vm586_vm5, %v699_v58 }
 0x1da PF: > { %s19_s22 = sadd.s32 1, %s798_s22  }
 0x1db   : > { %p16_p5 = scmp.ge.s32.totalorder %s19_s22, 4  }
 0x1dd   :  { %18 = sbr.rel (!%p16_p5) target bundleno = 5 (0x5), region = 79 }
 0x1e4   :  { %610 = vsyncpa [#allocation6], 1 }
 0x1e5   :  { %612 = vsyncpa [#allocation6 + $0x1], 1 }
 0x1e6   :  { %613 = vsyncpa [#allocation8], 1 }

// kernel: _lambda_.7
= control target key start
LH: loop header
LB: loop body
LE: loop exit
PB: predicated region body
PF: predicated region fallthrough
CT: control target
= control target key end

     0   :  { %s3828_s13 = smov 0   ;;  %s4320_s0 = inlined_call_operand.vmem [shape: bf16[2,5,5,32], index: 0, kind: input, shape index: {}]   ;;  %s4321_s1 = inlined_call_operand.vmem [shape: bf16[2,5,5,32], index: 1, kind: input, shape index: {}]   ;;  %s4322_s2 = inlined_call_operand.vmem [shape: bf16[2,5,5,32], index: 2, kind: input, shape index: {}]   ;;  %s4323_s3 = inlined_call_operand.vmem [shape: bf16[2,5,5,32], index: 3, kind: input, shape index: {}]   ;;  %s4324_s4 = inlined_call_operand.vmem [shape: bf16[3,3,32,64], index: 4, kind: input, shape index: {}]   ;;  %s4325_s5 = inlined_call_operand.vmem [shape: f32[1,64], index: 5, kind: input, shape index: {}]   ;;  %s4326_s6 = inlined_call_operand.vmem [shape: bf16[3,3,64,64], index: 6, kind: input, shape index: {}]   ;;  %s4327_s7 = inlined_call_operand.vmem [shape: f32[1,64], index: 7, kind: input, shape index: {}]   ;;  %s4328_s8 = inlined_call_operand.vmem [shape: bf16[1,1,32,64], index: 8, kind: input, shape index: {}]   ;;  %s4329_s9 = inlined_call_operand.vmem [shape: f32[1,64], index: 9, kind: input, shape index: {}]   ;;  %s4330_s10 = inlined_call_operand.vmem [shape: bf16[2,16,64], index: 10, kind: output, shape index: {}]  }
   0x1 LB: > { %s3097_s14 = sadd.s32 4294967295, %s3767_s13   ;;  %p3101_p0 = scmp.ge.s32.totalorder %s3767_s13, 1  ;;  %s3767_s13 = sphi %s3828_s13, %s20_s13  }
   0x2   : > { %p342_p1 = scmp.lt.s32.totalorder %s3767_s13, 3 }
   0x4   : > { %p343_p2 = pnand %p3101_p0, %p342_p1 }
   0x5   : > { %v3669_v0 = vld [vmem:[%s4324_s4 + $0x10] sm:$0xff] (!%p343_p2)   ;;  %v447_v1 = vlaneseq (!%p343_p2)  ;;  %v3769_v2 = vmov (!%p343_p2), 0.0   ;;  %v3670_v3 = vld [vmem:[%s4324_s4 + $0x18] sm:$0xff] (!%p343_p2)   ;;  %vm3770_vm0 = vmmov (!%p343_p2), 0   ;;  %p395_p3 = scmp.lt.s32.totalorder (!%p343_p2), %s3097_s14, 1  ;;  %vm471_vm1 = vcmask (!%p343_p2), 261120  }
   0x6   : > { %346 = sbr.rel (%p343_p2) target bundleno = 614 (0x266), region = 60  ;;  %3432 = vmatprep.subr.bf16.mxu0 (!%p343_p2), %v3769_v2  ;;  %3456 = vmatprep.subr.bf16.mxu1 (!%p343_p2), %v3769_v2  ;;  %v3771_v4 = vmov (!%p343_p2), 1983009808   ;;  %v3678_v8 = vld [vmem:[%s4324_s4 + $0x30] sm:$0xff] (!%p343_p2)   ;;  %v3680_v10 = vld [vmem:[%s4324_s4 + $0x38] sm:$0xff] (!%p343_p2)   ;;  %v3673_v13 = vld [vmem:[%s4324_s4] sm:$0xff] (!%p343_p2)  }
   0x7   : > { %3433 = vmatpush3.bf16.msra.mxu0 (!%p343_p2), %v3669_v0  ;;  %3436 = vmatprep.mubr.msk.bf16.mxu0 (!%p343_p2), %vm3770_vm0, %v3769_v2  ;;  %v445_v5 = vunpack.c.l.s4 (!%p343_p2), %v3771_v4  ;;  %v448_v6 = vshrl.u32 (!%p343_p2), %v447_v1, 7  ;;  %vm633_vm2 = vsmask.f32 (!%p343_p2), 1280  ;;  %vm634_vm3 = vsmask.f32 (!%p343_p2), 3336  ;;  %v3674_v26 = vld [vmem:[%s4324_s4 + $0x8] sm:$0xff] (!%p343_p2)  }
   0x8   : > { %3434 = vmatprep.subr.bf16.mxu0 (!%p343_p2), %v3769_v2  ;;  %3460 = vmatprep.mubr.msk.bf16.mxu1 (!%p343_p2), %vm3770_vm0, %v3769_v2  ;;  %vm636_vm4 = vsmask.f32 (!%p343_p2), 5392  ;;  %vm3890_vm5 = vmor (!%p343_p2), %vm633_vm2, %vm634_vm3  ;;  %vm638_vm6 = vsmask.f32 (!%p343_p2), 7448  ;;  %v3677_v44 = vld [vmem:[%s4324_s4 + $0x20] sm:$0xff] (!%p343_p2)   ;;  %v3679_v55 = vld [vmem:[%s4324_s4 + $0x28] sm:$0xff] (!%p343_p2)  }
   0x9   : > { %v446_v7 = vunpack.c.0.s8 (!%p343_p2), %v445_v5  ;;  %3457 = vmatpush3.bf16.msra.mxu1 (!%p343_p2), %v3678_v8  ;;  %vm3909_vm7 = vmor (!%p343_p2), %vm3890_vm5, %vm636_vm4  ;;  %v3684_v62 = vld [vmem:[%s4324_s4 + $0x50] sm:$0xff] (!%p343_p2)   ;;  %vm1557_vm9 = vcmask (!%p343_p2), 518144   ;;  %vm1620_vm10 = vsmask.f32 (!%p343_p2), 2306  ;;  %vm1792_vm12 = vcmask (!%p343_p2), 523264   ;;  %v3736_v49 = vld [vmem:[%s4326_s6 + $0xf8] sm:$0xff] (!%p343_p2)  }
   0xa   : > { %3458 = vmatprep.subr.bf16.mxu1 (!%p343_p2), %v3769_v2  ;;  %vm3920_vm8 = vmor (!%p343_p2), %vm3909_vm7, %vm638_vm6  ;;  %vm1966_vm13 = vcmask (!%p343_p2), 1040384   ;;  %vm1967_vm14 = vcmask (!%p343_p2), 1042434   ;;  %vm1971_vm3 = vcmask (!%p343_p2), 1046534  }
   0xb   : > { %3435 = vmatpush3.bf16.msra.mxu0 (!%p343_p2), %v3670_v3  ;;  %v3864_v9 = vsub.s32 (!%p343_p2), %v446_v7, %v448_v6  ;;  %vm4101_vm11 = vmand (!%p343_p2), %vm1557_vm9, %vm1620_vm10 }
   0xc   : > { %3440 = vmatprep.subr.bf16.mxu0 (!%p343_p2), %v3769_v2  ;;  %vm1968_vm15 = vmor (!%p343_p2), %vm1966_vm13, %vm1967_vm14 }
   0xd   : > { %s4344_s14 = smov (!%p395_p3, %s3097_s14), 1  ;;  %3459 = vmatpush3.bf16.msra.mxu1 %v3680_v10  ;;  %v3686_v10 = vld [vmem:[%s4324_s4 + $0x58] sm:$0xff]  }
   0xe   : > { %s3852_s19 = smul.u32 20, %s4344_s14  ;;  %3472 = vmatprep.subr.bf16.mxu1 %v3769_v2 }
  0x10   : > { %s3862_s24 = scalar_lea.vmem %s4321_s1, %s3852_s19  ;;  %s3874_s29 = scalar_lea.vmem %s4320_s0, %s3852_s19 }
  0x11   : > { %v3743_v11 = vld.sshfl [vmem:[%s3862_s24] sm:$0xf pattern:$0x76325410]  ;;  %s3903_s18 = scalar_lea.vmem %s4322_s2, %s3852_s19  ;;  %s414_s30 = scalar_lea.vmem %s4323_s3, %s3852_s19 }
  0x12   : > { %v3744_v12 = vld.sshfl [vmem:[%s3862_s24 + $0x8] sm:$0xf pattern:$0x76325410] }
  0x13   : > { %v3745_v14 = vld.sshfl [vmem:[%s3874_s29] sm:$0xf pattern:$0x76325410]  ;;  %v458_v17 = vcombine.low %v3743_v11, %v3744_v12 }
  0x14   : > { %v3746_v15 = vld.sshfl [vmem:[%s3874_s29 + $0x8] sm:$0xf pattern:$0x76325410] }
  0x15   : > { %v3118_v16 = vld.sshfl [vmem:[%s3874_s29] sm:$0x13 pattern:$0x76325410]  ;;  %3437 = vmatmul.mubr.msk.bf16.vlgmr.msra.gmra.mrb[0].mxu0 %vm471_vm1, %v458_v17  ;;  %v536_v22 = vcombine.low %v3745_v14, %v3746_v15 }
  0x16   : > { %v3119_v18 = vld.sshfl [vmem:[%s3874_s29 + $0x4] sm:$0x13 pattern:$0x76325410]  ;;  %v608_v19 = vcombine.high %v3118_v16, %v3118_v16  ;;  %3441 = vmatpush3.bf16.msra.mxu0 %v3673_v13  ;;  %3444 = vmatprep.mubr.msk.bf16.mxu0 %vm3770_vm0, %v3769_v2  ;;  %v641_v28 = vshrl.u32 %v3118_v16, 16  ;;  %v644_v29 = vshll.u32 %v3118_v16, 16 }
  0x17   : > { %v3120_v20 = vld.sshfl [vmem:[%s3874_s29 + $0x8] sm:$0x13 pattern:$0x76325410]  ;;  %v616_v21 = vcombine.high %v3119_v18, %v3119_v18  ;;  %3442 = vmatprep.subr.bf16.mxu0 %v3769_v2  ;;  %v655_v31 = vshrl.u32 %v3119_v18, 16  ;;  %v658_v32 = vshll.u32 %v3119_v18, 16 }
  0x18   : > { %v3121_v23 = vld.sshfl [vmem:[%s3874_s29 + $0xc] sm:$0x13 pattern:$0x76325410]  ;;  %v624_v24 = vcombine.high %v3120_v20, %v3120_v20  ;;  %v650_v30 = vshll.u32 %v608_v19, 16  ;;  %v669_v34 = vshrl.u32 %v3120_v20, 16 }
  0x19   : > { %v632_v27 = vcombine.high %v3121_v23, %v3121_v23  ;;  %v664_v33 = vshll.u32 %v616_v21, 16  ;;  %v643_v36 = vrot.slane %v641_v28, 6  ;;  %v646_v37 = vrot.slane %v644_v29, 7 }
  0x1a   : > { %v652_v38 = vrot.slane %v650_v30, 7  ;;  %v672_v39 = vshll.u32 %v3120_v20, 16  ;;  %v657_v40 = vrot.slane %v655_v31, 6  ;;  %v660_v41 = vrot.slane %v658_v32, 7  ;;  %3443 = vmatpush3.bf16.msra.mxu0 %v3674_v26  ;;  %v3681_v30 = vld [vmem:[%s4324_s4 + $0x40] sm:$0xff]  }
  0x1b   : > { %v666_v42 = vrot.slane %v664_v33, 7  ;;  %v671_v43 = vrot.slane %v669_v34, 6  ;;  %v647_v45 = vor.u32 %v646_v37, %v643_v36  ;;  %v678_v47 = vshll.u32 %v624_v24, 16  ;;  %3448 = vmatprep.subr.bf16.mxu0 %v3769_v2 }
  0x1c   : > { %v674_v46 = vrot.slane %v672_v39, 7  ;;  %v683_v48 = vshrl.u32 %v3121_v23, 16  ;;  %v661_v50 = vor.u32 %v660_v41, %v657_v40  ;;  %v686_v51 = vshll.u32 %v3121_v23, 16  ;;  %v3685_v39 = vld [vmem:[%s4324_s4 + $0x48] sm:$0xff]  }
  0x1d   : > { %v692_v52 = vshll.u32 %v632_v27, 16  ;;  %v3747_v53 = vld.sshfl [vmem:[%s3903_s18] sm:$0xf pattern:$0x76325410]  ;;  %v648_v56 = vrot.slane %v647_v45, 2  ;;  %3445 = vmatmul.mubr.msk.bf16.vlgmr.msra.gmra.mrb[4].mxu0 %vm471_vm1, %v536_v22 }
  0x1e   : > { %v3748_v54 = vld.sshfl [vmem:[%s3903_s18 + $0x8] sm:$0xf pattern:$0x76325410]  ;;  %v675_v57 = vor.u32 %v674_v46, %v671_v43  ;;  %v685_v58 = vrot.slane %v683_v48, 6  ;;  %v662_v59 = vrot.slane %v661_v50, 2  ;;  %3449 = vmatpush3.bf16.msra.mxu0 %v3677_v44  ;;  %3452 = vmatprep.mubr.msk.bf16.mxu0 %vm3770_vm0, %v3769_v2 }
  0x1f   : > { %v680_v60 = vrot.slane %v678_v47, 7  ;;  %v688_v61 = vrot.slane %v686_v51, 7  ;;  %v653_v63 = vsel %vm3920_vm8, %v648_v56, %v652_v38  ;;  %v694_v1 = vrot.slane %v692_v52, 7  ;;  %3450 = vmatprep.subr.bf16.mxu0 %v3769_v2 }
  0x20   : > { %v676_v0 = vrot.slane %v675_v57, 2  ;;  %v3944_v3 = vsel %vm3920_vm8, %v662_v59, %v666_v42  ;;  %v805_v6 = vcombine.low %v3747_v53, %v3748_v54  ;;  %v3749_v11 = vld.sshfl [vmem:[%s414_s30] sm:$0xf pattern:$0x76325410] }
  0x21   : > { %v689_v4 = vor.u32 %v688_v61, %v685_v58  ;;  %v701_v5 = vcombine.low %v653_v63, %v3944_v3  ;;  %v3750_v12 = vld.sshfl [vmem:[%s414_s30 + $0x8] sm:$0xf pattern:$0x76325410] }
  0x22   : > { %v3949_v7 = vsel %vm3920_vm8, %v676_v0, %v680_v60  ;;  %3451 = vmatpush3.bf16.msra.mxu0 %v3679_v55  ;;  %3461 = vmatmul.mubr.msk.bf16.vlgmr.msra.gmra.mrb[0].mxu1 %vm471_vm1, %v805_v6  ;;  %v3143_v15 = vld.sshfl [vmem:[%s3903_s18] sm:$0x13 pattern:$0x76325410]  ;;  %v3990_v61 = vcombine.low %v3749_v11, %v3750_v12  ;;  %v3691_v11 = vld [vmem:[%s4324_s4 + $0x68] sm:$0xff]  }
  0x23   : > { %v690_v8 = vrot.slane %v689_v4, 2  ;;  %3464 = vmatprep.subr.bf16.mxu0 %v3769_v2  ;;  %v709_v14 = vrot.slane %v701_v5, %v3864_v9  ;;  %3473 = vmatpush3.bf16.msra.mxu1 %v3684_v62  ;;  %v3144_v17 = vld.sshfl [vmem:[%s3903_s18 + $0x4] sm:$0x13 pattern:$0x76325410]  ;;  %v967_v18 = vcombine.high %v3143_v15, %v3143_v15  ;;  %v993_v19 = vshrl.u32 %v3143_v15, 16 }
  0x24   : > { %3474 = vmatprep.subr.bf16.mxu1 %v3769_v2  ;;  %3476 = vmatprep.mubr.msk.bf16.mxu1 %vm3770_vm0, %v3769_v2  ;;  %v996_v20 = vshll.u32 %v3143_v15, 16  ;;  %v3145_v21 = vld.sshfl [vmem:[%s3903_s18 + $0x8] sm:$0x13 pattern:$0x76325410]  ;;  %v975_v22 = vcombine.high %v3144_v17, %v3144_v17  ;;  %v1007_v23 = vshrl.u32 %v3144_v17, 16 }
  0x25   : > { %v3958_v13 = vsel %vm3920_vm8, %v690_v8, %v694_v1  ;;  %v1010_v24 = vshll.u32 %v3144_v17, 16  ;;  %v3146_v26 = vld.sshfl [vmem:[%s3903_s18 + $0xc] sm:$0x13 pattern:$0x76325410]  ;;  %v983_v27 = vcombine.high %v3145_v21, %v3145_v21  ;;  %v995_v28 = vrot.slane %v993_v19, 6 }
  0x26   : > { %v702_v16 = vcombine.low %v3949_v7, %v3958_v13  ;;  %v998_v29 = vrot.slane %v996_v20, 7  ;;  %v991_v31 = vcombine.high %v3146_v26, %v3146_v26  ;;  %v1002_v32 = vshll.u32 %v967_v18, 16  ;;  %v3689_v55 = vld [vmem:[%s4324_s4 + $0x60] sm:$0xff]  }
  0x27   : > { %3475 = vmatpush3.bf16.msra.mxu1 %v3686_v10  ;;  %v1009_v33 = vrot.slane %v1007_v23, 6  ;;  %v1012_v34 = vrot.slane %v1010_v24, 7  ;;  %v1016_v37 = vshll.u32 %v975_v22, 16  ;;  %v1021_v38 = vshrl.u32 %v3145_v21, 16  ;;  %v3690_v23 = vld [vmem:[%s4324_s4 + $0x70] sm:$0xff]  }
  0x28   : > { %v716_v25 = vrot.slane %v702_v16, %v3864_v9  ;;  %v999_v36 = vor.u32 %v998_v29, %v995_v28  ;;  %3488 = vmatprep.subr.bf16.mxu1 %v3769_v2  ;;  %v1004_v40 = vrot.slane %v1002_v32, 7  ;;  %v1024_v42 = vshll.u32 %v3145_v21, 16  ;;  %v3751_v60 = vld.sshfl [vmem:[%s3874_s29 + $0x4] sm:$0xf pattern:$0x76325410] }
  0x29   : > { %v1013_v41 = vor.u32 %v1012_v34, %v1009_v33  ;;  %v1030_v43 = vshll.u32 %v983_v27, 16  ;;  %v1018_v45 = vrot.slane %v1016_v37, 7  ;;  %v1023_v46 = vrot.slane %v1021_v38, 6  ;;  %v3698_v32 = vld [vmem:[%s4324_s4 + $0x88] sm:$0xff]   ;;  %v3699_v38 = vld [vmem:[%s4328_s8] sm:$0xff]  }
  0x2a   : > { %v717_v35 = vcombine.low %v709_v14, %v716_v25  ;;  %v1000_v44 = vrot.slane %v999_v36, 2  ;;  %v1035_v47 = vshrl.u32 %v3146_v26, 16  ;;  %v1026_v50 = vrot.slane %v1024_v42, 7  ;;  %v3702_v42 = vld [vmem:[%s4326_s6 + $0x80] sm:$0xff]  }
  0x2b   : > { %v1014_v48 = vrot.slane %v1013_v41, 2  ;;  %v1032_v51 = vrot.slane %v1030_v43, 7  ;;  %v1038_v52 = vshll.u32 %v3146_v26, 16  ;;  %v1044_v54 = vshll.u32 %v991_v31, 16  ;;  %v3695_v26 = vld [vmem:[%s4324_s4 + $0x80] sm:$0xff]   ;;  %v3703_v41 = vld [vmem:[%s4326_s6 + $0x28] sm:$0xff]  }
  0x2c   : > { %3453 = vmatmul.mubr.msk.bf16.vlgmr.msra.gmra.mrb[8].mxu0 %vm471_vm1, %v717_v35  ;;  %v1037_v53 = vrot.slane %v1035_v47, 6  ;;  %v1005_v56 = vsel %vm3920_vm8, %v1000_v44, %v1004_v40  ;;  %v1027_v58 = vor.u32 %v1026_v50, %v1023_v46  ;;  %v3752_v62 = vld.sshfl [vmem:[%s3874_s29 + $0xc] sm:$0xf pattern:$0x76325410]  ;;  %v1407_v31 = vcombine.low %v3944_v3, %v3949_v7  ;;  %v3708_v47 = vld [vmem:[%s4326_s6 + $0x98] sm:$0xff]  }
  0x2d   : > { %3465 = vmatpush3.bf16.msra.mxu0 %v3681_v30  ;;  %3468 = vmatprep.mubr.msk.bf16.mxu0 %vm3770_vm0, %v3769_v2  ;;  %v1019_v57 = vsel %vm3920_vm8, %v1014_v48, %v1018_v45  ;;  %v1040_v59 = vrot.slane %v1038_v52, 7  ;;  %v1046_v1 = vrot.slane %v1044_v54, 7  ;;  %v3183_v8 = vld.sshfl [vmem:[%s3874_s29 + $0x10] sm:$0x13 pattern:$0x76325410]  ;;  %v1158_v24 = vcombine.low %v3751_v60, %v3752_v62 }
  0x2e   : > { %3466 = vmatprep.subr.bf16.mxu0 %v3769_v2  ;;  %v1028_v63 = vrot.slane %v1027_v58, 2  ;;  %v1053_v4 = vcombine.low %v1005_v56, %v1019_v57  ;;  %v1345_v12 = vcombine.high %v3183_v8, %v3183_v8  ;;  %v1389_v14 = vshrl.u32 %v3183_v8, 16  ;;  %v3753_v17 = vld.sshfl [vmem:[%s3862_s24 + $0x4] sm:$0xf pattern:$0x76325410] }
  0x2f   : > { %v1041_v0 = vor.u32 %v1040_v59, %v1037_v53  ;;  %v3754_v18 = vld.sshfl [vmem:[%s3862_s24 + $0xc] sm:$0xf pattern:$0x76325410]  ;;  %v1392_v19 = vshll.u32 %v3183_v8, 16  ;;  %v3692_v30 = vld [vmem:[%s4324_s4 + $0x78] sm:$0xff]   ;;  %v1415_v7 = vrot.slane %v1407_v31, %v3864_v9 }
  0x30   : > { %v1033_v5 = vsel %vm3920_vm8, %v1028_v63, %v1032_v51  ;;  %v1061_v16 = vrot.slane %v1053_v4, %v3864_v9  ;;  %v1391_v20 = vrot.slane %v1389_v14, 6  ;;  %v1398_v21 = vshll.u32 %v1345_v12, 16  ;;  %v3700_v40 = vld [vmem:[%s4328_s8 + $0x8] sm:$0xff]   ;;  %v3705_v43 = vld [vmem:[%s4326_s6 + $0x30] sm:$0xff]   ;;  %v3707_v45 = vld [vmem:[%s4326_s6 + $0x38] sm:$0xff]   ;;  %s3350_s29 = sshll.u32 %s4344_s14, 3 }
  0x31   : > { %3467 = vmatpush3.bf16.msra.mxu0 %v3685_v39  ;;  %v1042_v6 = vrot.slane %v1041_v0, 2  ;;  %v1394_v25 = vrot.slane %v1392_v19, 7  ;;  %v1247_v35 = vcombine.low %v3753_v17, %v3754_v18  ;;  %v3701_v39 = vld [vmem:[%s4326_s6 + $0x20] sm:$0xff]   ;;  %v3704_v44 = vld [vmem:[%s4326_s6 + $0x88] sm:$0xff]   ;;  %v3706_v46 = vld [vmem:[%s4326_s6 + $0x90] sm:$0xff]   ;;  %s419_s26 = scalar_lea.vmem %s4330_s10, %s3350_s29 }
  0x32   : > { %3480 = vmatprep.subr.bf16.mxu0 %v3769_v2  ;;  %v1400_v27 = vrot.slane %v1398_v21, 7 }
  0x33   : > { %v1047_v10 = vsel %vm3920_vm8, %v1042_v6, %v1046_v1  ;;  %v1395_v29 = vor.u32 %v1394_v25, %v1391_v20 }
  0x34   : > { %3469 = vmatmul.mubr.msk.bf16.vlgmr.msra.gmra.mrb[12].mxu0 %vm471_vm1, %v3990_v61  ;;  %v1054_v15 = vcombine.low %v1033_v5, %v1047_v10 }
  0x35   : > { %3481 = vmatpush3.bf16.msra.mxu0 %v3689_v55  ;;  %3484 = vmatprep.mubr.msk.bf16.mxu0 %vm3770_vm0, %v3769_v2  ;;  %v1396_v33 = vrot.slane %v1395_v29, 2 }
  0x36   : > { %3482 = vmatprep.subr.bf16.mxu0 %v3769_v2  ;;  %v1068_v22 = vrot.slane %v1054_v15, %v3864_v9 }
  0x37   : > { %v1401_v34 = vsel %vm3920_vm8, %v1396_v33, %v1400_v27 }
  0x38   : > { %v1069_v28 = vcombine.low %v1061_v16, %v1068_v22  ;;  %v1408_v3 = vcombine.low %v3958_v13, %v1401_v34  ;;  %v3772_v13 = vmov 0  }
  0x39   : > { %3483 = vmatpush3.bf16.msra.mxu0 %v3691_v11  ;;  %1558 = vst.msk [vmem:[#allocation2] sm:$0x7] %vm1557_vm9, %v3772_v13  ;;  %1559 = vst.msk [vmem:[#allocation2 + $0x4] sm:$0x7] %vm1557_vm9, %v3772_v13 }
  0x3a   : > { %3496 = vmatprep.subr.bf16.mxu0 %v3769_v2  ;;  %3477 = vmatmul.mubr.msk.bf16.vlgmr.msra.gmra.mrb[4].mxu1 %vm471_vm1, %v1069_v28  ;;  %v1422_v36 = vrot.slane %v1408_v3, %v3864_v9  ;;  %1560 = vst.msk [vmem:[#allocation2 + $0x8] sm:$0x7] %vm1557_vm9, %v3772_v13  ;;  %1563 = vst.msk [vmem:[#allocation2 + $0x14] sm:$0x7] %vm1557_vm9, %v3772_v13  ;;  %v3191_v3 = vld [vmem:[%s4325_s5] ss:$0 sm:$0xff] }
  0x3b   : > { %3489 = vmatpush3.bf16.msra.mxu1 %v3690_v23  ;;  %3492 = vmatprep.mubr.msk.bf16.mxu1 %vm3770_vm0, %v3769_v2  ;;  %1561 = vst.msk [vmem:[#allocation2 + $0xc] sm:$0x7] %vm1557_vm9, %v3772_v13  ;;  %1562 = vst.msk [vmem:[#allocation2 + $0x10] sm:$0x7] %vm1557_vm9, %v3772_v13 }
  0x3c   : > { %3485 = vmatmul.mubr.msk.bf16.vlgmr.msra.gmra.mrb[16].mxu0 %vm471_vm1, %v1158_v24  ;;  %3490 = vmatprep.subr.bf16.mxu1 %v3769_v2  ;;  %v1423_v37 = vcombine.low %v1415_v7, %v1422_v36 }
  0x3d   : > { %3497 = vmatpush3.bf16.msra.mxu0 %v3695_v26  ;;  %3500 = vmatprep.mubr.msk.bf16.mxu0 %vm3770_vm0, %v3769_v2 }
  0x3e   : > { %3498 = vmatprep.subr.bf16.mxu0 %v3769_v2 }
  0x3f   : > { %3491 = vmatpush3.bf16.msra.mxu1 %v3692_v30 }
  0x40   : > { %3504 = vmatprep.subr.bf16.mxu1 %v3769_v2 }
  0x41   : > { %3499 = vmatpush3.bf16.msra.mxu0 %v3698_v32 }
  0x42   : > { %3512 = vmatprep.subr.bf16.mxu0 %v3769_v2  ;;  %3493 = vmatmul.mubr.msk.bf16.vlgmr.msra.gmra.mrb[8].mxu1 %vm471_vm1, %v1247_v35 }
  0x43   : > { %3508 = vmatprep.mubr.msk.bf16.mxu1 %vm3770_vm0, %v3769_v2  ;;  %3505 = vmatpush3.bf16.msra.mxu1 %v3699_v38 }
  0x44   : > { %3501 = vmatmul.mubr.msk.bf16.vlgmr.msra.gmra.mrb[20].mxu0 %vm471_vm1, %v1423_v37  ;;  %3506 = vmatprep.subr.bf16.mxu1 %v3769_v2 }
  0x45   : > { %3520 = vmatprep.mubr.msk.bf16.mxu0 %vm3770_vm0, %v3769_v2  ;;  %3513 = vmatpush3.bf16.msra.mxu0 %v3701_v39 }
  0x46   : > { %3514 = vmatprep.subr.bf16.mxu0 %v3769_v2 }
  0x47   : > { %3507 = vmatpush3.bf16.msra.mxu1 %v3700_v40 }
  0x48   : > { %3560 = vmatprep.subr.bf16.mxu1 %v3769_v2 }
  0x49   : > { %3515 = vmatpush3.bf16.msra.mxu0 %v3703_v41 }
  0x4a   : > { %3516 = vmatprep.subr.bf16.mxu0 %v3769_v2  ;;  %3509 = vmatmul.mubr.msk.bf16.vlgmr.msra.gmra.mrb[12].mxu1 %vm471_vm1, %v3990_v61  ;;  %vm1969_vm1 = vcmask 1044484  }
  0x4b   : > { %3561 = vmatpush3.bf16.msra.mxu1 %v3702_v42  ;;  %3568 = vmatprep.mubr.msk.bf16.mxu1 %vm3770_vm0, %v3769_v2  ;;  %vm4146_vm2 = vmor %vm1968_vm15, %vm1969_vm1 }
  0x4c   : > { %3562 = vmatprep.subr.bf16.mxu1 %v3769_v2  ;;  %vm4164_vm4 = vmor %vm4146_vm2, %vm1971_vm3 }
  0x4d   : > { %3517 = vmatpush3.bf16.msra.mxu0 %v3705_v43 }
  0x4e   : > { %3518 = vmatprep.subr.bf16.mxu0 %v3769_v2 }
  0x4f   : > { %3563 = vmatpush3.bf16.msra.mxu1 %v3704_v44 }
  0x50   : > { %3564 = vmatprep.subr.bf16.mxu1 %v3769_v2 }
  0x51   : > { %3519 = vmatpush3.bf16.msra.mxu0 %v3707_v45 }
  0x52   : > { %3524 = vmatprep.subr.bf16.mxu0 %v3769_v2 }
  0x53   : > { %3565 = vmatpush3.bf16.msra.mxu1 %v3706_v46 }
  0x54   : > { %3566 = vmatprep.subr.bf16.mxu1 %v3769_v2 }
  0x57   : > { %3567 = vmatpush3.bf16.msra.mxu1 %v3708_v47 }
  0x58   : > { %3572 = vmatprep.subr.bf16.mxu1 %v3769_v2 }
  0xe8   : > { %v509_v48 = vpop.f32.mrb[0].mxu0 }
  0xe9   : > { %v3438_v50 = vpop.f32.mrb[1].mxu0 }
  0xea   : > { %v512_v51 = vpop.f32.mrb[2].mxu0  ;;  %v3200_v50 = vld.sshfl [vmem:[#allocation2] sm:$0x13 pattern:$0x76325410] }
  0xeb   : > { %v3439_v52 = vpop.f32.mrb[3].mxu0 }
  0xf0   : > { %v586_v53 = vpop.f32.mrb[4].mxu0 }
  0xf1   : > { %v587_v54 = vadd.f32 %v586_v53, %v509_v48  ;;  %v3446_v55 = vpop.f32.mrb[5].mxu0 }
  0xf2   : > { %v589_v56 = vpop.f32.mrb[6].mxu0 }
  0xf3   : > { %v590_v57 = vadd.f32 %v589_v56, %v512_v51  ;;  %v3447_v58 = vpop.f32.mrb[7].mxu0 }
  0xf5   : > { %v855_v59 = vpop.f32.mrb[0].mxu1 }
  0xf6   : > { %v3462_v60 = vpop.f32.mrb[1].mxu1 }
  0xf7   : > { %v858_v61 = vpop.f32.mrb[2].mxu1  ;;  %v1690_v60 = vshll.u32 %v3200_v50, 16 }
  0xf8   : > { %v3463_v62 = vpop.f32.mrb[3].mxu1 }
  0xff   : > { %v767_v63 = vpop.f32.mrb[8].mxu0 }
 0x100   : > { %v774_v0 = vadd.f32 %v767_v63, %v587_v54  ;;  %v3454_v1 = vpop.f32.mrb[9].mxu0 }
 0x101   : > { %v770_v4 = vpop.f32.mrb[10].mxu0  ;;  %v1625_v1 = vld [vmem:[#allocation2 + $0x8] sm:$0x7] }
 0x102   : > { %v775_v5 = vadd.f32 %v770_v4, %v590_v57  ;;  %v862_v6 = vadd.f32 %v855_v59, %v774_v0  ;;  %v3455_v8 = vpop.f32.mrb[11].mxu0  ;;  %v1622_v57 = vld [vmem:[#allocation2 + $0x4] sm:$0x7]  ;;  %v1687_v59 = vshrl.u32 %v3200_v50, 16 }
 0x104   : > { %v863_v10 = vadd.f32 %v858_v61, %v775_v5 }
 0x107   : > { %v943_v11 = vpop.f32.mrb[12].mxu0 }
 0x108   : > { %v950_v12 = vadd.f32 %v943_v11, %v862_v6  ;;  %v3470_v14 = vpop.f32.mrb[13].mxu0  ;;  %v1661_v6 = vcombine.high %v3200_v50, %v3200_v50 }
 0x109   : > { %v946_v15 = vpop.f32.mrb[14].mxu0  ;;  %v1628_v14 = vld [vmem:[#allocation2 + $0xc] sm:$0x7] }
 0x10a   : > { %v951_v16 = vadd.f32 %v946_v15, %v863_v10  ;;  %v3471_v17 = vpop.f32.mrb[15].mxu0 }
 0x10b   : > { %v1689_v17 = vrot.slane %v1687_v59, 6 }
 0x10d   : > { %v1119_v18 = vpop.f32.mrb[4].mxu1 }
 0x10e   : > { %v1126_v20 = vadd.f32 %v1119_v18, %v950_v12  ;;  %v3478_v21 = vpop.f32.mrb[5].mxu1  ;;  %v1692_v18 = vrot.slane %v1690_v60, 7 }
 0x10f   : > { %v1208_v19 = vpop.f32.mrb[16].mxu0  ;;  %v1122_v23 = vpop.f32.mrb[6].mxu1 }
 0x110   : > { %v3486_v22 = vpop.f32.mrb[17].mxu0  ;;  %v1127_v25 = vadd.f32 %v1122_v23, %v951_v16  ;;  %v3479_v26 = vpop.f32.mrb[7].mxu1  ;;  %v1215_v27 = vadd.f32 %v1208_v19, %v1126_v20  ;;  %v1631_v16 = vld [vmem:[#allocation2 + $0x10] sm:$0x7] }
 0x111   : > { %v1211_v24 = vpop.f32.mrb[18].mxu0  ;;  %v1696_v22 = vshll.u32 %v1661_v6, 16 }
 0x112   : > { %v3487_v28 = vpop.f32.mrb[19].mxu0  ;;  %v1216_v29 = vadd.f32 %v1211_v24, %v1127_v25  ;;  %v1693_v24 = vor.u32 %v1692_v18, %v1689_v17 }
 0x113   : > { %v1698_v25 = vrot.slane %v1696_v22, 7 }
 0x114   : > { %v1694_v28 = vrot.slane %v1693_v24, 2 }
 0x115   : > { %v1297_v30 = vpop.f32.mrb[8].mxu1 }
 0x116   : > { %v1304_v31 = vadd.f32 %v1297_v30, %v1215_v27  ;;  %v3494_v32 = vpop.f32.mrb[9].mxu1 }
 0x117   : > { %v1473_v33 = vpop.f32.mrb[20].mxu0  ;;  %v1300_v34 = vpop.f32.mrb[10].mxu1 }
 0x118   : > { %v3502_v7 = vpop.f32.mrb[21].mxu0  ;;  %v1305_v35 = vadd.f32 %v1300_v34, %v1216_v29  ;;  %v3495_v36 = vpop.f32.mrb[11].mxu1  ;;  %v1480_v37 = vadd.f32 %v1473_v33, %v1304_v31 }
 0x119   : > { %v1476_v13 = vpop.f32.mrb[22].mxu0 }
 0x11a   : > { %v3503_v38 = vpop.f32.mrb[23].mxu0  ;;  %v1489_v39 = vadd.f32 %v3191_v3, %v1480_v37  ;;  %v1481_v40 = vadd.f32 %v1476_v13, %v1305_v35 }
 0x11c   : > { %v1491_v41 = vmax.f32 %v1489_v39, 0.0  ;;  %v1490_v42 = vadd.f32 %v3191_v3, %v1481_v40 }
 0x11e   : > { %v1566_v43 = vcombine.high %v1491_v41, %v1491_v41  ;;  %v3351_v44 = vpack.c.bf16 %v1491_v41, %v1491_v41  ;;  %v1492_v45 = vmax.f32 %v1490_v42, 0.0 }
 0x120   : > { %v3352_v46 = vpack.c.bf16 %v1566_v43, %v1566_v43  ;;  %v1587_v47 = vshrl.u32 %v3351_v44, 16  ;;  %v1567_v48 = vcombine.high %v1492_v45, %v1492_v45  ;;  %v3353_v51 = vpack.c.bf16 %v1492_v45, %v1492_v45 }
 0x121   : > { %v1590_v53 = vshll.u32 %v3351_v44, 16 }
 0x122   : > { %v1589_v52 = vrot.slane %v1587_v47, 7  ;;  %v1594_v54 = vshrl.u32 %v3352_v46, 16  ;;  %v3354_v55 = vpack.c.bf16 %v1567_v48, %v1567_v48  ;;  %v1601_v58 = vshrl.u32 %v3353_v51, 16 }
 0x123   : > { %v1597_v63 = vshll.u32 %v3352_v46, 16  ;;  %v1604_v5 = vshll.u32 %v3353_v51, 16  ;;  %v1699_v48 = vsel %vm3920_vm8, %v1694_v28, %v1698_v25  ;;  %v3711_v25 = vld [vmem:[%s4326_s6 + $0x8] sm:$0xff]  }
 0x124   : > { %v1592_v61 = vor.u32 %v1590_v53, %v1589_v52  ;;  %v1596_v62 = vrot.slane %v1594_v54, 7  ;;  %v1608_v0 = vshrl.u32 %v3354_v55, 16  ;;  %v1603_v4 = vrot.slane %v1601_v58, 7 }
 0x125   : > { %v1611_v12 = vshll.u32 %v3354_v55, 16 }
 0x126   : > { %v1599_v8 = vor.u32 %v1597_v63, %v1596_v62  ;;  %v1623_v10 = vsel %vm4101_vm11, %v1592_v61, %v1622_v57  ;;  %v1610_v11 = vrot.slane %v1608_v0, 7  ;;  %v1606_v15 = vor.u32 %v1604_v5, %v1603_v4 }
 0x127   : > { %1624 = vst [vmem:[#allocation2 + $0x4] sm:$0x7] %v1623_v10 }
 0x128   : > { %v1626_v19 = vsel %vm4101_vm11, %v1599_v8, %v1625_v1  ;;  %v1613_v20 = vor.u32 %v1611_v12, %v1610_v11  ;;  %v1629_v21 = vsel %vm4101_vm11, %v1606_v15, %v1628_v14  ;;  %v3709_v11 = vld [vmem:[%s4326_s6] sm:$0xff]  }
 0x129   : > { %1627 = vst [vmem:[#allocation2 + $0x8] sm:$0x7] %v1626_v19  ;;  %1630 = vst [vmem:[#allocation2 + $0xc] sm:$0x7] %v1629_v21 }
 0x12a   : > { %v1632_v23 = vsel %vm4101_vm11, %v1613_v20, %v1631_v16 }
 0x12b   : > { %1633 = vst [vmem:[#allocation2 + $0x10] sm:$0x7] %v1632_v23 }
 0x12e   : > { %v3201_v26 = vld.sshfl [vmem:[#allocation2 + $0x4] sm:$0x13 pattern:$0x76325410] }
 0x12f   : > { %v1669_v27 = vcombine.high %v3201_v26, %v3201_v26  ;;  %v1701_v29 = vshrl.u32 %v3201_v26, 16  ;;  %v1704_v30 = vshll.u32 %v3201_v26, 16  ;;  %v3273_v26 = vld.sshfl [vmem:[#allocation2 + $0x4] sm:$0x12 pattern:$0x76325410] }
 0x130   : > { %v3202_v31 = vld.sshfl [vmem:[#allocation2 + $0x8] sm:$0x13 pattern:$0x76325410] }
 0x131   : > { %v3203_v32 = vld.sshfl [vmem:[#allocation2 + $0xc] sm:$0x13 pattern:$0x76325410]  ;;  %v1677_v33 = vcombine.high %v3202_v31, %v3202_v31  ;;  %v1703_v34 = vrot.slane %v1701_v29, 6  ;;  %v1706_v3 = vrot.slane %v1704_v30, 7 }
 0x132   : > { %v1685_v7 = vcombine.high %v3203_v32, %v3203_v32  ;;  %v1710_v35 = vshll.u32 %v1669_v27, 16  ;;  %v1715_v36 = vshrl.u32 %v3202_v31, 16  ;;  %v1718_v37 = vshll.u32 %v3202_v31, 16  ;;  %v3710_v27 = vld [vmem:[%s4326_s6 + $0xa0] sm:$0xff]  }
 0x133   : > { %v1707_v13 = vor.u32 %v1706_v3, %v1703_v34  ;;  %v1729_v38 = vshrl.u32 %v3203_v32, 16  ;;  %v1732_v39 = vshll.u32 %v3203_v32, 16  ;;  %v1724_v43 = vshll.u32 %v1677_v33, 16  ;;  %v3713_v34 = vld [vmem:[%s4326_s6 + $0x10] sm:$0xff]   ;;  %v3712_v3 = vld [vmem:[%s4326_s6 + $0xa8] sm:$0xff]  }
 0x134   : > { %v1712_v40 = vrot.slane %v1710_v35, 7  ;;  %v1717_v41 = vrot.slane %v1715_v36, 6  ;;  %v1720_v42 = vrot.slane %v1718_v37, 7  ;;  %v1738_v47 = vshll.u32 %v1685_v7, 16 }
 0x135   : > { %v1708_v44 = vrot.slane %v1707_v13, 2  ;;  %v1731_v45 = vrot.slane %v1729_v38, 6  ;;  %v1734_v46 = vrot.slane %v1732_v39, 7  ;;  %v1726_v57 = vrot.slane %v1724_v43, 7  ;;  %v3715_v43 = vld [vmem:[%s4326_s6 + $0x18] sm:$0xff]  }
 0x136   : > { %v1721_v50 = vor.u32 %v1720_v42, %v1717_v41  ;;  %v3259_v51 = vld.sshfl [vmem:[#allocation2 + $0x10] sm:$0x13 pattern:$0x76325410]  ;;  %v1740_v60 = vrot.slane %v1738_v47, 7  ;;  %v2396_v32 = vcombine.high %v3273_v26, %v3273_v26 }
 0x137   : > { %v1713_v52 = vsel %vm3920_vm8, %v1708_v44, %v1712_v40  ;;  %v1735_v53 = vor.u32 %v1734_v46, %v1731_v45  ;;  %v2228_v54 = vcombine.high %v3259_v51, %v3259_v51  ;;  %v2272_v55 = vshrl.u32 %v3259_v51, 16  ;;  %v3276_v16 = vld.sshfl [vmem:[#allocation2 + $0x10] sm:$0x12 pattern:$0x76325410] }
 0x138   : > { %v1722_v56 = vrot.slane %v1721_v50, 2  ;;  %v2275_v58 = vshll.u32 %v3259_v51, 16  ;;  %v1751_v63 = vcombine.low %v1699_v48, %v1713_v52  ;;  %v3274_v19 = vld.sshfl [vmem:[#allocation2 + $0x8] sm:$0x12 pattern:$0x76325410]  ;;  %v2420_v22 = vcombine.high %v3276_v16, %v3276_v16 }
 0x139   : > { %v1736_v59 = vrot.slane %v1735_v53, 2  ;;  %v2274_v61 = vrot.slane %v2272_v55, 6  ;;  %v2281_v1 = vshll.u32 %v2228_v54, 16  ;;  %v2404_v28 = vcombine.high %v3274_v19, %v3274_v19  ;;  %v3714_v44 = vld [vmem:[%s4326_s6 + $0xb0] sm:$0xff]   ;;  %v3716_v55 = vld [vmem:[%s4326_s6 + $0xb8] sm:$0xff]  }
 0x13a   : > { %v1727_v62 = vsel %vm3920_vm8, %v1722_v56, %v1726_v57  ;;  %v2277_v0 = vrot.slane %v2275_v58, 7  ;;  %v1759_v8 = vrot.slane %v1751_v63, %v3864_v9  ;;  %v3275_v21 = vld.sshfl [vmem:[#allocation2 + $0xc] sm:$0x12 pattern:$0x76325410]  ;;  %v2435_v33 = vrot.slane %v2420_v22, 7 }
 0x13b   : > { %v1741_v4 = vsel %vm3920_vm8, %v1736_v59, %v1740_v60  ;;  %v2283_v14 = vrot.slane %v2281_v1, 7  ;;  %v2294_v15 = vcombine.low %v1713_v52, %v1727_v62  ;;  %v2412_v29 = vcombine.high %v3275_v21, %v3275_v21  ;;  %v3755_v7 = vld.sshfl [vmem:[#allocation2 + $0x8] sm:$0xf pattern:$0x76325410]  ;;  %v3719_v52 = vld [vmem:[%s4326_s6 + $0x40] sm:$0xff]  }
 0x13c   : > { %v1752_v5 = vcombine.low %v1727_v62, %v1741_v4  ;;  %v2278_v6 = vor.u32 %v2277_v0, %v2274_v61  ;;  %v2427_v35 = vrot.slane %v2404_v28, 7  ;;  %v3280_v37 = vrot.slane %v3276_v16, 9  ;;  %v3756_v38 = vld.sshfl [vmem:[#allocation2] sm:$0xf pattern:$0x76325410] }
 0x13d   : > { %v2302_v23 = vrot.slane %v2294_v15, %v3864_v9  ;;  %v2431_v36 = vrot.slane %v2412_v29, 7  ;;  %v2423_v39 = vrot.slane %v2396_v32, 7  ;;  %v3278_v40 = vrot.slane %v3274_v19, 9  ;;  %v3721_v59 = vld [vmem:[%s4326_s6 + $0x48] sm:$0xff]   ;;  %v3720_v62 = vld [vmem:[%s4326_s6 + $0xc0] sm:$0xff]   ;;  %v3723_v0 = vld [vmem:[%s4326_s6 + $0x50] sm:$0xff]  }
 0x13e   : > { %v4123_v10 = vrot.slane %v1752_v5, %v3864_v9  ;;  %v2279_v12 = vrot.slane %v2278_v6, 2  ;;  %v3279_v41 = vrot.slane %v3275_v21, 9  ;;  %v4170_v42 = vsel %vm4164_vm4, %v3280_v37, %v2435_v33  ;;  %v3222_v48 = vld.sshfl [vmem:[#allocation2] sm:$0x12 pattern:$0x76325410] }
 0x13f   : > { %v3277_v45 = vrot.slane %v3273_v26, 9  ;;  %v2428_v46 = vsel %vm4164_vm4, %v3278_v40, %v2427_v35  ;;  %v1941_v54 = vcombine.high %v3222_v48, %v3222_v48  ;;  %v1857_v56 = vcombine.low %v3756_v38, %v3755_v7  ;;  %v3722_v5 = vld [vmem:[%s4326_s6 + $0xc8] sm:$0xff]   ;;  %v3724_v15 = vld [vmem:[%s4326_s6 + $0xd0] sm:$0xff]   ;;  %v3735_v37 = vld [vmem:[%s4326_s6 + $0x78] sm:$0xff]  }
 0x140   : > { %v1767_v17 = vcombine.low %v1759_v8, %v4123_v10  ;;  %v4131_v18 = vsel %vm3920_vm8, %v2279_v12, %v2283_v14  ;;  %v2432_v47 = vsel %vm4164_vm4, %v3279_v41, %v2431_v36  ;;  %v3226_v60 = vrot.slane %v3222_v48, 9  ;;  %v3725_v14 = vld [vmem:[%s4326_s6 + $0x58] sm:$0xff]   ;;  %v3731_v29 = vld [vmem:[%s4326_s6 + $0x68] sm:$0xff]   ;;  %v3734_v38 = vld [vmem:[%s4326_s6 + $0xf0] sm:$0xff]  }
 0x141   : > { %v2295_v20 = vcombine.low %v1741_v4, %v4131_v18  ;;  %v2447_v50 = vcombine.low %v2432_v47, %v4170_v42  ;;  %v2424_v51 = vsel %vm4164_vm4, %v3277_v45, %v2423_v39  ;;  %v1975_v61 = vrot.slane %v1941_v54, 7  ;;  %v3310_v4 = vld.sshfl [vmem:[#allocation2 + $0x14] sm:$0x13 pattern:$0x76325410]  ;;  %v3740_v48 = vld [vmem:[%s4326_s6 + $0x108] sm:$0xff]  }
 0x142   : > { %3521 = vmatmul.mubr.msk.bf16.vlgmr.msra.gmra.mrb[24].mxu0 %vm1792_vm12, %v1767_v17  ;;  %v2446_v53 = vcombine.low %v2424_v51, %v2428_v46  ;;  %v1999_v6 = vcombine.low %v2428_v46, %v2432_v47  ;;  %v2724_v12 = vshll.u32 %v3310_v4, 16  ;;  %v3757_v17 = vld.sshfl [vmem:[#allocation2 + $0x10] sm:$0xf pattern:$0x76325410]  ;;  %v1550_v54 = vpop.f32.mrb[12].mxu1 }
 0x143   : > { %3525 = vmatpush3.bf16.msra.mxu0 %v3709_v11  ;;  %v2309_v24 = vrot.slane %v2295_v20, %v3864_v9  ;;  %3532 = vmatprep.mubr.msk.bf16.mxu0 %vm3770_vm0, %v3769_v2  ;;  %v2461_v57 = vrot.slane %v2447_v50, %v3864_v9  ;;  %v1976_v1 = vsel %vm4164_vm4, %v3226_v60, %v1975_v61  ;;  %v2721_v11 = vshrl.u32 %v3310_v4, 16  ;;  %v3759_v7 = vld.sshfl [vmem:[#allocation2 + $0xc] sm:$0xf pattern:$0x76325410] }
 0x144   : > { %3526 = vmatprep.subr.bf16.mxu0 %v3769_v2  ;;  %v2454_v58 = vrot.slane %v2446_v53, %v3864_v9  ;;  %v1998_v8 = vcombine.low %v1976_v1, %v2424_v51  ;;  %v4229_v16 = vrot.slane %v1999_v6, %v3864_v9  ;;  %v2677_v20 = vcombine.high %v3310_v4, %v3310_v4  ;;  %v3760_v35 = vld.sshfl [vmem:[#allocation2 + $0x4] sm:$0xf pattern:$0x76325410]  ;;  %v3345_v1 = vld [vmem:[%s4327_s7] ss:$0 sm:$0xff] }
 0x145   : > { %v2310_v30 = vcombine.low %v2302_v23, %v2309_v24  ;;  %v2723_v21 = vrot.slane %v2721_v11, 6  ;;  %v2726_v22 = vrot.slane %v2724_v12, 7  ;;  %v3727_v23 = vld [vmem:[%s4326_s6 + $0x60] sm:$0xff]   ;;  %v2118_v41 = vcombine.low %v3760_v35, %v3759_v7 }
 0x146   : > { %v2462_v63 = vcombine.low %v2454_v58, %v2461_v57  ;;  %v2006_v19 = vrot.slane %v1998_v8, %v3864_v9  ;;  %v3758_v24 = vld.sshfl [vmem:[#allocation2 + $0x8] sm:$0xf pattern:$0x76325410]  ;;  %v2730_v28 = vshll.u32 %v2677_v20, 16 }
 0x147   : > { %3569 = vmatmul.mubr.msk.bf16.vlgmr.msra.gmra.mrb[16].mxu1 %vm1792_vm12, %v2310_v30  ;;  %3527 = vmatpush3.bf16.msra.mxu0 %v3711_v25  ;;  %v3726_v25 = vld [vmem:[%s4326_s6 + $0xd8] sm:$0xff]   ;;  %v3730_v30 = vld [vmem:[%s4326_s6 + $0xe0] sm:$0xff]   ;;  %v2567_v31 = vcombine.low %v3758_v24, %v3757_v17  ;;  %v3327_v40 = vld.sshfl [vmem:[#allocation2 + $0x14] sm:$0x12 pattern:$0x76325410] }
 0x148   : > { %3573 = vmatpush3.bf16.msra.mxu1 %v3710_v27  ;;  %3528 = vmatprep.subr.bf16.mxu0 %v3769_v2  ;;  %v2014_v26 = vcombine.low %v2006_v19, %v4229_v16  ;;  %v2727_v27 = vor.u32 %v2726_v22, %v2723_v21  ;;  %v2732_v33 = vrot.slane %v2730_v28, 7  ;;  %v3331_v46 = vrot.slane %v3327_v40, 9 }
 0x149   : > { %3574 = vmatprep.subr.bf16.mxu1 %v3769_v2  ;;  %3580 = vmatprep.mubr.msk.bf16.mxu1 %vm3770_vm0, %v3769_v2 }
 0x14a   : > { %v2728_v32 = vrot.slane %v2727_v27, 2 }
 0x14b   : > { %3529 = vmatpush3.bf16.msra.mxu0 %v3713_v34  ;;  %v3733_v34 = vld [vmem:[%s4326_s6 + $0x70] sm:$0xff]  }
 0x14c   : > { %3575 = vmatpush3.bf16.msra.mxu1 %v3712_v3  ;;  %3530 = vmatprep.subr.bf16.mxu0 %v3769_v2  ;;  %v3732_v3 = vld [vmem:[%s4326_s6 + $0xe8] sm:$0xff]   ;;  %v2733_v36 = vsel %vm3920_vm8, %v2728_v32, %v2732_v33 }
 0x14d   : > { %3576 = vmatprep.subr.bf16.mxu1 %v3769_v2  ;;  %v2744_v39 = vcombine.low %v4131_v18, %v2733_v36  ;;  %v3739_v18 = vld [vmem:[%s4326_s6 + $0x100] sm:$0xff]  }
 0x14f   : > { %3531 = vmatpush3.bf16.msra.mxu0 %v3715_v43  ;;  %v2758_v43 = vrot.slane %v2744_v39, %v3864_v9 }
 0x150   : > { %3577 = vmatpush3.bf16.msra.mxu1 %v3714_v44  ;;  %3536 = vmatprep.subr.bf16.mxu0 %v3769_v2  ;;  %v2869_v44 = vcombine.high %v3327_v40, %v3327_v40 }
 0x151   : > { %3578 = vmatprep.subr.bf16.mxu1 %v3769_v2  ;;  %v2759_v45 = vcombine.low %v4123_v10, %v2758_v43  ;;  %v3741_v10 = vld [vmem:[%s4326_s6 + $0x110] sm:$0xff]  }
 0x152   : > { %3533 = vmatmul.mubr.msk.bf16.vlgmr.msra.gmra.mrb[24].mxu0 %vm1792_vm12, %v1857_v56  ;;  %v2884_v47 = vrot.slane %v2869_v44, 7 }
 0x153   : > { %3537 = vmatpush3.bf16.msra.mxu0 %v3719_v52  ;;  %3544 = vmatprep.mubr.msk.bf16.mxu0 %vm3770_vm0, %v3769_v2  ;;  %v3742_v52 = vld [vmem:[%s4326_s6 + $0x118] sm:$0xff]  }
 0x154   : > { %3579 = vmatpush3.bf16.msra.mxu1 %v3716_v55  ;;  %3538 = vmatprep.subr.bf16.mxu0 %v3769_v2  ;;  %v2885_v50 = vsel %vm4164_vm4, %v3331_v46, %v2884_v47  ;;  %v3510_v55 = vpop.f32.mrb[13].mxu1 }
 0x155   : > { %3584 = vmatprep.subr.bf16.mxu1 %v3769_v2  ;;  %v2896_v51 = vcombine.low %v4170_v42, %v2885_v50  ;;  %v1553_v56 = vpop.f32.mrb[14].mxu1  ;;  %v3192_v42 = vld [vmem:[%s4329_s9] ss:$0 sm:$0xff] }
 0x156   : > { %v3511_v57 = vpop.f32.mrb[15].mxu1  ;;  %v1551_v58 = vadd.f32 %v3192_v42, %v1550_v54  ;;  %v1554_v60 = vadd.f32 %v3192_v42, %v1553_v56 }
 0x157   : > { %3581 = vmatmul.mubr.msk.bf16.vlgmr.msra.gmra.mrb[16].mxu1 %vm1792_vm12, %v2462_v63  ;;  %3539 = vmatpush3.bf16.msra.mxu0 %v3721_v59  ;;  %v2910_v53 = vrot.slane %v2896_v51, %v3864_v9 }
 0x158   : > { %3585 = vmatpush3.bf16.msra.mxu1 %v3720_v62  ;;  %3540 = vmatprep.subr.bf16.mxu0 %v3769_v2 }
 0x159   : > { %3586 = vmatprep.subr.bf16.mxu1 %v3769_v2  ;;  %3592 = vmatprep.mubr.msk.bf16.mxu1 %vm3770_vm0, %v3769_v2  ;;  %v2911_v13 = vcombine.low %v4229_v16, %v2910_v53 }
 0x15b   : > { %3541 = vmatpush3.bf16.msra.mxu0 %v3723_v0 }
 0x15c   : > { %3587 = vmatpush3.bf16.msra.mxu1 %v3722_v5  ;;  %3542 = vmatprep.subr.bf16.mxu0 %v3769_v2 }
 0x15d   : > { %3588 = vmatprep.subr.bf16.mxu1 %v3769_v2 }
 0x15f   : > { %3543 = vmatpush3.bf16.msra.mxu0 %v3725_v14 }
 0x160   : > { %3589 = vmatpush3.bf16.msra.mxu1 %v3724_v15  ;;  %3548 = vmatprep.subr.bf16.mxu0 %v3769_v2 }
 0x161   : > { %3590 = vmatprep.subr.bf16.mxu1 %v3769_v2 }
 0x162   : > { %3545 = vmatmul.mubr.msk.bf16.vlgmr.msra.gmra.mrb[24].mxu0 %vm1792_vm12, %v2014_v26 }
 0x163   : > { %3549 = vmatpush3.bf16.msra.mxu0 %v3727_v23  ;;  %3556 = vmatprep.mubr.msk.bf16.mxu0 %vm3770_vm0, %v3769_v2 }
 0x164   : > { %3591 = vmatpush3.bf16.msra.mxu1 %v3726_v25  ;;  %3550 = vmatprep.subr.bf16.mxu0 %v3769_v2 }
 0x165   : > { %3596 = vmatprep.subr.bf16.mxu1 %v3769_v2 }
 0x167   : > { %3593 = vmatmul.mubr.msk.bf16.vlgmr.msra.gmra.mrb[16].mxu1 %vm1792_vm12, %v2567_v31  ;;  %3551 = vmatpush3.bf16.msra.mxu0 %v3731_v29 }
 0x168   : > { %3597 = vmatpush3.bf16.msra.mxu1 %v3730_v30  ;;  %3552 = vmatprep.subr.bf16.mxu0 %v3769_v2 }
 0x169   : > { %3598 = vmatprep.subr.bf16.mxu1 %v3769_v2  ;;  %3604 = vmatprep.mubr.msk.bf16.mxu1 %vm3770_vm0, %v3769_v2 }
 0x16b   : > { %3553 = vmatpush3.bf16.msra.mxu0 %v3733_v34 }
 0x16c   : > { %3599 = vmatpush3.bf16.msra.mxu1 %v3732_v3  ;;  %3554 = vmatprep.subr.bf16.mxu0 %v3769_v2 }
 0x16d   : > { %3600 = vmatprep.subr.bf16.mxu1 %v3769_v2 }
 0x16f   : > { %3555 = vmatpush3.bf16.msra.mxu0 %v3735_v37 }
 0x170   : > { %3601 = vmatpush3.bf16.msra.mxu1 %v3734_v38 }
 0x171   : > { %3602 = vmatprep.subr.bf16.mxu1 %v3769_v2 }
 0x172   : > { %3557 = vmatmul.mubr.msk.bf16.vlgmr.msra.gmra.mrb[24].mxu0 %vm1792_vm12, %v2118_v41 }
 0x174   : > { %3603 = vmatpush3.bf16.msra.mxu1 %v3736_v49 }
 0x175   : > { %3608 = vmatprep.subr.bf16.mxu1 %v3769_v2 }
 0x177   : > { %3605 = vmatmul.mubr.msk.bf16.vlgmr.msra.gmra.mrb[16].mxu1 %vm1792_vm12, %v2759_v45 }
 0x178   : > { %3609 = vmatpush3.bf16.msra.mxu1 %v3739_v18  ;;  %3616 = vmatprep.mubr.msk.bf16.mxu1 %vm3770_vm0, %v3769_v2  ;;  %vm3003_vm0 = vcmask 519168  }
 0x179   : > { %3610 = vmatprep.subr.bf16.mxu1 %v3769_v2 }
 0x17c   : > { %3611 = vmatpush3.bf16.msra.mxu1 %v3740_v48 }
 0x17d   : > { %3612 = vmatprep.subr.bf16.mxu1 %v3769_v2 }
 0x180   : > { %3613 = vmatpush3.bf16.msra.mxu1 %v3741_v10 }
 0x181   : > { %3614 = vmatprep.subr.bf16.mxu1 %v3769_v2 }
 0x184   : > { %3615 = vmatpush3.bf16.msra.mxu1 %v3742_v52 }
 0x187   : > { %3617 = vmatmul.mubr.msk.bf16.vlgmr.msra.gmra.mrb[16].mxu1 %vm1792_vm12, %v2911_v13 }
 0x245   : > { %v2180_v59 = vpop.f32.mrb[24].mxu0 }
 0x246   : > { %v3621_v2 = vadd.f32 %v2180_v59, %v1551_v58  ;;  %v3558_v61 = vpop.f32.mrb[25].mxu0 }
 0x247   : > { %v2183_v9 = vpop.f32.mrb[26].mxu0 }
 0x248   : > { %v3625_v62 = vadd.f32 %v2183_v9, %v1554_v60  ;;  %v3559_v63 = vpop.f32.mrb[27].mxu0 }
 0x25a   : > { %v2973_v0 = vpop.f32.mrb[16].mxu1 }
 0x25b   : > { %v3622_v4 = vadd.f32 %v3621_v2, %v2973_v0  ;;  %v3618_v5 = vpop.f32.mrb[17].mxu1 }
 0x25c   : > { %v2976_v6 = vpop.f32.mrb[18].mxu1 }
 0x25d   : > { %v3623_v8 = vadd.f32 %v3622_v4, %v3345_v1  ;;  %v3626_v11 = vadd.f32 %v3625_v62, %v2976_v6  ;;  %v3619_v12 = vpop.f32.mrb[19].mxu1 }
 0x25f   : > { %v2993_v14 = vmax.f32 %v3623_v8, 0.0  ;;  %v3627_v15 = vadd.f32 %v3626_v11, %v3345_v1 }
 0x261   : > { %v3355_v16 = vpack.c.bf16 %v2993_v14, %v2993_v14  ;;  %v2994_v17 = vmax.f32 %v3627_v15, 0.0 }
 0x263   : > { %3004 = vst.msk [vmem:[%s419_s26] sm:$0xf] %vm3003_vm0, %v3355_v16  ;;  %v3356_v19 = vpack.c.bf16 %v2994_v17, %v2994_v17 }
 0x265   : > { %3005 = vst.msk [vmem:[%s419_s26 + $0x4] sm:$0xf] %vm3003_vm0, %v3356_v19 }
 0x266 PF: > { %s20_s13 = sadd.s32 1, %s3767_s13  }
 0x267   : > { %p17_p4 = scmp.ge.s32.totalorder %s20_s13, 4  }
 0x269   :  { %19 = sbr.rel (!%p17_p4) target bundleno = 1 (0x1), region = 119 }

// kernel: _lambda_.5
= control target key start
LH: loop header
LB: loop body
LE: loop exit
PB: predicated region body
PF: predicated region fallthrough
CT: control target
= control target key end

     0   :  { %s4265_s13 = smov 0   ;;  %s5200_s0 = inlined_call_operand.vmem [shape: bf16[2,9,9,1], index: 0, kind: input, shape index: {}]   ;;  %s5201_s1 = inlined_call_operand.vmem [shape: bf16[2,9,9,1], index: 1, kind: input, shape index: {}]   ;;  %s5202_s2 = inlined_call_operand.vmem [shape: bf16[2,9,9,1], index: 2, kind: input, shape index: {}]   ;;  %s5203_s3 = inlined_call_operand.vmem [shape: bf16[2,9,9,1], index: 3, kind: input, shape index: {}]   ;;  %s5204_s4 = inlined_call_operand.vmem [shape: bf16[3,3,1,32], index: 4, kind: input, shape index: {}]   ;;  %s5205_s5 = inlined_call_operand.vmem [shape: f32[1,32], index: 5, kind: input, shape index: {}]   ;;  %s5206_s6 = inlined_call_operand.vmem [shape: bf16[3,3,32,32], index: 6, kind: input, shape index: {}]   ;;  %s5207_s7 = inlined_call_operand.vmem [shape: f32[1,32], index: 7, kind: input, shape index: {}]   ;;  %s5208_s8 = inlined_call_operand.vmem [shape: bf16[1,1,1,32], index: 8, kind: input, shape index: {}]   ;;  %s5209_s9 = inlined_call_operand.vmem [shape: f32[1,32], index: 9, kind: input, shape index: {}]   ;;  %s5210_s10 = inlined_call_operand.vmem [shape: bf16[2,64,32], index: 10, kind: output, shape index: {}]  }
   0x1 LB: > { %s3529_s14 = sadd.s32 4294967295, %s4207_s13   ;;  %p3533_p0 = scmp.ge.s32.totalorder %s4207_s13, 1  ;;  %s4207_s13 = sphi %s4265_s13, %s20_s13  }
   0x2   : > { %p342_p1 = scmp.lt.s32.totalorder %s4207_s13, 3 }
   0x4   : > { %p343_p2 = pnand %p3533_p0, %p342_p1 }
   0x5   : > { %p395_p3 = scmp.lt.s32.totalorder (!%p343_p2), %s3529_s14, 1  ;;  %v4209_v0 = vmov (!%p343_p2), 0   ;;  %vm594_vm0 = vsmask.f32 (!%p343_p2), 3328  ;;  %vm595_vm1 = vsmask.f32 (!%p343_p2), 7440 }
   0x6   : > { %346 = sbr.rel (%p343_p2) target bundleno = 566 (0x236), region = 60  ;;  %4015 = vset.pattern.permute.xlu1 (!%p343_p2), %v4209_v0  ;;  %4004 = vset.pattern.permute.xlu0 (!%p343_p2), %v4209_v0  ;;  %vm4317_vm2 = vmor (!%p343_p2), %vm594_vm0, %vm595_vm1  ;;  %vm1572_vm3 = vcmask (!%p343_p2), 257024   ;;  %vm1574_vm4 = vcmask (!%p343_p2), 253952   ;;  %vm1708_vm5 = vsmask.f32 (!%p343_p2), 7938  ;;  %vm1922_vm9 = vcmask (!%p343_p2), 261120  }
   0x7   : > { %1578 = vst.msk [vmem:[#allocation2 + $0x10] sm:$0xf] (!%p343_p2), %vm1572_vm3, %v4209_v0  ;;  %1573 = vst.msk [vmem:[#allocation2] sm:$0xf] (!%p343_p2), %vm1572_vm3, %v4209_v0  ;;  %vm1714_vm6 = vsmask.f32 (!%p343_p2), 256 }
   0x8   : > { %1576 = vst.msk [vmem:[#allocation2 + $0x8] sm:$0xf] (!%p343_p2), %vm1572_vm3, %v4209_v0  ;;  %1580 = vst.msk [vmem:[#allocation2 + $0x18] sm:$0xf] (!%p343_p2), %vm1572_vm3, %v4209_v0  ;;  %vm2133_vm10 = vcmask (!%p343_p2), 1042432   ;;  %vm2134_vm11 = vcmask (!%p343_p2), 1046532  }
   0x9   : > { %1582 = vst.msk [vmem:[#allocation2 + $0x20] sm:$0xf] (!%p343_p2), %vm1572_vm3, %v4209_v0  ;;  %1584 = vst.msk [vmem:[#allocation2 + $0x28] sm:$0xf] (!%p343_p2), %vm1572_vm3, %v4209_v0  ;;  %v3581_v58 = vld [vmem:[%s5209_s9] ss:$0 sm:$0xff] (!%p343_p2) }
   0xa   : > { %1586 = vst.msk [vmem:[#allocation2 + $0x30] sm:$0xf] (!%p343_p2), %vm1572_vm3, %v4209_v0  ;;  %1588 = vst.msk [vmem:[#allocation2 + $0x38] sm:$0xf] (!%p343_p2), %vm1572_vm3, %v4209_v0 }
   0xb   : > { %1590 = vst.msk [vmem:[#allocation2 + $0x40] sm:$0xf] (!%p343_p2), %vm1572_vm3, %v4209_v0  ;;  %1592 = vst.msk [vmem:[#allocation2 + $0x48] sm:$0xf] (!%p343_p2), %vm1572_vm3, %v4209_v0 }
   0xc   : > { %1579 = vst.msk [vmem:[#allocation2 + $0x14] sm:$0x1] (!%p343_p2), %vm1574_vm4, %v4209_v0  ;;  %1575 = vst.msk [vmem:[#allocation2 + $0x4] sm:$0x1] (!%p343_p2), %vm1574_vm4, %v4209_v0 }
   0xd   : > { %s5220_s14 = smov (!%p395_p3, %s3529_s14), 1  ;;  %1577 = vst.msk [vmem:[#allocation2 + $0xc] sm:$0x1] %vm1574_vm4, %v4209_v0  ;;  %1581 = vst.msk [vmem:[#allocation2 + $0x1c] sm:$0x1] %vm1574_vm4, %v4209_v0 }
   0xe   : > { %s3994_s15 = smul.u32 72, %s5220_s14  ;;  %1583 = vst.msk [vmem:[#allocation2 + $0x24] sm:$0x1] %vm1574_vm4, %v4209_v0  ;;  %1585 = vst.msk [vmem:[#allocation2 + $0x2c] sm:$0x1] %vm1574_vm4, %v4209_v0 }
   0xf   : > { %1587 = vst.msk [vmem:[#allocation2 + $0x34] sm:$0x1] %vm1574_vm4, %v4209_v0  ;;  %1589 = vst.msk [vmem:[#allocation2 + $0x3c] sm:$0x1] %vm1574_vm4, %v4209_v0 }
  0x10   : > { %s4281_s18 = scalar_lea.vmem %s5200_s0, %s3994_s15  ;;  %s4286_s21 = scalar_lea.vmem %s5201_s1, %s3994_s15  ;;  %1591 = vst.msk [vmem:[#allocation2 + $0x44] sm:$0x1] %vm1574_vm4, %v4209_v0  ;;  %1593 = vst.msk [vmem:[#allocation2 + $0x4c] sm:$0x1] %vm1574_vm4, %v4209_v0  ;;  %v4168_v0 = vld [vmem:[%s5206_s6 + $0x18] sm:$0xff]  }
  0x11   : > { %v423_v1 = vld [vmem:[%s4281_s18 + $0x10] ss:$8 sps:$4 sm:$0xff]   ;;  %v421_v2 = vld [vmem:[%s4281_s18] ss:$8 sps:$4 sm:$0xff]   ;;  %s4294_s24 = scalar_lea.vmem %s5202_s2, %s3994_s15  ;;  %s4299_s27 = scalar_lea.vmem %s5203_s3, %s3994_s15  ;;  %v583_v26 = vld [vmem:[%s4281_s18 + $0x14] sm:$0x1] }
  0x12   : > { %v501_v3 = vld [vmem:[%s4286_s21 + $0x10] ss:$8 sps:$4 sm:$0xff]   ;;  %v432_v4 = vunpack.c.l.bf16 %v423_v1  ;;  %v433_v5 = vunpack.c.h.bf16 %v423_v1  ;;  %v430_v6 = vunpack.c.l.bf16 %v421_v2  ;;  %v431_v7 = vunpack.c.h.bf16 %v421_v2  ;;  %v499_v8 = vld [vmem:[%s4286_s21] ss:$8 sps:$4 sm:$0xff]   ;;  %v585_v32 = vld [vmem:[%s4281_s18 + $0x1c] sm:$0x1] }
  0x13   : > { %v790_v9 = vld [vmem:[%s4294_s24 + $0x10] ss:$8 sps:$4 sm:$0xff]   ;;  %v788_v10 = vld [vmem:[%s4294_s24] ss:$8 sps:$4 sm:$0xff]   ;;  %v511_v11 = vunpack.c.l.bf16 %v501_v3  ;;  %v512_v12 = vunpack.c.h.bf16 %v501_v3  ;;  %v509_v13 = vunpack.c.l.bf16 %v499_v8  ;;  %v510_v14 = vunpack.c.h.bf16 %v499_v8  ;;  %v579_v42 = vld [vmem:[%s4281_s18 + $0x4] sm:$0x1] }
  0x14   : > { %v869_v15 = vld [vmem:[%s4299_s27 + $0x10] ss:$8 sps:$4 sm:$0xff]   ;;  %v867_v16 = vld [vmem:[%s4299_s27] ss:$8 sps:$4 sm:$0xff]   ;;  %v4016_v17 = vpack.i.bf16 %v433_v5, %v432_v4  ;;  %v4005_v18 = vpack.i.bf16 %v431_v7, %v430_v6  ;;  %v800_v19 = vunpack.c.l.bf16 %v790_v9  ;;  %v801_v20 = vunpack.c.h.bf16 %v790_v9  ;;  %v581_v51 = vld [vmem:[%s4281_s18 + $0xc] sm:$0x1] }
  0x15   : > { %v582_v21 = vld [vmem:[%s4281_s18 + $0x10] sm:$0xf]  ;;  %v4021_v22 = vpack.i.bf16 %v512_v12, %v511_v11  ;;  %v4010_v23 = vpack.i.bf16 %v510_v14, %v509_v13  ;;  %v798_v24 = vunpack.c.l.bf16 %v788_v10  ;;  %v799_v25 = vunpack.c.h.bf16 %v788_v10  ;;  %v584_v27 = vld [vmem:[%s4281_s18 + $0x18] sm:$0xf]  ;;  %v578_v37 = vld [vmem:[%s4281_s18] sm:$0xf] }
  0x16   : > { %4017 = vperm.xlu1 %4015, %v4016_v17   ;;  %4006 = vperm.xlu0 %4004, %v4005_v18   ;;  %v4031_v28 = vpack.i.bf16 %v801_v20, %v800_v19  ;;  %v879_v29 = vunpack.c.l.bf16 %v869_v15  ;;  %v880_v30 = vunpack.c.h.bf16 %v869_v15  ;;  %v877_v31 = vunpack.c.l.bf16 %v867_v16  ;;  %v580_v47 = vld [vmem:[%s4281_s18 + $0x8] sm:$0xf]  ;;  %v946_v57 = vld [vmem:[%s4294_s24] sm:$0xf]  ;;  %v947_v7 = vld [vmem:[%s4294_s24 + $0x4] sm:$0x1] }
  0x17   : > { %v4026_v33 = vpack.i.bf16 %v799_v25, %v798_v24  ;;  %v878_v34 = vunpack.c.h.bf16 %v867_v16  ;;  %v626_v35 = vshrl.u32 %v582_v21, 16  ;;  %v629_v36 = vshll.u32 %v582_v21, 16  ;;  %v948_v12 = vld [vmem:[%s4294_s24 + $0x8] sm:$0xf]  ;;  %v949_v13 = vld [vmem:[%s4294_s24 + $0xc] sm:$0x1]  ;;  %vm4713_vm7 = vmand %vm1572_vm3, %vm1708_vm5 }
  0x18   : > { %v4041_v38 = vpack.i.bf16 %v880_v30, %v879_v29  ;;  %v635_v39 = vshll.u32 %v583_v26, 16  ;;  %v640_v40 = vshrl.u32 %v584_v27, 16  ;;  %v643_v41 = vshll.u32 %v584_v27, 16  ;;  %v425_v27 = vld [vmem:[%s4281_s18 + $0x20] ss:$8 sps:$4 sm:$0xff]   ;;  %vm4720_vm8 = vmand %vm1574_vm4, %vm1714_vm6 }
  0x19   : > { %v4036_v43 = vpack.i.bf16 %v878_v34, %v877_v31  ;;  %v628_v44 = vrot.slane %v626_v35, 4  ;;  %v631_v45 = vrot.slane %v629_v36, 5  ;;  %v649_v46 = vshll.u32 %v585_v32, 16  ;;  %v503_v32 = vld [vmem:[%s4286_s21 + $0x20] ss:$8 sps:$4 sm:$0xff]   ;;  %vm4863_vm12 = vmor %vm2133_vm10, %vm2134_vm11 }
  0x1a   : > { %4022 = vperm.xlu1 %4015, %v4021_v22   ;;  %4011 = vperm.xlu0 %4004, %v4010_v23   ;;  %v637_v48 = vrot.slane %v635_v39, 5  ;;  %v642_v49 = vrot.slane %v640_v40, 4  ;;  %v645_v50 = vrot.slane %v643_v41, 5  ;;  %v598_v52 = vshrl.u32 %v578_v37, 16 }
  0x1b   : > { %v632_v53 = vor.u32 %v631_v45, %v628_v44  ;;  %v651_v54 = vrot.slane %v649_v46, 5  ;;  %v601_v55 = vshll.u32 %v578_v37, 16  ;;  %v607_v56 = vshll.u32 %v579_v42, 16 }
  0x1c   : > { %v646_v59 = vor.u32 %v645_v50, %v642_v49  ;;  %v600_v60 = vrot.slane %v598_v52, 4  ;;  %v612_v61 = vshrl.u32 %v580_v47, 16  ;;  %v615_v62 = vshll.u32 %v580_v47, 16  ;;  %v586_v47 = vld [vmem:[%s4281_s18 + $0x20] sm:$0xf] }
  0x1d   : > { %v633_v63 = vrot.slane %v632_v53, 4  ;;  %v603_v1 = vrot.slane %v601_v55, 5  ;;  %v609_v2 = vrot.slane %v607_v56, 5  ;;  %v621_v3 = vshll.u32 %v581_v51, 16  ;;  %v950_v53 = vld [vmem:[%s4294_s24 + $0x10] sm:$0xf] }
  0x1e   : > { %4032 = vperm.xlu1 %4015, %v4031_v28   ;;  %4027 = vperm.xlu0 %4004, %v4026_v33   ;;  %v647_v4 = vrot.slane %v646_v59, 4  ;;  %v614_v5 = vrot.slane %v612_v61, 4  ;;  %v617_v6 = vrot.slane %v615_v62, 5  ;;  %v963_v8 = vshrl.u32 %v946_v57, 16  ;;  %v4333_v33 = vld [vmem:[%s4286_s21 + $0x8] ss:$40 sps:$4 sm:$0xff]  }
  0x1f   : > { %v638_v9 = vsel %vm4317_vm2, %v633_v63, %v637_v48  ;;  %v604_v10 = vor.u32 %v603_v1, %v600_v60  ;;  %v623_v11 = vrot.slane %v621_v3, 5  ;;  %v966_v14 = vshll.u32 %v946_v57, 16  ;;  %v587_v48 = vld [vmem:[%s4281_s18 + $0x24] sm:$0x1]  ;;  %v951_v59 = vld [vmem:[%s4294_s24 + $0x14] sm:$0x1] }
  0x20   : > { %v652_v15 = vsel %vm4317_vm2, %v647_v4, %v651_v54  ;;  %v721_v16 = vunpack.c.l.bf16 %v638_v9  ;;  %v618_v17 = vor.u32 %v617_v6, %v614_v5  ;;  %v965_v18 = vrot.slane %v963_v8, 4  ;;  %v952_v1 = vld [vmem:[%s4294_s24 + $0x18] sm:$0xf]  ;;  %v953_v4 = vld [vmem:[%s4294_s24 + $0x1c] sm:$0x1] }
  0x21   : > { %v722_v19 = vunpack.c.l.bf16 %v652_v15  ;;  %v605_v20 = vrot.slane %v604_v10, 4  ;;  %v968_v21 = vrot.slane %v966_v14, 5  ;;  %v972_v22 = vshll.u32 %v947_v7, 16 }
  0x22   : > { %4042 = vperm.xlu1 %4015, %v4041_v38   ;;  %4037 = vperm.xlu0 %4004, %v4036_v43   ;;  %v619_v23 = vrot.slane %v618_v17, 4  ;;  %v977_v24 = vshrl.u32 %v948_v12, 16  ;;  %v980_v25 = vshll.u32 %v948_v12, 16  ;;  %v986_v26 = vshll.u32 %v949_v13, 16  ;;  %v4338_v38 = vld [vmem:[%s4281_s18 + $0x8] ss:$40 sps:$4 sm:$0xff]  }
  0x23   : > { %v4056_v28 = vpack.i.bf16 %v722_v19, %v721_v16  ;;  %v610_v29 = vsel %vm4317_vm2, %v605_v20, %v609_v2  ;;  %v969_v30 = vor.u32 %v968_v21, %v965_v18  ;;  %v974_v31 = vrot.slane %v972_v22, 5  ;;  %v591_v20 = vld [vmem:[%s4281_s18 + $0x34] sm:$0x1]  ;;  %v4356_v21 = vld [vmem:[%s4281_s18 + $0x10] ss:$8 sps:$4 sm:$0xff]  }
  0x24   : > { %v624_v34 = vsel %vm4317_vm2, %v619_v23, %v623_v11  ;;  %v719_v35 = vunpack.c.l.bf16 %v610_v29  ;;  %v979_v36 = vrot.slane %v977_v24, 4  ;;  %v982_v37 = vrot.slane %v980_v25, 5  ;;  %v590_v11 = vld [vmem:[%s4281_s18 + $0x30] sm:$0xf] }
  0x25   : > { %v720_v39 = vunpack.c.l.bf16 %v624_v34  ;;  %v970_v40 = vrot.slane %v969_v30, 4  ;;  %v988_v41 = vrot.slane %v986_v26, 5  ;;  %v434_v42 = vunpack.c.l.bf16 %v425_v27  ;;  %v588_v26 = vld [vmem:[%s4281_s18 + $0x28] sm:$0xf] }
  0x26   : > { %4057 = vperm.xlu1 %4015, %v4056_v28   ;;  %v983_v43 = vor.u32 %v982_v37, %v979_v36  ;;  %v513_v44 = vunpack.c.l.bf16 %v503_v32  ;;  %v514_v45 = vunpack.c.h.bf16 %v503_v32  ;;  %v515_v46 = vunpack.c.h.bf16 %v4333_v33 }
  0x27   : > { %v4046_v49 = vpack.i.bf16 %v720_v39, %v719_v35  ;;  %v975_v50 = vsel %vm4317_vm2, %v970_v40, %v974_v31  ;;  %v435_v51 = vunpack.c.h.bf16 %v425_v27  ;;  %v436_v52 = vunpack.c.h.bf16 %v4338_v38  ;;  %v589_v39 = vld [vmem:[%s4281_s18 + $0x2c] sm:$0x1] }
  0x28   : > { %v984_v54 = vrot.slane %v983_v43, 4  ;;  %v1084_v55 = vunpack.c.l.bf16 %v975_v50  ;;  %v4051_v56 = vpack.i.bf16 %v513_v44, %v434_v42  ;;  %v4071_v57 = vpack.i.bf16 %v515_v46, %v514_v45  ;;  %v3555_v45 = vld [vmem:[%s4286_s21 + $0x10] ss:$8 sps:$4 sm:$0xff]   ;;  %v792_v50 = vld [vmem:[%s4294_s24 + $0x20] ss:$8 sps:$4 sm:$0xff]  }
  0x29   : > { %4047 = vperm.xlu0 %4004, %v4046_v49   ;;  %v4066_v60 = vpack.i.bf16 %v436_v52, %v435_v51  ;;  %v654_v61 = vshrl.u32 %v586_v47, 16  ;;  %v657_v62 = vshll.u32 %v586_v47, 16  ;;  %v663_v63 = vshll.u32 %v587_v48, 16 }
  0x2a   : > { %v989_v2 = vsel %vm4317_vm2, %v984_v54, %v988_v41  ;;  %v1164_v3 = vunpack.c.l.bf16 %v4338_v38  ;;  %v991_v5 = vshrl.u32 %v950_v53, 16  ;;  %v994_v6 = vshll.u32 %v950_v53, 16 }
  0x2b   : > { %v1085_v7 = vunpack.c.l.bf16 %v989_v2  ;;  %v656_v8 = vrot.slane %v654_v61, 4  ;;  %v659_v9 = vrot.slane %v657_v62, 5  ;;  %v665_v10 = vrot.slane %v663_v63, 5  ;;  %v4375_v61 = vld [vmem:[%s4286_s21 + $0x20] ss:$16 sps:$4 sm:$0xff]  }
  0x2c   : > { %v993_v12 = vrot.slane %v991_v5, 4  ;;  %v996_v13 = vrot.slane %v994_v6, 5  ;;  %v1000_v14 = vshll.u32 %v951_v59, 16  ;;  %v1005_v15 = vshrl.u32 %v952_v1, 16 }
  0x2d   : > { %v4061_v16 = vpack.i.bf16 %v1085_v7, %v1084_v55  ;;  %4052 = vperm.xlu0 %4004, %v4051_v56   ;;  %v660_v17 = vor.u32 %v659_v9, %v656_v8  ;;  %v1008_v18 = vshll.u32 %v952_v1, 16  ;;  %v1014_v19 = vshll.u32 %v953_v4, 16  ;;  %v4369_v55 = vld [vmem:[%s4281_s18 + $0x20] ss:$8 sps:$4 sm:$0xff]   ;;  %v3565_v8 = vld [vmem:[%s4281_s18 + $0x10] sm:$0xf] }
  0x2e   : > { %v997_v22 = vor.u32 %v996_v13, %v993_v12  ;;  %v1002_v23 = vrot.slane %v1000_v14, 5  ;;  %v1007_v24 = vrot.slane %v1005_v15, 4  ;;  %v682_v25 = vshrl.u32 %v590_v11, 16  ;;  %v4381_v4 = vld [vmem:[%s4299_s27 + $0x20] ss:$8 sps:$4 sm:$0xff]  }
  0x2f   : > { %4062 = vperm.xlu1 %4015, %v4061_v16   ;;  %v661_v27 = vrot.slane %v660_v17, 4  ;;  %v1010_v28 = vrot.slane %v1008_v18, 5  ;;  %v1016_v29 = vrot.slane %v1014_v19, 5  ;;  %v685_v30 = vshll.u32 %v590_v11, 16  ;;  %v3566_v13 = vld [vmem:[%s4281_s18 + $0x14] sm:$0x1] }
  0x30   : > { %v998_v31 = vrot.slane %v997_v22, 4  ;;  %v684_v32 = vrot.slane %v682_v25, 4  ;;  %v691_v34 = vshll.u32 %v591_v20, 16  ;;  %v1166_v35 = vunpack.c.h.bf16 %v4356_v21  ;;  %v3563_v18 = vld [vmem:[%s4281_s18 + $0x8] sm:$0xf] }
  0x31   : > { %4067 = vperm.xlu0 %4004, %v4066_v60   ;;  %v666_v36 = vsel %vm4317_vm2, %v661_v27, %v665_v10  ;;  %v1011_v37 = vor.u32 %v1010_v28, %v1007_v24  ;;  %v687_v38 = vrot.slane %v685_v30, 5  ;;  %v668_v40 = vshrl.u32 %v588_v26, 16  ;;  %v3564_v19 = vld [vmem:[%s4281_s18 + $0xc] sm:$0x1]  ;;  %v954_v24 = vld [vmem:[%s4294_s24 + $0x20] sm:$0xf] }
  0x32   : > { %v723_v41 = vunpack.c.l.bf16 %v666_v36  ;;  %v1003_v42 = vsel %vm4317_vm2, %v998_v31, %v1002_v23  ;;  %v693_v43 = vrot.slane %v691_v34, 5  ;;  %v671_v44 = vshll.u32 %v588_v26, 16  ;;  %v955_v25 = vld [vmem:[%s4294_s24 + $0x24] sm:$0x1]  ;;  %v3569_v30 = vld [vmem:[%s4281_s18 + $0x20] sm:$0xf] }
  0x33   : > { %4072 = vperm.xlu1 %4015, %v4071_v57   ;;  %v1012_v46 = vrot.slane %v1011_v37, 4  ;;  %v1086_v47 = vunpack.c.l.bf16 %v1003_v42  ;;  %v688_v48 = vor.u32 %v687_v38, %v684_v32  ;;  %v670_v49 = vrot.slane %v668_v40, 4  ;;  %v3570_v36 = vld [vmem:[%s4281_s18 + $0x24] sm:$0x1] }
  0x34   : > { %v4081_v51 = vpack.i.bf16 %v1164_v3, %v723_v41  ;;  %v673_v52 = vrot.slane %v671_v44, 5  ;;  %v677_v53 = vshll.u32 %v589_v39, 16  ;;  %v1165_v54 = vunpack.c.l.bf16 %v4356_v21  ;;  %v4378_v3 = vld [vmem:[%s4294_s24 + $0x30] ss:$8 sps:$4 sm:$0xff]  }
  0x35   : > { %v1017_v56 = vsel %vm4317_vm2, %v1012_v46, %v1016_v29  ;;  %v689_v59 = vrot.slane %v688_v48, 4  ;;  %v1244_v57 = vunpack.c.l.bf16 %v4333_v33  ;;  %v1245_v60 = vunpack.c.l.bf16 %v3555_v45  ;;  %v4401_v41 = vld [vmem:[%s4299_s27 + $0x30] ss:$8 sps:$4 sm:$0xff]  }
  0x36   : > { %v1087_v62 = vunpack.c.l.bf16 %v1017_v56  ;;  %v674_v63 = vor.u32 %v673_v52, %v670_v49  ;;  %v679_v1 = vrot.slane %v677_v53, 5  ;;  %v802_v2 = vunpack.c.l.bf16 %v792_v50  ;;  %v3567_v46 = vld [vmem:[%s4281_s18 + $0x18] sm:$0xf]  ;;  %v3568_v56 = vld [vmem:[%s4281_s18 + $0x1c] sm:$0x1] }
  0x37   : > { %4082 = vperm.xlu1 %4015, %v4081_v51   ;;  %v694_v5 = vsel %vm4317_vm2, %v689_v59, %v693_v43  ;;  %v4101_v6 = vpack.i.bf16 %v1245_v60, %v1244_v57  ;;  %v1167_v33 = vunpack.c.l.bf16 %v4369_v55  ;;  %v1246_v7 = vunpack.c.h.bf16 %v3555_v45 }
  0x38   : > { %v4076_v9 = vpack.i.bf16 %v1087_v62, %v1086_v47  ;;  %v725_v10 = vunpack.c.l.bf16 %v694_v5  ;;  %v675_v11 = vrot.slane %v674_v63, 4  ;;  %v1247_v12 = vunpack.c.l.bf16 %v4375_v61 }
  0x39   : > { %v4096_v14 = vpack.i.bf16 %v802_v2, %v1167_v33  ;;  %v803_v15 = vunpack.c.h.bf16 %v792_v50  ;;  %v804_v16 = vunpack.c.l.bf16 %v4378_v3  ;;  %v882_v17 = vunpack.c.h.bf16 %v4381_v4 }
  0x3a   : > { %4077 = vperm.xlu0 %4004, %v4076_v9   ;;  %v4091_v20 = vpack.i.bf16 %v1166_v35, %v725_v10  ;;  %v680_v21 = vsel %vm4317_vm2, %v675_v11, %v679_v1  ;;  %v4111_v22 = vpack.i.bf16 %v1247_v12, %v1246_v7  ;;  %v1344_v23 = vshrl.u32 %v3565_v8, 16  ;;  %v3550_v9 = vld [vmem:[%s4281_s18 + $0x30] ss:$8 sps:$4 sm:$0xff]   ;;  %v956_v10 = vld [vmem:[%s4294_s24 + $0x28] sm:$0xf] }
  0x3b   : > { %v724_v26 = vunpack.c.l.bf16 %v680_v21  ;;  %v4106_v27 = vpack.i.bf16 %v804_v16, %v803_v15  ;;  %v1347_v28 = vshll.u32 %v3565_v8, 16  ;;  %v1353_v29 = vshll.u32 %v3566_v13, 16  ;;  %v957_v16 = vld [vmem:[%s4294_s24 + $0x2c] sm:$0x1] }
  0x3c   : > { %4092 = vperm.xlu1 %4015, %v4091_v20   ;;  %v1346_v31 = vrot.slane %v1344_v23, 4  ;;  %v881_v32 = vunpack.c.l.bf16 %v4381_v4  ;;  %v1330_v34 = vshrl.u32 %v3563_v18, 16  ;;  %v1333_v35 = vshll.u32 %v3563_v18, 16  ;;  %v958_v18 = vld [vmem:[%s4294_s24 + $0x30] sm:$0xf] }
  0x3d   : > { %v4086_v37 = vpack.i.bf16 %v724_v26, %v1165_v54  ;;  %v1349_v38 = vrot.slane %v1347_v28, 5  ;;  %v1355_v39 = vrot.slane %v1353_v29, 5  ;;  %v1339_v40 = vshll.u32 %v3564_v19, 16 }
  0x3e   : > { %v1332_v42 = vrot.slane %v1330_v34, 4  ;;  %v1335_v43 = vrot.slane %v1333_v35, 5  ;;  %v1019_v44 = vshrl.u32 %v954_v24, 16  ;;  %v1022_v45 = vshll.u32 %v954_v24, 16 }
  0x3f   : > { %4087 = vperm.xlu0 %4004, %v4086_v37   ;;  %v1350_v47 = vor.u32 %v1349_v38, %v1346_v31  ;;  %v1341_v48 = vrot.slane %v1339_v40, 5  ;;  %v1028_v49 = vshll.u32 %v955_v25, 16  ;;  %v1372_v50 = vshrl.u32 %v3569_v30, 16  ;;  %v959_v31 = vld [vmem:[%s4294_s24 + $0x34] sm:$0x1] }
  0x40   : > { %4102 = vperm.xlu1 %4015, %v4101_v6   ;;  %v1336_v51 = vor.u32 %v1335_v43, %v1332_v42  ;;  %v1021_v52 = vrot.slane %v1019_v44, 4  ;;  %v1024_v53 = vrot.slane %v1022_v45, 5  ;;  %v1375_v54 = vshll.u32 %v3569_v30, 16 }
  0x41   : > { %v1351_v59 = vrot.slane %v1350_v47, 4  ;;  %v1030_v57 = vrot.slane %v1028_v49, 5  ;;  %v1374_v60 = vrot.slane %v1372_v50, 4  ;;  %v1381_v62 = vshll.u32 %v3570_v36, 16  ;;  %v3560_v36 = vld [vmem:[%s4286_s21 + $0x28] ss:$16 sps:$4 sm:$0xff]  }
  0x42   : > { %v1337_v63 = vrot.slane %v1336_v51, 4  ;;  %v1025_v1 = vor.u32 %v1024_v53, %v1021_v52  ;;  %v1377_v2 = vrot.slane %v1375_v54, 5  ;;  %v883_v5 = vunpack.c.l.bf16 %v4401_v41  ;;  %v3575_v47 = vld [vmem:[%s4281_s18 + $0x38] sm:$0xf] }
  0x43   : > { %4097 = vperm.xlu0 %4004, %v4096_v14   ;;  %v1356_v6 = vsel %vm4317_vm2, %v1351_v59, %v1355_v39  ;;  %v1383_v33 = vrot.slane %v1381_v62, 5  ;;  %v1358_v7 = vshrl.u32 %v3567_v46, 16  ;;  %v1361_v8 = vshll.u32 %v3567_v46, 16  ;;  %v3576_v59 = vld [vmem:[%s4281_s18 + $0x3c] sm:$0x1] }
  0x44   : > { %4112 = vperm.xlu1 %4015, %v4111_v22   ;;  %v1452_v11 = vunpack.c.l.bf16 %v1356_v6  ;;  %v1342_v12 = vsel %vm4317_vm2, %v1337_v63, %v1341_v48  ;;  %v1026_v13 = vrot.slane %v1025_v1, 4  ;;  %v1378_v15 = vor.u32 %v1377_v2, %v1374_v60 }
  0x45   : > { %v1451_v19 = vunpack.c.l.bf16 %v1342_v12  ;;  %v1360_v14 = vrot.slane %v1358_v7, 4  ;;  %v1363_v20 = vrot.slane %v1361_v8, 5  ;;  %v1367_v21 = vshll.u32 %v3568_v56, 16  ;;  %v3572_v8 = vld [vmem:[%s4281_s18 + $0x2c] sm:$0x1] }
  0x46   : > { %v4121_v23 = vpack.i.bf16 %v882_v17, %v1452_v11  ;;  %v1031_v22 = vsel %vm4317_vm2, %v1026_v13, %v1030_v57  ;;  %v1379_v24 = vrot.slane %v1378_v15, 4  ;;  %v1168_v25 = vunpack.c.h.bf16 %v4369_v55  ;;  %v3571_v57 = vld [vmem:[%s4281_s18 + $0x28] sm:$0xf]  ;;  %v3574_v12 = vld [vmem:[%s4281_s18 + $0x34] sm:$0x1] }
  0x47   : > { %4107 = vperm.xlu0 %4004, %v4106_v27   ;;  %v4116_v26 = vpack.i.bf16 %v1451_v19, %v881_v32  ;;  %v1088_v28 = vunpack.c.l.bf16 %v1031_v22  ;;  %v1364_v29 = vor.u32 %v1363_v20, %v1360_v14  ;;  %v1369_v30 = vrot.slane %v1367_v21, 5  ;;  %v592_v19 = vld [vmem:[%s4281_s18 + $0x38] sm:$0xf] }
  0x48   : > { %4122 = vperm.xlu1 %4015, %v4121_v23   ;;  %v1384_v34 = vsel %vm4317_vm2, %v1379_v24, %v1383_v33  ;;  %v1169_v35 = vunpack.c.l.bf16 %v3550_v9  ;;  %v1033_v4 = vshrl.u32 %v956_v10, 16  ;;  %v1036_v17 = vshll.u32 %v956_v10, 16  ;;  %v3573_v10 = vld [vmem:[%s4281_s18 + $0x30] sm:$0xf] }
  0x49   : > { %v1454_v37 = vunpack.c.l.bf16 %v1384_v34  ;;  %v1365_v38 = vrot.slane %v1364_v29, 4  ;;  %v1042_v39 = vshll.u32 %v957_v16, 16  ;;  %v1047_v40 = vshrl.u32 %v958_v18, 16 }
  0x4a   : > { %v4141_v55 = vpack.i.bf16 %v1169_v35, %v1168_v25  ;;  %v1035_v27 = vrot.slane %v1033_v4, 4  ;;  %v1038_v32 = vrot.slane %v1036_v17, 5  ;;  %v1050_v42 = vshll.u32 %v958_v18, 16  ;;  %v4439_v35 = vld [vmem:[%s4281_s18 + $0x38] ss:$8 sps:$4 sm:$0xff]  }
  0x4b   : > { %4117 = vperm.xlu0 %4004, %v4116_v26   ;;  %v4131_v43 = vpack.i.bf16 %v1088_v28, %v1454_v37  ;;  %v1370_v44 = vsel %vm4317_vm2, %v1365_v38, %v1369_v30  ;;  %v1044_v45 = vrot.slane %v1042_v39, 5  ;;  %v1049_v46 = vrot.slane %v1047_v40, 4  ;;  %v593_v28 = vld [vmem:[%s4281_s18 + $0x3c] sm:$0x1]  ;;  %v4442_v38 = vld [vmem:[%s4286_s21 + $0x38] ss:$8 sps:$4 sm:$0xff]  }
  0x4c   : > { %v1453_v48 = vunpack.c.l.bf16 %v1370_v44  ;;  %v1039_v49 = vor.u32 %v1038_v32, %v1035_v27  ;;  %v1052_v50 = vrot.slane %v1050_v42, 5  ;;  %v1056_v51 = vshll.u32 %v959_v31, 16 }
  0x4d   : > { %4132 = vperm.xlu1 %4015, %v4131_v43   ;;  %v1249_v52 = vunpack.c.h.bf16 %v4375_v61  ;;  %v1250_v53 = vunpack.c.h.bf16 %v3560_v36  ;;  %v1170_v54 = vunpack.c.h.bf16 %v3550_v9  ;;  %v1248_v56 = vunpack.c.l.bf16 %v3560_v36 }
  0x4e   : > { %v4126_v60 = vpack.i.bf16 %v1453_v48, %v883_v5  ;;  %v1040_v62 = vrot.slane %v1039_v49, 4  ;;  %v1053_v63 = vor.u32 %v1052_v50, %v1049_v46  ;;  %v1058_v1 = vrot.slane %v1056_v51, 5  ;;  %v960_v49 = vld [vmem:[%s4294_s24 + $0x38] sm:$0xf]  ;;  %v3577_v51 = vld [vmem:[%s4281_s18 + $0x40] sm:$0xf] }
  0x4f   : > { %v4151_v2 = vpack.i.bf16 %v1250_v53, %v1249_v52  ;;  %v4146_v6 = vpack.i.bf16 %v1248_v56, %v1170_v54  ;;  %v1414_v33 = vshrl.u32 %v3575_v47, 16  ;;  %v1417_v7 = vshll.u32 %v3575_v47, 16 }
  0x50   : > { %4127 = vperm.xlu0 %4004, %v4126_v60   ;;  %v1045_v61 = vsel %vm4317_vm2, %v1040_v62, %v1044_v45  ;;  %v1054_v9 = vrot.slane %v1053_v63, 4  ;;  %v1423_v11 = vshll.u32 %v3576_v59, 16  ;;  %v1386_v13 = vshrl.u32 %v3571_v57, 16  ;;  %v961_v59 = vld [vmem:[%s4294_s24 + $0x3c] sm:$0x1]  ;;  %s3747_s24 = sshll.u32 %s5220_s14, 5 }
  0x51   : > { %4142 = vperm.xlu1 %4015, %v4141_v55   ;;  %v1089_v5 = vunpack.c.l.bf16 %v1045_v61  ;;  %v1416_v15 = vrot.slane %v1414_v33, 4  ;;  %v1419_v16 = vrot.slane %v1417_v7, 5  ;;  %v1389_v18 = vshll.u32 %v3571_v57, 16  ;;  %v3578_v63 = vld [vmem:[%s4281_s18 + $0x44] sm:$0x1]  ;;  %s5172_s27 = scalar_lea.vmem %s5210_s10, %s3747_s24 }
  0x52   : > { %v1059_v14 = vsel %vm4317_vm2, %v1054_v9, %v1058_v1  ;;  %v1425_v20 = vrot.slane %v1423_v11, 5  ;;  %v1388_v21 = vrot.slane %v1386_v13, 4  ;;  %v1395_v23 = vshll.u32 %v3572_v8, 16 }
  0x53   : > { %v1090_v22 = vunpack.c.l.bf16 %v1059_v14  ;;  %v1420_v24 = vor.u32 %v1419_v16, %v1416_v15  ;;  %v1391_v25 = vrot.slane %v1389_v18, 5  ;;  %v1400_v26 = vshrl.u32 %v3573_v10, 16 }
  0x54   : > { %v1397_v29 = vrot.slane %v1395_v23, 5  ;;  %v1403_v30 = vshll.u32 %v3573_v10, 16  ;;  %v1409_v31 = vshll.u32 %v3574_v12, 16  ;;  %v696_v34 = vshrl.u32 %v592_v19, 16 }
  0x55   : > { %v4136_v4 = vpack.i.bf16 %v1090_v22, %v1089_v5  ;;  %4152 = vperm.xlu1 %4015, %v4151_v2   ;;  %v1421_v17 = vrot.slane %v1420_v24, 4  ;;  %v1392_v36 = vor.u32 %v1391_v25, %v1388_v21  ;;  %v1402_v37 = vrot.slane %v1400_v26, 4 }
  0x56   : > { %v1405_v39 = vrot.slane %v1403_v30, 5  ;;  %v1411_v40 = vrot.slane %v1409_v31, 5  ;;  %v698_v55 = vrot.slane %v696_v34, 4  ;;  %v699_v27 = vshll.u32 %v592_v19, 16  ;;  %v4167_v30 = vld [vmem:[%s5206_s6 + $0x40] sm:$0xff]   ;;  %v4169_v31 = vld [vmem:[%s5206_s6 + $0x48] sm:$0xff]  }
  0x57   : > { %4137 = vperm.xlu0 %4004, %v4136_v4   ;;  %v1426_v32 = vsel %vm4317_vm2, %v1421_v17, %v1425_v20  ;;  %v1393_v42 = vrot.slane %v1392_v36, 4  ;;  %v705_v43 = vshll.u32 %v593_v28, 16  ;;  %v437_v44 = vunpack.c.l.bf16 %v4439_v35  ;;  %3866 = vmatprep.subr.bf16.mxu0 %v4167_v30  ;;  %v4521_v34 = vld [vmem:[%s5206_s6] sm:$0xff]  }
  0x58   : > { %v1457_v45 = vunpack.c.l.bf16 %v1426_v32  ;;  %v1406_v46 = vor.u32 %v1405_v39, %v1402_v37  ;;  %v701_v47 = vrot.slane %v699_v27, 5  ;;  %v516_v48 = vunpack.c.l.bf16 %v4442_v38  ;;  %3867 = vmatpush3.bf16.msra.mxu0 %v4167_v30  ;;  %v429_v27 = vld [vmem:[%s5204_s4] sm:$0x1]  ;;  %v3540_v32 = vld [vmem:[%s5204_s4 + $0x1] sm:$0x1] }
  0x59   : > { %v1398_v50 = vsel %vm4317_vm2, %v1393_v42, %v1397_v29  ;;  %v707_v54 = vrot.slane %v705_v43, 5  ;;  %v1061_v60 = vshrl.u32 %v960_v49, 16  ;;  %v1064_v62 = vshll.u32 %v960_v49, 16  ;;  %v4166_v29 = vld [vmem:[%s5206_s6 + $0x10] sm:$0xff]   ;;  %3868 = vmatprep.subr.bf16.mxu0 %v4169_v31  ;;  %v3542_v42 = vld [vmem:[%s5204_s4 + $0x3] sm:$0x1] }
  0x5a   : > { %1492 = vperm.xlu1 %4015, %v1457_v45   ;;  %v1407_v52 = vrot.slane %v1406_v46, 4  ;;  %v702_v53 = vor.u32 %v701_v47, %v698_v55  ;;  %v4161_v56 = vpack.i.bf16 %v516_v48, %v437_v44  ;;  %v1455_v57 = vunpack.c.l.bf16 %v1398_v50  ;;  %3818 = vmatprep.subr.bf16.mxu1 %v4166_v29  ;;  %v3543_v45 = vld [vmem:[%s5204_s4 + $0x4] sm:$0x1]  ;;  %v3541_v46 = vld [vmem:[%s5204_s4 + $0x2] sm:$0x1] }
  0x5b   : > { %4147 = vperm.xlu0 %4004, %v4146_v6   ;;  %v1428_v33 = vshrl.u32 %v3577_v51, 16  ;;  %v1431_v7 = vshll.u32 %v3577_v51, 16  ;;  %v1063_v10 = vrot.slane %v1061_v60, 4  ;;  %v1066_v61 = vrot.slane %v1064_v62, 5  ;;  %3819 = vmatpush3.bf16.msra.mxu1 %v4166_v29  ;;  %v3544_v47 = vld [vmem:[%s5204_s4 + $0x5] sm:$0x1] }
  0x5c   : > { %v1412_v1 = vsel %vm4317_vm2, %v1407_v52, %v1411_v40  ;;  %v703_v2 = vrot.slane %v702_v53, 4  ;;  %v1070_v9 = vshll.u32 %v961_v59, 16  ;;  %v1437_v6 = vshll.u32 %v3578_v63, 16  ;;  %3820 = vmatprep.subr.bf16.mxu1 %v4168_v0  ;;  %3869 = vmatpush3.bf16.msra.mxu0 %v4169_v31 }
  0x5d   : > { %v1456_v8 = vunpack.c.l.bf16 %v1412_v1  ;;  %v1430_v12 = vrot.slane %v1428_v33, 4  ;;  %v1433_v13 = vrot.slane %v1431_v7, 5  ;;  %v1067_v16 = vor.u32 %v1066_v61, %v1063_v10  ;;  %v3562_v1 = vld [vmem:[%s5204_s4 + $0x7] sm:$0x1]  ;;  %v1761_v61 = vld [vmem:[#allocation2] sm:$0xf] }
  0x5e   : > { %v708_v11 = vsel %vm4317_vm2, %v703_v2, %v707_v54  ;;  %v884_v19 = vunpack.c.h.bf16 %v4401_v41  ;;  %v1072_v20 = vrot.slane %v1070_v9, 5  ;;  %v1439_v23 = vrot.slane %v1437_v6, 5  ;;  %v3579_v2 = vld [vmem:[%s5204_s4 + $0x8] sm:$0x1] }
  0x5f   : > { %v4156_v5 = vpack.i.bf16 %v1456_v8, %v1455_v57  ;;  %v726_v15 = vunpack.c.l.bf16 %v708_v11  ;;  %v1434_v18 = vor.u32 %v1433_v13, %v1430_v12  ;;  %v1068_v14 = vrot.slane %v1067_v16, 4  ;;  %3821 = vmatpush3.bf16.msra.mxu1 %v4168_v0  ;;  %v3553_v57 = vld [vmem:[%s5204_s4 + $0x6] sm:$0x1] }
  0x60   : > { %v805_v22 = vunpack.c.h.bf16 %v4378_v3  ;;  %v1171_v24 = vunpack.c.h.bf16 %v4439_v35  ;;  %v1251_v28 = vunpack.c.h.bf16 %v4442_v38  ;;  %v4171_v35 = vld [vmem:[%s5206_s6 + $0x50] sm:$0xff]   ;;  %3830 = vmatprep.subr.bf16.mxu1 %v4521_v34  ;;  %v479_v38 = vlaneseq }
  0x61   : > { %4157 = vperm.xlu0 %4004, %v4156_v5   ;;  %765 = vperm.xlu1 %4015, %v726_v15   ;;  %v1435_v21 = vrot.slane %v1434_v18, 4  ;;  %v1073_v25 = vsel %vm4317_vm2, %v1068_v14, %v1072_v20  ;;  %v438_v48 = vunpack.c.l.bf16 %v429_v27  ;;  %v517_v50 = vunpack.c.l.bf16 %v3540_v32 }
  0x62   : > { %v1091_v3 = vunpack.c.l.bf16 %v1073_v25  ;;  %3878 = vmatprep.subr.bf16.mxu0 %v4171_v35  ;;  %v480_v55 = vshrl.u32 %v479_v38, 7  ;;  %v806_v51 = vunpack.c.l.bf16 %v3542_v42  ;;  %v885_v52 = vunpack.c.l.bf16 %v3543_v45  ;;  %v1773_v45 = vld [vmem:[#allocation2 + $0x4] sm:$0x1] }
  0x63   : > { %v1440_v26 = vsel %vm4317_vm2, %v1435_v21, %v1439_v23  ;;  %v727_v53 = vunpack.c.l.bf16 %v3541_v46  ;;  %v1092_v54 = vunpack.c.l.bf16 %v3544_v47  ;;  %v1172_v13 = vunpack.c.l.bf16 %v3553_v57 }
  0x64   : > { %v1458_v41 = vunpack.c.l.bf16 %v1440_v26  ;;  %v4555_v49 = vsub.s32 0, %v480_v55  ;;  %v1252_v15 = vunpack.c.l.bf16 %v3562_v1  ;;  %v1459_v16 = vunpack.c.l.bf16 %v3579_v2 }
  0x65   : > { %4162 = vperm.xlu0 %4004, %v4161_v56   ;;  %923 = vperm.xlu1 %4015, %v884_v19   ;;  %v1782_v20 = vshrl.u32 %v1761_v61, 16  ;;  %v1785_v21 = vshll.u32 %v1761_v61, 16 }
  0x66   : > { %v4561_v60 = vrot.slane %v438_v48, %v4555_v49  ;;  %v4564_v62 = vrot.slane %v517_v50, %v4555_v49  ;;  %v4567_v63 = vrot.slane %v806_v51, %v4555_v49  ;;  %v4576_v8 = vrot.slane %v885_v52, %v4555_v49 }
  0x67   : > { %v4579_v10 = vrot.slane %v727_v53, %v4555_v49  ;;  %v4582_v12 = vrot.slane %v1092_v54, %v4555_v49  ;;  %v4597_v31 = vrot.slane %v1172_v13, %v4555_v49  ;;  %v4600_v35 = vrot.slane %v1252_v15, %v4555_v49 }
  0x68   : > { %v1787_v38 = vrot.slane %v1785_v21, 5  ;;  %v1791_v51 = vshll.u32 %v1773_v45, 16  ;;  %v4615_v1 = vrot.slane %v1459_v16, %v4555_v49 }
  0x69   : > { %844 = vperm.xlu0 %4004, %v805_v22   ;;  %1210 = vperm.xlu1 %4015, %v1171_v24  }
  0x6d   : > { %1130 = vperm.xlu0 %4004, %v1091_v3   ;;  %1497 = vperm.xlu1 %4015, %v1458_v41  }
  0x71   : > { %1290 = vperm.xlu0 %4004, %v1251_v28  }
  0x95   : > { %v4018_v4 = vpop.permute.xlu1 %4017  ;;  %v4527_v17 = vpop.permute.xlu0 %4006 }
  0x96   : > { %v4019_v33 = vunpack.i.l.bf16 %v4018_v4  ;;  %v4020_v9 = vunpack.i.h.bf16 %v4018_v4  ;;  %v4008_v18 = vunpack.i.l.bf16 %v4527_v17  ;;  %v4009_v41 = vunpack.i.h.bf16 %v4527_v17 }
  0x98   : > { %v485_v23 = vmul.f32 %v4019_v33, %v4561_v60  ;;  %v486_v3 = vmul.f32 %v4020_v9, %v4561_v60  ;;  %v483_v4 = vmul.f32 %v4008_v18, %v4561_v60  ;;  %v484_v46 = vmul.f32 %v4009_v41, %v4561_v60 }
  0x99   : > { %v4023_v36 = vpop.permute.xlu1 %4022  ;;  %v4012_v37 = vpop.permute.xlu0 %4011  ;;  %v4624_v18 = vrot.slane %v1791_v51, 5 }
  0x9a   : > { %v4024_v7 = vunpack.i.l.bf16 %v4023_v36  ;;  %v4025_v11 = vunpack.i.h.bf16 %v4023_v36  ;;  %v4013_v6 = vunpack.i.l.bf16 %v4012_v37  ;;  %v4014_v19 = vunpack.i.h.bf16 %v4012_v37 }
  0x9b   : > { %v1784_v37 = vrot.slane %v1782_v20, 4 }
  0x9c   : > { %v564_v22 = vmul.f32 %v4024_v7, %v4564_v62  ;;  %v565_v28 = vmul.f32 %v4025_v11, %v4564_v62  ;;  %v562_v30 = vmul.f32 %v4013_v6, %v4564_v62  ;;  %v563_v36 = vmul.f32 %v4014_v19, %v4564_v62 }
  0x9d   : > { %v4529_v39 = vpop.permute.xlu1 %4032  ;;  %v4531_v40 = vpop.permute.xlu0 %4027  ;;  %v1788_v2 = vor.u32 %v1787_v38, %v1784_v37 }
  0x9e   : > { %v572_v17 = vadd.f32 %v564_v22, %v485_v23  ;;  %v4034_v55 = vunpack.i.l.bf16 %v4529_v39  ;;  %v573_v47 = vadd.f32 %v565_v28, %v486_v3  ;;  %v570_v52 = vadd.f32 %v562_v30, %v483_v4 }
  0x9f   : > { %v4035_v53 = vunpack.i.h.bf16 %v4529_v39  ;;  %v4029_v54 = vunpack.i.l.bf16 %v4531_v40  ;;  %v4030_v57 = vunpack.i.h.bf16 %v4531_v40  ;;  %v4629_v22 = vrot.slane %v1788_v2, 4 }
  0xa0   : > { %v853_v33 = vmul.f32 %v4034_v55, %v4567_v63 }
  0xa1   : > { %v4542_v43 = vpop.permute.xlu1 %4042  ;;  %v4544_v44 = vpop.permute.xlu0 %4037  ;;  %v854_v40 = vmul.f32 %v4035_v53, %v4567_v63  ;;  %v851_v15 = vmul.f32 %v4029_v54, %v4567_v63  ;;  %v852_v19 = vmul.f32 %v4030_v57, %v4567_v63 }
  0xa2   : > { %v4044_v7 = vunpack.i.l.bf16 %v4542_v43  ;;  %v4045_v13 = vunpack.i.h.bf16 %v4542_v43  ;;  %v4040_v39 = vunpack.i.h.bf16 %v4544_v44  ;;  %v4039_v6 = vunpack.i.l.bf16 %v4544_v44 }
  0xa4   : > { %v933_v28 = vmul.f32 %v4045_v13, %v4576_v8 }
  0xa5   : > { %v4058_v56 = vpop.permute.xlu1 %4057 }
  0xa6   : > { %v4059_v5 = vunpack.i.l.bf16 %v4058_v56  ;;  %v4060_v24 = vunpack.i.h.bf16 %v4058_v56 }
  0xa8   : > { %v4048_v59 = vpop.permute.xlu0 %4047  ;;  %v774_v0 = vmul.f32 %v4059_v5, %v4579_v10  ;;  %v775_v27 = vmul.f32 %v4060_v24, %v4579_v10  ;;  %v932_v24 = vmul.f32 %v4044_v7, %v4576_v8 }
  0xa9   : > { %v4049_v25 = vunpack.i.l.bf16 %v4048_v59  ;;  %v4050_v29 = vunpack.i.h.bf16 %v4048_v59  ;;  %v571_v59 = vadd.f32 %v563_v36, %v484_v46 }
  0xaa   : > { %v782_v56 = vadd.f32 %v774_v0, %v572_v17  ;;  %v783_v61 = vadd.f32 %v775_v27, %v573_v47 }
  0xab   : > { %v772_v32 = vmul.f32 %v4049_v25, %v4579_v10  ;;  %v773_v48 = vmul.f32 %v4050_v29, %v4579_v10  ;;  %v931_v29 = vmul.f32 %v4040_v39, %v4576_v8 }
  0xac   : > { %v4585_v14 = vpop.permute.xlu0 %4052  ;;  %v861_v16 = vadd.f32 %v853_v33, %v782_v56  ;;  %v862_v25 = vadd.f32 %v854_v40, %v783_v61 }
  0xad   : > { %v780_v9 = vadd.f32 %v772_v32, %v570_v52  ;;  %v781_v5 = vadd.f32 %v773_v48, %v571_v59  ;;  %v4055_v20 = vunpack.i.h.bf16 %v4585_v14  ;;  %v4054_v21 = vunpack.i.l.bf16 %v4585_v14 }
  0xae   : > { %v4589_v26 = vpop.permute.xlu1 %4062  ;;  %v930_v14 = vmul.f32 %v4039_v6, %v4576_v8  ;;  %v940_v38 = vadd.f32 %v932_v24, %v861_v16  ;;  %v941_v48 = vadd.f32 %v933_v28, %v862_v25 }
  0xaf   : > { %v859_v3 = vadd.f32 %v851_v15, %v780_v9  ;;  %v4065_v41 = vunpack.i.h.bf16 %v4589_v26  ;;  %v860_v30 = vadd.f32 %v852_v19, %v781_v5  ;;  %v4064_v4 = vunpack.i.l.bf16 %v4589_v26 }
  0xb0   : > { %v4068_v50 = vpop.permute.xlu0 %4067  ;;  %v566_v17 = vmul.f32 %v4055_v20, %v4564_v62  ;;  %v487_v55 = vmul.f32 %v4054_v21, %v4561_v60 }
  0xb1   : > { %v4070_v37 = vunpack.i.h.bf16 %v4068_v50  ;;  %v4069_v32 = vunpack.i.l.bf16 %v4068_v50  ;;  %v1138_v45 = vmul.f32 %v4065_v41, %v4582_v12  ;;  %v938_v46 = vadd.f32 %v930_v14, %v859_v3 }
  0xb2   : > { %v4607_v42 = vpop.permute.xlu1 %4072  ;;  %v939_v52 = vadd.f32 %v931_v29, %v860_v30  ;;  %v1137_v59 = vmul.f32 %v4064_v4, %v4582_v12 }
  0xb3   : > { %v4075_v36 = vunpack.i.h.bf16 %v4607_v42  ;;  %v4074_v27 = vunpack.i.l.bf16 %v4607_v42  ;;  %v489_v2 = vmul.f32 %v4070_v37, %v4561_v60  ;;  %v574_v42 = vadd.f32 %v566_v17, %v487_v55 }
  0xb4   : > { %v488_v61 = vmul.f32 %v4069_v32, %v4561_v60  ;;  %v1145_v5 = vadd.f32 %v1137_v59, %v938_v46  ;;  %v1146_v19 = vadd.f32 %v1138_v45, %v939_v52 }
  0xb5   : > { %v568_v57 = vmul.f32 %v4075_v36, %v4564_v62  ;;  %v567_v50 = vmul.f32 %v4074_v27, %v4564_v62 }
  0xb6   : > { %v4083_v11 = vpop.permute.xlu1 %4082 }
  0xb7   : > { %v4084_v47 = vunpack.i.l.bf16 %v4083_v11  ;;  %v4085_v53 = vunpack.i.h.bf16 %v4083_v11  ;;  %v576_v25 = vadd.f32 %v568_v57, %v489_v2  ;;  %v575_v29 = vadd.f32 %v567_v50, %v488_v61 }
  0xb9   : > { %v4078_v23 = vpop.permute.xlu0 %4077  ;;  %v776_v40 = vmul.f32 %v4084_v47, %v4579_v10  ;;  %v1217_v20 = vmul.f32 %v4085_v53, %v4597_v31 }
  0xba   : > { %v4080_v26 = vunpack.i.h.bf16 %v4078_v23  ;;  %v4079_v54 = vunpack.i.l.bf16 %v4078_v23 }
  0xbb   : > { %v4093_v0 = vpop.permute.xlu1 %4092  ;;  %v784_v4 = vadd.f32 %v776_v40, %v574_v42  ;;  %v1225_v27 = vadd.f32 %v1217_v20, %v1145_v5 }
  0xbc   : > { %v4094_v9 = vunpack.i.l.bf16 %v4093_v0  ;;  %v4095_v11 = vunpack.i.h.bf16 %v4093_v0  ;;  %v1140_v21 = vmul.f32 %v4080_v26, %v4582_v12  ;;  %v1139_v23 = vmul.f32 %v4079_v54, %v4582_v12 }
  0xbe   : > { %v4088_v51 = vpop.permute.xlu0 %4087  ;;  %v778_v14 = vmul.f32 %v4094_v9, %v4579_v10  ;;  %v1219_v36 = vmul.f32 %v4095_v11, %v4597_v31  ;;  %v1148_v32 = vadd.f32 %v1140_v21, %v941_v48  ;;  %v1147_v45 = vadd.f32 %v1139_v23, %v940_v38  ;;  %v4678_v9 = vld [vmem:[%s5205_s5] ss:$0 sm:$0xff] }
  0xbf   : > { %v4103_v56 = vpop.permute.xlu1 %4102  ;;  %v4089_v33 = vunpack.i.l.bf16 %v4088_v51  ;;  %v4090_v3 = vunpack.i.h.bf16 %v4088_v51 }
  0xc0   : > { %v4105_v15 = vunpack.i.h.bf16 %v4103_v56  ;;  %v4104_v28 = vunpack.i.l.bf16 %v4103_v56  ;;  %v786_v54 = vadd.f32 %v778_v14, %v576_v25  ;;  %v1227_v2 = vadd.f32 %v1219_v36, %v1147_v45 }
  0xc1   : > { %v1218_v41 = vmul.f32 %v4089_v33, %v4597_v31  ;;  %v777_v51 = vmul.f32 %v4090_v3, %v4579_v10 }
  0xc2   : > { %v4098_v16 = vpop.permute.xlu0 %4097  ;;  %v1298_v37 = vmul.f32 %v4105_v15, %v4600_v35  ;;  %v1297_v53 = vmul.f32 %v4104_v28, %v4600_v35 }
  0xc3   : > { %v4113_v24 = vpop.permute.xlu1 %4112  ;;  %v4100_v30 = vunpack.i.h.bf16 %v4098_v16  ;;  %v4099_v0 = vunpack.i.l.bf16 %v4098_v16  ;;  %v1226_v52 = vadd.f32 %v1218_v41, %v1146_v19  ;;  %v785_v11 = vadd.f32 %v777_v51, %v575_v29 }
  0xc4   : > { %v4115_v17 = vunpack.i.h.bf16 %v4113_v24  ;;  %v4114_v46 = vunpack.i.l.bf16 %v4113_v24  ;;  %v1305_v15 = vadd.f32 %v1297_v53, %v1225_v27 }
  0xc5   : > { %v855_v56 = vmul.f32 %v4100_v30, %v4567_v63  ;;  %v1220_v59 = vmul.f32 %v4099_v0, %v4597_v31  ;;  %v1306_v33 = vadd.f32 %v1298_v37, %v1226_v52 }
  0xc6   : > { %v4108_v55 = vpop.permute.xlu0 %4107  ;;  %v1300_v38 = vmul.f32 %v4115_v17, %v4600_v35  ;;  %v1299_v50 = vmul.f32 %v4114_v46, %v4600_v35 }
  0xc7   : > { %v4663_v47 = vpop.permute.xlu1 %4122  ;;  %v4109_v57 = vunpack.i.l.bf16 %v4108_v55  ;;  %v4110_v61 = vunpack.i.h.bf16 %v4108_v55  ;;  %v863_v21 = vadd.f32 %v855_v56, %v784_v4  ;;  %v1228_v23 = vadd.f32 %v1220_v59, %v1148_v32 }
  0xc8   : > { %v4124_v26 = vunpack.i.l.bf16 %v4663_v47  ;;  %v4125_v16 = vunpack.i.h.bf16 %v4663_v47  ;;  %v1307_v14 = vadd.f32 %v1299_v50, %v1227_v2 }
  0xc9   : > { %v856_v24 = vmul.f32 %v4109_v57, %v4567_v63  ;;  %v1308_v30 = vadd.f32 %v1300_v38, %v1228_v23  ;;  %v857_v0 = vmul.f32 %v4110_v61, %v4567_v63 }
  0xca   : > { %v1505_v48 = vmul.f32 %v4124_v26, %v4615_v1  ;;  %v4672_v42 = vpop.permute.xlu0 %4117  ;;  %v935_v4 = vmul.f32 %v4125_v16, %v4576_v8 }
  0xcb   : > { %v4120_v5 = vunpack.i.h.bf16 %v4672_v42  ;;  %v4119_v40 = vunpack.i.l.bf16 %v4672_v42  ;;  %v864_v45 = vadd.f32 %v856_v24, %v785_v11  ;;  %v1794_v11 = vsel %vm4317_vm2, %v4629_v22, %v4624_v18 }
  0xcc   : > { %v1513_v19 = vadd.f32 %v1505_v48, %v1306_v33  ;;  %v4133_v20 = vpop.permute.xlu1 %4132 }
  0xcd   : > { %v1504_v25 = vmul.f32 %v4120_v5, %v4615_v1  ;;  %v934_v41 = vmul.f32 %v4119_v40, %v4576_v8  ;;  %v4135_v28 = vunpack.i.h.bf16 %v4133_v20  ;;  %v4134_v29 = vunpack.i.l.bf16 %v4133_v20 }
  0xce   : > { %v1528_v3 = vadd.f32 %v4678_v9, %v1513_v19  ;;  %v943_v19 = vadd.f32 %v935_v4, %v864_v45 }
  0xcf   : > { %v1512_v36 = vadd.f32 %v1504_v25, %v1305_v15  ;;  %v4690_v37 = vpop.permute.xlu0 %4127  ;;  %v1507_v55 = vmul.f32 %v4134_v29, %v4615_v1  ;;  %v1141_v51 = vmul.f32 %v4135_v28, %v4582_v12  ;;  %v942_v26 = vadd.f32 %v934_v41, %v863_v21 }
  0xd0   : > { %v1536_v17 = vmax.f32 %v1528_v3, 0.0  ;;  %v4130_v27 = vunpack.i.h.bf16 %v4690_v37  ;;  %v4143_v32 = vpop.permute.xlu1 %4142  ;;  %v4129_v52 = vunpack.i.l.bf16 %v4690_v37  ;;  %v865_v15 = vadd.f32 %v857_v0, %v786_v54  ;;  %v1719_v54 = vld [vmem:[#allocation2 + $0x10] sm:$0xf] }
  0xd1   : > { %v1527_v46 = vadd.f32 %v4678_v9, %v1512_v36  ;;  %v1515_v56 = vadd.f32 %v1507_v55, %v1308_v30  ;;  %v4145_v33 = vunpack.i.h.bf16 %v4143_v32  ;;  %v4144_v38 = vunpack.i.l.bf16 %v4143_v32 }
  0xd2   : > { %v3749_v53 = vpack.c.bf16 %v1536_v17, %v1536_v17  ;;  %v1506_v59 = vmul.f32 %v4130_v27, %v4615_v1  ;;  %v936_v2 = vmul.f32 %v4129_v52, %v4576_v8  ;;  %v1149_v21 = vadd.f32 %v1141_v51, %v942_v26 }
  0xd3   : > { %v1535_v57 = vmax.f32 %v1527_v46, 0.0  ;;  %v1530_v50 = vadd.f32 %v4678_v9, %v1515_v56  ;;  %v1222_v36 = vmul.f32 %v4145_v33, %v4597_v31  ;;  %v1221_v4 = vmul.f32 %v4144_v38, %v4597_v31 }
  0xd4   : > { %v1635_v48 = vshrl.u32 %v3749_v53, 16  ;;  %v1514_v61 = vadd.f32 %v1506_v59, %v1307_v14  ;;  %v4705_v5 = vpop.permute.xlu1 %4152  ;;  %v1638_v25 = vshll.u32 %v3749_v53, 16  ;;  %v1722_v14 = vld [vmem:[#allocation2 + $0x14] sm:$0x1]  ;;  %v944_v0 = vadd.f32 %v936_v2, %v865_v15  ;;  %v1710_v59 = vld [vmem:[#allocation2 + $0x8] sm:$0xf] }
  0xd5   : > { %v3748_v20 = vpack.c.bf16 %v1535_v57, %v1535_v57  ;;  %v1538_v3 = vmax.f32 %v1530_v50, 0.0  ;;  %v1716_v57 = vld [vmem:[#allocation2 + $0xc] sm:$0x1]  ;;  %v4155_v33 = vunpack.i.h.bf16 %v4705_v5 }
  0xd6   : > { %v1637_v24 = vrot.slane %v1635_v48, 7  ;;  %v1529_v41 = vadd.f32 %v4678_v9, %v1514_v61  ;;  %v4138_v28 = vpop.permute.xlu0 %4137 }
  0xd7   : > { %v1627_v30 = vshrl.u32 %v3748_v20, 16  ;;  %v3751_v27 = vpack.c.bf16 %v1538_v3, %v1538_v3  ;;  %v1630_v46 = vshll.u32 %v3748_v20, 16  ;;  %v4140_v51 = vunpack.i.h.bf16 %v4138_v28 }
  0xd8   : > { %v1640_v17 = vor.u32 %v1638_v25, %v1637_v24  ;;  %v1641_v55 = vrot.slane %v1637_v24, 4  ;;  %v1537_v32 = vmax.f32 %v1529_v41, 0.0  ;;  %v4139_v53 = vunpack.i.l.bf16 %v4138_v28 }
  0xd9   : > { %v1629_v45 = vrot.slane %v1627_v30, 7  ;;  %v1651_v2 = vshrl.u32 %v3751_v27, 16  ;;  %v1493_v48 = vpop.permute.xlu1 %1492  ;;  %v1654_v25 = vshll.u32 %v3751_v27, 16  ;;  %v4154_v3 = vunpack.i.l.bf16 %v4705_v5  ;;  %v1734_v30 = vld [vmem:[#allocation2 + $0x24] sm:$0x1] }
  0xda   : > { %v1720_v26 = vsel %vm4713_vm7, %v1640_v17, %v1719_v54  ;;  %v1723_v56 = vsel %vm4720_vm8, %v1641_v55, %v1722_v14  ;;  %v4148_v38 = vpop.permute.xlu0 %4147  ;;  %v3750_v15 = vpack.c.bf16 %v1537_v32, %v1537_v32  ;;  %v1142_v20 = vmul.f32 %v4139_v53, %v4582_v12  ;;  %v1731_v14 = vld [vmem:[#allocation2 + $0x20] sm:$0xf] }
  0xdb   : > { %1721 = vst [vmem:[#allocation2 + $0x10] sm:$0xf] %v1720_v26  ;;  %1724 = vst [vmem:[#allocation2 + $0x14] sm:$0x1] %v1723_v56  ;;  %v1632_v50 = vor.u32 %v1630_v46, %v1629_v45  ;;  %v1633_v61 = vrot.slane %v1629_v45, 4  ;;  %v1653_v24 = vrot.slane %v1651_v2, 7  ;;  %v4150_v41 = vunpack.i.h.bf16 %v4148_v38 }
  0xdc   : > { %v1643_v17 = vshrl.u32 %v3750_v15, 16  ;;  %v1143_v55 = vmul.f32 %v4140_v51, %v4582_v12  ;;  %v1229_v46 = vadd.f32 %v1221_v4, %v1149_v21  ;;  %v1150_v27 = vadd.f32 %v1142_v20, %v943_v19  ;;  %v1725_v2 = vld [vmem:[#allocation2 + $0x18] sm:$0xf] }
  0xdd   : > { %v1711_v28 = vsel %vm4713_vm7, %v1632_v50, %v1710_v59  ;;  %v1717_v54 = vsel %vm4720_vm8, %v1633_v61, %v1716_v57  ;;  %v1656_v32 = vor.u32 %v1654_v25, %v1653_v24  ;;  %v1657_v45 = vrot.slane %v1653_v24, 4  ;;  %v1728_v50 = vld [vmem:[#allocation2 + $0x1c] sm:$0x1] }
  0xde   : > { %1712 = vst [vmem:[#allocation2 + $0x8] sm:$0xf] %v1711_v28  ;;  %1718 = vst [vmem:[#allocation2 + $0xc] sm:$0x1] %v1717_v54  ;;  %v1645_v53 = vrot.slane %v1643_v17, 7  ;;  %v1646_v5 = vshll.u32 %v3750_v15, 16  ;;  %v1301_v26 = vmul.f32 %v4150_v41, %v4600_v35  ;;  %v4149_v56 = vunpack.i.l.bf16 %v4148_v38 }
  0xdf   : > { %v1732_v59 = vsel %vm4713_vm7, %v1656_v32, %v1731_v14  ;;  %v1735_v57 = vsel %vm4720_vm8, %v1657_v45, %v1734_v30  ;;  %v1230_v51 = vadd.f32 %v1222_v36, %v1150_v27  ;;  %v1302_v61 = vmul.f32 %v4154_v3, %v4600_v35 }
  0xe0   : > { %v4158_v25 = vpop.permute.xlu0 %4157  ;;  %v766_v24 = vpop.permute.xlu1 %765  ;;  %1733 = vst [vmem:[#allocation2 + $0x20] sm:$0xf] %v1732_v59  ;;  %1736 = vst [vmem:[#allocation2 + $0x24] sm:$0x1] %v1735_v57  ;;  %v1648_v19 = vor.u32 %v1646_v5, %v1645_v53  ;;  %v1649_v21 = vrot.slane %v1645_v53, 4  ;;  %v1151_v4 = vadd.f32 %v1143_v55, %v944_v0  ;;  %v1223_v38 = vmul.f32 %v4149_v56, %v4597_v31 }
  0xe1   : > { %v1303_v15 = vmul.f32 %v4155_v33, %v4600_v35  ;;  %v1510_v20 = vmul.f32 %v4615_v1, %v1493_v48  ;;  %v4160_v41 = vunpack.i.h.bf16 %v4158_v25  ;;  %v4159_v28 = vunpack.i.l.bf16 %v4158_v25 }
  0xe2   : > { %v4747_v54 = vld [vmem:[#allocation2 + $0x10] sm:$0xf]  ;;  %v1726_v36 = vsel %vm4713_vm7, %v1648_v19, %v1725_v2  ;;  %v1729_v3 = vsel %vm4720_vm8, %v1649_v21, %v1728_v50  ;;  %v1231_v14 = vadd.f32 %v1223_v38, %v1151_v4  ;;  %v1309_v30 = vadd.f32 %v1301_v26, %v1229_v46  ;;  %v4760_v56 = vld [vmem:[#allocation2 + $0x14] sm:$0x1] }
  0xe3   : > { %1727 = vst [vmem:[#allocation2 + $0x18] sm:$0xf] %v1726_v36  ;;  %1730 = vst [vmem:[#allocation2 + $0x1c] sm:$0x1] %v1729_v3  ;;  %v1310_v0 = vadd.f32 %v1302_v61, %v1230_v51  ;;  %v1509_v17 = vmul.f32 %v4160_v41, %v4615_v1  ;;  %v1508_v33 = vmul.f32 %v4159_v28, %v4615_v1  ;;  %v2443_v46 = vshrl.u32 %v4747_v54, 16 }
  0xe4   : > { %v779_v48 = vmul.f32 %v4579_v10, %v766_v24  ;;  %v4163_v55 = vpop.permute.xlu0 %4162  ;;  %v4756_v32 = vpop.permute.xlu1 %923  ;;  %v1311_v45 = vadd.f32 %v1303_v15, %v1231_v14  ;;  %v2446_v2 = vshll.u32 %v4747_v54, 16  ;;  %v2452_v41 = vshll.u32 %v4760_v56, 16 }
  0xe5   : > { %v4165_v27 = vunpack.i.h.bf16 %v4163_v55  ;;  %v4164_v53 = vunpack.i.l.bf16 %v4163_v55  ;;  %v4758_v5 = vld [vmem:[#allocation2 + $0x8] sm:$0xf]  ;;  %v1516_v26 = vadd.f32 %v1508_v33, %v1309_v30  ;;  %v1517_v59 = vadd.f32 %v1509_v17, %v1310_v0  ;;  %v4767_v61 = vld [vmem:[#allocation2 + $0xc] sm:$0x1] }
  0xe6   : > { %v1796_v57 = vshrl.u32 %v4758_v5, 16  ;;  %v1518_v50 = vadd.f32 %v1510_v20, %v1311_v45  ;;  %v1799_v25 = vshll.u32 %v4758_v5, 16  ;;  %v4772_v15 = vld [vmem:[#allocation2 + $0x8] sm:$0xf]  ;;  %v1805_v30 = vshll.u32 %v4767_v61, 16 }
  0xe7   : > { %v569_v10 = vmul.f32 %v4165_v27, %v4564_v62  ;;  %v490_v51 = vmul.f32 %v4164_v53, %v4561_v60  ;;  %v1531_v24 = vadd.f32 %v4678_v9, %v1516_v26  ;;  %v1532_v19 = vadd.f32 %v4678_v9, %v1517_v59 }
  0xe8   : > { %v845_v21 = vpop.permute.xlu0 %844  ;;  %v1211_v4 = vpop.permute.xlu1 %1210  ;;  %v1798_v38 = vrot.slane %v1796_v57, 4  ;;  %v1533_v20 = vadd.f32 %v4678_v9, %v1518_v50  ;;  %v937_v60 = vmul.f32 %v4576_v8, %v4756_v32  ;;  %v1801_v14 = vrot.slane %v1799_v25, 5 }
  0xe9   : > { %v577_v62 = vadd.f32 %v569_v10, %v490_v51  ;;  %v858_v28 = vmul.f32 %v4567_v63, %v845_v21  ;;  %v1539_v36 = vmax.f32 %v1531_v24, 0.0  ;;  %v1540_v3 = vmax.f32 %v1532_v19, 0.0  ;;  %v1737_v21 = vld [vmem:[#allocation2 + $0x28] sm:$0xf] }
  0xea   : > { %v1541_v0 = vmax.f32 %v1533_v20, 0.0  ;;  %v1224_v33 = vmul.f32 %v4597_v31, %v1211_v4  ;;  %v2429_v55 = vshrl.u32 %v4772_v15, 16  ;;  %v1802_v59 = vor.u32 %v1801_v14, %v1798_v38  ;;  %v4824_v54 = vld [vmem:[#allocation2 + $0x1c] sm:$0x1] }
  0xeb   : > { %v787_v17 = vadd.f32 %v779_v48, %v577_v62  ;;  %v3752_v45 = vpack.c.bf16 %v1539_v36, %v1539_v36  ;;  %v3753_v27 = vpack.c.bf16 %v1540_v3, %v1540_v3  ;;  %v1807_v8 = vrot.slane %v1805_v30, 5  ;;  %v1749_v62 = vld [vmem:[#allocation2 + $0x38] sm:$0xf]  ;;  %v1740_v36 = vld [vmem:[#allocation2 + $0x2c] sm:$0x1] }
  0xec   : > { %v1131_v53 = vpop.permute.xlu0 %1130  ;;  %v1498_v26 = vpop.permute.xlu1 %1497  ;;  %v3754_v57 = vpack.c.bf16 %v1541_v0, %v1541_v0  ;;  %v1803_v20 = vrot.slane %v1802_v59, 4  ;;  %v2431_v30 = vrot.slane %v2429_v55, 4  ;;  %v1743_v0 = vld [vmem:[#allocation2 + $0x30] sm:$0xf]  ;;  %v4793_v55 = vld [vmem:[#allocation2 + $0xc] sm:$0x1] }
  0xed   : > { %v866_v63 = vadd.f32 %v858_v28, %v787_v17  ;;  %v1144_v50 = vmul.f32 %v4582_v12, %v1131_v53  ;;  %v1511_v10 = vmul.f32 %v4615_v1, %v1498_v26  ;;  %v1659_v51 = vshrl.u32 %v3752_v45, 16  ;;  %v1746_v1 = vld [vmem:[#allocation2 + $0x34] sm:$0x1]  ;;  %v1752_v53 = vld [vmem:[#allocation2 + $0x3c] sm:$0x1] }
  0xee   : > { %v1662_v25 = vshll.u32 %v3752_v45, 16  ;;  %v1667_v24 = vshrl.u32 %v3753_v27, 16  ;;  %v1670_v48 = vshll.u32 %v3753_v27, 16  ;;  %v1675_v19 = vshrl.u32 %v3754_v57, 16 }
  0xef   : > { %v1678_v31 = vshll.u32 %v3754_v57, 16  ;;  %v945_v4 = vadd.f32 %v937_v60, %v866_v63  ;;  %v1661_v3 = vrot.slane %v1659_v51, 7  ;;  %v2432_v28 = vshll.u32 %v4772_v15, 16 }
  0xf0   : > { %v1669_v38 = vrot.slane %v1667_v24, 7  ;;  %v1291_v14 = vpop.permute.xlu0 %1290  ;;  %v1677_v12 = vrot.slane %v1675_v19, 7  ;;  %v1808_v27 = vsel %vm4317_vm2, %v1803_v20, %v1807_v8  ;;  %v2438_v19 = vshll.u32 %v4793_v55, 16 }
  0xf1   : > { %v1152_v17 = vadd.f32 %v1144_v50, %v945_v4  ;;  %v1304_v45 = vmul.f32 %v4600_v35, %v1291_v14  ;;  %v1664_v60 = vor.u32 %v1662_v25, %v1661_v3  ;;  %v1665_v26 = vrot.slane %v1661_v3, 4  ;;  %v4815_v4 = vld [vmem:[#allocation2 + $0x18] sm:$0xf] }
  0xf2   : > { %v1672_v59 = vor.u32 %v1670_v48, %v1669_v38  ;;  %v1673_v57 = vrot.slane %v1669_v38, 4  ;;  %v1680_v63 = vor.u32 %v1678_v31, %v1677_v12  ;;  %v1681_v51 = vrot.slane %v1677_v12, 4  ;;  %v4808_v48 = vld [vmem:[#allocation2 + $0x10] sm:$0xf]  ;;  %v4819_v38 = vld [vmem:[#allocation2 + $0x14] sm:$0x1] }
  0xf3   : > { %v1232_v24 = vadd.f32 %v1224_v33, %v1152_v17  ;;  %v3594_v15 = vcombine.low %v1794_v11, %v1808_v27  ;;  %v1738_v35 = vsel %vm4713_vm7, %v1664_v60, %v1737_v21  ;;  %v1741_v8 = vsel %vm4720_vm8, %v1665_v26, %v1740_v36  ;;  %v2416_v60 = vld [vmem:[#allocation2 + $0x18] sm:$0xf] }
  0xf4   : > { %v1744_v50 = vsel %vm4713_vm7, %v1672_v59, %v1743_v0  ;;  %v1747_v33 = vsel %vm4720_vm8, %v1673_v57, %v1746_v1  ;;  %v1750_v25 = vsel %vm4713_vm7, %v1680_v63, %v1749_v62  ;;  %v1753_v18 = vsel %vm4720_vm8, %v1681_v51, %v1752_v53  ;;  %1739 = vst [vmem:[#allocation2 + $0x28] sm:$0xf] %v1738_v35 }
  0xf5   : > { %1742 = vst [vmem:[#allocation2 + $0x2c] sm:$0x1] %v1741_v8  ;;  %1745 = vst [vmem:[#allocation2 + $0x30] sm:$0xf] %v1744_v50  ;;  %v1312_v22 = vadd.f32 %v1304_v45, %v1232_v24  ;;  %3822 = vmatprep.mubr.msk.bf16.mxu1 %vm1922_vm9, %v3594_v15  ;;  %v2434_v11 = vrot.slane %v2432_v28, 5  ;;  %v2445_v31 = vrot.slane %v2443_v46, 4 }
  0xf6   : > { %1748 = vst [vmem:[#allocation2 + $0x34] sm:$0x1] %v1747_v33  ;;  %1751 = vst [vmem:[#allocation2 + $0x38] sm:$0xf] %v1750_v25  ;;  %v2448_v21 = vrot.slane %v2446_v2, 5  ;;  %v2454_v3 = vrot.slane %v2452_v41, 5 }
  0xf7   : > { %1754 = vst [vmem:[#allocation2 + $0x3c] sm:$0x1] %v1753_v18  ;;  %v1519_v20 = vadd.f32 %v1511_v10, %v1312_v22  ;;  %v2435_v62 = vor.u32 %v2434_v11, %v2431_v30  ;;  %v1810_v14 = vshrl.u32 %v4808_v48, 16  ;;  %v1813_v28 = vshll.u32 %v4808_v48, 16  ;;  %v4834_v24 = vld [vmem:[#allocation2 + $0x1c] sm:$0x1] }
  0xf8   : > { %v2449_v36 = vor.u32 %v2448_v21, %v2445_v31  ;;  %v2440_v0 = vrot.slane %v2438_v19, 5  ;;  %v1824_v2 = vshrl.u32 %v4815_v4, 16  ;;  %v1827_v17 = vshll.u32 %v4815_v4, 16  ;;  %v2418_v15 = vld [vmem:[#allocation2 + $0x20] sm:$0xf] }
  0xf9   : > { %v1534_v12 = vadd.f32 %v4678_v9, %v1519_v20  ;;  %v2436_v46 = vrot.slane %v2435_v62, 4  ;;  %v1812_v30 = vrot.slane %v1810_v14, 4  ;;  %v1815_v1 = vrot.slane %v1813_v28, 5  ;;  %v4838_v11 = vld [vmem:[#allocation2 + $0x24] sm:$0x1] }
  0xfa   : > { %v2450_v10 = vrot.slane %v2449_v36, 4  ;;  %v1819_v27 = vshll.u32 %v4819_v38, 16  ;;  %v1826_v53 = vrot.slane %v1824_v2, 4  ;;  %v1829_v59 = vrot.slane %v1827_v17, 5  ;;  %v1755_v31 = vld [vmem:[#allocation2 + $0x40] sm:$0xf] }
  0xfb   : > { %v1542_v41 = vmax.f32 %v1534_v12, 0.0  ;;  %v2441_v45 = vsel %vm4317_vm2, %v2436_v46, %v2440_v0  ;;  %v1816_v26 = vor.u32 %v1815_v1, %v1812_v30  ;;  %v1833_v57 = vshll.u32 %v4824_v54, 16  ;;  %v2654_v12 = vld [vmem:[#allocation2 + $0x8] sm:$0xe]  ;;  %v1758_v46 = vld [vmem:[#allocation2 + $0x44] sm:$0x1] }
  0xfc   : > { %v2455_v9 = vsel %vm4317_vm2, %v2450_v10, %v2454_v3  ;;  %v2680_v35 = vrot.slane %v4793_v55, 5  ;;  %v1830_v50 = vor.u32 %v1829_v59, %v1826_v53  ;;  %v2457_v33 = vshrl.u32 %v2416_v60, 16  ;;  %v2655_v1 = vld [vmem:[#allocation2 + $0x10] sm:$0xe]  ;;  %v4846_v53 = vld [vmem:[#allocation2 + $0x20] sm:$0xf] }
  0xfd   : > { %v3755_v63 = vpack.c.bf16 %v1542_v41, %v1542_v41  ;;  %v3654_v51 = vcombine.low %v2441_v45, %v2455_v9  ;;  %v1817_v8 = vrot.slane %v1816_v26, 4  ;;  %v1821_v18 = vrot.slane %v1819_v27, 5 }
  0xfe   : > { %v1835_v22 = vrot.slane %v1833_v57, 5  ;;  %v2460_v19 = vshll.u32 %v2416_v60, 16  ;;  %v1831_v21 = vrot.slane %v1830_v50, 4  ;;  %v2459_v20 = vrot.slane %v2457_v33, 4  ;;  %v4173_v60 = vld [vmem:[%s5206_s6 + $0x8] sm:$0xff]  }
  0xff   : > { %v1683_v25 = vshrl.u32 %v3755_v63, 16  ;;  %3870 = vmatprep.mubr.msk.bf16.mxu0 %vm1922_vm9, %v3654_v51  ;;  %v2466_v62 = vshll.u32 %v4834_v24, 16  ;;  %v2471_v36 = vshrl.u32 %v2418_v15, 16  ;;  %v1686_v14 = vshll.u32 %v3755_v63, 16  ;;  %v4852_v63 = vld [vmem:[#allocation2 + $0x28] sm:$0xf] }
 0x100   : > { %v2462_v55 = vrot.slane %v2460_v19, 5  ;;  %v2474_v28 = vshll.u32 %v2418_v15, 16  ;;  %v1822_v0 = vsel %vm4317_vm2, %v1817_v8, %v1821_v18  ;;  %v1836_v2 = vsel %vm4317_vm2, %v1831_v21, %v1835_v22  ;;  %v4859_v33 = vld [vmem:[#allocation2 + $0x24] sm:$0x1]  ;;  %v4872_v19 = vld [vmem:[#allocation2 + $0x2c] sm:$0x1] }
 0x101   : > { %v1685_v3 = vrot.slane %v1683_v25, 7  ;;  %v2473_v10 = vrot.slane %v2471_v36, 4  ;;  %v2480_v30 = vshll.u32 %v4838_v11, 16  ;;  %v3595_v45 = vcombine.low %v1822_v0, %v1836_v2  ;;  %v4878_v21 = vld [vmem:[%s5206_s6 + $0x20] sm:$0xff]  }
 0x102   : > { %v2463_v27 = vor.u32 %v2462_v55, %v2459_v20  ;;  %v2684_v9 = vrot.slane %v4760_v56, 5  ;;  %v2468_v26 = vrot.slane %v2466_v62, 5  ;;  %v2476_v59 = vrot.slane %v2474_v28, 5  ;;  %v2657_v0 = vld [vmem:[#allocation2 + $0x20] sm:$0xe] }
 0x103   : > { %v1688_v17 = vor.u32 %v1686_v14, %v1685_v3  ;;  %v1689_v41 = vrot.slane %v1685_v3, 4  ;;  %v3664_v57 = vrot.slane %v2654_v12, 9  ;;  %3823 = vmatmul.mubr.msk.bf16.vlgmr.msra.gmra.mrb[0].mxu1 %vm1922_vm9, %v3595_v45  ;;  %v3665_v50 = vrot.slane %v2655_v1, 9  ;;  %v4881_v3 = vld [vmem:[#allocation2 + $0x30] sm:$0xf]  ;;  %v4172_v45 = vld [vmem:[%s5206_s6 + $0x58] sm:$0xff]  }
 0x104   : > { %v2464_v8 = vrot.slane %v2463_v27, 4  ;;  %v2477_v56 = vor.u32 %v2476_v59, %v2473_v10  ;;  %3831 = vmatpush3.bf16.msra.mxu1 %v4521_v34  ;;  %v1838_v23 = vshrl.u32 %v4846_v53, 16  ;;  %v1841_v29 = vshll.u32 %v4846_v53, 16  ;;  %v1543_v25 = vld [vmem:[%s5208_s8] sm:$0x1] }
 0x105   : > { %v1756_v51 = vsel %vm4713_vm7, %v1688_v17, %v1755_v31  ;;  %v1759_v15 = vsel %vm4720_vm8, %v1689_v41, %v1758_v46  ;;  %v2482_v22 = vrot.slane %v2480_v30, 5  ;;  %v1852_v31 = vshrl.u32 %v4852_v63, 16  ;;  %3832 = vmatprep.subr.bf16.mxu1 %v4173_v60  ;;  %v2656_v46 = vld [vmem:[#allocation2 + $0x18] sm:$0xe]  ;;  %v4894_v41 = vld [vmem:[#allocation2 + $0x34] sm:$0x1] }
 0x106   : > { %1757 = vst [vmem:[#allocation2 + $0x40] sm:$0xf] %v1756_v51  ;;  %1760 = vst [vmem:[#allocation2 + $0x44] sm:$0x1] %v1759_v15  ;;  %v2469_v18 = vsel %vm4317_vm2, %v2464_v8, %v2468_v26  ;;  %v2478_v20 = vrot.slane %v2477_v56, 4  ;;  %v1840_v34 = vrot.slane %v1838_v23, 4  ;;  %v2681_v14 = vsel %vm4863_vm12, %v3664_v57, %v2680_v35 }
 0x107   : > { %v1843_v62 = vrot.slane %v1841_v29, 5  ;;  %v1847_v36 = vshll.u32 %v4859_v33, 16  ;;  %v2685_v55 = vsel %vm4863_vm12, %v3665_v50, %v2684_v9  ;;  %v1854_v28 = vrot.slane %v1852_v31, 4  ;;  %v4892_v17 = vld [vmem:[#allocation2 + $0x38] sm:$0xf] }
 0x108   : > { %v1855_v12 = vshll.u32 %v4852_v63, 16  ;;  %v2483_v2 = vsel %vm4317_vm2, %v2478_v20, %v2482_v22  ;;  %v2688_v10 = vrot.slane %v4834_v24, 5  ;;  %v2692_v30 = vrot.slane %v4838_v11, 5  ;;  %3833 = vmatpush3.bf16.msra.mxu1 %v4173_v60  ;;  %v4900_v26 = vld [vmem:[#allocation2 + $0x3c] sm:$0x1]  ;;  %v4196_v22 = vld [vmem:[%s5206_s6 + $0x50] sm:$0xff]  }
 0x109   : > { %v1844_v1 = vor.u32 %v1843_v62, %v1840_v34  ;;  %v3655_v35 = vcombine.low %v2469_v18, %v2483_v2  ;;  %v1861_v9 = vshll.u32 %v4872_v19, 16  ;;  %v1866_v24 = vshrl.u32 %v4881_v3, 16  ;;  %3842 = vmatprep.subr.bf16.mxu1 %v4878_v21  ;;  %v4905_v60 = vld [vmem:[#allocation2 + $0x2c] sm:$0x1]  ;;  %v4907_v15 = vld [vmem:[#allocation2 + $0x34] sm:$0x1] }
 0x10a   : > { %v1857_v27 = vrot.slane %v1855_v12, 5  ;;  %v3676_v11 = vcombine.low %v2681_v14, %v2685_v55  ;;  %v1849_v57 = vrot.slane %v1847_v36, 5  ;;  %v1869_v51 = vshll.u32 %v4881_v3, 16  ;;  %v2658_v8 = vld [vmem:[#allocation2 + $0x28] sm:$0xe]  ;;  %v4175_v12 = vld [vmem:[%s5206_s6 + $0x60] sm:$0xff]  }
 0x10b   : > { %v1845_v59 = vrot.slane %v1844_v1, 4  ;;  %3871 = vmatmul.mubr.msk.bf16.vlgmr.msra.gmra.mrb[0].mxu0 %vm1922_vm9, %v3655_v35  ;;  %v3666_v56 = vrot.slane %v2656_v46, 9  ;;  %v3667_v23 = vrot.slane %v2657_v0, 9  ;;  %v1868_v29 = vrot.slane %v1866_v24, 4  ;;  %v2659_v18 = vld [vmem:[#allocation2 + $0x30] sm:$0xe] }
 0x10c   : > { %v1858_v50 = vor.u32 %v1857_v27, %v1854_v28  ;;  %3882 = vmatprep.mubr.msk.bf16.mxu0 %vm1922_vm9, %v3676_v11  ;;  %3879 = vmatpush3.bf16.msra.mxu0 %v4196_v22  ;;  %v1871_v31 = vrot.slane %v1869_v51, 5  ;;  %v1875_v20 = vshll.u32 %v4894_v41, 16  ;;  %v1880_v34 = vshrl.u32 %v4892_v17, 16 }
 0x10d   : > { %v1883_v62 = vshll.u32 %v4892_v17, 16  ;;  %3880 = vmatprep.subr.bf16.mxu0 %v4172_v45  ;;  %v1850_v36 = vsel %vm4317_vm2, %v1845_v59, %v1849_v57  ;;  %v1863_v55 = vrot.slane %v1861_v9, 5  ;;  %v1889_v28 = vshll.u32 %v4900_v26, 16 }
 0x10e   : > { %v1859_v14 = vrot.slane %v1858_v50, 4  ;;  %v1872_v46 = vor.u32 %v1871_v31, %v1868_v29  ;;  %v1882_v0 = vrot.slane %v1880_v34, 4  ;;  %v3668_v1 = vrot.slane %v2658_v8, 9  ;;  %v4929_v29 = vld [vmem:[#allocation2 + $0x44] sm:$0x1] }
 0x10f   : > { %v1885_v2 = vrot.slane %v1883_v62, 5  ;;  %v2696_v27 = vrot.slane %v4905_v60, 5  ;;  %v3669_v24 = vrot.slane %v2659_v18, 9  ;;  %v2700_v11 = vrot.slane %v4907_v15, 5  ;;  %v2661_v8 = vld [vmem:[#allocation2 + $0x40] sm:$0xe] }
 0x110   : > { %v1864_v35 = vsel %vm4317_vm2, %v1859_v14, %v1863_v55  ;;  %3881 = vmatpush3.bf16.msra.mxu0 %v4172_v45  ;;  %v1873_v59 = vrot.slane %v1872_v46, 4  ;;  %v1877_v57 = vrot.slane %v1875_v20, 5  ;;  %v2689_v50 = vsel %vm4863_vm12, %v3666_v56, %v2688_v10  ;;  %v4940_v56 = vld [vmem:[#allocation2 + $0x3c] sm:$0x1]  ;;  %v2660_v34 = vld [vmem:[#allocation2 + $0x38] sm:$0xe] }
 0x111   : > { %v3596_v9 = vcombine.low %v1850_v36, %v1864_v35  ;;  %v1886_v51 = vor.u32 %v1885_v2, %v1882_v0  ;;  %3890 = vmatprep.subr.bf16.mxu0 %v4175_v12  ;;  %v2693_v22 = vsel %vm4863_vm12, %v3667_v23, %v2692_v30  ;;  %v1891_v31 = vrot.slane %v1889_v28, 5  ;;  %v4197_v46 = vld [vmem:[#allocation2] sm:$0xf]  ;;  %v2969_v35 = vld [vmem:[#allocation2 + $0x48] sm:$0xf] }
 0x112   : > { %v1878_v18 = vsel %vm4317_vm2, %v1873_v59, %v1877_v57  ;;  %v2697_v20 = vsel %vm4863_vm12, %v3668_v1, %v2696_v27  ;;  %v2701_v10 = vsel %vm4863_vm12, %v3669_v24, %v2700_v11  ;;  %v3671_v36 = vrot.slane %v2661_v8, 9  ;;  %v4179_v1 = vld [vmem:[%s5206_s6 + $0x68] sm:$0xff]   ;;  %v2109_v27 = vld [vmem:[#allocation2] sm:$0xe]  ;;  %v2957_v11 = vld [vmem:[#allocation2 + $0x18] sm:$0xf] }
 0x113   : > { %3826 = vmatprep.mubr.msk.bf16.mxu1 %vm1922_vm9, %v3596_v9  ;;  %v1887_v45 = vrot.slane %v1886_v51, 4  ;;  %v2708_v30 = vrot.slane %v4929_v29, 5  ;;  %v3677_v23 = vcombine.low %v2689_v50, %v2693_v22  ;;  %v3678_v55 = vcombine.low %v2697_v20, %v2701_v10  ;;  %v2110_v24 = vld [vmem:[#allocation2 + $0x8] sm:$0xe]  ;;  %v4198_v57 = vld [vmem:[#allocation2 + $0x4] sm:$0x1] }
 0x114   : > { %v3604_v28 = vcombine.low %v4197_v46, %v4758_v5  ;;  %v3670_v0 = vrot.slane %v2660_v34, 9  ;;  %v2704_v2 = vrot.slane %v4940_v56, 5  ;;  %v3070_v9 = vshrl.u32 %v2969_v35, 16  ;;  %v4961_v22 = vld [vmem:[%s5206_s6 + $0x70] sm:$0xff]  }
 0x115   : > { %v1892_v62 = vsel %vm4317_vm2, %v1887_v45, %v1891_v31  ;;  %v2709_v5 = vsel %vm4863_vm12, %v3671_v36, %v2708_v30  ;;  %v3073_v59 = vshll.u32 %v2969_v35, 16  ;;  %v2138_v51 = vrot.slane %v4198_v57, 5  ;;  %v2955_v45 = vld [vmem:[#allocation2 + $0x10] sm:$0xf]  ;;  %v2959_v35 = vld [vmem:[#allocation2 + $0x20] sm:$0xf] }
 0x116   : > { %v3597_v14 = vcombine.low %v1878_v18, %v1892_v62  ;;  %v2705_v50 = vsel %vm4863_vm12, %v3670_v0, %v2704_v2  ;;  %v3614_v8 = vrot.slane %v2109_v27, 9  ;;  %v2142_v31 = vrot.slane %v4767_v61, 5  ;;  %v2111_v10 = vld [vmem:[#allocation2 + $0x10] sm:$0xe]  ;;  %v2114_v0 = vld [vmem:[#allocation2 + $0x28] sm:$0xe] }
 0x117   : > { %3883 = vmatmul.mubr.msk.bf16.vlgmr.msra.gmra.mrb[0].mxu0 %vm1922_vm9, %v3677_v23  ;;  %v3679_v18 = vcombine.low %v2705_v50, %v2709_v5  ;;  %v3615_v20 = vrot.slane %v2110_v24, 9  ;;  %v2986_v34 = vshrl.u32 %v2957_v11, 16  ;;  %v2989_v62 = vshll.u32 %v2957_v11, 16  ;;  %v4180_v30 = vld [vmem:[#allocation2 + $0x10] ss:$8 sps:$4 sm:$0xff]  }
 0x118   : > { %3827 = vmatmul.mubr.msk.bf16.gmra.mrb[4].mxu1 %vm1922_vm9, %v3597_v14  ;;  %3886 = vmatprep.mubr.msk.bf16.mxu0 %vm1922_vm9, %v3678_v55  ;;  %v3605_v36 = vcombine.low %v4808_v48, %v4815_v4  ;;  %v2112_v23 = vld [vmem:[#allocation2 + $0x18] sm:$0xe]  ;;  %v4969_v14 = vrot.slane %v3070_v9, 4  ;;  %v4971_v55 = vrot.slane %v3073_v59, 5  ;;  %v3606_v46 = vcombine.low %v4846_v53, %v4852_v63  ;;  %v2961_v27 = vld [vmem:[#allocation2 + $0x28] sm:$0xf] }
 0x119   : > { %3834 = vmatprep.mubr.msk.bf16.mxu1 %vm1922_vm9, %v3604_v28  ;;  %3891 = vmatpush3.bf16.msra.mxu0 %v4175_v12  ;;  %v4181_v12 = vld [vmem:[%s5206_s6 + $0x28] sm:$0xff]   ;;  %v4977_v61 = vsel %vm4863_vm12, %v3614_v8, %v2138_v51  ;;  %v4980_v28 = vld [vmem:[#allocation2 + $0x20] sm:$0xe]  ;;  %v2972_v48 = vshrl.u32 %v2955_v45, 16  ;;  %v2975_v4 = vshll.u32 %v2955_v45, 16  ;;  %v2146_v2 = vrot.slane %v4819_v38, 5 }
 0x11a   : > { %3892 = vmatprep.subr.bf16.mxu0 %v4179_v1  ;;  %v3607_v53 = vcombine.low %v4881_v3, %v4892_v17  ;;  %v3616_v63 = vrot.slane %v2111_v10, 9  ;;  %v2143_v5 = vsel %vm4863_vm12, %v3615_v20, %v2142_v31  ;;  %v4995_v38 = vld [vmem:[%s5206_s6 + $0x30] sm:$0xff]   ;;  %v2988_v11 = vrot.slane %v2986_v34, 4  ;;  %v2965_v51 = vld [vmem:[#allocation2 + $0x38] sm:$0xf] }
 0x11b   : > { %v4997_v24 = vld [vmem:[#allocation2 + $0x14] sm:$0x1]  ;;  %v2991_v3 = vrot.slane %v2989_v62, 5  ;;  %v2963_v17 = vld [vmem:[#allocation2 + $0x30] sm:$0xf]  ;;  %v2154_v9 = vrot.slane %v4859_v33, 5  ;;  %v3626_v20 = vcombine.low %v4977_v61, %v2143_v5 }
 0x11c   : > { %v3619_v59 = vrot.slane %v2114_v0, 9  ;;  %v2158_v57 = vrot.slane %v4872_v19, 5  ;;  %v5003_v50 = vld [vmem:[#allocation2 + $0x1c] sm:$0x1]  ;;  %v2974_v8 = vrot.slane %v2972_v48, 4  ;;  %v3014_v45 = vshrl.u32 %v2961_v27, 16 }
 0x11d   : > { %3893 = vmatpush3.bf16.msra.mxu0 %v4179_v1  ;;  %v2150_v1 = vrot.slane %v4824_v54, 5  ;;  %v3617_v54 = vrot.slane %v2112_v23, 9  ;;  %v3017_v31 = vshll.u32 %v2961_v27, 16  ;;  %v5008_v10 = vsel %vm4863_vm12, %v3616_v63, %v2146_v2  ;;  %v4183_v23 = vld [vmem:[#allocation2 + $0x20] ss:$8 sps:$4 sm:$0xff]   ;;  %v4188_v61 = vld [vmem:[%s5206_s6 + $0x78] sm:$0xff]  }
 0x11e   : > { %3902 = vmatprep.subr.bf16.mxu0 %v4961_v22  ;;  %v3028_v34 = vshrl.u32 %v2963_v17, 16  ;;  %v3031_v62 = vshll.u32 %v2963_v17, 16  ;;  %v2992_v33 = vor.u32 %v2991_v3, %v2988_v11  ;;  %v3042_v19 = vshrl.u32 %v2965_v51, 16  ;;  %v5022_v63 = vld [vmem:[#allocation2 + $0x30] sm:$0xe] }
 0x11f   : > { %3887 = vmatmul.mubr.msk.bf16.gmra.mrb[4].mxu0 %vm1922_vm9, %v3679_v18  ;;  %v2977_v18 = vrot.slane %v2975_v4, 5  ;;  %v2995_v0 = vshll.u32 %v5003_v50, 16  ;;  %v3045_v48 = vshll.u32 %v2965_v51, 16  ;;  %v5020_v4 = vsel %vm4863_vm12, %v3619_v59, %v2158_v57  ;;  %v2967_v3 = vld [vmem:[#allocation2 + $0x40] sm:$0xf] }
 0x120   : > { %3835 = vmatmul.mubr.msk.bf16.vlgmr.msra.gmra.mrb[0].mxu1 %vm1922_vm9, %v3605_v36  ;;  %3894 = vmatprep.mubr.msk.bf16.mxu0 %vm1922_vm9, %v4180_v30  ;;  %v3000_v36 = vshrl.u32 %v2959_v35, 16  ;;  %v3003_v30 = vshll.u32 %v2959_v35, 16  ;;  %v3016_v35 = vrot.slane %v3014_v45, 4  ;;  %v3019_v27 = vrot.slane %v3017_v31, 5  ;;  %v2116_v57 = vld [vmem:[#allocation2 + $0x38] sm:$0xe] }
 0x121   : > { %3843 = vmatpush3.bf16.msra.mxu1 %v4878_v21  ;;  %3838 = vmatprep.mubr.msk.bf16.mxu1 %vm1922_vm9, %v3606_v46  ;;  %v3618_v21 = vrot.slane %v4980_v28, 9  ;;  %v2151_v46 = vsel %vm4863_vm12, %v3617_v54, %v2150_v1  ;;  %v2981_v28 = vshll.u32 %v4997_v24, 16  ;;  %v2978_v2 = vor.u32 %v2977_v18, %v2974_v8  ;;  %v5030_v51 = vld [vmem:[#allocation2 + $0x24] sm:$0x1] }
 0x122   : > { %3844 = vmatprep.subr.bf16.mxu1 %v4181_v12  ;;  %v3030_v1 = vrot.slane %v3028_v34, 4  ;;  %v3033_v5 = vrot.slane %v3031_v62, 5  ;;  %v3044_v54 = vrot.slane %v3042_v19, 4  ;;  %v3047_v11 = vrot.slane %v3045_v48, 5  ;;  %v5037_v62 = vld [vmem:[#allocation2 + $0x34] sm:$0x1] }
 0x123   : > { %v2155_v17 = vsel %vm4863_vm12, %v3618_v21, %v2154_v9  ;;  %v2993_v59 = vrot.slane %v2992_v33, 4  ;;  %v3002_v8 = vrot.slane %v3000_v36, 4  ;;  %v3627_v18 = vcombine.low %v5008_v10, %v2151_v46  ;;  %v5042_v33 = vld [vmem:[%s5206_s6 + $0x80] sm:$0xff]   ;;  %v5044_v36 = vld [vmem:[#allocation2 + $0x3c] sm:$0x1] }
 0x124   : > { %v3628_v45 = vcombine.low %v2155_v17, %v5020_v4  ;;  %v2983_v31 = vrot.slane %v2981_v28, 5  ;;  %v2997_v34 = vrot.slane %v2995_v0, 5  ;;  %v2979_v21 = vrot.slane %v2978_v2, 4  ;;  %v4189_v0 = vld [vmem:[%s5206_s6 + $0x38] sm:$0xff]   ;;  %v4187_v2 = vld [vmem:[#allocation2 + $0x40] ss:$8 sps:$4 sm:$0xff]  }
 0x125   : > { %3845 = vmatpush3.bf16.msra.mxu1 %v4181_v12  ;;  %v4185_v12 = vld [vmem:[#allocation2 + $0x30] ss:$8 sps:$4 sm:$0xff]   ;;  %v3020_v9 = vor.u32 %v3019_v27, %v3016_v35  ;;  %v3059_v10 = vshll.u32 %v2967_v3, 16  ;;  %v2162_v19 = vrot.slane %v4894_v41, 5  ;;  %v3048_v46 = vor.u32 %v3047_v11, %v3044_v54  ;;  %v5061_v54 = vld [vmem:[#allocation2 + $0x4c] sm:$0x1] }
 0x126   : > { %3854 = vmatprep.subr.bf16.mxu1 %v4995_v38  ;;  %v2998_v28 = vsel %vm4317_vm2, %v2993_v59, %v2997_v34  ;;  %v3621_v48 = vrot.slane %v2116_v57, 9  ;;  %v2166_v35 = vrot.slane %v4900_v26, 5  ;;  %v3037_v41 = vshll.u32 %v5037_v62, 16  ;;  %v2420_v57 = vld [vmem:[#allocation2 + $0x28] sm:$0xf] }
 0x127   : > { %3895 = vmatmul.mubr.msk.bf16.vlgmr.msra.gmra.mrb[0].mxu0 %vm1922_vm9, %v4183_v23  ;;  %v3034_v23 = vor.u32 %v3033_v5, %v3030_v1  ;;  %v3051_v27 = vshll.u32 %v5044_v36, 16  ;;  %v2984_v1 = vsel %vm4317_vm2, %v2979_v21, %v2983_v31  ;;  %v3021_v5 = vrot.slane %v3020_v9, 4  ;;  %v2422_v34 = vld [vmem:[#allocation2 + $0x30] sm:$0xf] }
 0x128   : > { %3839 = vmatmul.mubr.msk.bf16.gmra.mrb[4].mxu1 %vm1922_vm9, %v3607_v53  ;;  %3898 = vmatprep.mubr.msk.bf16.mxu0 %vm1922_vm9, %v4185_v12  ;;  %v3005_v53 = vrot.slane %v3003_v30, 5  ;;  %v3620_v30 = vrot.slane %v5022_v63, 9  ;;  %v3009_v63 = vshll.u32 %v5030_v51, 16  ;;  %v3704_v26 = vcombine.low %v2984_v1, %v2998_v28  ;;  %v4199_v1 = vld [vmem:[%s5206_s6 + $0x40] sm:$0xff]  }
 0x129   : > { %3846 = vmatprep.mubr.msk.bf16.mxu1 %vm1922_vm9, %v3626_v20  ;;  %3903 = vmatpush3.bf16.msra.mxu0 %v4961_v22  ;;  %v5035_v20 = vld [vmem:[#allocation2 + $0x2c] sm:$0x1]  ;;  %v3056_v22 = vshrl.u32 %v2967_v3, 16  ;;  %v3061_v3 = vrot.slane %v3059_v10, 5  ;;  %v3049_v17 = vrot.slane %v3048_v46, 4  ;;  %v3079_v59 = vshll.u32 %v5061_v54, 16 }
 0x12a   : > { %3904 = vmatprep.subr.bf16.mxu0 %v4188_v61  ;;  %v3006_v12 = vor.u32 %v3005_v53, %v3002_v8  ;;  %v3023_v4 = vshll.u32 %v5035_v20, 16  ;;  %v2163_v8 = vsel %vm4863_vm12, %v3620_v30, %v2162_v19  ;;  %v2167_v21 = vsel %vm4863_vm12, %v3621_v48, %v2166_v35  ;;  %v5075_v10 = vld [vmem:[#allocation2 + $0x44] sm:$0x1]  ;;  %v3198_v19 = vld [vmem:[#allocation2 + $0x18] sm:$0xe] }
 0x12b   : > { %v3058_v11 = vrot.slane %v3056_v22, 4  ;;  %v3011_v9 = vrot.slane %v3009_v63, 5  ;;  %v3039_v22 = vrot.slane %v3037_v41, 5  ;;  %v2488_v46 = vshll.u32 %v2420_v57, 16  ;;  %v3197_v63 = vld [vmem:[#allocation2 + $0x10] sm:$0xe] }
 0x12c   : > { %v3007_v53 = vrot.slane %v3006_v12, 4  ;;  %v3025_v31 = vrot.slane %v3023_v4, 5  ;;  %v2499_v28 = vshrl.u32 %v2422_v34, 16  ;;  %v2502_v48 = vshll.u32 %v2422_v34, 16 }
 0x12d   : > { %3905 = vmatpush3.bf16.msra.mxu0 %v4188_v61  ;;  %v3035_v61 = vrot.slane %v3034_v23, 4  ;;  %v3062_v30 = vor.u32 %v3061_v3, %v3058_v11  ;;  %v2485_v23 = vshrl.u32 %v2420_v57, 16  ;;  %v3065_v4 = vshll.u32 %v5075_v10, 16  ;;  %v4190_v3 = vld [vmem:[#allocation2 + $0x8] ss:$8 sps:$4 sm:$0xff]  }
 0x12e   : > { %3914 = vmatprep.subr.bf16.mxu0 %v5042_v33  ;;  %v3012_v12 = vsel %vm4317_vm2, %v3007_v53, %v3011_v9  ;;  %v3081_v35 = vrot.slane %v3079_v59, 5  ;;  %v3629_v41 = vcombine.low %v2163_v8, %v2167_v21  ;;  %v3227_v11 = vrot.slane %v5003_v50, 5  ;;  %v3200_v9 = vld [vmem:[#allocation2 + $0x28] sm:$0xe] }
 0x12f   : > { %3899 = vmatmul.mubr.msk.bf16.gmra.mrb[4].mxu0 %vm1922_vm9, %v4187_v2  ;;  %v2490_v59 = vrot.slane %v2488_v46, 5  ;;  %v3714_v57 = vrot.slane %v3197_v63, 9  ;;  %v3223_v8 = vrot.slane %v4997_v24, 5  ;;  %v2501_v53 = vrot.slane %v2499_v28, 4  ;;  %v3199_v46 = vld [vmem:[#allocation2 + $0x20] sm:$0xe] }
 0x130   : > { %3847 = vmatmul.mubr.msk.bf16.vlgmr.msra.gmra.mrb[0].mxu1 %vm1922_vm9, %v3627_v18  ;;  %v3076_v18 = vor.u32 %v4971_v55, %v4969_v14  ;;  %3906 = vmatprep.mubr.msk.bf16.mxu0 %vm1922_vm9, %v3704_v26  ;;  %v3040_v14 = vsel %vm4317_vm2, %v3035_v61, %v3039_v22  ;;  %v3063_v26 = vrot.slane %v3062_v30, 4  ;;  %v4194_v61 = vld [vmem:[%s5206_s6 + $0x88] sm:$0xff]   ;;  %v3067_v50 = vrot.slane %v3065_v4, 5  ;;  %v4192_v22 = vld [vmem:[#allocation2 + $0x18] ss:$8 sps:$4 sm:$0xff]  }
 0x131   : > { %3855 = vmatpush3.bf16.msra.mxu1 %v4995_v38  ;;  %3850 = vmatprep.mubr.msk.bf16.mxu1 %vm1922_vm9, %v3628_v45  ;;  %v3053_v38 = vrot.slane %v3051_v27, 5  ;;  %v3026_v45 = vsel %vm4317_vm2, %v3021_v5, %v3025_v31  ;;  %v3715_v5 = vrot.slane %v3198_v19, 9  ;;  %v2504_v31 = vrot.slane %v2502_v48, 5  ;;  %v3201_v30 = vld [vmem:[#allocation2 + $0x30] sm:$0xe] }
 0x132   : > { %3856 = vmatprep.subr.bf16.mxu1 %v4189_v0  ;;  %v3077_v2 = vrot.slane %v3076_v18, 4  ;;  %v3705_v27 = vcombine.low %v3012_v12, %v3026_v45  ;;  %v3068_v34 = vsel %vm4317_vm2, %v3063_v26, %v3067_v50  ;;  %v2426_v19 = vld [vmem:[#allocation2 + $0x40] sm:$0xf]  ;;  %v2508_v28 = vshll.u32 %v4907_v15, 16  ;;  %v2424_v4 = vld [vmem:[#allocation2 + $0x38] sm:$0xf] }
 0x133   : > { %v3054_v55 = vsel %vm4317_vm2, %v3049_v17, %v3053_v38  ;;  %v2487_v17 = vrot.slane %v2485_v23, 4  ;;  %v3228_v18 = vsel %vm4863_vm12, %v3715_v5, %v3227_v11  ;;  %v3224_v38 = vsel %vm4863_vm12, %v3714_v57, %v3223_v8 }
 0x134   : > { %v3082_v21 = vsel %vm4317_vm2, %v3077_v2, %v3081_v35  ;;  %v2505_v45 = vor.u32 %v2504_v31, %v2501_v53  ;;  %v2494_v23 = vshll.u32 %v4905_v60, 16  ;;  %v3717_v48 = vrot.slane %v3200_v9, 9  ;;  %v4193_v2 = vld [vmem:[#allocation2 + $0x28] ss:$8 sps:$4 sm:$0xff]  }
 0x135   : > { %3857 = vmatpush3.bf16.msra.mxu1 %v4189_v0  ;;  %v3706_v0 = vcombine.low %v3040_v14, %v3054_v55  ;;  %v2491_v24 = vor.u32 %v2490_v59, %v2487_v17  ;;  %v3202_v14 = vld [vmem:[#allocation2 + $0x38] sm:$0xe]  ;;  %v3707_v55 = vcombine.low %v3068_v34, %v3082_v21  ;;  %v3235_v12 = vrot.slane %v5035_v20, 5  ;;  %v3204_v59 = vld [vmem:[#allocation2 + $0x48] sm:$0xe] }
 0x136   : > { %3926 = vmatprep.subr.bf16.mxu1 %v4199_v1  ;;  %v3718_v63 = vrot.slane %v3201_v30, 9  ;;  %v2506_v60 = vrot.slane %v2505_v45, 4  ;;  %v3239_v5 = vrot.slane %v5037_v62, 5  ;;  %v3719_v11 = vrot.slane %v3202_v14, 9 }
 0x137   : > { %3907 = vmatmul.mubr.msk.bf16.vlgmr.msra.gmra.mrb[0].mxu0 %vm1922_vm9, %v3705_v27  ;;  %v2492_v35 = vrot.slane %v2491_v24, 4  ;;  %v2530_v27 = vshll.u32 %v2426_v19, 16  ;;  %v3716_v15 = vrot.slane %v3199_v46, 9  ;;  %v3231_v20 = vrot.slane %v5030_v51, 5  ;;  %v4195_v24 = vld [vmem:[#allocation2 + $0x38] ss:$8 sps:$4 sm:$0xff]  }
 0x138   : > { %3851 = vmatmul.mubr.msk.bf16.gmra.mrb[4].mxu1 %vm1922_vm9, %v3629_v41  ;;  %3910 = vmatprep.mubr.msk.bf16.mxu0 %vm1922_vm9, %v3706_v0  ;;  %v2527_v41 = vshrl.u32 %v2426_v19, 16  ;;  %v2513_v0 = vshrl.u32 %v2424_v4, 16  ;;  %v2516_v26 = vshll.u32 %v2424_v4, 16  ;;  %v2496_v17 = vrot.slane %v2494_v23, 5 }
 0x139   : > { %3858 = vmatprep.mubr.msk.bf16.mxu1 %vm1922_vm9, %v4190_v3  ;;  %3915 = vmatpush3.bf16.msra.mxu0 %v5042_v33  ;;  %v3726_v33 = vcombine.low %v3224_v38, %v3228_v18  ;;  %v3243_v3 = vrot.slane %v5044_v36, 5  ;;  %v2510_v62 = vrot.slane %v2508_v28, 5  ;;  %v3236_v36 = vsel %vm4863_vm12, %v3717_v48, %v3235_v12 }
 0x13a   : > { %3916 = vmatprep.subr.bf16.mxu0 %v4194_v61  ;;  %v2529_v57 = vrot.slane %v2527_v41, 4  ;;  %v2532_v8 = vrot.slane %v2530_v27, 5  ;;  %v2497_v51 = vsel %vm4317_vm2, %v2492_v35, %v2496_v17  ;;  %v3240_v31 = vsel %vm4863_vm12, %v3718_v63, %v3239_v5 }
 0x13b   : > { %v2511_v53 = vsel %vm4317_vm2, %v2506_v60, %v2510_v62  ;;  %v3244_v50 = vsel %vm4863_vm12, %v3719_v11, %v3243_v3  ;;  %v3232_v18 = vsel %vm4863_vm12, %v3716_v15, %v3231_v20  ;;  %v2515_v34 = vrot.slane %v2513_v0, 4  ;;  %v3736_v0 = vld [vmem:[%s5207_s7] ss:$0 sm:$0xff] }
 0x13c   : > { %v2518_v21 = vrot.slane %v2516_v26, 5  ;;  %v3727_v9 = vcombine.low %v3232_v18, %v3236_v36  ;;  %v3721_v38 = vrot.slane %v3204_v59, 9  ;;  %v3251_v45 = vrot.slane %v5061_v54, 5 }
 0x13d   : > { %3917 = vmatpush3.bf16.msra.mxu0 %v4194_v61  ;;  %v4200_v61 = vld [vmem:[%s5206_s6 + $0x48] sm:$0xff]   ;;  %v3656_v30 = vcombine.low %v2497_v51, %v2511_v53  ;;  %v3728_v19 = vcombine.low %v3240_v31, %v3244_v50  ;;  %v2533_v23 = vor.u32 %v2532_v8, %v2529_v57  ;;  %v2536_v46 = vshll.u32 %v4929_v29, 16 }
 0x13e   : > { %v2519_v14 = vor.u32 %v2518_v21, %v2515_v34  ;;  %v1544_v63 = vunpack.c.l.bf16 %v1543_v25 }
 0x13f   : > { %3911 = vmatmul.mubr.msk.bf16.gmra.mrb[4].mxu0 %vm1922_vm9, %v3707_v55  ;;  %v2522_v55 = vshll.u32 %v4940_v56, 16  ;;  %v2534_v28 = vrot.slane %v2533_v23, 4  ;;  %v2538_v48 = vrot.slane %v2536_v46, 5 }
 0x140   : > { %3859 = vmatmul.mubr.msk.bf16.vlgmr.msra.gmra.mrb[0].mxu1 %vm1922_vm9, %v4192_v22  ;;  %3918 = vmatprep.mubr.msk.bf16.mxu0 %vm1922_vm9, %v3726_v33  ;;  %v3247_v33 = vrot.slane %v5075_v10, 5  ;;  %v3252_v10 = vsel %vm4863_vm12, %v3721_v38, %v3251_v45  ;;  %v2520_v12 = vrot.slane %v2519_v14, 4  ;;  %v1548_v5 = vrot.slane %v1544_v63, %v4555_v49 }
 0x141   : > { %3928 = vmatpush3.bf16.msra.mxu1 %v4199_v1  ;;  %3862 = vmatprep.mubr.msk.bf16.mxu1 %vm1922_vm9, %v4193_v2  ;;  %v3203_v1 = vld [vmem:[#allocation2 + $0x40] sm:$0xe]  ;;  %v2524_v2 = vrot.slane %v2522_v55, 5  ;;  %v2539_v29 = vsel %vm4317_vm2, %v2534_v28, %v2538_v48 }
 0x142   : > { %3927 = vmatprep.subr.bf16.mxu1 %v4200_v61  ;;  %v3720_v22 = vrot.slane %v3203_v1, 9  ;;  %v1551_v3 = vmul.f32 %v4044_v7, %v1548_v5  ;;  %v1549_v15 = vmul.f32 %v4039_v6, %v1548_v5  ;;  %v1552_v49 = vmul.f32 %v4045_v13, %v1548_v5 }
 0x143   : > { %v2525_v35 = vsel %vm4317_vm2, %v2520_v12, %v2524_v2  ;;  %v1550_v7 = vmul.f32 %v4040_v39, %v1548_v5  ;;  %v1553_v14 = vmul.f32 %v4119_v40, %v1548_v5  ;;  %v1554_v37 = vmul.f32 %v4125_v16, %v1548_v5 }
 0x144   : > { %v3248_v54 = vsel %vm4863_vm12, %v3720_v22, %v3247_v33  ;;  %v3657_v56 = vcombine.low %v2525_v35, %v2539_v29  ;;  %v1566_v36 = vadd.f32 %v3581_v58, %v1551_v3  ;;  %v1564_v57 = vadd.f32 %v3581_v58, %v1549_v15 }
 0x145   : > { %3929 = vmatpush3.bf16.msra.mxu1 %v4200_v61  ;;  %v3729_v4 = vcombine.low %v3248_v54, %v3252_v10  ;;  %v1567_v53 = vadd.f32 %v3581_v58, %v1552_v49  ;;  %v1565_v43 = vadd.f32 %v3581_v58, %v1550_v7  ;;  %v1555_v33 = vmul.f32 %v4129_v52, %v1548_v5 }
 0x146   : > { %v1556_v10 = vmul.f32 %v1548_v5, %v4756_v32  ;;  %v1568_v29 = vadd.f32 %v3581_v58, %v1553_v14 }
 0x147   : > { %3919 = vmatmul.mubr.msk.bf16.vlgmr.msra.gmra.mrb[0].mxu0 %vm1922_vm9, %v3727_v9 }
 0x148   : > { %3863 = vmatmul.mubr.msk.bf16.gmra.mrb[4].mxu1 %vm1922_vm9, %v4195_v24  ;;  %3922 = vmatprep.mubr.msk.bf16.mxu0 %vm1922_vm9, %v3728_v19  ;;  %v1571_v32 = vadd.f32 %v3581_v58, %v1556_v10 }
 0x149   : > { %3874 = vmatprep.mubr.msk.bf16.mxu1 %vm1922_vm9, %v3656_v30 }
 0x14f   : > { %3923 = vmatmul.mubr.msk.bf16.gmra.mrb[4].mxu0 %vm1922_vm9, %v3729_v4  ;;  %v1570_v4 = vadd.f32 %v3581_v58, %v1555_v33 }
 0x154   : > { %3875 = vmatmul.mubr.msk.bf16.vlgmr.msra.gmra.mrb[4].mxu1 %vm1922_vm9, %v3657_v56 }
 0x213   : > { %v3860_v41 = vpop.f32.mrb[0].mxu1 }
 0x214   : > { %v2373_v27 = vpop.f32.mrb[1].mxu1 }
 0x215   : > { %v3861_v60 = vpop.f32.mrb[2].mxu1 }
 0x216   : > { %v2376_v11 = vpop.f32.mrb[3].mxu1 }
 0x21a   : > { %v3920_v20 = vpop.f32.mrb[0].mxu0 }
 0x21b   : > { %v3930_v26 = vadd.f32 %v3920_v20, %v3860_v41  ;;  %v3328_v61 = vpop.f32.mrb[1].mxu0  ;;  %v1569_v41 = vadd.f32 %v3581_v58, %v1554_v37 }
 0x21c   : > { %v3931_v17 = vadd.f32 %v3328_v61, %v2373_v27  ;;  %v3921_v62 = vpop.f32.mrb[2].mxu0 }
 0x21d   : > { %v3376_v1 = vadd.f32 %v3930_v26, %v3736_v0  ;;  %v3932_v59 = vadd.f32 %v3921_v62, %v3861_v60  ;;  %v3331_v6 = vpop.f32.mrb[3].mxu0 }
 0x21e   : > { %v3374_v8 = vadd.f32 %v3931_v17, %v3736_v0  ;;  %v3933_v51 = vadd.f32 %v3331_v6, %v2376_v11 }
 0x21f   : > { %v3384_v31 = vadd.f32 %v3376_v1, %v1566_v36  ;;  %v3377_v50 = vadd.f32 %v3932_v59, %v3736_v0 }
 0x220   : > { %v3382_v13 = vadd.f32 %v3374_v8, %v1564_v57  ;;  %v3375_v18 = vadd.f32 %v3933_v51, %v3736_v0 }
 0x221   : > { %v3392_v34 = vmax.f32 %v3384_v31, 0.0  ;;  %v3385_v21 = vadd.f32 %v3377_v50, %v1567_v53 }
 0x222   : > { %v3390_v44 = vmax.f32 %v3382_v13, 0.0  ;;  %v3383_v39 = vadd.f32 %v3375_v18, %v1565_v43  ;;  %v3924_v24 = vpop.f32.mrb[4].mxu0 }
 0x223   : > { %v3758_v9 = vpack.c.bf16 %v3392_v34, %v3392_v34  ;;  %v3393_v22 = vmax.f32 %v3385_v21, 0.0  ;;  %v3344_v38 = vpop.f32.mrb[5].mxu0 }
 0x224   : > { %v3756_v45 = vpack.c.bf16 %v3390_v44, %v3390_v44  ;;  %v3391_v30 = vmax.f32 %v3383_v39, 0.0  ;;  %v3925_v19 = vpop.f32.mrb[6].mxu0 }
 0x225   : > { %3432 = vst.msk [vmem:[%s5172_s27 + $0x8] sm:$0xf] %vm1572_vm3, %v3758_v9  ;;  %v3759_v23 = vpack.c.bf16 %v3393_v22, %v3393_v22  ;;  %v3347_v46 = vpop.f32.mrb[7].mxu0 }
 0x226   : > { %3430 = vst.msk [vmem:[%s5172_s27] sm:$0xf] %vm1572_vm3, %v3756_v45  ;;  %v3757_v55 = vpack.c.bf16 %v3391_v30, %v3391_v30 }
 0x227   : > { %v3876_v54 = vpop.f32.mrb[4].mxu1  ;;  %3433 = vst.msk [vmem:[%s5172_s27 + $0xc] sm:$0xf] %vm1572_vm3, %v3759_v23 }
 0x228   : > { %v3934_v28 = vadd.f32 %v3924_v24, %v3876_v54  ;;  %v2631_v48 = vpop.f32.mrb[5].mxu1  ;;  %3431 = vst.msk [vmem:[%s5172_s27 + $0x4] sm:$0xf] %vm1572_vm3, %v3757_v55 }
 0x229   : > { %v3935_v52 = vadd.f32 %v3344_v38, %v2631_v48  ;;  %v3877_v12 = vpop.f32.mrb[6].mxu1 }
 0x22a   : > { %v3380_v42 = vadd.f32 %v3934_v28, %v3736_v0  ;;  %v3936_v40 = vadd.f32 %v3925_v19, %v3877_v12  ;;  %v2634_v2 = vpop.f32.mrb[7].mxu1 }
 0x22b   : > { %v3378_v35 = vadd.f32 %v3935_v52, %v3736_v0  ;;  %v3937_v56 = vadd.f32 %v3347_v46, %v2634_v2 }
 0x22c   : > { %v3388_v25 = vadd.f32 %v3380_v42, %v1570_v4  ;;  %v3381_v63 = vadd.f32 %v3936_v40, %v3736_v0 }
 0x22d   : > { %v3386_v47 = vadd.f32 %v3378_v35, %v1568_v29  ;;  %v3379_v16 = vadd.f32 %v3937_v56, %v3736_v0 }
 0x22e   : > { %v3396_v27 = vmax.f32 %v3388_v25, 0.0  ;;  %v3389_v60 = vadd.f32 %v3381_v63, %v1571_v32 }
 0x22f   : > { %v3394_v5 = vmax.f32 %v3386_v47, 0.0  ;;  %v3387_v11 = vadd.f32 %v3379_v16, %v1569_v41 }
 0x230   : > { %v3762_v3 = vpack.c.bf16 %v3396_v27, %v3396_v27  ;;  %v3397_v15 = vmax.f32 %v3389_v60, 0.0 }
 0x231   : > { %v3760_v20 = vpack.c.bf16 %v3394_v5, %v3394_v5  ;;  %v3395_v49 = vmax.f32 %v3387_v11, 0.0 }
 0x232   : > { %3436 = vst.msk [vmem:[%s5172_s27 + $0x18] sm:$0xf] %vm1572_vm3, %v3762_v3  ;;  %v3763_v26 = vpack.c.bf16 %v3397_v15, %v3397_v15 }
 0x233   : > { %3434 = vst.msk [vmem:[%s5172_s27 + $0x10] sm:$0xf] %vm1572_vm3, %v3760_v20  ;;  %v3761_v61 = vpack.c.bf16 %v3395_v49, %v3395_v49 }
 0x234   : > { %3437 = vst.msk [vmem:[%s5172_s27 + $0x1c] sm:$0xf] %vm1572_vm3, %v3763_v26 }
 0x235   : > { %3435 = vst.msk [vmem:[%s5172_s27 + $0x14] sm:$0xf] %vm1572_vm3, %v3761_v61 }
 0x236 PF: > { %s20_s13 = sadd.s32 1, %s4207_s13  }
 0x237   : > { %p17_p4 = scmp.ge.s32.totalorder %s20_s13, 4  }
 0x239   :  { %19 = sbr.rel (!%p17_p4) target bundleno = 1 (0x1), region = 119 }

// kernel: _lambda_.6
= control target key start
LH: loop header
LB: loop body
LE: loop exit
PB: predicated region body
PF: predicated region fallthrough
CT: control target
= control target key end

     0   :  { %s4898_s18 = smov 0   ;;  %s5812_s0 = inlined_call_operand.vmem [shape: bf16[2,10,10,32], index: 0, kind: input, shape index: {}]   ;;  %s5813_s1 = inlined_call_operand.vmem [shape: bf16[3,3,32,32], index: 1, kind: input, shape index: {}]   ;;  %s5814_s2 = inlined_call_operand.vmem [shape: f32[1,32], index: 2, kind: input, shape index: {}]   ;;  %s5815_s3 = inlined_call_operand.vmem [shape: bf16[3,3,32,32], index: 3, kind: input, shape index: {}]   ;;  %s5816_s4 = inlined_call_operand.vmem [shape: f32[1,32], index: 4, kind: input, shape index: {}]   ;;  %s5817_s5 = inlined_call_operand.vmem [shape: bf16[2,64,32], index: 5, kind: output, shape index: {}]  }
   0x1 LB: > { %s3920_s19 = sadd.s32 4294967295, %s4865_s18   ;;  %p3924_p0 = scmp.ge.s32.totalorder %s4865_s18, 1  ;;  %s4865_s18 = sphi %s4898_s18, %s15_s18  }
   0x2   : > { %p187_p1 = scmp.lt.s32.totalorder %s4865_s18, 3 }
   0x4   : > { %p188_p2 = pnand %p3924_p0, %p187_p1 }
   0x5   : > { %v4799_v0 = vld [vmem:[%s5813_s1 + $0x10] sm:$0xff] (!%p188_p2)   ;;  %p215_p3 = scmp.lt.s32.totalorder (!%p188_p2), %s3920_s19, 1  ;;  %v4800_v1 = vld [vmem:[%s5813_s1 + $0x18] sm:$0xff] (!%p188_p2)   ;;  %v4918_v2 = vld [vmem:[%s5813_s1] sm:$0xff] (!%p188_p2)   ;;  %vm246_vm0 = vsmask.f32 (!%p188_p2), 3328 }
   0x6   : > { %191 = sbr.rel (%p188_p2) target bundleno = 777 (0x309), region = 40  ;;  %4445 = vmatprep.subr.bf16.mxu0 (!%p188_p2), %v4799_v0  ;;  %vm247_vm1 = vsmask.f32 (!%p188_p2), 7440  ;;  %vm390_vm3 = vcmask (!%p188_p2), 261120   ;;  %vm601_vm4 = vcmask (!%p188_p2), 1042432   ;;  %vm602_vm5 = vcmask (!%p188_p2), 1046532  }
   0x7   : > { %4446 = vmatpush3.bf16.msra.mxu0 (!%p188_p2), %v4799_v0  ;;  %vm4961_vm2 = vmor (!%p188_p2), %vm246_vm0, %vm247_vm1  ;;  %vm1859_vm7 = vcmask (!%p188_p2), 257024   ;;  %vm1861_vm8 = vcmask (!%p188_p2), 253952   ;;  %vm1995_vm9 = vsmask.f32 (!%p188_p2), 7938  ;;  %vm2001_vm10 = vsmask.f32 (!%p188_p2), 256 }
   0x8   : > { %4447 = vmatprep.subr.bf16.mxu0 (!%p188_p2), %v4800_v1  ;;  %vm5045_vm6 = vmor (!%p188_p2), %vm601_vm4, %vm602_vm5 }
   0x9   : > { %vm5384_vm11 = vmand (!%p188_p2), %vm1859_vm7, %vm1995_vm9 }
   0xa   : > { %vm5391_vm12 = vmand (!%p188_p2), %vm1861_vm8, %vm2001_vm10 }
   0xb   : > { %4448 = vmatpush3.bf16.msra.mxu0 (!%p188_p2), %v4800_v1 }
   0xc   : > { %4457 = vmatprep.subr.bf16.mxu0 (!%p188_p2), %v4918_v2 }
   0xd   : > { %s5827_s19 = smov (!%p215_p3, %s3920_s19), 1 }
   0xe   : > { %s4789_s24 = smul.u32 80, %s5827_s19 }
  0x10   : > { %s4923_s29 = scalar_lea.vmem %s5812_s0, %s4789_s24 }
  0x11   : > { %v4926_v3 = vld [vmem:[%s4923_s29] sm:$0xf]  ;;  %v4929_v4 = vld [vmem:[%s4923_s29 + $0x8] sm:$0xf]  ;;  %v4932_v5 = vld [vmem:[%s4923_s29 + $0x4] sm:$0x1] }
  0x12   : > { %v4935_v6 = vld [vmem:[%s4923_s29 + $0xc] sm:$0x1]  ;;  %v250_v7 = vshrl.u32 %v4926_v3, 16  ;;  %v253_v8 = vshll.u32 %v4926_v3, 16  ;;  %v259_v9 = vshll.u32 %v4932_v5, 16  ;;  %v264_v10 = vshrl.u32 %v4929_v4, 16 }
  0x13   : > { %v267_v11 = vshll.u32 %v4929_v4, 16  ;;  %v273_v12 = vshll.u32 %v4935_v6, 16  ;;  %v4945_v13 = vld [vmem:[%s4923_s29 + $0x10] sm:$0xf]  ;;  %v4948_v18 = vld [vmem:[%s4923_s29 + $0x18] sm:$0xf] }
  0x14   : > { %v252_v14 = vrot.slane %v250_v7, 4  ;;  %v255_v15 = vrot.slane %v253_v8, 5  ;;  %v261_v16 = vrot.slane %v259_v9, 5  ;;  %v266_v17 = vrot.slane %v264_v10, 4  ;;  %v4951_v21 = vld [vmem:[%s4923_s29 + $0x14] sm:$0x1] }
  0x15   : > { %v269_v19 = vrot.slane %v267_v11, 5  ;;  %v275_v20 = vrot.slane %v273_v12, 5  ;;  %v4954_v22 = vld [vmem:[%s4923_s29 + $0x1c] sm:$0x1]  ;;  %v278_v24 = vshrl.u32 %v4945_v13, 16  ;;  %v281_v25 = vshll.u32 %v4945_v13, 16 }
  0x16   : > { %v256_v23 = vor.u32 %v255_v15, %v252_v14  ;;  %v287_v26 = vshll.u32 %v4951_v21, 16  ;;  %v292_v29 = vshrl.u32 %v4948_v18, 16  ;;  %v295_v30 = vshll.u32 %v4948_v18, 16  ;;  %v4969_v32 = vld [vmem:[%s4923_s29 + $0x20] sm:$0xf]  ;;  %v4802_v14 = vld [vmem:[%s5813_s1 + $0x8] sm:$0xff]  }
  0x17   : > { %v270_v28 = vor.u32 %v269_v19, %v266_v17  ;;  %v301_v31 = vshll.u32 %v4954_v22, 16  ;;  %v280_v34 = vrot.slane %v278_v24, 4  ;;  %v283_v35 = vrot.slane %v281_v25, 5  ;;  %v4972_v36 = vld [vmem:[%s4923_s29 + $0x28] sm:$0xf] }
  0x18   : > { %v257_v33 = vrot.slane %v256_v23, 4  ;;  %v294_v38 = vrot.slane %v292_v29, 4  ;;  %v297_v39 = vrot.slane %v295_v30, 5  ;;  %v4975_v40 = vld [vmem:[%s4923_s29 + $0x24] sm:$0x1]  ;;  %v289_v43 = vrot.slane %v287_v26, 5 }
  0x19   : > { %v271_v37 = vrot.slane %v270_v28, 4  ;;  %v284_v42 = vor.u32 %v283_v35, %v280_v34  ;;  %v303_v44 = vrot.slane %v301_v31, 5  ;;  %v4982_v47 = vld [vmem:[%s4923_s29 + $0x2c] sm:$0x1]  ;;  %v306_v48 = vshrl.u32 %v4969_v32, 16  ;;  %v4804_v35 = vld [vmem:[%s5813_s1 + $0x20] sm:$0xff]  }
  0x1a   : > { %v262_v41 = vsel %vm4961_vm2, %v257_v33, %v261_v16  ;;  %v298_v46 = vor.u32 %v297_v39, %v294_v38  ;;  %v309_v49 = vshll.u32 %v4969_v32, 16  ;;  %v4987_v50 = vld [vmem:[%s4923_s29 + $0x30] sm:$0xf]  ;;  %v315_v53 = vshll.u32 %v4975_v40, 16  ;;  %v4992_v55 = vld [vmem:[%s4923_s29 + $0x38] sm:$0xf] }
  0x1b   : > { %v276_v45 = vsel %vm4961_vm2, %v271_v37, %v275_v20  ;;  %v285_v52 = vrot.slane %v284_v42, 4  ;;  %v320_v54 = vshrl.u32 %v4972_v36, 16  ;;  %v308_v57 = vrot.slane %v306_v48, 4  ;;  %v4996_v60 = vld [vmem:[%s4923_s29 + $0x34] sm:$0x1] }
  0x1c   : > { %v3932_v51 = vcombine.low %v262_v41, %v276_v45  ;;  %v299_v56 = vrot.slane %v298_v46, 4  ;;  %v311_v58 = vrot.slane %v309_v49, 5  ;;  %v323_v59 = vshll.u32 %v4972_v36, 16  ;;  %v5005_v9 = vld [vmem:[%s4923_s29 + $0x3c] sm:$0x1] }
  0x1d   : > { %v290_v61 = vsel %vm4961_vm2, %v285_v52, %v289_v43  ;;  %v317_v62 = vrot.slane %v315_v53, 5  ;;  %v322_v63 = vrot.slane %v320_v54, 4  ;;  %v329_v0 = vshll.u32 %v4982_v47, 16  ;;  %v577_v48 = vld [vmem:[%s4923_s29] sm:$0xe]  ;;  %v4807_v53 = vld [vmem:[%s5813_s1 + $0x28] sm:$0xff]  }
  0x1e   : > { %4449 = vmatprep.mubr.msk.bf16.mxu0 %vm390_vm3, %v3932_v51  ;;  %v304_v1 = vsel %vm4961_vm2, %v299_v56, %v303_v44  ;;  %v312_v7 = vor.u32 %v311_v58, %v308_v57  ;;  %v325_v8 = vrot.slane %v323_v59, 5  ;;  %v334_v10 = vshrl.u32 %v4987_v50, 16  ;;  %v578_v49 = vld [vmem:[%s4923_s29 + $0x8] sm:$0xe]  ;;  %v581_v57 = vld [vmem:[%s4923_s29 + $0x20] sm:$0xe] }
  0x1f   : > { %v3933_v11 = vcombine.low %v290_v61, %v304_v1  ;;  %v331_v12 = vrot.slane %v329_v0, 5  ;;  %v337_v15 = vshll.u32 %v4987_v50, 16  ;;  %v343_v16 = vshll.u32 %v4996_v60, 16  ;;  %v582_v58 = vld [vmem:[%s4923_s29 + $0x28] sm:$0xe] }
  0x20   : > { %v313_v17 = vrot.slane %v312_v7, 4  ;;  %v326_v19 = vor.u32 %v325_v8, %v322_v63  ;;  %v336_v20 = vrot.slane %v334_v10, 4  ;;  %v348_v23 = vshrl.u32 %v4992_v55, 16 }
  0x21   : > { %4450 = vmatmul.mubr.msk.bf16.vlgmr.msra.gmra.mrb[0].mxu0 %vm390_vm3, %v3933_v11  ;;  %v339_v24 = vrot.slane %v337_v15, 5  ;;  %v351_v25 = vshll.u32 %v4992_v55, 16  ;;  %v357_v26 = vshll.u32 %v5005_v9, 16  ;;  %v345_v33 = vrot.slane %v343_v16, 5 }
  0x22   : > { %4458 = vmatpush3.bf16.msra.mxu0 %v4918_v2  ;;  %v318_v28 = vsel %vm4961_vm2, %v313_v17, %v317_v62  ;;  %v327_v29 = vrot.slane %v326_v19, 4  ;;  %v350_v30 = vrot.slane %v348_v23, 4  ;;  %v3942_v45 = vcombine.low %v4926_v3, %v4929_v4  ;;  %v3998_v17 = vld [vmem:[%s4923_s29 + $0x10] sm:$0xf] }
  0x23   : > { %4459 = vmatprep.subr.bf16.mxu0 %v4802_v14  ;;  %v340_v31 = vor.u32 %v339_v24, %v336_v20  ;;  %v353_v34 = vrot.slane %v351_v25, 5  ;;  %v359_v41 = vrot.slane %v357_v26, 5  ;;  %v3943_v51 = vcombine.low %v4945_v13, %v4948_v18  ;;  %v4810_v24 = vld [vmem:[%s5813_s1 + $0x38] sm:$0xff]  }
  0x24   : > { %v332_v37 = vsel %vm4961_vm2, %v327_v29, %v331_v12  ;;  %v3944_v52 = vcombine.low %v4969_v32, %v4972_v36  ;;  %v606_v3 = vrot.slane %v4932_v5, 5  ;;  %v610_v4 = vrot.slane %v4935_v6, 5  ;;  %v4809_v5 = vld [vmem:[%s5813_s1 + $0x30] sm:$0xff]   ;;  %v580_v36 = vld [vmem:[%s4923_s29 + $0x18] sm:$0xe] }
  0x25   : > { %v3934_v38 = vcombine.low %v318_v28, %v332_v37  ;;  %v341_v2 = vrot.slane %v340_v31, 4  ;;  %v354_v39 = vor.u32 %v353_v34, %v350_v30  ;;  %v3952_v54 = vrot.slane %v577_v48, 9  ;;  %v579_v6 = vld [vmem:[%s4923_s29 + $0x10] sm:$0xe]  ;;  %v584_v12 = vld [vmem:[%s4923_s29 + $0x38] sm:$0xe] }
  0x26   : > { %4460 = vmatpush3.bf16.msra.mxu0 %v4802_v14  ;;  %v3953_v56 = vrot.slane %v578_v49, 9  ;;  %v614_v59 = vrot.slane %v4951_v21, 5  ;;  %v3945_v61 = vcombine.low %v4987_v50, %v4992_v55  ;;  %v618_v62 = vrot.slane %v4954_v22, 5  ;;  %v583_v55 = vld [vmem:[%s4923_s29 + $0x30] sm:$0xe]  ;;  %v4812_v30 = vld [vmem:[%s5813_s1 + $0x40] sm:$0xff]  }
  0x27   : > { %4453 = vmatprep.mubr.msk.bf16.mxu0 %vm390_vm3, %v3934_v38  ;;  %v346_v42 = vsel %vm4961_vm2, %v341_v2, %v345_v33  ;;  %v355_v43 = vrot.slane %v354_v39, 4  ;;  %4469 = vmatprep.subr.bf16.mxu0 %v4804_v35  ;;  %v607_v18 = vsel %vm5045_vm6, %v3952_v54, %v606_v3  ;;  %v3954_v0 = vrot.slane %v579_v6, 9  ;;  %v3996_v14 = vld [vmem:[%s4923_s29 + $0x8] sm:$0xf]  ;;  %v5097_v31 = vld [vmem:[%s4923_s29 + $0xc] sm:$0x1] }
  0x28   : > { %v611_v32 = vsel %vm5045_vm6, %v3953_v56, %v610_v4  ;;  %v3955_v1 = vrot.slane %v580_v36, 9  ;;  %v3956_v7 = vrot.slane %v581_v57, 9  ;;  %v622_v8 = vrot.slane %v4975_v40, 5  ;;  %v5100_v33 = vld [vmem:[%s4923_s29 + $0x14] sm:$0x1] }
  0x29   : > { %v360_v44 = vsel %vm4961_vm2, %v355_v43, %v359_v41  ;;  %v3964_v63 = vcombine.low %v607_v18, %v611_v32  ;;  %v3957_v10 = vrot.slane %v582_v58, 9  ;;  %v626_v21 = vrot.slane %v4982_v47, 5  ;;  %v4000_v34 = vld [vmem:[%s4923_s29 + $0x18] sm:$0xf]  ;;  %v4004_v48 = vld [vmem:[%s4923_s29 + $0x28] sm:$0xf] }
  0x2a   : > { %v3935_v46 = vcombine.low %v346_v42, %v360_v44  ;;  %v615_v22 = vsel %vm5045_vm6, %v3954_v0, %v614_v59  ;;  %v619_v50 = vsel %vm5045_vm6, %v3955_v1, %v618_v62  ;;  %v623_v11 = vsel %vm5045_vm6, %v3956_v7, %v622_v8  ;;  %v4002_v42 = vld [vmem:[%s4923_s29 + $0x20] sm:$0xf]  ;;  %v4006_v49 = vld [vmem:[%s4923_s29 + $0x30] sm:$0xf]  ;;  %v5113_v57 = vld [vmem:[%s4923_s29 + $0x1c] sm:$0x1] }
  0x2b   : > { %v627_v40 = vsel %vm5045_vm6, %v3957_v10, %v626_v21  ;;  %v3965_v47 = vcombine.low %v615_v22, %v619_v50  ;;  %v3958_v15 = vrot.slane %v583_v55, 9  ;;  %v630_v16 = vrot.slane %v4996_v60, 5  ;;  %v4815_v59 = vld [vmem:[%s5813_s1 + $0x48] sm:$0xff]   ;;  %v5119_v62 = vld [vmem:[%s4923_s29 + $0x24] sm:$0x1] }
  0x2c   : > { %4454 = vmatmul.mubr.msk.bf16.gmra.mrb[4].mxu0 %vm390_vm3, %v3935_v46  ;;  %v3966_v19 = vcombine.low %v623_v11, %v627_v40  ;;  %v3959_v20 = vrot.slane %v584_v12, 9  ;;  %v634_v23 = vrot.slane %v5005_v9, 5  ;;  %v898_v25 = vshrl.u32 %v3996_v14, 16  ;;  %v4814_v7 = vld [vmem:[%s4923_s29 + $0x28] ss:$8 sps:$4 sm:$0xff]  }
  0x2d   : > { %4461 = vmatprep.mubr.msk.bf16.mxu0 %vm390_vm3, %v3942_v45  ;;  %v901_v26 = vshll.u32 %v3996_v14, 16  ;;  %v912_v28 = vshrl.u32 %v3998_v17, 16  ;;  %v915_v29 = vshll.u32 %v3998_v17, 16  ;;  %v631_v60 = vsel %vm5045_vm6, %v3958_v15, %v630_v16  ;;  %v5123_v8 = vld [vmem:[%s4923_s29 + $0x2c] sm:$0x1] }
  0x2e   : > { %v635_v9 = vsel %vm5045_vm6, %v3959_v20, %v634_v23  ;;  %v900_v37 = vrot.slane %v898_v25, 4  ;;  %v907_v43 = vshll.u32 %v5097_v31, 16  ;;  %v921_v45 = vshll.u32 %v5100_v33, 16  ;;  %v4008_v10 = vld [vmem:[%s4923_s29 + $0x38] sm:$0xf] }
  0x2f   : > { %v903_v38 = vrot.slane %v901_v26, 5  ;;  %v914_v2 = vrot.slane %v912_v28, 4  ;;  %v917_v39 = vrot.slane %v915_v29, 5  ;;  %v3967_v41 = vcombine.low %v631_v60, %v635_v9  ;;  %v4010_v11 = vld [vmem:[%s4923_s29 + $0x40] sm:$0xf]  ;;  %v4817_v26 = vld [vmem:[%s5813_s1 + $0x50] sm:$0xff]  }
  0x30   : > { %v926_v46 = vshrl.u32 %v4000_v34, 16  ;;  %v940_v3 = vshrl.u32 %v4002_v42, 16  ;;  %v943_v4 = vshll.u32 %v4002_v42, 16  ;;  %v954_v54 = vshrl.u32 %v4004_v48, 16 }
  0x31   : > { %v904_v44 = vor.u32 %v903_v38, %v900_v37  ;;  %v957_v56 = vshll.u32 %v4004_v48, 16  ;;  %v971_v6 = vshll.u32 %v4006_v49, 16  ;;  %v909_v32 = vrot.slane %v907_v43, 5 }
  0x32   : > { %v923_v36 = vrot.slane %v921_v45, 5  ;;  %v928_v58 = vrot.slane %v926_v46, 4  ;;  %v942_v0 = vrot.slane %v940_v3, 4  ;;  %v945_v1 = vrot.slane %v943_v4, 5 }
  0x33   : > { %v905_v18 = vrot.slane %v904_v44, 4  ;;  %v956_v21 = vrot.slane %v954_v54, 4  ;;  %v959_v22 = vrot.slane %v957_v56, 5  ;;  %v973_v55 = vrot.slane %v971_v6, 5 }
  0x34   : > { %4462 = vmatmul.mubr.msk.bf16.vlgmr.msra.gmra.mrb[0].mxu0 %vm390_vm3, %v3943_v51  ;;  %v918_v51 = vor.u32 %v917_v39, %v914_v2  ;;  %v935_v12 = vshll.u32 %v5113_v57, 16  ;;  %v949_v14 = vshll.u32 %v5119_v62, 16  ;;  %v946_v17 = vor.u32 %v945_v1, %v942_v0  ;;  %v4818_v0 = vld [vmem:[%s5813_s1 + $0x58] sm:$0xff]  }
  0x35   : > { %4470 = vmatpush3.bf16.msra.mxu0 %v4804_v35  ;;  %4465 = vmatprep.mubr.msk.bf16.mxu0 %vm390_vm3, %v3944_v52  ;;  %v4811_v35 = vld [vmem:[%s4923_s29 + $0x8] ss:$8 sps:$4 sm:$0xff]   ;;  %v929_v52 = vshll.u32 %v4000_v34, 16  ;;  %v910_v40 = vsel %vm4961_vm2, %v905_v18, %v909_v32  ;;  %v982_v20 = vshrl.u32 %v4008_v10, 16  ;;  %v985_v23 = vshll.u32 %v4008_v10, 16 }
  0x36   : > { %4471 = vmatprep.subr.bf16.mxu0 %v4807_v53  ;;  %v999_v25 = vshll.u32 %v4010_v11, 16  ;;  %v960_v28 = vor.u32 %v959_v22, %v956_v21  ;;  %v937_v9 = vrot.slane %v935_v12, 5  ;;  %v951_v34 = vrot.slane %v949_v14, 5 }
  0x37   : > { %v947_v2 = vrot.slane %v946_v17, 4  ;;  %v984_v42 = vrot.slane %v982_v20, 4  ;;  %v987_v43 = vrot.slane %v985_v23, 5  ;;  %v1157_v12 = vrot.slane %v5113_v57, 5 }
  0x38   : > { %v1001_v45 = vrot.slane %v999_v25, 5  ;;  %v961_v46 = vrot.slane %v960_v28, 4  ;;  %v1165_v17 = vrot.slane %v5123_v8, 5  ;;  %v4032_v25 = vld [vmem:[%s4923_s29 + $0x38] sm:$0xe] }
  0x39   : > { %4472 = vmatpush3.bf16.msra.mxu0 %v4807_v53  ;;  %v4813_v53 = vld [vmem:[%s4923_s29 + $0x18] ss:$8 sps:$4 sm:$0xff]   ;;  %v988_v54 = vor.u32 %v987_v43, %v984_v42  ;;  %v4820_v43 = vld [vmem:[%s5813_s1 + $0x68] sm:$0xff]  }
  0x3a   : > { %4481 = vmatprep.subr.bf16.mxu0 %v4809_v5  ;;  %v4080_v42 = vld [vmem:[%s4923_s29 + $0x18] sm:$0xf] }
  0x3b   : > { %v989_v21 = vrot.slane %v988_v54, 4 }
  0x3c   : > { %4466 = vmatmul.mubr.msk.bf16.gmra.mrb[4].mxu0 %vm390_vm3, %v3945_v61  ;;  %v919_v61 = vrot.slane %v918_v51, 4 }
  0x3d   : > { %4473 = vmatprep.mubr.msk.bf16.mxu0 %vm390_vm3, %v3964_v63  ;;  %v931_v63 = vrot.slane %v929_v52, 5  ;;  %v4026_v52 = vld [vmem:[%s4923_s29 + $0x8] sm:$0xe] }
  0x3e   : > { %v924_v15 = vsel %vm4961_vm2, %v919_v61, %v923_v36  ;;  %v4034_v36 = vrot.slane %v4026_v52, 9  ;;  %v4030_v61 = vld [vmem:[%s4923_s29 + $0x28] sm:$0xe] }
  0x3f   : > { %v932_v16 = vor.u32 %v931_v63, %v928_v58  ;;  %v4016_v37 = vcombine.low %v910_v40, %v924_v15  ;;  %v4028_v58 = vld [vmem:[%s4923_s29 + $0x18] sm:$0xe]  ;;  %v1161_v15 = vrot.slane %v5119_v62, 5 }
  0x40   : > { %v4036_v40 = vrot.slane %v4028_v58, 9 }
  0x41   : > { %v933_v38 = vrot.slane %v932_v16, 4  ;;  %v4819_v16 = vld [vmem:[%s5813_s1 + $0x60] sm:$0xff]  }
  0x43   : > { %v938_v4 = vsel %vm4961_vm2, %v933_v38, %v937_v9 }
  0x44   : > { %4474 = vmatmul.mubr.msk.bf16.vlgmr.msra.gmra.mrb[0].mxu0 %vm390_vm3, %v3965_v47  ;;  %v5132_v47 = vld [vmem:[%s4923_s29 + $0x34] sm:$0x1] }
  0x45   : > { %4482 = vmatpush3.bf16.msra.mxu0 %v4809_v5  ;;  %4477 = vmatprep.mubr.msk.bf16.mxu0 %vm390_vm3, %v3966_v19  ;;  %v968_v5 = vshrl.u32 %v4006_v49, 16  ;;  %v963_v19 = vshll.u32 %v5123_v8, 16  ;;  %v977_v60 = vshll.u32 %v5132_v47, 16 }
  0x46   : > { %4483 = vmatprep.subr.bf16.mxu0 %v4810_v24 }
  0x47   : > { %v970_v50 = vrot.slane %v968_v5, 4  ;;  %v965_v39 = vrot.slane %v963_v19, 5  ;;  %v979_v49 = vrot.slane %v977_v60, 5  ;;  %v4027_v5 = vld [vmem:[%s4923_s29 + $0x10] sm:$0xe]  ;;  %v1169_v19 = vrot.slane %v5132_v47, 5 }
  0x48   : > { %v1158_v47 = vsel %vm5045_vm6, %v4036_v40, %v1157_v12  ;;  %v4033_v60 = vld [vmem:[%s4923_s29 + $0x40] sm:$0xe] }
  0x49   : > { %4484 = vmatpush3.bf16.msra.mxu0 %v4810_v24  ;;  %v996_v24 = vshrl.u32 %v4010_v11, 16  ;;  %v974_v29 = vor.u32 %v973_v55, %v970_v50  ;;  %v966_v6 = vsel %vm4961_vm2, %v961_v46, %v965_v39  ;;  %v4035_v50 = vrot.slane %v4027_v5, 9  ;;  %v4031_v11 = vld [vmem:[%s4923_s29 + $0x30] sm:$0xe]  ;;  %v4082_v5 = vld [vmem:[%s4923_s29 + $0x20] sm:$0xf] }
  0x4a   : > { %4493 = vmatprep.subr.bf16.mxu0 %v4812_v30  ;;  %v1153_v55 = vrot.slane %v5100_v33, 5  ;;  %v4039_v62 = vrot.slane %v4031_v11, 9  ;;  %v1455_v46 = vshrl.u32 %v4080_v42, 16 }
  0x4b   : > { %v998_v44 = vrot.slane %v996_v24, 4  ;;  %v975_v48 = vrot.slane %v974_v29, 4 }
  0x4c   : > { %4478 = vmatmul.mubr.msk.bf16.gmra.mrb[4].mxu0 %vm390_vm3, %v3967_v41  ;;  %v5148_v41 = vld [vmem:[%s4923_s29 + $0x44] sm:$0x1]  ;;  %v1154_v8 = vsel %vm5045_vm6, %v4035_v50, %v1153_v55  ;;  %v1170_v29 = vsel %vm5045_vm6, %v4039_v62, %v1169_v19  ;;  %v1457_v54 = vrot.slane %v1455_v46, 4  ;;  %v4824_v19 = vld [vmem:[%s4923_s29 + $0x30] ss:$8 sps:$4 sm:$0xff]  }
  0x4d   : > { %4485 = vmatprep.mubr.msk.bf16.mxu0 %vm390_vm3, %v4811_v35  ;;  %v5144_v35 = vld [vmem:[%s4923_s29 + $0x3c] sm:$0x1]  ;;  %v1005_v3 = vshll.u32 %v5148_v41, 16  ;;  %v1002_v56 = vor.u32 %v1001_v45, %v998_v44  ;;  %v980_v18 = vsel %vm4961_vm2, %v975_v48, %v979_v49  ;;  %v1177_v39 = vrot.slane %v5148_v41, 5  ;;  %v4822_v49 = vld [vmem:[%s5813_s1 + $0x70] sm:$0xff]  }
  0x4e   : > { %v991_v51 = vshll.u32 %v5144_v35, 16  ;;  %v4018_v10 = vcombine.low %v966_v6, %v980_v18  ;;  %v1173_v38 = vrot.slane %v5144_v35, 5  ;;  %v1458_v48 = vshll.u32 %v4080_v42, 16  ;;  %v4821_v6 = vld [vmem:[%s4923_s29 + $0x10] ss:$8 sps:$4 sm:$0xff]  }
  0x4f   : > { %v1007_v1 = vrot.slane %v1005_v3, 5  ;;  %v1003_v22 = vrot.slane %v1002_v56, 4  ;;  %v4084_v18 = vld [vmem:[%s4923_s29 + $0x28] sm:$0xf] }
  0x50   : > { %v993_v32 = vrot.slane %v991_v51, 5  ;;  %v5219_v51 = vld [vmem:[%s4923_s29 + $0x14] sm:$0x1]  ;;  %v1460_v56 = vrot.slane %v1458_v48, 5 }
  0x51   : > { %v1008_v57 = vsel %vm4961_vm2, %v1003_v22, %v1007_v1  ;;  %v1472_v1 = vshll.u32 %v4082_v5, 16 }
  0x52   : > { %v994_v33 = vsel %vm4961_vm2, %v989_v21, %v993_v32  ;;  %v1450_v32 = vshll.u32 %v5219_v51, 16  ;;  %v4823_v21 = vld [vmem:[%s4923_s29 + $0x20] ss:$8 sps:$4 sm:$0xff]  }
  0x53   : > { %v4019_v23 = vcombine.low %v994_v33, %v1008_v57  ;;  %v1474_v33 = vrot.slane %v1472_v1, 5 }
  0x54   : > { %4486 = vmatmul.mubr.msk.bf16.vlgmr.msra.gmra.mrb[0].mxu0 %vm390_vm3, %v4813_v53  ;;  %v952_v53 = vsel %vm4961_vm2, %v947_v2, %v951_v34  ;;  %v4040_v34 = vrot.slane %v4032_v25, 9  ;;  %v4041_v2 = vrot.slane %v4033_v60, 9  ;;  %v1452_v12 = vrot.slane %v1450_v32, 5  ;;  %v5249_v60 = vld [vmem:[%s4923_s29 + $0x34] sm:$0x1] }
  0x55   : > { %4494 = vmatpush3.bf16.msra.mxu0 %v4812_v30  ;;  %4489 = vmatprep.mubr.msk.bf16.mxu0 %vm390_vm3, %v4814_v7  ;;  %v4816_v30 = vld [vmem:[%s4923_s29 + $0x38] ss:$8 sps:$4 sm:$0xff]   ;;  %v4017_v63 = vcombine.low %v938_v4, %v952_v53  ;;  %v1149_v7 = vrot.slane %v5097_v31, 5  ;;  %v4038_v31 = vrot.slane %v4030_v61, 9  ;;  %v5222_v53 = vld [vmem:[%s4923_s29 + $0x1c] sm:$0x1] }
  0x56   : > { %4495 = vmatprep.subr.bf16.mxu0 %v4815_v59  ;;  %v1174_v35 = vsel %vm5045_vm6, %v4040_v34, %v1173_v38  ;;  %v1178_v41 = vsel %vm5045_vm6, %v4041_v2, %v1177_v39  ;;  %v1464_v58 = vshll.u32 %v5222_v53, 16  ;;  %v4086_v61 = vld [vmem:[%s4923_s29 + $0x30] sm:$0xf]  ;;  %v1506_v46 = vshll.u32 %v5249_v60, 16 }
  0x57   : > { %v1150_v20 = vsel %vm5045_vm6, %v4034_v36, %v1149_v7  ;;  %v1166_v28 = vsel %vm5045_vm6, %v4038_v31, %v1165_v17  ;;  %v4049_v4 = vcombine.low %v1174_v35, %v1178_v41  ;;  %v1483_v7 = vshrl.u32 %v4084_v18, 16  ;;  %v5238_v17 = vld [vmem:[%s4923_s29 + $0x2c] sm:$0x1] }
  0x58   : > { %v4046_v24 = vcombine.low %v1150_v20, %v1154_v8  ;;  %v1497_v22 = vshrl.u32 %v4086_v61, 16  ;;  %v1500_v50 = vshll.u32 %v4086_v61, 16  ;;  %v4825_v20 = vld [vmem:[%s5813_s1 + $0x78] sm:$0xff]   ;;  %v4090_v8 = vld [vmem:[%s4923_s29 + $0x40] sm:$0xf] }
  0x59   : > { %4496 = vmatpush3.bf16.msra.mxu0 %v4815_v59  ;;  %v4029_v59 = vld [vmem:[%s4923_s29 + $0x20] sm:$0xe]  ;;  %v1485_v57 = vrot.slane %v1483_v7, 4  ;;  %v1525_v2 = vshrl.u32 %v4090_v8, 16  ;;  %v1528_v39 = vshll.u32 %v4090_v8, 16 }
  0x5a   : > { %4505 = vmatprep.subr.bf16.mxu0 %v4817_v26  ;;  %v4037_v14 = vrot.slane %v4029_v59, 9  ;;  %v1469_v59 = vshrl.u32 %v4082_v5, 16 }
  0x5b   : > { %v1527_v5 = vrot.slane %v1525_v2, 4 }
  0x5c   : > { %4490 = vmatmul.mubr.msk.bf16.gmra.mrb[4].mxu0 %vm390_vm3, %v4816_v30  ;;  %v4078_v30 = vld [vmem:[%s4923_s29 + $0x10] sm:$0xf] }
  0x5d   : > { %4497 = vmatprep.mubr.msk.bf16.mxu0 %vm390_vm3, %v4016_v37  ;;  %v4048_v37 = vcombine.low %v1166_v28, %v1170_v29  ;;  %v1441_v44 = vshrl.u32 %v4078_v30, 16  ;;  %v1444_v45 = vshll.u32 %v4078_v30, 16  ;;  %v1492_v29 = vshll.u32 %v5238_v17, 16 }
  0x5f   : > { %v1443_v52 = vrot.slane %v1441_v44, 4  ;;  %v1446_v3 = vrot.slane %v1444_v45, 5  ;;  %v4827_v44 = vld [vmem:[%s5813_s1 + $0x80] sm:$0xff]  }
  0x61   : > { %v1447_v36 = vor.u32 %v1446_v3, %v1443_v52 }
  0x63   : > { %v1448_v40 = vrot.slane %v1447_v36, 4 }
  0x64   : > { %4498 = vmatmul.mubr.msk.bf16.vlgmr.msra.gmra.mrb[0].mxu0 %vm390_vm3, %v4017_v63  ;;  %v4088_v63 = vld [vmem:[%s4923_s29 + $0x38] sm:$0xf] }
  0x65   : > { %4506 = vmatpush3.bf16.msra.mxu0 %v4817_v26  ;;  %4501 = vmatprep.mubr.msk.bf16.mxu0 %vm390_vm3, %v4018_v10  ;;  %v1162_v26 = vsel %vm5045_vm6, %v4037_v14, %v1161_v15  ;;  %v1486_v10 = vshll.u32 %v4084_v18, 16  ;;  %v1511_v55 = vshrl.u32 %v4088_v63, 16  ;;  %v1514_v11 = vshll.u32 %v4088_v63, 16  ;;  %v5235_v15 = vld [vmem:[%s4923_s29 + $0x24] sm:$0x1] }
  0x66   : > { %4507 = vmatprep.subr.bf16.mxu0 %v4818_v0  ;;  %v4047_v9 = vcombine.low %v1158_v47, %v1162_v26  ;;  %v1466_v14 = vrot.slane %v1464_v58, 5  ;;  %v4092_v26 = vld [vmem:[%s4923_s29 + $0x48] sm:$0xf]  ;;  %v1478_v28 = vshll.u32 %v5235_v15, 16  ;;  %v1453_v34 = vsel %vm4961_vm2, %v1448_v40, %v1452_v12  ;;  %v5270_v63 = vld [vmem:[%s4923_s29 + $0x4c] sm:$0x1] }
  0x67   : > { %v1488_v62 = vrot.slane %v1486_v10, 5  ;;  %v1513_v25 = vrot.slane %v1511_v55, 4  ;;  %v1516_v47 = vrot.slane %v1514_v11, 5  ;;  %v1539_v42 = vshrl.u32 %v4092_v26, 16  ;;  %v4108_v11 = vld [vmem:[%s4923_s29 + $0x10] sm:$0xe] }
  0x68   : > { %v1480_v41 = vrot.slane %v1478_v28, 5  ;;  %v1508_v58 = vrot.slane %v1506_v46, 5  ;;  %v4109_v40 = vld [vmem:[%s4923_s29 + $0x18] sm:$0xe]  ;;  %v4112_v28 = vld [vmem:[%s4923_s29 + $0x30] sm:$0xe] }
  0x69   : > { %4508 = vmatpush3.bf16.msra.mxu0 %v4818_v0  ;;  %v1461_v0 = vor.u32 %v1460_v56, %v1457_v54  ;;  %v1489_v38 = vor.u32 %v1488_v62, %v1485_v57  ;;  %v1517_v48 = vor.u32 %v1516_v47, %v1513_v25  ;;  %v1494_v54 = vrot.slane %v1492_v29, 5  ;;  %v5267_v56 = vld [vmem:[%s4923_s29 + $0x44] sm:$0x1]  ;;  %v4828_v62 = vld [vmem:[%s5813_s1 + $0x88] sm:$0xff]   ;;  %v4110_v47 = vld [vmem:[%s4923_s29 + $0x20] sm:$0xe] }
  0x6a   : > { %4517 = vmatprep.subr.bf16.mxu0 %v4819_v16  ;;  %v1541_v18 = vrot.slane %v1539_v42, 4  ;;  %v1534_v1 = vshll.u32 %v5267_v56, 16  ;;  %v4117_v8 = vrot.slane %v4109_v40, 9  ;;  %v4113_v29 = vld [vmem:[%s4923_s29 + $0x38] sm:$0xe]  ;;  %v4120_v42 = vrot.slane %v4112_v28, 9 }
  0x6b   : > { %v1462_v31 = vrot.slane %v1461_v0, 4 }
  0x6c   : > { %4502 = vmatmul.mubr.msk.bf16.gmra.mrb[4].mxu0 %vm390_vm3, %v4019_v23  ;;  %v1499_v23 = vrot.slane %v1497_v22, 4  ;;  %v1548_v22 = vshll.u32 %v5270_v63, 16 }
  0x6d   : > { %4509 = vmatprep.mubr.msk.bf16.mxu0 %vm390_vm3, %v4046_v24  ;;  %v1502_v24 = vrot.slane %v1500_v50, 5  ;;  %v1467_v30 = vsel %vm4961_vm2, %v1462_v31, %v1466_v14  ;;  %v1536_v14 = vrot.slane %v1534_v1, 5 }
  0x6e   : > { %v4098_v52 = vcombine.low %v1453_v34, %v1467_v30  ;;  %v1550_v57 = vrot.slane %v1548_v22, 5  ;;  %v4118_v30 = vrot.slane %v4110_v47, 9 }
  0x6f   : > { %v1503_v45 = vor.u32 %v1502_v24, %v1499_v23  ;;  %v1696_v23 = vrot.slane %v5222_v53, 5  ;;  %v4111_v53 = vld [vmem:[%s4923_s29 + $0x28] sm:$0xe] }
  0x70   : > { %v4119_v2 = vrot.slane %v4111_v53, 9 }
  0x71   : > { %v1504_v36 = vrot.slane %v1503_v45, 4 }
  0x73   : > { %v1509_v50 = vsel %vm4961_vm2, %v1504_v36, %v1508_v58  ;;  %v5359_v36 = vld [vmem:[%s5815_s3] sm:$0xff]  }
  0x74   : > { %4510 = vmatmul.mubr.msk.bf16.vlgmr.msra.gmra.mrb[0].mxu0 %vm390_vm3, %v4047_v9  ;;  %v5252_v9 = vld [vmem:[%s4923_s29 + $0x3c] sm:$0x1]  ;;  %v5365_v58 = vld [vmem:[%s5814_s2] ss:$0 sm:$0xff] }
  0x75   : > { %4518 = vmatpush3.bf16.msra.mxu0 %v4819_v16  ;;  %4513 = vmatprep.mubr.msk.bf16.mxu0 %vm390_vm3, %v4048_v37  ;;  %v1471_v16 = vrot.slane %v1469_v59, 4  ;;  %v1520_v35 = vshll.u32 %v5252_v9, 16  ;;  %v1518_v59 = vrot.slane %v1517_v48, 4  ;;  %v1712_v45 = vrot.slane %v5252_v9, 5 }
  0x76   : > { %4519 = vmatprep.subr.bf16.mxu0 %v4820_v43 }
  0x77   : > { %v1475_v37 = vor.u32 %v1474_v33, %v1471_v16  ;;  %v1522_v61 = vrot.slane %v1520_v35, 5  ;;  %v4115_v35 = vld [vmem:[%s4923_s29 + $0x48] sm:$0xe] }
  0x79   : > { %4520 = vmatpush3.bf16.msra.mxu0 %v4820_v43  ;;  %v1542_v43 = vshll.u32 %v4092_v26, 16  ;;  %v1476_v3 = vrot.slane %v1475_v37, 4  ;;  %v1523_v55 = vsel %vm4961_vm2, %v1518_v59, %v1522_v61 }
  0x7a   : > { %4529 = vmatprep.subr.bf16.mxu0 %v4822_v49  ;;  %v4100_v16 = vcombine.low %v1509_v50, %v1523_v55 }
  0x7b   : > { %v1544_v32 = vrot.slane %v1542_v43, 5  ;;  %v1481_v0 = vsel %vm4961_vm2, %v1476_v3, %v1480_v41  ;;  %v1708_v43 = vrot.slane %v5249_v60, 5  ;;  %v4123_v3 = vrot.slane %v4115_v35, 9 }
  0x7c   : > { %4514 = vmatmul.mubr.msk.bf16.gmra.mrb[4].mxu0 %vm390_vm3, %v4049_v4  ;;  %v1490_v4 = vrot.slane %v1489_v38, 4  ;;  %v1700_v38 = vrot.slane %v5235_v15, 5  ;;  %v4114_v15 = vld [vmem:[%s4923_s29 + $0x40] sm:$0xe] }
  0x7d   : > { %4521 = vmatprep.mubr.msk.bf16.mxu0 %vm390_vm3, %v4821_v6  ;;  %v1530_v6 = vrot.slane %v1528_v39, 5  ;;  %v1704_v39 = vrot.slane %v5238_v17, 5  ;;  %v1709_v17 = vsel %vm5045_vm6, %v4120_v42, %v1708_v43  ;;  %v4122_v9 = vrot.slane %v4114_v15, 9 }
  0x7e   : > { %v1495_v7 = vsel %vm4961_vm2, %v1490_v4, %v1494_v54  ;;  %v1701_v46 = vsel %vm5045_vm6, %v4118_v30, %v1700_v38  ;;  %v1720_v4 = vrot.slane %v5270_v63, 5 }
  0x7f   : > { %v1531_v10 = vor.u32 %v1530_v6, %v1527_v5  ;;  %v4099_v12 = vcombine.low %v1481_v0, %v1495_v7  ;;  %v1705_v48 = vsel %vm5045_vm6, %v4119_v2, %v1704_v39 }
  0x80   : > { %v4129_v41 = vcombine.low %v1701_v46, %v1705_v48  ;;  %v1721_v5 = vsel %vm5045_vm6, %v4123_v3, %v1720_v4 }
  0x81   : > { %v1532_v31 = vrot.slane %v1531_v10, 4 }
  0x83   : > { %v1537_v24 = vsel %vm4961_vm2, %v1532_v31, %v1536_v14 }
  0x84   : > { %4522 = vmatmul.mubr.msk.bf16.vlgmr.msra.gmra.mrb[0].mxu0 %vm390_vm3, %v4823_v21  ;;  %v1545_v21 = vor.u32 %v1544_v32, %v1541_v18  ;;  %v4867_v18 = vmov 0   ;;  %v4830_v32 = vld [vmem:[%s5815_s3 + $0x18] sm:$0xff]  }
  0x85   : > { %4530 = vmatpush3.bf16.msra.mxu0 %v4822_v49  ;;  %4525 = vmatprep.mubr.msk.bf16.mxu0 %vm390_vm3, %v4824_v19  ;;  %v4826_v49 = vld [vmem:[%s4923_s29 + $0x40] ss:$8 sps:$4 sm:$0xff]   ;;  %v4116_v19 = vrot.slane %v4108_v11, 9  ;;  %1867 = vst.msk [vmem:[#allocation2 + $0x18] sm:$0xf] %vm1859_vm7, %v4867_v18 }
  0x86   : > { %4531 = vmatprep.subr.bf16.mxu0 %v4825_v20  ;;  %v1546_v33 = vrot.slane %v1545_v21, 4  ;;  %1868 = vst.msk [vmem:[#allocation2 + $0x1c] sm:$0x1] %vm1861_vm8, %v4867_v18  ;;  %1862 = vst.msk [vmem:[#allocation2 + $0x4] sm:$0x1] %vm1861_vm8, %v4867_v18 }
  0x87   : > { %1860 = vst.msk [vmem:[#allocation2] sm:$0xf] %vm1859_vm7, %v4867_v18  ;;  %1863 = vst.msk [vmem:[#allocation2 + $0x8] sm:$0xf] %vm1859_vm7, %v4867_v18 }
  0x88   : > { %v1551_v25 = vsel %vm4961_vm2, %v1546_v33, %v1550_v57  ;;  %1864 = vst.msk [vmem:[#allocation2 + $0xc] sm:$0x1] %vm1861_vm8, %v4867_v18  ;;  %1866 = vst.msk [vmem:[#allocation2 + $0x14] sm:$0x1] %vm1861_vm8, %v4867_v18 }
  0x89   : > { %4532 = vmatpush3.bf16.msra.mxu0 %v4825_v20  ;;  %v1692_v20 = vrot.slane %v5219_v51, 5  ;;  %v1697_v51 = vsel %vm5045_vm6, %v4117_v8, %v1696_v23  ;;  %v4101_v34 = vcombine.low %v1537_v24, %v1551_v25  ;;  %1865 = vst.msk [vmem:[#allocation2 + $0x10] sm:$0xf] %vm1859_vm7, %v4867_v18  ;;  %1869 = vst.msk [vmem:[#allocation2 + $0x20] sm:$0xf] %vm1859_vm7, %v4867_v18 }
  0x8a   : > { %4541 = vmatprep.subr.bf16.mxu0 %v4827_v44  ;;  %1870 = vst.msk [vmem:[#allocation2 + $0x24] sm:$0x1] %vm1861_vm8, %v4867_v18  ;;  %1872 = vst.msk [vmem:[#allocation2 + $0x2c] sm:$0x1] %vm1861_vm8, %v4867_v18 }
  0x8b   : > { %v1693_v26 = vsel %vm5045_vm6, %v4116_v19, %v1692_v20  ;;  %1871 = vst.msk [vmem:[#allocation2 + $0x28] sm:$0xf] %vm1859_vm7, %v4867_v18  ;;  %1873 = vst.msk [vmem:[#allocation2 + $0x30] sm:$0xf] %vm1859_vm7, %v4867_v18 }
  0x8c   : > { %4526 = vmatmul.mubr.msk.bf16.gmra.mrb[4].mxu0 %vm390_vm3, %v4826_v49  ;;  %v4128_v37 = vcombine.low %v1693_v26, %v1697_v51  ;;  %1874 = vst.msk [vmem:[#allocation2 + $0x34] sm:$0x1] %vm1861_vm8, %v4867_v18  ;;  %1876 = vst.msk [vmem:[#allocation2 + $0x3c] sm:$0x1] %vm1861_vm8, %v4867_v18  ;;  %v2012_v24 = vld [vmem:[#allocation2 + $0x18] sm:$0xf] }
  0x8d   : > { %4533 = vmatprep.mubr.msk.bf16.mxu0 %vm390_vm3, %v4098_v52  ;;  %v1716_v52 = vrot.slane %v5267_v56, 5  ;;  %1875 = vst.msk [vmem:[#allocation2 + $0x38] sm:$0xf] %vm1859_vm7, %v4867_v18  ;;  %1877 = vst.msk [vmem:[#allocation2 + $0x40] sm:$0xf] %vm1859_vm7, %v4867_v18  ;;  %v4829_v56 = vld [vmem:[%s5815_s3 + $0x10] sm:$0xff]  }
  0x8e   : > { %1878 = vst.msk [vmem:[#allocation2 + $0x44] sm:$0x1] %vm1861_vm8, %v4867_v18  ;;  %1880 = vst.msk [vmem:[#allocation2 + $0x4c] sm:$0x1] %vm1861_vm8, %v4867_v18  ;;  %4553 = vmatprep.subr.bf16.mxu1 %v4829_v56  ;;  %v5367_v61 = vld [vmem:[#allocation2] sm:$0xf] }
  0x8f   : > { %v1717_v54 = vsel %vm5045_vm6, %v4122_v9, %v1716_v52  ;;  %1879 = vst.msk [vmem:[#allocation2 + $0x48] sm:$0xf] %vm1859_vm7, %v4867_v18  ;;  %4554 = vmatpush3.bf16.msra.mxu1 %v4829_v56  ;;  %v2069_v50 = vshrl.u32 %v5367_v61, 16  ;;  %v2072_v55 = vshll.u32 %v5367_v61, 16  ;;  %v2015_v25 = vld [vmem:[#allocation2 + $0x1c] sm:$0x1] }
  0x90   : > { %v4131_v6 = vcombine.low %v1717_v54, %v1721_v5  ;;  %4555 = vmatprep.subr.bf16.mxu1 %v4830_v32  ;;  %v2003_v43 = vld [vmem:[#allocation2 + $0xc] sm:$0x1]  ;;  %v2018_v35 = vld [vmem:[#allocation2 + $0x20] sm:$0xf] }
  0x91   : > { %v5378_v20 = vrot.slane %v2069_v50, 4  ;;  %v5380_v8 = vrot.slane %v2072_v55, 5  ;;  %v2021_v3 = vld [vmem:[#allocation2 + $0x24] sm:$0x1] }
  0x93   : > { %4556 = vmatpush3.bf16.msra.mxu1 %v4830_v32  ;;  %v2006_v32 = vld [vmem:[#allocation2 + $0x10] sm:$0xf] }
  0x94   : > { %4534 = vmatmul.mubr.msk.bf16.vlgmr.msra.gmra.mrb[0].mxu0 %vm390_vm3, %v4099_v12  ;;  %4565 = vmatprep.subr.bf16.mxu1 %v5359_v36 }
  0x95   : > { %4542 = vmatpush3.bf16.msra.mxu0 %v4827_v44  ;;  %4537 = vmatprep.mubr.msk.bf16.mxu0 %vm390_vm3, %v4100_v16  ;;  %v4121_v44 = vrot.slane %v4113_v29, 9  ;;  %v5375_v16 = vld [vmem:[#allocation2 + $0x4] sm:$0x1] }
  0x96   : > { %4543 = vmatprep.subr.bf16.mxu0 %v4828_v62  ;;  %v2078_v57 = vshll.u32 %v5375_v16, 16 }
  0x97   : > { %v1713_v60 = vsel %vm5045_vm6, %v4121_v44, %v1712_v45 }
  0x98   : > { %v4130_v49 = vcombine.low %v1709_v17, %v1713_v60 }
  0x99   : > { %4544 = vmatpush3.bf16.msra.mxu0 %v4828_v62 }
  0x9c   : > { %4538 = vmatmul.mubr.msk.bf16.gmra.mrb[4].mxu0 %vm390_vm3, %v4101_v34  ;;  %v1997_v34 = vld [vmem:[#allocation2 + $0x8] sm:$0xf] }
  0x9d   : > { %4545 = vmatprep.mubr.msk.bf16.mxu0 %vm390_vm3, %v4128_v37 }
  0xa4   : > { %4546 = vmatmul.mubr.msk.bf16.vlgmr.msra.gmra.mrb[0].mxu0 %vm390_vm3, %v4129_v41 }
  0xa5   : > { %4549 = vmatprep.mubr.msk.bf16.mxu0 %vm390_vm3, %v4130_v49 }
  0xac   : > { %4550 = vmatmul.mubr.msk.bf16.gmra.mrb[4].mxu0 %vm390_vm3, %v4131_v6 }
 0x177   : > { %v4547_v59 = vpop.f32.mrb[0].mxu0 }
 0x178   : > { %v1845_v63 = vadd.f32 %v4547_v59, %v5365_v58  ;;  %v1797_v0 = vpop.f32.mrb[1].mxu0  ;;  %v2009_v59 = vld [vmem:[#allocation2 + $0x14] sm:$0x1] }
 0x179   : > { %v1843_v1 = vadd.f32 %v5365_v58, %v1797_v0  ;;  %v4548_v7 = vpop.f32.mrb[2].mxu0 }
 0x17a   : > { %v1853_v10 = vmax.f32 %v1845_v63, 0.0  ;;  %v1846_v21 = vadd.f32 %v4548_v7, %v5365_v58  ;;  %v1800_v22 = vpop.f32.mrb[3].mxu0 }
 0x17b   : > { %v1851_v11 = vmax.f32 %v1843_v1, 0.0  ;;  %v1844_v40 = vadd.f32 %v5365_v58, %v1800_v22 }
 0x17c   : > { %v4323_v12 = vpack.c.bf16 %v1853_v10, %v1853_v10  ;;  %v1854_v14 = vmax.f32 %v1846_v21, 0.0 }
 0x17d   : > { %v4321_v31 = vpack.c.bf16 %v1851_v11, %v1851_v11  ;;  %v1852_v33 = vmax.f32 %v1844_v40, 0.0 }
 0x17e   : > { %v1930_v62 = vshrl.u32 %v4323_v12, 16  ;;  %v4324_v19 = vpack.c.bf16 %v1854_v14, %v1854_v14  ;;  %v1933_v23 = vshll.u32 %v4323_v12, 16 }
 0x17f   : > { %v1914_v47 = vshrl.u32 %v4321_v31, 16  ;;  %v1917_v26 = vshll.u32 %v4321_v31, 16  ;;  %v4322_v51 = vpack.c.bf16 %v1852_v33, %v1852_v33  ;;  %v4551_v53 = vpop.f32.mrb[4].mxu0  ;;  %v2036_v33 = vld [vmem:[#allocation2 + $0x38] sm:$0xf] }
 0x180   : > { %v1932_v28 = vrot.slane %v1930_v62, 7  ;;  %v1938_v30 = vshrl.u32 %v4324_v19, 16  ;;  %v1941_v37 = vshll.u32 %v4324_v19, 16  ;;  %v1849_v38 = vadd.f32 %v4551_v53, %v5365_v58  ;;  %v1813_v2 = vpop.f32.mrb[5].mxu0  ;;  %v2027_v53 = vld [vmem:[#allocation2 + $0x2c] sm:$0x1] }
 0x181   : > { %v1916_v42 = vrot.slane %v1914_v47, 7  ;;  %v1922_v44 = vshrl.u32 %v4322_v51, 16  ;;  %v1925_v45 = vshll.u32 %v4322_v51, 16  ;;  %v1847_v46 = vadd.f32 %v5365_v58, %v1813_v2  ;;  %v4552_v48 = vpop.f32.mrb[6].mxu0  ;;  %v2024_v51 = vld [vmem:[#allocation2 + $0x28] sm:$0xf] }
 0x182   : > { %v1935_v15 = vor.u32 %v1933_v23, %v1932_v28  ;;  %v1936_v17 = vrot.slane %v1932_v28, 4  ;;  %v1940_v60 = vrot.slane %v1938_v30, 7  ;;  %v1857_v41 = vmax.f32 %v1849_v38, 0.0  ;;  %v1816_v9 = vpop.f32.mrb[7].mxu0 }
 0x183   : > { %v1919_v49 = vor.u32 %v1917_v26, %v1916_v42  ;;  %v1920_v52 = vrot.slane %v1916_v42, 4  ;;  %v1924_v4 = vrot.slane %v1922_v44, 7  ;;  %v1855_v54 = vmax.f32 %v1847_v46, 0.0 }
 0x184   : > { %v2013_v5 = vsel %vm5384_vm11, %v1935_v15, %v2012_v24  ;;  %v2016_v6 = vsel %vm5391_vm12, %v1936_v17, %v2015_v25  ;;  %v1943_v18 = vor.u32 %v1941_v37, %v1940_v60  ;;  %v1944_v56 = vrot.slane %v1940_v60, 4  ;;  %v2039_v25 = vld [vmem:[#allocation2 + $0x3c] sm:$0x1]  ;;  %v2042_v17 = vld [vmem:[#allocation2 + $0x40] sm:$0xf] }
 0x185   : > { %2014 = vst [vmem:[#allocation2 + $0x18] sm:$0xf] %v2013_v5  ;;  %2017 = vst [vmem:[#allocation2 + $0x1c] sm:$0x1] %v2016_v6  ;;  %v1998_v63 = vsel %vm5384_vm11, %v1919_v49, %v1997_v34  ;;  %v2004_v0 = vsel %vm5391_vm12, %v1920_v52, %v2003_v43  ;;  %v1927_v1 = vor.u32 %v1925_v45, %v1924_v4  ;;  %v1928_v7 = vrot.slane %v1924_v4, 4 }
 0x186   : > { %1999 = vst [vmem:[#allocation2 + $0x8] sm:$0xf] %v1998_v63  ;;  %2005 = vst [vmem:[#allocation2 + $0xc] sm:$0x1] %v2004_v0  ;;  %v2019_v10 = vsel %vm5384_vm11, %v1943_v18, %v2018_v35  ;;  %v2022_v21 = vsel %vm5391_vm12, %v1944_v56, %v2021_v3  ;;  %v4327_v22 = vpack.c.bf16 %v1857_v41, %v1857_v41  ;;  %v2045_v60 = vld [vmem:[#allocation2 + $0x44] sm:$0x1] }
 0x187   : > { %v4325_v50 = vpack.c.bf16 %v1855_v54, %v1855_v54  ;;  %2020 = vst [vmem:[#allocation2 + $0x20] sm:$0xf] %v2019_v10  ;;  %2023 = vst [vmem:[#allocation2 + $0x24] sm:$0x1] %v2022_v21  ;;  %v2007_v55 = vsel %vm5384_vm11, %v1927_v1, %v2006_v32  ;;  %v2010_v11 = vsel %vm5391_vm12, %v1928_v7, %v2009_v59  ;;  %v2030_v35 = vld [vmem:[#allocation2 + $0x30] sm:$0xf] }
 0x188   : > { %v1850_v40 = vadd.f32 %v4552_v48, %v5365_v58  ;;  %v1848_v12 = vadd.f32 %v5365_v58, %v1816_v9  ;;  %2008 = vst [vmem:[#allocation2 + $0x10] sm:$0xf] %v2007_v55  ;;  %2011 = vst [vmem:[#allocation2 + $0x14] sm:$0x1] %v2010_v11  ;;  %v1962_v14 = vshrl.u32 %v4327_v22, 16  ;;  %v1965_v24 = vshll.u32 %v4327_v22, 16 }
 0x189   : > { %v1946_v31 = vshrl.u32 %v4325_v50, 16  ;;  %v1949_v26 = vshll.u32 %v4325_v50, 16  ;;  %v2075_v30 = vor.u32 %v5380_v8, %v5378_v20  ;;  %v5418_v58 = vrot.slane %v2078_v57, 5  ;;  %v2033_v54 = vld [vmem:[#allocation2 + $0x34] sm:$0x1] }
 0x18a   : > { %v1858_v62 = vmax.f32 %v1850_v40, 0.0  ;;  %v1856_v19 = vmax.f32 %v1848_v12, 0.0  ;;  %v1964_v23 = vrot.slane %v1962_v14, 7 }
 0x18b   : > { %v1948_v47 = vrot.slane %v1946_v31, 7  ;;  %v2076_v5 = vrot.slane %v2075_v30, 4 }
 0x18c   : > { %v4328_v28 = vpack.c.bf16 %v1858_v62, %v1858_v62  ;;  %v4326_v34 = vpack.c.bf16 %v1856_v19, %v1856_v19  ;;  %v1967_v37 = vor.u32 %v1965_v24, %v1964_v23  ;;  %v1968_v38 = vrot.slane %v1964_v23, 4  ;;  %v5439_v1 = vld [vmem:[#allocation2 + $0x18] sm:$0xf]  ;;  %v5451_v12 = vld [vmem:[#allocation2 + $0x1c] sm:$0x1] }
 0x18d   : > { %v1951_v2 = vor.u32 %v1949_v26, %v1948_v47  ;;  %v1952_v42 = vrot.slane %v1948_v47, 4  ;;  %v5420_v48 = vld [vmem:[#allocation2 + $0x8] sm:$0xf]  ;;  %v5430_v41 = vld [vmem:[#allocation2 + $0xc] sm:$0x1]  ;;  %v2111_v62 = vshrl.u32 %v5439_v1, 16  ;;  %v2081_v29 = vsel %vm4961_vm2, %v2076_v5, %v5418_v58 }
 0x18e   : > { %v1970_v43 = vshrl.u32 %v4328_v28, 16  ;;  %v1973_v44 = vshll.u32 %v4328_v28, 16  ;;  %v1954_v45 = vshrl.u32 %v4326_v34, 16  ;;  %v1957_v46 = vshll.u32 %v4326_v34, 16  ;;  %v5455_v19 = vld [vmem:[#allocation2 + $0x20] sm:$0xf] }
 0x18f   : > { %v2037_v15 = vsel %vm5384_vm11, %v1967_v37, %v2036_v33  ;;  %v2040_v20 = vsel %vm5391_vm12, %v1968_v38, %v2039_v25  ;;  %v2025_v57 = vsel %vm5384_vm11, %v1951_v2, %v2024_v51  ;;  %v2028_v8 = vsel %vm5391_vm12, %v1952_v42, %v2027_v53  ;;  %v5434_v4 = vld [vmem:[#allocation2 + $0x10] sm:$0xf]  ;;  %v5441_v7 = vld [vmem:[#allocation2 + $0x14] sm:$0x1]  ;;  %v5468_v38 = vld [vmem:[#allocation2 + $0x24] sm:$0x1] }
 0x190   : > { %2038 = vst [vmem:[#allocation2 + $0x38] sm:$0xf] %v2037_v15  ;;  %2041 = vst [vmem:[#allocation2 + $0x3c] sm:$0x1] %v2040_v20  ;;  %v1972_v9 = vrot.slane %v1970_v43, 7  ;;  %v1956_v49 = vrot.slane %v1954_v45, 7 }
 0x191   : > { %2026 = vst [vmem:[#allocation2 + $0x28] sm:$0xf] %v2025_v57  ;;  %2029 = vst [vmem:[#allocation2 + $0x2c] sm:$0x1] %v2028_v8  ;;  %v2083_v52 = vshrl.u32 %v5420_v48, 16  ;;  %v2086_v3 = vshll.u32 %v5420_v48, 16 }
 0x192   : > { %v2092_v6 = vshll.u32 %v5430_v41, 16  ;;  %v2097_v18 = vshrl.u32 %v5434_v4, 16  ;;  %v2100_v56 = vshll.u32 %v5434_v4, 16  ;;  %v1975_v32 = vor.u32 %v1973_v44, %v1972_v9 }
 0x193   : > { %v1976_v59 = vrot.slane %v1972_v9, 4  ;;  %v1959_v63 = vor.u32 %v1957_v46, %v1956_v49  ;;  %v1960_v0 = vrot.slane %v1956_v49, 4  ;;  %v2085_v10 = vrot.slane %v2083_v52, 4 }
 0x194   : > { %v2088_v21 = vrot.slane %v2086_v3, 5  ;;  %v2099_v22 = vrot.slane %v2097_v18, 4  ;;  %v2043_v50 = vsel %vm5384_vm11, %v1975_v32, %v2042_v17  ;;  %v2102_v31 = vrot.slane %v2100_v56, 5  ;;  %v4832_v32 = vld [vmem:[%s5815_s3 + $0x8] sm:$0xff]  }
 0x195   : > { %v2046_v55 = vsel %vm5391_vm12, %v1976_v59, %v2045_v60  ;;  %v2031_v11 = vsel %vm5384_vm11, %v1959_v63, %v2030_v35  ;;  %v2034_v40 = vsel %vm5391_vm12, %v1960_v0, %v2033_v54  ;;  %2044 = vst [vmem:[#allocation2 + $0x40] sm:$0xf] %v2043_v50  ;;  %v2106_v33 = vshll.u32 %v5441_v7, 16 }
 0x196   : > { %2047 = vst [vmem:[#allocation2 + $0x44] sm:$0x1] %v2046_v55  ;;  %2032 = vst [vmem:[#allocation2 + $0x30] sm:$0xf] %v2031_v11  ;;  %v2089_v14 = vor.u32 %v2088_v21, %v2085_v10  ;;  %v2094_v39 = vrot.slane %v2092_v6, 5  ;;  %v2114_v23 = vshll.u32 %v5439_v1, 16  ;;  %v2103_v25 = vor.u32 %v2102_v31, %v2099_v22 }
 0x197   : > { %2035 = vst [vmem:[#allocation2 + $0x34] sm:$0x1] %v2034_v40  ;;  %v2113_v47 = vrot.slane %v2111_v62, 4  ;;  %v2120_v26 = vshll.u32 %v5451_v12, 16  ;;  %v2125_v28 = vshrl.u32 %v5455_v19, 16  ;;  %v2128_v34 = vshll.u32 %v5455_v19, 16 }
 0x198   : > { %v2090_v24 = vrot.slane %v2089_v14, 4  ;;  %v5462_v51 = vld [vmem:[#allocation2 + $0x28] sm:$0xf]  ;;  %v2116_v53 = vrot.slane %v2114_v23, 5  ;;  %v2104_v37 = vrot.slane %v2103_v25, 4  ;;  %v2108_v58 = vrot.slane %v2106_v33, 5 }
 0x199   : > { %v2139_v2 = vshrl.u32 %v5462_v51, 16  ;;  %v5471_v44 = vld [vmem:[#allocation2 + $0x2c] sm:$0x1]  ;;  %v2127_v45 = vrot.slane %v2125_v28, 4  ;;  %v2130_v46 = vrot.slane %v2128_v34, 5  ;;  %v2122_v15 = vrot.slane %v2120_v26, 5 }
 0x19a   : > { %v2095_v30 = vsel %vm4961_vm2, %v2090_v24, %v2094_v39  ;;  %v2117_v43 = vor.u32 %v2116_v53, %v2113_v47  ;;  %v2142_v57 = vshll.u32 %v5462_v51, 16  ;;  %v5474_v8 = vld [vmem:[#allocation2 + $0x38] sm:$0xf]  ;;  %v2109_v17 = vsel %vm4961_vm2, %v2104_v37, %v2108_v58  ;;  %v5493_v10 = vld [vmem:[#allocation2 + $0x3c] sm:$0x1]  ;;  %v4834_v25 = vld [vmem:[%s5815_s3 + $0x20] sm:$0xff]  }
 0x19b   : > { %v4151_v42 = vcombine.low %v2081_v29, %v2095_v30  ;;  %v2141_v20 = vrot.slane %v2139_v2, 4  ;;  %v2131_v35 = vor.u32 %v2130_v46, %v2127_v45  ;;  %v2134_v9 = vshll.u32 %v5468_v38, 16  ;;  %v2395_v2 = vld [vmem:[#allocation2] sm:$0xe]  ;;  %v4837_v45 = vld [vmem:[%s5815_s3 + $0x28] sm:$0xff]  }
 0x19c   : > { %v2118_v60 = vrot.slane %v2117_v43, 4  ;;  %v2144_v52 = vrot.slane %v2142_v57, 5  ;;  %v2148_v3 = vshll.u32 %v5471_v44, 16  ;;  %v2167_v59 = vshrl.u32 %v5474_v8, 16  ;;  %v2398_v57 = vld [vmem:[#allocation2 + $0x18] sm:$0xe] }
 0x19d   : > { %4557 = vmatprep.mubr.msk.bf16.mxu1 %vm390_vm3, %v4151_v42  ;;  %v5480_v49 = vld [vmem:[#allocation2 + $0x30] sm:$0xf]  ;;  %v2132_v56 = vrot.slane %v2131_v35, 4  ;;  %v2170_v11 = vshll.u32 %v5474_v8, 16  ;;  %v2136_v40 = vrot.slane %v2134_v9, 5  ;;  %v2176_v29 = vshll.u32 %v5493_v10, 16 }
 0x19e   : > { %v5483_v54 = vld [vmem:[#allocation2 + $0x34] sm:$0x1]  ;;  %v2153_v5 = vshrl.u32 %v5480_v49, 16  ;;  %v2156_v6 = vshll.u32 %v5480_v49, 16  ;;  %v2123_v18 = vsel %vm4961_vm2, %v2118_v60, %v2122_v15  ;;  %v2145_v0 = vor.u32 %v2144_v52, %v2141_v20  ;;  %v2396_v42 = vld [vmem:[#allocation2 + $0x8] sm:$0xe] }
 0x19f   : > { %v4152_v63 = vcombine.low %v2109_v17, %v2123_v18  ;;  %v2162_v50 = vshll.u32 %v5483_v54, 16  ;;  %v2169_v55 = vrot.slane %v2167_v59, 4  ;;  %v2150_v31 = vrot.slane %v2148_v3, 5  ;;  %v2399_v9 = vld [vmem:[#allocation2 + $0x20] sm:$0xe] }
 0x1a0   : > { %v2155_v21 = vrot.slane %v2153_v5, 4  ;;  %v2158_v22 = vrot.slane %v2156_v6, 5  ;;  %v2146_v14 = vrot.slane %v2145_v0, 4  ;;  %v2172_v62 = vrot.slane %v2170_v11, 5  ;;  %v4842_v11 = vld [vmem:[%s5815_s3 + $0x40] sm:$0xff]  }
 0x1a1   : > { %4558 = vmatmul.mubr.msk.bf16.vlgmr.msra.gmra.mrb[0].mxu1 %vm390_vm3, %v4152_v63  ;;  %v2137_v39 = vsel %vm4961_vm2, %v2132_v56, %v2136_v40  ;;  %v2164_v26 = vrot.slane %v2162_v50, 5  ;;  %v2178_v34 = vrot.slane %v2176_v29, 5  ;;  %v4161_v58 = vcombine.low %v5367_v61, %v5420_v48  ;;  %v2401_v56 = vld [vmem:[#allocation2 + $0x30] sm:$0xe]  ;;  %v2402_v63 = vld [vmem:[#allocation2 + $0x38] sm:$0xe] }
 0x1a2   : > { %v2159_v33 = vor.u32 %v2158_v22, %v2155_v21  ;;  %4566 = vmatpush3.bf16.msra.mxu1 %v5359_v36  ;;  %v2151_v23 = vsel %vm4961_vm2, %v2146_v14, %v2150_v31  ;;  %v2173_v53 = vor.u32 %v2172_v62, %v2169_v55  ;;  %v4162_v43 = vcombine.low %v5434_v4, %v5439_v1  ;;  %v4839_v4 = vld [vmem:[%s5815_s3 + $0x30] sm:$0xff]   ;;  %v2695_v14 = vld [vmem:[#allocation2 + $0x8] sm:$0xf] }
 0x1a3   : > { %4567 = vmatprep.subr.bf16.mxu1 %v4832_v32  ;;  %v4153_v47 = vcombine.low %v2137_v39, %v2151_v23  ;;  %v4163_v46 = vcombine.low %v5455_v19, %v5462_v51  ;;  %v2421_v15 = vrot.slane %v5375_v16, 5  ;;  %v2425_v61 = vrot.slane %v5430_v41, 5  ;;  %v2397_v19 = vld [vmem:[#allocation2 + $0x10] sm:$0xe]  ;;  %v2400_v41 = vld [vmem:[#allocation2 + $0x28] sm:$0xe] }
 0x1a4   : > { %v2160_v24 = vrot.slane %v2159_v33, 4  ;;  %v2174_v28 = vrot.slane %v2173_v53, 4  ;;  %v4171_v48 = vrot.slane %v2395_v2, 9  ;;  %v4172_v20 = vrot.slane %v2396_v42, 9  ;;  %v2697_v55 = vld [vmem:[#allocation2 + $0x10] sm:$0xf] }
 0x1a5   : > { %4561 = vmatprep.mubr.msk.bf16.mxu1 %vm390_vm3, %v4153_v47  ;;  %v4164_v51 = vcombine.low %v5480_v49, %v5474_v8  ;;  %v2429_v17 = vrot.slane %v5441_v7, 5  ;;  %v4173_v35 = vrot.slane %v2397_v19, 9  ;;  %v4176_v52 = vrot.slane %v2400_v41, 9  ;;  %v4841_v39 = vld [vmem:[#allocation2 + $0x8] ss:$8 sps:$4 sm:$0xff]  }
 0x1a6   : > { %v2165_v36 = vsel %vm4961_vm2, %v2160_v24, %v2164_v26  ;;  %4568 = vmatpush3.bf16.msra.mxu1 %v4832_v32  ;;  %v2179_v30 = vsel %vm4961_vm2, %v2174_v28, %v2178_v34  ;;  %v2422_v1 = vsel %vm5045_vm6, %v4171_v48, %v2421_v15  ;;  %v2426_v16 = vsel %vm5045_vm6, %v4172_v20, %v2425_v61  ;;  %v2705_v47 = vld [vmem:[#allocation2 + $0x30] sm:$0xf]  ;;  %v5566_v28 = vld [vmem:[#allocation2 + $0x14] sm:$0x1]  ;;  %v4843_v15 = vld [vmem:[#allocation2 + $0x18] ss:$8 sps:$4 sm:$0xff]  }
 0x1a7   : > { %4577 = vmatprep.subr.bf16.mxu1 %v4834_v25  ;;  %v4154_v37 = vcombine.low %v2165_v36, %v2179_v30  ;;  %v4183_v60 = vcombine.low %v2422_v1, %v2426_v16  ;;  %v2441_v3 = vrot.slane %v5471_v44, 5  ;;  %v2433_v5 = vrot.slane %v5451_v12, 5  ;;  %v4840_v44 = vld [vmem:[%s5815_s3 + $0x38] sm:$0xff]   ;;  %v4845_v61 = vld [vmem:[%s5815_s3 + $0x48] sm:$0xff]  }
 0x1a8   : > { %v4174_v6 = vrot.slane %v2398_v57, 9  ;;  %v4175_v18 = vrot.slane %v2399_v9, 9  ;;  %v2437_v8 = vrot.slane %v5468_v38, 5  ;;  %v2430_v49 = vsel %vm5045_vm6, %v4173_v35, %v2429_v17  ;;  %v2699_v36 = vld [vmem:[#allocation2 + $0x18] sm:$0xf]  ;;  %v5580_v9 = vld [vmem:[%s5815_s3 + $0x50] sm:$0xff]  }
 0x1a9   : > { %4562 = vmatmul.mubr.msk.bf16.gmra.mrb[4].mxu1 %vm390_vm3, %v4154_v37  ;;  %v2442_v7 = vsel %vm5045_vm6, %v4176_v52, %v2441_v3  ;;  %v4177_v0 = vrot.slane %v2401_v56, 9  ;;  %v2445_v21 = vrot.slane %v5483_v54, 5  ;;  %v4178_v22 = vrot.slane %v2402_v63, 9  ;;  %v2703_v37 = vld [vmem:[#allocation2 + $0x28] sm:$0xf] }
 0x1aa   : > { %4569 = vmatprep.mubr.msk.bf16.mxu1 %vm390_vm3, %v4161_v58  ;;  %v2434_v32 = vsel %vm5045_vm6, %v4174_v6, %v2433_v5  ;;  %v2438_v12 = vsel %vm5045_vm6, %v4175_v18, %v2437_v8  ;;  %v2449_v50 = vrot.slane %v5493_v10, 5  ;;  %v2726_v31 = vshrl.u32 %v2697_v55, 16  ;;  %v4844_v16 = vld [vmem:[#allocation2 + $0x28] ss:$8 sps:$4 sm:$0xff]   ;;  %v2709_v35 = vld [vmem:[#allocation2 + $0x40] sm:$0xf] }
 0x1ab   : > { %v4184_v59 = vcombine.low %v2430_v49, %v2434_v32  ;;  %v4185_v38 = vcombine.low %v2438_v12, %v2442_v7  ;;  %v2446_v40 = vsel %vm5045_vm6, %v4177_v0, %v2445_v21  ;;  %v2729_v54 = vshll.u32 %v2697_v55, 16  ;;  %v5582_v52 = vld [vmem:[#allocation2 + $0x24] sm:$0x1]  ;;  %v2707_v7 = vld [vmem:[#allocation2 + $0x38] sm:$0xf] }
 0x1ac   : > { %v2450_v33 = vsel %vm5045_vm6, %v4178_v22, %v2449_v50  ;;  %v2712_v29 = vshrl.u32 %v2695_v14, 16  ;;  %v2715_v10 = vshll.u32 %v2695_v14, 16  ;;  %v2728_v23 = vrot.slane %v2726_v31, 4  ;;  %v5584_v56 = vld [vmem:[#allocation2 + $0x1c] sm:$0x1] }
 0x1ad   : > { %v4186_v62 = vcombine.low %v2446_v40, %v2450_v33  ;;  %v2731_v24 = vrot.slane %v2729_v54, 5  ;;  %v2782_v2 = vshrl.u32 %v2705_v47, 16  ;;  %v2785_v42 = vshll.u32 %v2705_v47, 16  ;;  %v5591_v50 = vld [vmem:[#allocation2 + $0x2c] sm:$0x1] }
 0x1ae   : > { %v2714_v26 = vrot.slane %v2712_v29, 4  ;;  %v2717_v53 = vrot.slane %v2715_v10, 5  ;;  %v2735_v20 = vshll.u32 %v5566_v28, 16  ;;  %v2771_v1 = vshll.u32 %v2703_v37, 16  ;;  %v4846_v40 = vld [vmem:[#allocation2 + $0x38] ss:$8 sps:$4 sm:$0xff]  }
 0x1af   : > { %v2732_v58 = vor.u32 %v2731_v24, %v2728_v23  ;;  %v2784_v17 = vrot.slane %v2782_v2, 4  ;;  %v2810_v12 = vshrl.u32 %v2709_v35, 16  ;;  %v2763_v22 = vshll.u32 %v5582_v52, 16 }
 0x1b0   : > { %v2718_v48 = vor.u32 %v2717_v53, %v2714_v26  ;;  %v2737_v18 = vrot.slane %v2735_v20, 5  ;;  %v2773_v49 = vrot.slane %v2771_v1, 5  ;;  %v2796_v55 = vshrl.u32 %v2707_v7, 16  ;;  %v2938_v20 = vld [vmem:[#allocation2 + $0x10] sm:$0xe] }
 0x1b1   : > { %4570 = vmatmul.mubr.msk.bf16.vlgmr.msra.gmra.mrb[0].mxu1 %vm390_vm3, %v4162_v43  ;;  %v5568_v43 = vld [vmem:[#allocation2 + $0xc] sm:$0x1]  ;;  %v2733_v57 = vrot.slane %v2732_v58, 4  ;;  %v2749_v31 = vshll.u32 %v5584_v56, 16  ;;  %v2812_v10 = vrot.slane %v2810_v12, 4  ;;  %v2777_v23 = vshll.u32 %v5591_v50, 16 }
 0x1b2   : > { %4578 = vmatpush3.bf16.msra.mxu1 %v4834_v25  ;;  %4573 = vmatprep.mubr.msk.bf16.mxu1 %vm390_vm3, %v4163_v46  ;;  %v2701_v25 = vld [vmem:[#allocation2 + $0x20] sm:$0xf]  ;;  %v2743_v46 = vshll.u32 %v2699_v36, 16  ;;  %v2719_v6 = vrot.slane %v2718_v48, 4  ;;  %v2765_v47 = vrot.slane %v2763_v22, 5  ;;  %v2798_v26 = vrot.slane %v2796_v55, 4 }
 0x1b3   : > { %4579 = vmatprep.subr.bf16.mxu1 %v4837_v45  ;;  %v2754_v34 = vshrl.u32 %v2701_v25, 16  ;;  %v2757_v30 = vshll.u32 %v2701_v25, 16 }
 0x1b4   : > { %v2745_v5 = vrot.slane %v2743_v46, 5  ;;  %v5607_v46 = vld [vmem:[#allocation2 + $0x3c] sm:$0x1] }
 0x1b5   : > { %v2756_v19 = vrot.slane %v2754_v34, 4  ;;  %v2759_v41 = vrot.slane %v2757_v30, 5  ;;  %v5601_v30 = vld [vmem:[#allocation2 + $0x44] sm:$0x1] }
 0x1b6   : > { %4580 = vmatpush3.bf16.msra.mxu1 %v4837_v45  ;;  %v2740_v45 = vshrl.u32 %v2699_v36, 16  ;;  %v2819_v48 = vshll.u32 %v5601_v30, 16 }
 0x1b7   : > { %4589 = vmatprep.subr.bf16.mxu1 %v4839_v4  ;;  %v2760_v32 = vor.u32 %v2759_v41, %v2756_v19  ;;  %v2805_v41 = vshll.u32 %v5607_v46, 16 }
 0x1b8   : > { %v2742_v3 = vrot.slane %v2740_v45, 4 }
 0x1b9   : > { %4574 = vmatmul.mubr.msk.bf16.gmra.mrb[4].mxu1 %vm390_vm3, %v4164_v51  ;;  %v2721_v51 = vshll.u32 %v5568_v43, 16  ;;  %v2761_v29 = vrot.slane %v2760_v32, 4  ;;  %v2942_v32 = vld [vmem:[#allocation2 + $0x30] sm:$0xe] }
 0x1ba   : > { %4581 = vmatprep.mubr.msk.bf16.mxu1 %vm390_vm3, %v4183_v60  ;;  %v2787_v60 = vrot.slane %v2785_v42, 5  ;;  %v2746_v21 = vor.u32 %v2745_v5, %v2742_v3  ;;  %v2779_v42 = vrot.slane %v2777_v23, 5  ;;  %v2821_v3 = vrot.slane %v2819_v48, 5  ;;  %v3246_v48 = vld [vmem:[#allocation2 + $0x30] sm:$0xf] }
 0x1bb   : > { %v2723_v63 = vrot.slane %v2721_v51, 5  ;;  %v2766_v58 = vsel %vm4961_vm2, %v2761_v29, %v2765_v47  ;;  %v4226_v22 = vrot.slane %v2942_v32, 9  ;;  %v2991_v23 = vrot.slane %v5601_v30, 5  ;;  %v3238_v47 = vld [vmem:[#allocation2 + $0x10] sm:$0xf] }
 0x1bc   : > { %v2788_v0 = vor.u32 %v2787_v60, %v2784_v17  ;;  %v2747_v25 = vrot.slane %v2746_v21, 4  ;;  %v4222_v17 = vrot.slane %v2938_v20, 9  ;;  %v2967_v60 = vrot.slane %v5566_v28, 5  ;;  %v2941_v21 = vld [vmem:[#allocation2 + $0x28] sm:$0xe] }
 0x1bd   : > { %v2724_v14 = vsel %vm4961_vm2, %v2719_v6, %v2723_v63  ;;  %v2963_v6 = vrot.slane %v5568_v43, 5  ;;  %v3258_v30 = vshll.u32 %v3238_v47, 16  ;;  %v4854_v32 = vld [vmem:[#allocation2 + $0x30] ss:$8 sps:$4 sm:$0xff]  }
 0x1be   : > { %v2789_v24 = vrot.slane %v2788_v0, 4  ;;  %v2968_v28 = vsel %vm5045_vm6, %v4222_v17, %v2967_v60  ;;  %v2975_v0 = vrot.slane %v5582_v52, 5  ;;  %v3311_v17 = vshrl.u32 %v3246_v48, 16 }
 0x1bf   : > { %v3314_v60 = vshll.u32 %v3246_v48, 16 }
 0x1c1   : > { %4582 = vmatmul.mubr.msk.bf16.vlgmr.msra.gmra.mrb[0].mxu1 %vm390_vm3, %v4184_v59  ;;  %v5586_v59 = vld [vmem:[#allocation2 + $0x34] sm:$0x1] }
 0x1c2   : > { %4590 = vmatpush3.bf16.msra.mxu1 %v4839_v4  ;;  %4585 = vmatprep.mubr.msk.bf16.mxu1 %vm390_vm3, %v4185_v38  ;;  %v2768_v4 = vshrl.u32 %v2703_v37, 16  ;;  %v2738_v38 = vsel %vm4961_vm2, %v2733_v57, %v2737_v18  ;;  %v2791_v33 = vshll.u32 %v5586_v59, 16  ;;  %v2751_v37 = vrot.slane %v2749_v31, 5  ;;  %v2937_v57 = vld [vmem:[#allocation2 + $0x8] sm:$0xe]  ;;  %v4849_v18 = vld [vmem:[%s5815_s3 + $0x60] sm:$0xff]  }
 0x1c3   : > { %4591 = vmatprep.subr.bf16.mxu1 %v4840_v44  ;;  %v4221_v5 = vrot.slane %v2937_v57, 9  ;;  %v2983_v55 = vrot.slane %v5586_v59, 5  ;;  %v2979_v31 = vrot.slane %v5591_v50, 5 }
 0x1c4   : > { %v2770_v8 = vrot.slane %v2768_v4, 4  ;;  %v2793_v34 = vrot.slane %v2791_v33, 5  ;;  %v2944_v33 = vld [vmem:[#allocation2 + $0x40] sm:$0xe] }
 0x1c5   : > { %v2964_v43 = vsel %vm5045_vm6, %v4221_v5, %v2963_v6  ;;  %v2984_v52 = vsel %vm5045_vm6, %v4226_v22, %v2983_v55  ;;  %v3252_v6 = vld [vmem:[#allocation2 + $0x48] sm:$0xf]  ;;  %v5678_v22 = vld [vmem:[%s5815_s3 + $0x80] sm:$0xff]  }
 0x1c6   : > { %4592 = vmatpush3.bf16.msra.mxu1 %v4840_v44  ;;  %v2813_v44 = vshll.u32 %v2709_v35, 16  ;;  %v2774_v54 = vor.u32 %v2773_v49, %v2770_v8  ;;  %v2794_v45 = vsel %vm4961_vm2, %v2789_v24, %v2793_v34  ;;  %v2807_v8 = vrot.slane %v2805_v41, 5 }
 0x1c7   : > { %4601 = vmatprep.subr.bf16.mxu1 %v4842_v11  ;;  %v4233_v63 = vcombine.low %v2964_v43, %v2968_v28  ;;  %v3255_v34 = vshrl.u32 %v3238_v47, 16 }
 0x1c8   : > { %v2775_v36 = vrot.slane %v2774_v54, 4 }
 0x1c9   : > { %4586 = vmatmul.mubr.msk.bf16.gmra.mrb[4].mxu1 %vm390_vm3, %v4186_v62  ;;  %v4211_v62 = vcombine.low %v2724_v14, %v2738_v38  ;;  %v4225_v14 = vrot.slane %v2941_v21, 9  ;;  %v3250_v21 = vld [vmem:[#allocation2 + $0x40] sm:$0xf] }
 0x1ca   : > { %4593 = vmatprep.mubr.msk.bf16.mxu1 %vm390_vm3, %v4841_v39  ;;  %v2815_v39 = vrot.slane %v2813_v44, 5  ;;  %v2780_v1 = vsel %vm4961_vm2, %v2775_v36, %v2779_v42  ;;  %v2939_v44 = vld [vmem:[#allocation2 + $0x18] sm:$0xe] }
 0x1cb   : > { %v4213_v19 = vcombine.low %v2780_v1, %v2794_v45  ;;  %v2980_v59 = vsel %vm5045_vm6, %v4225_v14, %v2979_v31  ;;  %v3240_v36 = vld [vmem:[#allocation2 + $0x18] sm:$0xf]  ;;  %v3242_v1 = vld [vmem:[#allocation2 + $0x20] sm:$0xf]  ;;  %v3356_v14 = vshll.u32 %v3252_v6, 16 }
 0x1cc   : > { %v2816_v2 = vor.u32 %v2815_v39, %v2812_v10  ;;  %v2943_v10 = vld [vmem:[#allocation2 + $0x38] sm:$0xe]  ;;  %v4235_v50 = vcombine.low %v2980_v59, %v2984_v52  ;;  %v4228_v39 = vrot.slane %v2944_v33, 9  ;;  %v3272_v42 = vshll.u32 %v3240_v36, 16  ;;  %v5680_v52 = vld [vmem:[#allocation2 + $0x2c] sm:$0x1] }
 0x1cd   : > { %v4227_v24 = vrot.slane %v2943_v10, 9  ;;  %v4851_v45 = vld [vmem:[#allocation2 + $0x10] ss:$8 sps:$4 sm:$0xff]   ;;  %v3286_v5 = vshll.u32 %v3242_v1, 16  ;;  %v3339_v10 = vshrl.u32 %v3250_v21, 16  ;;  %v3306_v47 = vshll.u32 %v5680_v52, 16 }
 0x1ce   : > { %v2817_v51 = vrot.slane %v2816_v2, 4  ;;  %v3269_v2 = vshrl.u32 %v3240_v36, 16  ;;  %v3358_v36 = vrot.slane %v3356_v14, 5 }
 0x1d0   : > { %v2822_v49 = vsel %vm4961_vm2, %v2817_v51, %v2821_v3  ;;  %v3271_v20 = vrot.slane %v3269_v2, 4  ;;  %v3248_v51 = vld [vmem:[#allocation2 + $0x38] sm:$0xf]  ;;  %v3283_v3 = vshrl.u32 %v3242_v1, 16 }
 0x1d1   : > { %4594 = vmatmul.mubr.msk.bf16.vlgmr.msra.gmra.mrb[0].mxu1 %vm390_vm3, %v4843_v15  ;;  %v2752_v15 = vsel %vm4961_vm2, %v2747_v25, %v2751_v37  ;;  %v2987_v25 = vrot.slane %v5607_v46, 5  ;;  %v3257_v46 = vrot.slane %v3255_v34, 4  ;;  %v4856_v34 = vld [vmem:[#allocation2 + $0x40] ss:$8 sps:$4 sm:$0xff]  }
 0x1d2   : > { %4602 = vmatpush3.bf16.msra.mxu1 %v4842_v11  ;;  %4597 = vmatprep.mubr.msk.bf16.mxu1 %vm390_vm3, %v4844_v16  ;;  %v2799_v11 = vshll.u32 %v2707_v7, 16  ;;  %v4212_v4 = vcombine.low %v2752_v15, %v2766_v58  ;;  %v4848_v16 = vld [vmem:[%s5815_s3 + $0x58] sm:$0xff]   ;;  %v3260_v15 = vrot.slane %v3258_v30, 5  ;;  %v3285_v55 = vrot.slane %v3283_v3, 4 }
 0x1d3   : > { %4603 = vmatprep.subr.bf16.mxu1 %v4845_v61  ;;  %v2988_v37 = vsel %vm5045_vm6, %v4227_v24, %v2987_v25 }
 0x1d4   : > { %v2801_v53 = vrot.slane %v2799_v11, 5  ;;  %v4223_v11 = vrot.slane %v2939_v44, 9  ;;  %v3261_v57 = vor.u32 %v3260_v15, %v3257_v46  ;;  %v3341_v46 = vrot.slane %v3339_v10, 4 }
 0x1d6   : > { %4604 = vmatpush3.bf16.msra.mxu1 %v4845_v61  ;;  %v2802_v61 = vor.u32 %v2801_v53, %v2798_v26  ;;  %v4852_v26 = vld [vmem:[%s5815_s3 + $0x70] sm:$0xff]   ;;  %v2992_v53 = vsel %vm5045_vm6, %v4228_v39, %v2991_v23  ;;  %v3262_v44 = vrot.slane %v3261_v57, 4 }
 0x1d7   : > { %4613 = vmatprep.subr.bf16.mxu1 %v5580_v9  ;;  %v4236_v58 = vcombine.low %v2988_v37, %v2992_v53 }
 0x1d8   : > { %v2803_v35 = vrot.slane %v2802_v61, 4  ;;  %v3244_v61 = vld [vmem:[#allocation2 + $0x28] sm:$0xf] }
 0x1d9   : > { %4598 = vmatmul.mubr.msk.bf16.gmra.mrb[4].mxu1 %vm390_vm3, %v4846_v40  ;;  %v2971_v40 = vrot.slane %v5584_v56, 5  ;;  %v4850_v56 = vld [vmem:[%s5815_s3 + $0x68] sm:$0xff]   ;;  %v3300_v41 = vshll.u32 %v3244_v61, 16 }
 0x1da   : > { %4605 = vmatprep.mubr.msk.bf16.mxu1 %vm390_vm3, %v4211_v62  ;;  %v2808_v7 = vsel %vm4961_vm2, %v2803_v35, %v2807_v8  ;;  %v5666_v35 = vld [vmem:[#allocation2 + $0x1c] sm:$0x1] }
 0x1db   : > { %v4214_v12 = vcombine.low %v2808_v7, %v2822_v49  ;;  %v2972_v62 = vsel %vm5045_vm6, %v4223_v11, %v2971_v40  ;;  %v4855_v8 = vld [vmem:[%s5815_s3 + $0x78] sm:$0xff]   ;;  %v3328_v7 = vshll.u32 %v3248_v51, 16  ;;  %v3302_v43 = vrot.slane %v3300_v41, 5  ;;  %v5699_v41 = vld [vmem:[#allocation2 + $0x44] sm:$0x1] }
 0x1dc   : > { %v3288_v11 = vrot.slane %v3286_v5, 5  ;;  %v3353_v40 = vshrl.u32 %v3252_v6, 16 }
 0x1de   : > { %v3289_v25 = vor.u32 %v3288_v11, %v3285_v55  ;;  %v3355_v53 = vrot.slane %v3353_v40, 4  ;;  %v3510_v40 = vrot.slane %v5666_v35, 5 }
 0x1e0   : > { %v3359_v57 = vor.u32 %v3358_v36, %v3355_v53 }
 0x1e1   : > { %4606 = vmatmul.mubr.msk.bf16.vlgmr.msra.gmra.mrb[0].mxu1 %vm390_vm3, %v4212_v4  ;;  %v3274_v4 = vrot.slane %v3272_v42, 5 }
 0x1e2   : > { %4614 = vmatpush3.bf16.msra.mxu1 %v5580_v9  ;;  %4609 = vmatprep.mubr.msk.bf16.mxu1 %vm390_vm3, %v4213_v19  ;;  %v2940_v9 = vld [vmem:[#allocation2 + $0x20] sm:$0xe]  ;;  %v3297_v19 = vshrl.u32 %v3244_v61, 16 }
 0x1e3   : > { %4615 = vmatprep.subr.bf16.mxu1 %v4848_v16  ;;  %v4224_v38 = vrot.slane %v2940_v9, 9  ;;  %v3275_v28 = vor.u32 %v3274_v4, %v3271_v20  ;;  %v3325_v9 = vshrl.u32 %v3248_v51, 16  ;;  %v3290_v20 = vrot.slane %v3289_v25, 4  ;;  %v5701_v51 = vld [vmem:[#allocation2 + $0x4c] sm:$0x1] }
 0x1e4   : > { %v3308_v4 = vrot.slane %v3306_v47, 5  ;;  %v3362_v5 = vshll.u32 %v5701_v51, 16 }
 0x1e5   : > { %v2976_v54 = vsel %vm5045_vm6, %v4224_v38, %v2975_v0  ;;  %v3313_v38 = vrot.slane %v3311_v17, 4  ;;  %v3316_v0 = vrot.slane %v3314_v60, 5  ;;  %v3327_v33 = vrot.slane %v3325_v9, 4 }
 0x1e6   : > { %4616 = vmatpush3.bf16.msra.mxu1 %v4848_v16  ;;  %v4234_v29 = vcombine.low %v2972_v62, %v2976_v54  ;;  %v5664_v16 = vld [vmem:[#allocation2 + $0x14] sm:$0x1]  ;;  %v3276_v54 = vrot.slane %v3275_v28, 4  ;;  %v3330_v62 = vrot.slane %v3328_v7, 5  ;;  %v3480_v28 = vld [vmem:[#allocation2 + $0x10] sm:$0xe] }
 0x1e7   : > { %4625 = vmatprep.subr.bf16.mxu1 %v4849_v18  ;;  %v3264_v49 = vshll.u32 %v5664_v16, 16  ;;  %v3317_v24 = vor.u32 %v3316_v0, %v3313_v38  ;;  %v3481_v38 = vld [vmem:[#allocation2 + $0x18] sm:$0xe]  ;;  %v4271_v0 = vrot.slane %v3480_v28, 9 }
 0x1e8   : > { %v3331_v2 = vor.u32 %v3330_v62, %v3327_v33  ;;  %v4272_v11 = vrot.slane %v3481_v38, 9  ;;  %v3483_v33 = vld [vmem:[#allocation2 + $0x28] sm:$0xe] }
 0x1e9   : > { %4610 = vmatmul.mubr.msk.bf16.gmra.mrb[4].mxu1 %vm390_vm3, %v4214_v12  ;;  %v3299_v12 = vrot.slane %v3297_v19, 4  ;;  %v3266_v31 = vrot.slane %v3264_v49, 5  ;;  %v3318_v61 = vrot.slane %v3317_v24, 4  ;;  %v3348_v49 = vshll.u32 %v5699_v41, 16 }
 0x1ea   : > { %4617 = vmatprep.mubr.msk.bf16.mxu1 %vm390_vm3, %v4233_v63  ;;  %v3278_v63 = vshll.u32 %v5666_v35, 16  ;;  %v3332_v19 = vrot.slane %v3331_v2, 4  ;;  %v3511_v62 = vsel %vm5045_vm6, %v4272_v11, %v3510_v40  ;;  %v3518_v35 = vrot.slane %v5680_v52, 5  ;;  %v4296_v11 = vld [vmem:[%s4923_s29 + $0x14] sm:$0x1] }
 0x1eb   : > { %v3303_v59 = vor.u32 %v3302_v43, %v3299_v12  ;;  %v3267_v39 = vsel %vm4961_vm2, %v3262_v44, %v3266_v31  ;;  %v3360_v44 = vrot.slane %v3359_v57, 4  ;;  %v3350_v55 = vrot.slane %v3348_v49, 5 }
 0x1ec   : > { %v3280_v23 = vrot.slane %v3278_v63, 5  ;;  %v3364_v63 = vrot.slane %v3362_v5, 5 }
 0x1ee   : > { %v3281_v30 = vsel %vm4961_vm2, %v3276_v54, %v3280_v23  ;;  %v3365_v31 = vsel %vm4961_vm2, %v3360_v44, %v3364_v63  ;;  %v4301_v44 = vld [vmem:[%s4923_s29 + $0x28] sm:$0xf]  ;;  %v4300_v63 = vld [vmem:[%s4923_s29 + $0x24] sm:$0x1] }
 0x1ef   : > { %v4261_v42 = vcombine.low %v3267_v39, %v3281_v30  ;;  %v3485_v39 = vld [vmem:[#allocation2 + $0x38] sm:$0xe]  ;;  %v3487_v30 = vld [vmem:[#allocation2 + $0x48] sm:$0xe] }
 0x1f0   : > { %v4276_v53 = vrot.slane %v3485_v39, 9  ;;  %v4278_v2 = vrot.slane %v3487_v30, 9  ;;  %v3690_v39 = vshll.u32 %v4296_v11, 16 }
 0x1f1   : > { %4618 = vmatmul.mubr.msk.bf16.vlgmr.msra.gmra.mrb[0].mxu1 %vm390_vm3, %v4234_v29  ;;  %v5682_v29 = vld [vmem:[#allocation2 + $0x24] sm:$0x1] }
 0x1f2   : > { %4626 = vmatpush3.bf16.msra.mxu1 %v4849_v18  ;;  %4621 = vmatprep.mubr.msk.bf16.mxu1 %vm390_vm3, %v4235_v50  ;;  %v4853_v18 = vld [vmem:[#allocation2 + $0x20] ss:$8 sps:$4 sm:$0xff]   ;;  %v3342_v50 = vshll.u32 %v3250_v21, 16  ;;  %v3292_v37 = vshll.u32 %v5682_v29, 16  ;;  %v3506_v21 = vrot.slane %v5664_v16, 5  ;;  %v3514_v47 = vrot.slane %v5682_v29, 5 }
 0x1f3   : > { %4627 = vmatprep.subr.bf16.mxu1 %v4850_v56  ;;  %v3484_v16 = vld [vmem:[#allocation2 + $0x30] sm:$0xe] }
 0x1f4   : > { %v3344_v15 = vrot.slane %v3342_v50, 5  ;;  %v3294_v17 = vrot.slane %v3292_v37, 5  ;;  %v3507_v54 = vsel %vm5045_vm6, %v4271_v0, %v3506_v21  ;;  %v4274_v50 = vrot.slane %v3483_v33, 9  ;;  %v3486_v37 = vld [vmem:[#allocation2 + $0x40] sm:$0xe] }
 0x1f5   : > { %v4283_v10 = vcombine.low %v3507_v54, %v3511_v62  ;;  %v4275_v23 = vrot.slane %v3484_v16, 9  ;;  %v4307_v21 = vld [vmem:[%s4923_s29 + $0x40] sm:$0xf]  ;;  %v3723_v16 = vshrl.u32 %v4301_v44, 16 }
 0x1f6   : > { %4628 = vmatpush3.bf16.msra.mxu1 %v4850_v56  ;;  %v5684_v56 = vld [vmem:[#allocation2 + $0x34] sm:$0x1]  ;;  %v3345_v3 = vor.u32 %v3344_v15, %v3341_v46  ;;  %v3534_v46 = vrot.slane %v5701_v51, 5  ;;  %v4295_v51 = vld [vmem:[%s4923_s29 + $0x10] sm:$0xf] }
 0x1f7   : > { %4637 = vmatprep.subr.bf16.mxu1 %v4852_v26  ;;  %v3522_v24 = vrot.slane %v5684_v56, 5  ;;  %v3681_v13 = vshrl.u32 %v4295_v51, 16 }
 0x1f8   : > { %v3346_v43 = vrot.slane %v3345_v3, 4 }
 0x1f9   : > { %4622 = vmatmul.mubr.msk.bf16.gmra.mrb[4].mxu1 %vm390_vm3, %v4236_v58  ;;  %v3320_v58 = vshll.u32 %v5684_v56, 16  ;;  %v3523_v52 = vsel %vm5045_vm6, %v4275_v23, %v3522_v24  ;;  %v3683_v38 = vrot.slane %v3681_v13, 4 }
 0x1fa   : > { %4629 = vmatprep.mubr.msk.bf16.mxu1 %vm390_vm3, %v4851_v45  ;;  %v3304_v45 = vrot.slane %v3303_v59, 4  ;;  %v3351_v14 = vsel %vm4961_vm2, %v3346_v43, %v3350_v55  ;;  %v3482_v59 = vld [vmem:[#allocation2 + $0x20] sm:$0xe] }
 0x1fb   : > { %v3322_v1 = vrot.slane %v3320_v58, 5  ;;  %v4273_v25 = vrot.slane %v3482_v59, 9  ;;  %v3718_v59 = vshll.u32 %v4300_v63, 16 }
 0x1fc   : > { %v3309_v60 = vsel %vm4961_vm2, %v3304_v45, %v3308_v4  ;;  %v3530_v45 = vrot.slane %v5699_v41, 5  ;;  %v4293_v4 = vld [vmem:[%s4923_s29 + $0x8] sm:$0xf] }
 0x1fd   : > { %v3323_v6 = vsel %vm4961_vm2, %v3318_v61, %v3322_v1  ;;  %v3515_v56 = vsel %vm5045_vm6, %v4273_v25, %v3514_v47  ;;  %v3535_v61 = vsel %vm5045_vm6, %v4278_v2, %v3534_v46  ;;  %v4299_v1 = vld [vmem:[%s4923_s29 + $0x20] sm:$0xf]  ;;  %v3667_v57 = vshrl.u32 %v4293_v4, 16  ;;  %v4302_v2 = vld [vmem:[%s4923_s29 + $0x2c] sm:$0x1] }
 0x1fe   : > { %v3709_v3 = vshrl.u32 %v4299_v1, 16  ;;  %v3712_v5 = vshll.u32 %v4299_v1, 16  ;;  %v3692_v46 = vrot.slane %v3690_v39, 5 }
 0x1ff   : > { %v3669_v28 = vrot.slane %v3667_v57, 4  ;;  %v3732_v57 = vshll.u32 %v4302_v2, 16 }
 0x200   : > { %v3714_v43 = vrot.slane %v3712_v5, 5 }
 0x201   : > { %4630 = vmatmul.mubr.msk.bf16.vlgmr.msra.gmra.mrb[0].mxu1 %vm390_vm3, %v4853_v18  ;;  %v3734_v63 = vrot.slane %v3732_v57, 5 }
 0x202   : > { %4638 = vmatpush3.bf16.msra.mxu1 %v4852_v26  ;;  %4633 = vmatprep.mubr.msk.bf16.mxu1 %vm390_vm3, %v4854_v32  ;;  %v5689_v26 = vld [vmem:[#allocation2 + $0x3c] sm:$0x1]  ;;  %v4858_v32 = vld [vmem:[%s5815_s3 + $0x88] sm:$0xff]  }
 0x203   : > { %4639 = vmatprep.subr.bf16.mxu1 %v4855_v8  ;;  %v3334_v48 = vshll.u32 %v5689_v26, 16  ;;  %v3526_v36 = vrot.slane %v5689_v26, 5 }
 0x205   : > { %v3336_v18 = vrot.slane %v3334_v48, 5  ;;  %v3527_v29 = vsel %vm5045_vm6, %v4276_v53, %v3526_v36 }
 0x206   : > { %4640 = vmatpush3.bf16.msra.mxu1 %v4855_v8  ;;  %v3295_v8 = vsel %vm4961_vm2, %v3290_v20, %v3294_v17  ;;  %v4285_v26 = vcombine.low %v3523_v52, %v3527_v29  ;;  %v4297_v20 = vld [vmem:[%s4923_s29 + $0x18] sm:$0xf]  ;;  %v3670_v17 = vshll.u32 %v4293_v4, 16  ;;  %v4306_v52 = vld [vmem:[%s4923_s29 + $0x3c] sm:$0x1]  ;;  %v3720_v29 = vrot.slane %v3718_v59, 5 }
 0x207   : > { %4649 = vmatprep.subr.bf16.mxu1 %v5678_v22  ;;  %v4262_v9 = vcombine.low %v3295_v8, %v3309_v60  ;;  %v3337_v7 = vsel %vm4961_vm2, %v3332_v19, %v3336_v18  ;;  %v3695_v19 = vshrl.u32 %v4297_v20, 16  ;;  %v3698_v41 = vshll.u32 %v4297_v20, 16  ;;  %v4298_v60 = vld [vmem:[%s4923_s29 + $0x1c] sm:$0x1] }
 0x208   : > { %v4263_v12 = vcombine.low %v3323_v6, %v3337_v7  ;;  %v3684_v6 = vshll.u32 %v4295_v51, 16  ;;  %v3704_v49 = vshll.u32 %v4298_v60, 16  ;;  %v4305_v7 = vld [vmem:[%s4923_s29 + $0x38] sm:$0xf]  ;;  %v3760_v1 = vshll.u32 %v4306_v52, 16 }
 0x209   : > { %4634 = vmatmul.mubr.msk.bf16.gmra.mrb[4].mxu1 %vm390_vm3, %v4856_v34  ;;  %v3519_v34 = vsel %vm5045_vm6, %v4274_v50, %v3518_v35  ;;  %v3697_v18 = vrot.slane %v3695_v19, 4  ;;  %v3700_v8 = vrot.slane %v3698_v41, 5  ;;  %v3751_v40 = vshrl.u32 %v4305_v7, 16  ;;  %v4304_v19 = vld [vmem:[%s4923_s29 + $0x34] sm:$0x1] }
 0x20a   : > { %4641 = vmatprep.mubr.msk.bf16.mxu1 %vm390_vm3, %v4261_v42  ;;  %v4284_v58 = vcombine.low %v3515_v56, %v3519_v34  ;;  %v4277_v42 = vrot.slane %v3486_v37, 9  ;;  %v3686_v0 = vrot.slane %v3684_v6, 5  ;;  %v3768_v50 = vshll.u32 %v4307_v21, 16 }
 0x20b   : > { %v3701_v55 = vor.u32 %v3700_v8, %v3697_v18  ;;  %v3706_v47 = vrot.slane %v3704_v49, 5  ;;  %v3753_v53 = vrot.slane %v3751_v40, 4  ;;  %v3725_v37 = vrot.slane %v3723_v16, 4 }
 0x20c   : > { %v3531_v15 = vsel %vm5045_vm6, %v4277_v42, %v3530_v45  ;;  %v3687_v35 = vor.u32 %v3686_v0, %v3683_v38  ;;  %v3770_v42 = vrot.slane %v3768_v50, 5  ;;  %v3746_v8 = vshll.u32 %v4304_v19, 16 }
 0x20d   : > { %v4286_v48 = vcombine.low %v3531_v15, %v3535_v61  ;;  %v3702_v25 = vrot.slane %v3701_v55, 4  ;;  %v4308_v15 = vld [vmem:[%s4923_s29 + $0x44] sm:$0x1] }
 0x20e   : > { %v3688_v45 = vrot.slane %v3687_v35, 4  ;;  %v3774_v5 = vshll.u32 %v4308_v15, 16 }
 0x20f   : > { %v3707_v20 = vsel %vm4961_vm2, %v3702_v25, %v3706_v47 }
 0x210   : > { %v3788_v13 = vunpack.c.l.bf16 %v3707_v20  ;;  %v3693_v6 = vsel %vm4961_vm2, %v3688_v45, %v3692_v46  ;;  %v3776_v11 = vrot.slane %v3774_v5, 5 }
 0x211   : > { %4642 = vmatmul.mubr.msk.bf16.vlgmr.msra.gmra.mrb[0].mxu1 %vm390_vm3, %v4262_v9  ;;  %v3672_v9 = vrot.slane %v3670_v17, 5  ;;  %v4309_v17 = vld [vmem:[%s5816_s4] ss:$0 sm:$0xff] }
 0x212   : > { %4650 = vmatpush3.bf16.msra.mxu1 %v5678_v22  ;;  %4645 = vmatprep.mubr.msk.bf16.mxu1 %vm390_vm3, %v4263_v12  ;;  %v4264_v22 = vcombine.low %v3351_v14, %v3365_v31  ;;  %v3711_v12 = vrot.slane %v3709_v3, 4  ;;  %v3754_v14 = vshll.u32 %v4305_v7, 16  ;;  %v4303_v31 = vld [vmem:[%s4923_s29 + $0x30] sm:$0xf]  ;;  %v3762_v7 = vrot.slane %v3760_v1, 5 }
 0x213   : > { %4651 = vmatprep.subr.bf16.mxu1 %v4858_v32  ;;  %v3673_v54 = vor.u32 %v3672_v9, %v3669_v28  ;;  %v3737_v23 = vshrl.u32 %v4303_v31, 16  ;;  %v3740_v24 = vshll.u32 %v4303_v31, 16 }
 0x214   : > { %v3715_v62 = vor.u32 %v3714_v43, %v3711_v12  ;;  %v3756_v36 = vrot.slane %v3754_v14, 5 }
 0x215   : > { %v3674_v34 = vrot.slane %v3673_v54, 4  ;;  %v3739_v61 = vrot.slane %v3737_v23, 4 }
 0x216   : > { %4652 = vmatpush3.bf16.msra.mxu1 %v4858_v32  ;;  %v4294_v32 = vld [vmem:[%s4923_s29 + $0xc] sm:$0x1]  ;;  %v3757_v4 = vor.u32 %v3756_v36, %v3753_v53  ;;  %s4320_s29 = sshll.u32 %s5827_s19, 5 }
 0x217   : > { %v3676_v33 = vshll.u32 %v4294_v32, 16  ;;  %s5787_s11 = scalar_lea.vmem %s5817_s5, %s4320_s29 }
 0x218   : > { %v3758_v9 = vrot.slane %v3757_v4, 4 }
 0x219   : > { %4646 = vmatmul.mubr.msk.bf16.gmra.mrb[4].mxu1 %vm390_vm3, %v4264_v22  ;;  %v3726_v22 = vshll.u32 %v4301_v44, 16  ;;  %v3678_v30 = vrot.slane %v3676_v33, 5  ;;  %v3748_v33 = vrot.slane %v3746_v8, 5 }
 0x21a   : > { %4653 = vmatprep.mubr.msk.bf16.mxu1 %vm390_vm3, %v4283_v10  ;;  %v3765_v10 = vshrl.u32 %v4307_v21, 16  ;;  %v3787_v21 = vunpack.c.l.bf16 %v3693_v6 }
 0x21b   : > { %v3728_v56 = vrot.slane %v3726_v22, 5  ;;  %v3679_v41 = vsel %vm4961_vm2, %v3674_v34, %v3678_v30 }
 0x21c   : > { %v3786_v28 = vunpack.c.l.bf16 %v3679_v41 }
 0x21d   : > { %v3729_v51 = vor.u32 %v3728_v56, %v3725_v37 }
 0x21f   : > { %v3730_v44 = vrot.slane %v3729_v51, 4 }
 0x221   : > { %4654 = vmatmul.mubr.msk.bf16.vlgmr.msra.gmra.mrb[0].mxu1 %vm390_vm3, %v4284_v58  ;;  %v3716_v58 = vrot.slane %v3715_v62, 4  ;;  %v3763_v62 = vsel %vm4961_vm2, %v3758_v9, %v3762_v7  ;;  %v3735_v50 = vsel %vm4961_vm2, %v3730_v44, %v3734_v63 }
 0x222   : > { %4657 = vmatprep.mubr.msk.bf16.mxu1 %vm390_vm3, %v4285_v26  ;;  %v3767_v26 = vrot.slane %v3765_v10, 4  ;;  %v3792_v47 = vunpack.c.l.bf16 %v3763_v62  ;;  %v3790_v52 = vunpack.c.l.bf16 %v3735_v50 }
 0x223   : > { %v3721_v60 = vsel %vm4961_vm2, %v3716_v58, %v3720_v29 }
 0x224   : > { %v3771_v3 = vor.u32 %v3770_v42, %v3767_v26  ;;  %v3789_v43 = vunpack.c.l.bf16 %v3721_v60 }
 0x226   : > { %v3772_v55 = vrot.slane %v3771_v3, 4 }
 0x228   : > { %v3777_v23 = vsel %vm4961_vm2, %v3772_v55, %v3776_v11 }
 0x229   : > { %4658 = vmatmul.mubr.msk.bf16.gmra.mrb[4].mxu1 %vm390_vm3, %v4286_v48  ;;  %v3742_v48 = vrot.slane %v3740_v24, 5  ;;  %v3793_v29 = vunpack.c.l.bf16 %v3777_v23 }
 0x22b   : > { %v3743_v18 = vor.u32 %v3742_v48, %v3739_v61 }
 0x22d   : > { %v3744_v54 = vrot.slane %v3743_v18, 4 }
 0x22f   : > { %v3749_v53 = vsel %vm4961_vm2, %v3744_v54, %v3748_v33 }
 0x230   : > { %v3791_v45 = vunpack.c.l.bf16 %v3749_v53 }
 0x2f4   : > { %v4655_v49 = vpop.f32.mrb[0].mxu1 }
 0x2f5   : > { %v3803_v32 = vadd.f32 %v4655_v49, %v4309_v17  ;;  %v3611_v12 = vpop.f32.mrb[1].mxu1 }
 0x2f6   : > { %v3801_v38 = vadd.f32 %v4309_v17, %v3611_v12  ;;  %v4656_v0 = vpop.f32.mrb[2].mxu1 }
 0x2f7   : > { %v3811_v40 = vadd.f32 %v3803_v32, %v3788_v13  ;;  %v3804_v14 = vadd.f32 %v4656_v0, %v4309_v17  ;;  %v3614_v31 = vpop.f32.mrb[3].mxu1 }
 0x2f8   : > { %v3809_v16 = vadd.f32 %v3801_v38, %v3786_v28  ;;  %v3802_v22 = vadd.f32 %v4309_v17, %v3614_v31 }
 0x2f9   : > { %v3819_v59 = vmax.f32 %v3811_v40, 0.0  ;;  %v3812_v10 = vadd.f32 %v3804_v14, %v3789_v43 }
 0x2fa   : > { %v3817_v35 = vmax.f32 %v3809_v16, 0.0  ;;  %v3810_v39 = vadd.f32 %v3802_v22, %v3787_v21 }
 0x2fb   : > { %v4331_v24 = vpack.c.bf16 %v3819_v59, %v3819_v59  ;;  %v3820_v25 = vmax.f32 %v3812_v10, 0.0 }
 0x2fc   : > { %v4329_v36 = vpack.c.bf16 %v3817_v35, %v3817_v35  ;;  %v3818_v34 = vmax.f32 %v3810_v39, 0.0  ;;  %v4659_v30 = vpop.f32.mrb[4].mxu1 }
 0x2fd   : > { %3859 = vst.msk [vmem:[%s5787_s11 + $0x8] sm:$0xf] %vm1859_vm7, %v4331_v24  ;;  %v4332_v37 = vpack.c.bf16 %v3820_v25, %v3820_v25  ;;  %v3807_v56 = vadd.f32 %v4659_v30, %v4309_v17  ;;  %v3627_v58 = vpop.f32.mrb[5].mxu1 }
 0x2fe   : > { %3857 = vst.msk [vmem:[%s5787_s11] sm:$0xf] %vm1859_vm7, %v4329_v36  ;;  %v4330_v2 = vpack.c.bf16 %v3818_v34, %v3818_v34  ;;  %v3805_v26 = vadd.f32 %v4309_v17, %v3627_v58  ;;  %v4660_v42 = vpop.f32.mrb[6].mxu1 }
 0x2ff   : > { %3860 = vst.msk [vmem:[%s5787_s11 + $0xc] sm:$0xf] %vm1859_vm7, %v4332_v37  ;;  %v3815_v27 = vadd.f32 %v3807_v56, %v3792_v47  ;;  %v3808_v46 = vadd.f32 %v4660_v42, %v4309_v17  ;;  %v3630_v15 = vpop.f32.mrb[7].mxu1 }
 0x300   : > { %3858 = vst.msk [vmem:[%s5787_s11 + $0x4] sm:$0xf] %vm1859_vm7, %v4330_v2  ;;  %v3813_v61 = vadd.f32 %v3805_v26, %v3790_v52  ;;  %v3806_v48 = vadd.f32 %v4309_v17, %v3630_v15 }
 0x301   : > { %v3823_v20 = vmax.f32 %v3815_v27, 0.0  ;;  %v3816_v4 = vadd.f32 %v3808_v46, %v3793_v29 }
 0x302   : > { %v3821_v1 = vmax.f32 %v3813_v61, 0.0  ;;  %v3814_v19 = vadd.f32 %v3806_v48, %v3791_v45 }
 0x303   : > { %v4335_v41 = vpack.c.bf16 %v3823_v20, %v3823_v20  ;;  %v3824_v51 = vmax.f32 %v3816_v4, 0.0 }
 0x304   : > { %v4333_v57 = vpack.c.bf16 %v3821_v1, %v3821_v1  ;;  %v3822_v60 = vmax.f32 %v3814_v19, 0.0 }
 0x305   : > { %3863 = vst.msk [vmem:[%s5787_s11 + $0x18] sm:$0xf] %vm1859_vm7, %v4335_v41  ;;  %v4336_v3 = vpack.c.bf16 %v3824_v51, %v3824_v51 }
 0x306   : > { %3861 = vst.msk [vmem:[%s5787_s11 + $0x10] sm:$0xf] %vm1859_vm7, %v4333_v57  ;;  %v4334_v5 = vpack.c.bf16 %v3822_v60, %v3822_v60 }
 0x307   : > { %3864 = vst.msk [vmem:[%s5787_s11 + $0x1c] sm:$0xf] %vm1859_vm7, %v4336_v3 }
 0x308   : > { %3862 = vst.msk [vmem:[%s5787_s11 + $0x14] sm:$0xf] %vm1859_vm7, %v4334_v5 }
 0x309 PF: > { %s15_s18 = sadd.s32 1, %s4865_s18  }
 0x30a   : > { %p12_p4 = scmp.ge.s32.totalorder %s15_s18, 4  }
 0x30c   :  { %14 = sbr.rel (!%p12_p4) target bundleno = 1 (0x1), region = 90 }

</bundles_post_ra>
